<compile_context>
chip_gen: v5e
topology: v5e:2x2
jax: 0.10.0
libtpu: 0.0.40
codegen_flags: <defaults>
</compile_context>

<pallas_src>
import functools

import jax
import jax.numpy as jnp
from jax.experimental import pallas as pl
from jax.experimental.pallas import tpu as pltpu


def decomposable_attention_kernel(
    x_ref,
    wf1_ref, bf1_ref, wf2_ref, bf2_ref,
    wg1a_ref, wg1b_ref, bg1_ref, wg2_ref, bg2_ref,
    wh1a_ref, wh1b_ref, bh1_ref, wh2_ref, bh2_ref,
    wfin_ref, bfin_ref,
    out_ref,
    *, lp,
):
    tb, L, D = x_ref.shape            # x rows [0:lp) = premise, [lp:L) = hypothesis
    lh = L - lp

    x = x_ref[...]                    # (tb, L, D)
    x2 = x.reshape(tb * L, D)         # fold batch into the matmul M dimension

    def softmax_last(s):
        m = jnp.max(s, axis=-1, keepdims=True)
        e = jnp.exp(s - m)
        # approx reciprocal lowers to the EUP slot; final log-softmax is exact.
        return e * pl.reciprocal(jnp.sum(e, axis=-1, keepdims=True), approx=True)

    # ----- Attend: one fused F-MLP over prem+hypo rows of all tb examples ----
    f1 = jnp.maximum(
        jnp.dot(x2, wf1_ref[...], preferred_element_type=jnp.float32)
        + bf1_ref[...], 0.0)
    f2 = jnp.maximum(
        jnp.dot(f1, wf2_ref[...], preferred_element_type=jnp.float32)
        + bf2_ref[...], 0.0)
    f3 = f2.reshape(tb, L, D)
    f_prem, f_hypo = f3[:, :lp, :], f3[:, lp:, :]
    prem, hypo = x[:, :lp, :], x[:, lp:, :]

    # e_ij contracted once; e_ji is just its transpose (XLU, not a second MXU pass).
    e_ph = jnp.einsum("bpd,bhd->bph", f_prem, f_hypo,
                      preferred_element_type=jnp.float32)   # (tb, Lp, Lh)
    e_hp = jnp.swapaxes(e_ph, 1, 2)                          # (tb, Lh, Lp)

    beta_i = jnp.einsum("bph,bhd->bpd", softmax_last(e_ph), hypo,
                        preferred_element_type=jnp.float32)  # (tb, Lp, D)
    alpha_j = jnp.einsum("bhp,bpd->bhd", softmax_last(e_hp), prem,
                         preferred_element_type=jnp.float32)  # (tb, Lh, D)

    # ----- Compare: split-weight G1 per half; no sublane concat, no g3 slices -
    def g_mlp(a2, att2):
        g1 = jnp.maximum(
            jnp.dot(a2, wg1a_ref[...], preferred_element_type=jnp.float32)
            + jnp.dot(att2, wg1b_ref[...], preferred_element_type=jnp.float32)
            + bg1_ref[...], 0.0)
        return jnp.maximum(
            jnp.dot(g1, wg2_ref[...], preferred_element_type=jnp.float32)
            + bg2_ref[...], 0.0)

    g_p = g_mlp(prem.reshape(tb * lp, D), beta_i.reshape(tb * lp, D))
    g_h = g_mlp(hypo.reshape(tb * lh, D), alpha_j.reshape(tb * lh, D))

    # ----- Aggregate ----------------------------------------------------------
    v1 = jnp.sum(g_p.reshape(tb, lp, D), axis=1)    # (tb, D)
    v2 = jnp.sum(g_h.reshape(tb, lh, D), axis=1)    # (tb, D)

    # Split-weight H1 replaces concat([v1, v2], -1) @ W_H1.T
    h1 = jnp.maximum(
        jnp.dot(v1, wh1a_ref[...], preferred_element_type=jnp.float32)
        + jnp.dot(v2, wh1b_ref[...], preferred_element_type=jnp.float32)
        + bh1_ref[...], 0.0)
    h2 = jnp.maximum(
        jnp.dot(h1, wh2_ref[...], preferred_element_type=jnp.float32)
        + bh2_ref[...], 0.0)

    # ----- Final layer: Linear + log_softmax over lane-padded logits ----------
    # Padded label columns have zero weights and a -1e9 bias -> exp() == 0,
    # so the log-softmax over real labels is exact.
    logits = jnp.dot(h2, wfin_ref[...],
                     preferred_element_type=jnp.float32) + bfin_ref[...]  # (tb, NLpad)
    m = jnp.max(logits, axis=-1, keepdims=True)
    lse = m + jnp.log(jnp.sum(jnp.exp(logits - m), axis=-1, keepdims=True))
    out_ref[...] = logits - lse


def _select_tiling(B, L, D, nl_pad):
    """Generation-aware batch tile and VMEM limit.

    v5e/v6e (1 TC, 128 MiB VMEM): aim for a single giant grid step.
    v7x (2 TCs, 64 MiB VMEM): keep >= 2 "parallel" steps so both cores work,
    and size tb against the smaller VMEM budget.
    """
    try:
        kind = jax.devices()[0].device_kind.lower()
    except Exception:
        kind = ""
    two_tc = ("v7" in kind) or ("7x" in kind)

    try:
        vmem_phys = int(pltpu.get_tpu_info().vmem_capacity_bytes)
    except Exception:
        vmem_phys = 64 * 1024 * 1024          # conservative (v7x physical)
    vmem_limit = min(int(0.75 * vmem_phys), 100 * 1024 * 1024)

    # Conservative per-example f32 footprint: pipelined x/out blocks plus the
    # (L, D) and lane-padded (L, 128) intermediates live inside the body.
    per_example = 4 * (2 * L * D + 8 * L * D + 2 * L * 128 + 2 * nl_pad)
    budget = vmem_limit // 2                  # headroom for compiler scratch
    tb_cap = max(8, (budget // per_example) // 8 * 8)

    n_steps = 2 if two_tc else 1              # v7x: feed both TensorCores
    tb_want = -(-B // n_steps)                # ceil(B / n_steps)
    tb_want = -(-tb_want // 8) * 8            # round up to sublane multiple
    tb = max(8, min(tb_cap, tb_want))
    return tb, vmem_limit


def decomposable_attention(prem_emb, hypo_emb, params, num_labels):
    B, Lp, D = prem_emb.shape
    _, Lh, _ = hypo_emb.shape
    # TODO(synk): for ragged / non-8-multiple sequence lengths, pad on the host
    # and mask padded key positions to -inf before softmax (and exclude them
    # from the v1/v2 sums).
    assert Lp % 8 == 0 and Lh % 8 == 0, "pad Lp/Lh to multiples of 8 on host"
    L = Lp + Lh
    NLpad = max(128, pl.cdiv(num_labels, 128) * 128)   # lane-dense output width

    tb, vmem_limit = _select_tiling(B, L, D, NLpad)
    B_pad = pl.cdiv(B, tb) * tb

    # Stack prem/hypo along the sequence axis once on the host so the
    # shared-weight F MLP sees a single operand per block.
    x = jnp.concatenate([prem_emb, hypo_emb], axis=1)        # (B, L, D)
    if B_pad != B:
        x = jnp.pad(x, ((0, B_pad - B), (0, 0), (0, 0)))

    # Host-side weight prep: transpose to (in, out), split the 2D-input
    # weights into halves, pad the final layer to a lane-dense width.
    # TODO(synk): optional bf16 cast of x / weight matrices (f32 accumulation)
    # for the full-rate MXU path on v6e/v7x; needs a looser test tolerance.
    p = params
    wf1, bf1 = p["W_F1"].T, p["b_F1"]
    wf2, bf2 = p["W_F2"].T, p["b_F2"]
    wg1a, wg1b, bg1 = p["W_G1"][:, :D].T, p["W_G1"][:, D:].T, p["b_G1"]
    wg2, bg2 = p["W_G2"].T, p["b_G2"]
    wh1a, wh1b, bh1 = p["W_H1"][:, :D].T, p["W_H1"][:, D:].T, p["b_H1"]
    wh2, bh2 = p["W_H2"].T, p["b_H2"]
    wfin = jnp.zeros((D, NLpad), jnp.float32).at[:, :num_labels].set(p["W_fin"].T)
    bfin = jnp.full((1, NLpad), -1e9, jnp.float32).at[:, :num_labels].set(p["b_fin"])

    weights = [wf1, bf1, wf2, bf2,
               wg1a, wg1b, bg1, wg2, bg2,
               wh1a, wh1b, bh1, wh2, bh2,
               wfin, bfin]

    # Advisory cost estimate so XLA schedules neighbours around this call.
    flops = int(2 * B_pad * (
        2 * L * D * D            # F MLP
        + 3 * Lp * Lh * D        # scores + two attention-weighted sums
        + L * 3 * D * D          # G MLP (2D-in layer + D-in layer)
        + 3 * D * D              # H MLP
        + D * NLpad))            # final linear
    cost = pl.CostEstimate(
        flops=flops,
        transcendentals=int(B_pad * (2 * Lp * Lh + NLpad)),
        bytes_accessed=int(4 * (x.size + sum(int(w.size) for w in weights)
                                + B_pad * NLpad)),
    )

    def build(single_buffer_weights):
        def weight_spec(shape):
            ndim = len(shape)
            idx = lambda b, _n=ndim: (0,) * _n
            if single_buffer_weights:
                # Constant-index blocks: one buffer is enough (never re-fetched).
                return pl.BlockSpec(shape, idx, pipeline_mode=pl.Buffered(1))
            return pl.BlockSpec(shape, idx)

        in_specs = [pl.BlockSpec((tb, L, D), lambda b: (b, 0, 0))]
        in_specs += [weight_spec(w.shape) for w in weights]

        return pl.pallas_call(
            functools.partial(decomposable_attention_kernel, lp=Lp),
            out_shape=jax.ShapeDtypeStruct((B_pad, NLpad), jnp.float32),
            grid_spec=pltpu.PrefetchScalarGridSpec(
                num_scalar_prefetch=0,
                grid=(B_pad // tb,),
                in_specs=in_specs,
                out_specs=pl.BlockSpec((tb, NLpad), lambda b: (b, 0)),
            ),
            compiler_params=pltpu.CompilerParams(
                dimension_semantics=("parallel",),
                vmem_limit_bytes=vmem_limit),
            cost_estimate=cost,
        )

    try:
        out = build(True)(x, *weights)
    except Exception:
        # Fallback for jax versions without BlockSpec(pipeline_mode=...).
        out = build(False)(x, *weights)

    return out[:B, :num_labels]


def init_params(key, hidden_dim, num_labels, para_init=0.01):
    """Deterministic normal(0, para_init) init, matching the module's shapes."""
    D = hidden_dim
    shapes = {
        # mlp_F: Linear(D, D), Linear(D, D)
        "W_F1": (D, D), "b_F1": (1, D),
        "W_F2": (D, D), "b_F2": (1, D),
        # mlp_G: Linear(2D, D), Linear(D, D)
        "W_G1": (D, 2 * D), "b_G1": (1, D),
        "W_G2": (D, D), "b_G2": (1, D),
        # mlp_H: Linear(2D, D), Linear(D, D)
        "W_H1": (D, 2 * D), "b_H1": (1, D),
        "W_H2": (D, D), "b_H2": (1, D),
        # linear_final: Linear(D, num_labels)
        "W_fin": (num_labels, D), "b_fin": (1, num_labels),
    }
    params = {}
    keys = jax.random.split(key, len(shapes))
    for k, (name, shape) in zip(keys, sorted(shapes.items())):
        params[name] = para_init * jax.random.normal(k, shape, jnp.float32)
    return params


def reference_forward(prem, hypo, params):
    """Pure-JAX reference of the PyTorch forward (eval-mode dropout)."""
    def mlp(x, w1, b1, w2, b2):
        h = jnp.maximum(x @ w1.T + b1, 0.0)
        return jnp.maximum(h @ w2.T + b2, 0.0)

    p = params
    f_p = mlp(prem, p["W_F1"], p["b_F1"], p["W_F2"], p["b_F2"])
    f_h = mlp(hypo, p["W_F1"], p["b_F1"], p["W_F2"], p["b_F2"])
    e = jnp.einsum("bpd,bhd->bph", f_p, f_h)
    beta = jax.nn.softmax(e, axis=-1)
    beta_i = jnp.einsum("bph,bhd->bpd", beta, hypo)
    alpha = jax.nn.softmax(jnp.swapaxes(e, 1, 2), axis=-1)
    alpha_j = jnp.einsum("bhp,bpd->bhd", alpha, prem)
    c1 = mlp(jnp.concatenate([prem, beta_i], -1),
             p["W_G1"], p["b_G1"], p["W_G2"], p["b_G2"])
    c2 = mlp(jnp.concatenate([hypo, alpha_j], -1),
             p["W_G1"], p["b_G1"], p["W_G2"], p["b_G2"])
    v = jnp.concatenate([c1.sum(1), c2.sum(1)], -1)
    y = mlp(v, p["W_H1"], p["b_H1"], p["W_H2"], p["b_H2"])
    logits = y @ p["W_fin"].T + p["b_fin"]
    return jax.nn.log_softmax(logits, axis=-1)


if __name__ == "__main__":
    B, Lp, Lh, D, num_labels = 16, 8, 8, 32, 3
    key = jax.random.PRNGKey(0)
    k_prem, k_hypo, k_params = jax.random.split(key, 3)

    prem_emb = jax.random.normal(k_prem, (B, Lp, D), jnp.float32)
    hypo_emb = jax.random.normal(k_hypo, (B, Lh, D), jnp.float32)
    params = init_params(k_params, D, num_labels, para_init=0.01)

    out = decomposable_attention(prem_emb, hypo_emb, params, num_labels)
    out = jax.block_until_ready(out)

    ref = reference_forward(prem_emb, hypo_emb, params)
    assert out.shape == (B, num_labels)
    assert jnp.allclose(out, ref, atol=1e-4, rtol=1e-4)
    print("KERNEL_OK")
</pallas_src>

<mosaic_0001>
module attributes {stable_mosaic.version = 11 : i64} {
  func.func @decomposable_attention_kernel(%arg0: i32, %arg1: memref<16x16x32xf32, #tpu.memory_space<vmem>>, %arg2: memref<32x32xf32, #tpu.memory_space<vmem>>, %arg3: memref<1x32xf32, #tpu.memory_space<vmem>>, %arg4: memref<32x32xf32, #tpu.memory_space<vmem>>, %arg5: memref<1x32xf32, #tpu.memory_space<vmem>>, %arg6: memref<32x32xf32, #tpu.memory_space<vmem>>, %arg7: memref<32x32xf32, #tpu.memory_space<vmem>>, %arg8: memref<1x32xf32, #tpu.memory_space<vmem>>, %arg9: memref<32x32xf32, #tpu.memory_space<vmem>>, %arg10: memref<1x32xf32, #tpu.memory_space<vmem>>, %arg11: memref<32x32xf32, #tpu.memory_space<vmem>>, %arg12: memref<32x32xf32, #tpu.memory_space<vmem>>, %arg13: memref<1x32xf32, #tpu.memory_space<vmem>>, %arg14: memref<32x32xf32, #tpu.memory_space<vmem>>, %arg15: memref<1x32xf32, #tpu.memory_space<vmem>>, %arg16: memref<32x128xf32, #tpu.memory_space<vmem>>, %arg17: memref<1x128xf32, #tpu.memory_space<vmem>>, %arg18: memref<16x128xf32, #tpu.memory_space<vmem>>) attributes {dimension_semantics = [#tpu.dimension_semantics<parallel>], iteration_bounds = array<i64: 1>, scalar_prefetch = 0 : i64, scratch_operands = 0 : i64, tpu.core_type = #tpu.core_type<tc>, window_params = [{transform_indices = @transform_0, window_bounds = array<i64: 16, 16, 32>}, {pipeline_mode = #tpu.pipeline_mode<synchronous>, transform_indices = @transform_1, window_bounds = array<i64: 32, 32>}, {pipeline_mode = #tpu.pipeline_mode<synchronous>, transform_indices = @transform_2, window_bounds = array<i64: 1, 32>}, {pipeline_mode = #tpu.pipeline_mode<synchronous>, transform_indices = @transform_3, window_bounds = array<i64: 32, 32>}, {pipeline_mode = #tpu.pipeline_mode<synchronous>, transform_indices = @transform_4, window_bounds = array<i64: 1, 32>}, {pipeline_mode = #tpu.pipeline_mode<synchronous>, transform_indices = @transform_5, window_bounds = array<i64: 32, 32>}, {pipeline_mode = #tpu.pipeline_mode<synchronous>, transform_indices = @transform_6, window_bounds = array<i64: 32, 32>}, {pipeline_mode = #tpu.pipeline_mode<synchronous>, transform_indices = @transform_7, window_bounds = array<i64: 1, 32>}, {pipeline_mode = #tpu.pipeline_mode<synchronous>, transform_indices = @transform_8, window_bounds = array<i64: 32, 32>}, {pipeline_mode = #tpu.pipeline_mode<synchronous>, transform_indices = @transform_9, window_bounds = array<i64: 1, 32>}, {pipeline_mode = #tpu.pipeline_mode<synchronous>, transform_indices = @transform_10, window_bounds = array<i64: 32, 32>}, {pipeline_mode = #tpu.pipeline_mode<synchronous>, transform_indices = @transform_11, window_bounds = array<i64: 32, 32>}, {pipeline_mode = #tpu.pipeline_mode<synchronous>, transform_indices = @transform_12, window_bounds = array<i64: 1, 32>}, {pipeline_mode = #tpu.pipeline_mode<synchronous>, transform_indices = @transform_13, window_bounds = array<i64: 32, 32>}, {pipeline_mode = #tpu.pipeline_mode<synchronous>, transform_indices = @transform_14, window_bounds = array<i64: 1, 32>}, {pipeline_mode = #tpu.pipeline_mode<synchronous>, transform_indices = @transform_15, window_bounds = array<i64: 32, 128>}, {pipeline_mode = #tpu.pipeline_mode<synchronous>, transform_indices = @transform_16, window_bounds = array<i64: 1, 128>}, {transform_indices = @transform_17, window_bounds = array<i64: 16, 128>}]} {
    %c0 = arith.constant 0 : index
    %c0_0 = arith.constant 0 : index
    %c0_1 = arith.constant 0 : index
    %0 = vector.load %arg1[%c0, %c0_0, %c0_1] : memref<16x16x32xf32, #tpu.memory_space<vmem>>, vector<16x16x32xf32>
    %1 = vector.shape_cast %0 : vector<16x16x32xf32> to vector<256x32xf32>
    %c0_2 = arith.constant 0 : index
    %c0_3 = arith.constant 0 : index
    %2 = vector.load %arg2[%c0_2, %c0_3] : memref<32x32xf32, #tpu.memory_space<vmem>>, vector<32x32xf32>
    %cst = arith.constant dense<0.000000e+00> : vector<256x32xf32>
    %3 = tpu.matmul %1, %2, %cst {dimension_numbers = #tpu.dot_dimension_numbers<[1], [0], [0], [1], [0, 0, 1, 1], [], []>} : vector<256x32xf32>, vector<32x32xf32>, vector<256x32xf32> -> vector<256x32xf32>
    %c0_4 = arith.constant 0 : index
    %c0_5 = arith.constant 0 : index
    %4 = vector.load %arg3[%c0_4, %c0_5] : memref<1x32xf32, #tpu.memory_space<vmem>>, vector<1x32xf32>
    %5 = vector.broadcast %4 : vector<1x32xf32> to vector<256x32xf32>
    %6 = arith.addf %3, %5 : vector<256x32xf32>
    %cst_6 = arith.constant 0.000000e+00 : f32
    %7 = vector.broadcast %cst_6 : f32 to vector<256x32xf32>
    %8 = arith.maximumf %6, %7 : vector<256x32xf32>
    %c0_7 = arith.constant 0 : index
    %c0_8 = arith.constant 0 : index
    %9 = vector.load %arg4[%c0_7, %c0_8] : memref<32x32xf32, #tpu.memory_space<vmem>>, vector<32x32xf32>
    %cst_9 = arith.constant dense<0.000000e+00> : vector<256x32xf32>
    %10 = tpu.matmul %8, %9, %cst_9 {dimension_numbers = #tpu.dot_dimension_numbers<[1], [0], [0], [1], [0, 0, 1, 1], [], []>} : vector<256x32xf32>, vector<32x32xf32>, vector<256x32xf32> -> vector<256x32xf32>
    %c0_10 = arith.constant 0 : index
    %c0_11 = arith.constant 0 : index
    %11 = vector.load %arg5[%c0_10, %c0_11] : memref<1x32xf32, #tpu.memory_space<vmem>>, vector<1x32xf32>
    %12 = vector.broadcast %11 : vector<1x32xf32> to vector<256x32xf32>
    %13 = arith.addf %10, %12 : vector<256x32xf32>
    %cst_12 = arith.constant 0.000000e+00 : f32
    %14 = vector.broadcast %cst_12 : f32 to vector<256x32xf32>
    %15 = arith.maximumf %13, %14 : vector<256x32xf32>
    %16 = vector.shape_cast %15 : vector<256x32xf32> to vector<16x16x32xf32>
    %17 = vector.extract_strided_slice %16 {offsets = [0, 0, 0], sizes = [16, 8, 32], strides = [1, 1, 1]} : vector<16x16x32xf32> to vector<16x8x32xf32>
    %18 = vector.extract_strided_slice %16 {offsets = [0, 8, 0], sizes = [16, 8, 32], strides = [1, 1, 1]} : vector<16x16x32xf32> to vector<16x8x32xf32>
    %19 = vector.extract_strided_slice %0 {offsets = [0, 0, 0], sizes = [16, 8, 32], strides = [1, 1, 1]} : vector<16x16x32xf32> to vector<16x8x32xf32>
    %20 = vector.extract_strided_slice %0 {offsets = [0, 8, 0], sizes = [16, 8, 32], strides = [1, 1, 1]} : vector<16x16x32xf32> to vector<16x8x32xf32>
    "tpu.trace_start"() <{level = 10 : i32, message = "bpd,bhd->bph"}> : () -> ()
    %cst_13 = arith.constant dense<0.000000e+00> : vector<16x8x8xf32>
    %21 = tpu.matmul %17, %18, %cst_13 {dimension_numbers = #tpu.dot_dimension_numbers<[2], [2], [1], [1], [0, 0, 0, 1, 1, 1], [0], [0]>} : vector<16x8x32xf32>, vector<16x8x32xf32>, vector<16x8x8xf32> -> vector<16x8x8xf32>
    "tpu.trace_stop"() : () -> ()
    %22 = tpu.transpose %21, [0, 2, 1] : vector<16x8x8xf32> -> vector<16x8x8xf32>
    %cst_14 = arith.constant dense<0xFF800000> : vector<16x8xf32>
    %23 = vector.multi_reduction <maximumf>, %21, %cst_14 [2] : vector<16x8x8xf32> to vector<16x8xf32>
    %24 = vector.shape_cast %23 : vector<16x8xf32> to vector<16x8x1xf32>
    %25 = vector.broadcast %24 : vector<16x8x1xf32> to vector<16x8x8xf32>
    %26 = arith.subf %21, %25 : vector<16x8x8xf32>
    %27 = math.exp %26 : vector<16x8x8xf32>
    %cst_15 = arith.constant dense<0.000000e+00> : vector<16x8xf32>
    %28 = vector.multi_reduction <add>, %27, %cst_15 [2] : vector<16x8x8xf32> to vector<16x8xf32>
    %29 = vector.shape_cast %28 : vector<16x8xf32> to vector<16x8x1xf32>
    %30 = tpu.reciprocal %29 {approx = true} : vector<16x8x1xf32> -> vector<16x8x1xf32>
    %31 = vector.broadcast %30 : vector<16x8x1xf32> to vector<16x8x8xf32>
    %32 = arith.mulf %27, %31 : vector<16x8x8xf32>
    "tpu.trace_start"() <{level = 10 : i32, message = "bph,bhd->bpd"}> : () -> ()
    %cst_16 = arith.constant dense<0.000000e+00> : vector<16x8x32xf32>
    %33 = tpu.matmul %32, %20, %cst_16 {dimension_numbers = #tpu.dot_dimension_numbers<[2], [1], [1], [2], [0, 0, 0, 1, 1, 2], [0], [0]>} : vector<16x8x8xf32>, vector<16x8x32xf32>, vector<16x8x32xf32> -> vector<16x8x32xf32>
    "tpu.trace_stop"() : () -> ()
    %cst_17 = arith.constant dense<0xFF800000> : vector<16x8xf32>
    %34 = vector.multi_reduction <maximumf>, %22, %cst_17 [2] : vector<16x8x8xf32> to vector<16x8xf32>
    %35 = vector.shape_cast %34 : vector<16x8xf32> to vector<16x8x1xf32>
    %36 = vector.broadcast %35 : vector<16x8x1xf32> to vector<16x8x8xf32>
    %37 = arith.subf %22, %36 : vector<16x8x8xf32>
    %38 = math.exp %37 : vector<16x8x8xf32>
    %cst_18 = arith.constant dense<0.000000e+00> : vector<16x8xf32>
    %39 = vector.multi_reduction <add>, %38, %cst_18 [2] : vector<16x8x8xf32> to vector<16x8xf32>
    %40 = vector.shape_cast %39 : vector<16x8xf32> to vector<16x8x1xf32>
    %41 = tpu.reciprocal %40 {approx = true} : vector<16x8x1xf32> -> vector<16x8x1xf32>
    %42 = vector.broadcast %41 : vector<16x8x1xf32> to vector<16x8x8xf32>
    %43 = arith.mulf %38, %42 : vector<16x8x8xf32>
    "tpu.trace_start"() <{level = 10 : i32, message = "bhp,bpd->bhd"}> : () -> ()
    %cst_19 = arith.constant dense<0.000000e+00> : vector<16x8x32xf32>
    %44 = tpu.matmul %43, %19, %cst_19 {dimension_numbers = #tpu.dot_dimension_numbers<[2], [1], [1], [2], [0, 0, 0, 1, 1, 2], [0], [0]>} : vector<16x8x8xf32>, vector<16x8x32xf32>, vector<16x8x32xf32> -> vector<16x8x32xf32>
    "tpu.trace_stop"() : () -> ()
    %45 = vector.shape_cast %19 : vector<16x8x32xf32> to vector<128x32xf32>
    %46 = vector.shape_cast %33 : vector<16x8x32xf32> to vector<128x32xf32>
    %c0_20 = arith.constant 0 : index
    %c0_21 = arith.constant 0 : index
    %47 = vector.load %arg6[%c0_20, %c0_21] : memref<32x32xf32, #tpu.memory_space<vmem>>, vector<32x32xf32>
    %cst_22 = arith.constant dense<0.000000e+00> : vector<128x32xf32>
    %48 = tpu.matmul %45, %47, %cst_22 {dimension_numbers = #tpu.dot_dimension_numbers<[1], [0], [0], [1], [0, 0, 1, 1], [], []>} : vector<128x32xf32>, vector<32x32xf32>, vector<128x32xf32> -> vector<128x32xf32>
    %c0_23 = arith.constant 0 : index
    %c0_24 = arith.constant 0 : index
    %49 = vector.load %arg7[%c0_23, %c0_24] : memref<32x32xf32, #tpu.memory_space<vmem>>, vector<32x32xf32>
    %cst_25 = arith.constant dense<0.000000e+00> : vector<128x32xf32>
    %50 = tpu.matmul %46, %49, %cst_25 {dimension_numbers = #tpu.dot_dimension_numbers<[1], [0], [0], [1], [0, 0, 1, 1], [], []>} : vector<128x32xf32>, vector<32x32xf32>, vector<128x32xf32> -> vector<128x32xf32>
    %51 = arith.addf %48, %50 : vector<128x32xf32>
    %c0_26 = arith.constant 0 : index
    %c0_27 = arith.constant 0 : index
    %52 = vector.load %arg8[%c0_26, %c0_27] : memref<1x32xf32, #tpu.memory_space<vmem>>, vector<1x32xf32>
    %53 = vector.broadcast %52 : vector<1x32xf32> to vector<128x32xf32>
    %54 = arith.addf %51, %53 : vector<128x32xf32>
    %cst_28 = arith.constant 0.000000e+00 : f32
    %55 = vector.broadcast %cst_28 : f32 to vector<128x32xf32>
    %56 = arith.maximumf %54, %55 : vector<128x32xf32>
    %c0_29 = arith.constant 0 : index
    %c0_30 = arith.constant 0 : index
    %57 = vector.load %arg9[%c0_29, %c0_30] : memref<32x32xf32, #tpu.memory_space<vmem>>, vector<32x32xf32>
    %cst_31 = arith.constant dense<0.000000e+00> : vector<128x32xf32>
    %58 = tpu.matmul %56, %57, %cst_31 {dimension_numbers = #tpu.dot_dimension_numbers<[1], [0], [0], [1], [0, 0, 1, 1], [], []>} : vector<128x32xf32>, vector<32x32xf32>, vector<128x32xf32> -> vector<128x32xf32>
    %c0_32 = arith.constant 0 : index
    %c0_33 = arith.constant 0 : index
    %59 = vector.load %arg10[%c0_32, %c0_33] : memref<1x32xf32, #tpu.memory_space<vmem>>, vector<1x32xf32>
    %60 = vector.broadcast %59 : vector<1x32xf32> to vector<128x32xf32>
    %61 = arith.addf %58, %60 : vector<128x32xf32>
    %cst_34 = arith.constant 0.000000e+00 : f32
    %62 = vector.broadcast %cst_34 : f32 to vector<128x32xf32>
    %63 = arith.maximumf %61, %62 : vector<128x32xf32>
    %64 = vector.shape_cast %20 : vector<16x8x32xf32> to vector<128x32xf32>
    %65 = vector.shape_cast %44 : vector<16x8x32xf32> to vector<128x32xf32>
    %c0_35 = arith.constant 0 : index
    %c0_36 = arith.constant 0 : index
    %66 = vector.load %arg6[%c0_35, %c0_36] : memref<32x32xf32, #tpu.memory_space<vmem>>, vector<32x32xf32>
    %cst_37 = arith.constant dense<0.000000e+00> : vector<128x32xf32>
    %67 = tpu.matmul %64, %66, %cst_37 {dimension_numbers = #tpu.dot_dimension_numbers<[1], [0], [0], [1], [0, 0, 1, 1], [], []>} : vector<128x32xf32>, vector<32x32xf32>, vector<128x32xf32> -> vector<128x32xf32>
    %c0_38 = arith.constant 0 : index
    %c0_39 = arith.constant 0 : index
    %68 = vector.load %arg7[%c0_38, %c0_39] : memref<32x32xf32, #tpu.memory_space<vmem>>, vector<32x32xf32>
    %cst_40 = arith.constant dense<0.000000e+00> : vector<128x32xf32>
    %69 = tpu.matmul %65, %68, %cst_40 {dimension_numbers = #tpu.dot_dimension_numbers<[1], [0], [0], [1], [0, 0, 1, 1], [], []>} : vector<128x32xf32>, vector<32x32xf32>, vector<128x32xf32> -> vector<128x32xf32>
    %70 = arith.addf %67, %69 : vector<128x32xf32>
    %c0_41 = arith.constant 0 : index
    %c0_42 = arith.constant 0 : index
    %71 = vector.load %arg8[%c0_41, %c0_42] : memref<1x32xf32, #tpu.memory_space<vmem>>, vector<1x32xf32>
    %72 = vector.broadcast %71 : vector<1x32xf32> to vector<128x32xf32>
    %73 = arith.addf %70, %72 : vector<128x32xf32>
    %cst_43 = arith.constant 0.000000e+00 : f32
    %74 = vector.broadcast %cst_43 : f32 to vector<128x32xf32>
    %75 = arith.maximumf %73, %74 : vector<128x32xf32>
    %c0_44 = arith.constant 0 : index
    %c0_45 = arith.constant 0 : index
    %76 = vector.load %arg9[%c0_44, %c0_45] : memref<32x32xf32, #tpu.memory_space<vmem>>, vector<32x32xf32>
    %cst_46 = arith.constant dense<0.000000e+00> : vector<128x32xf32>
    %77 = tpu.matmul %75, %76, %cst_46 {dimension_numbers = #tpu.dot_dimension_numbers<[1], [0], [0], [1], [0, 0, 1, 1], [], []>} : vector<128x32xf32>, vector<32x32xf32>, vector<128x32xf32> -> vector<128x32xf32>
    %c0_47 = arith.constant 0 : index
    %c0_48 = arith.constant 0 : index
    %78 = vector.load %arg10[%c0_47, %c0_48] : memref<1x32xf32, #tpu.memory_space<vmem>>, vector<1x32xf32>
    %79 = vector.broadcast %78 : vector<1x32xf32> to vector<128x32xf32>
    %80 = arith.addf %77, %79 : vector<128x32xf32>
    %cst_49 = arith.constant 0.000000e+00 : f32
    %81 = vector.broadcast %cst_49 : f32 to vector<128x32xf32>
    %82 = arith.maximumf %80, %81 : vector<128x32xf32>
    %83 = vector.shape_cast %63 : vector<128x32xf32> to vector<16x8x32xf32>
    %cst_50 = arith.constant dense<0.000000e+00> : vector<16x32xf32>
    %84 = vector.multi_reduction <add>, %83, %cst_50 [1] : vector<16x8x32xf32> to vector<16x32xf32>
    %85 = vector.shape_cast %82 : vector<128x32xf32> to vector<16x8x32xf32>
    %cst_51 = arith.constant dense<0.000000e+00> : vector<16x32xf32>
    %86 = vector.multi_reduction <add>, %85, %cst_51 [1] : vector<16x8x32xf32> to vector<16x32xf32>
    %c0_52 = arith.constant 0 : index
    %c0_53 = arith.constant 0 : index
    %87 = vector.load %arg11[%c0_52, %c0_53] : memref<32x32xf32, #tpu.memory_space<vmem>>, vector<32x32xf32>
    %cst_54 = arith.constant dense<0.000000e+00> : vector<16x32xf32>
    %88 = tpu.matmul %84, %87, %cst_54 {dimension_numbers = #tpu.dot_dimension_numbers<[1], [0], [0], [1], [0, 0, 1, 1], [], []>} : vector<16x32xf32>, vector<32x32xf32>, vector<16x32xf32> -> vector<16x32xf32>
    %c0_55 = arith.constant 0 : index
    %c0_56 = arith.constant 0 : index
    %89 = vector.load %arg12[%c0_55, %c0_56] : memref<32x32xf32, #tpu.memory_space<vmem>>, vector<32x32xf32>
    %cst_57 = arith.constant dense<0.000000e+00> : vector<16x32xf32>
    %90 = tpu.matmul %86, %89, %cst_57 {dimension_numbers = #tpu.dot_dimension_numbers<[1], [0], [0], [1], [0, 0, 1, 1], [], []>} : vector<16x32xf32>, vector<32x32xf32>, vector<16x32xf32> -> vector<16x32xf32>
    %91 = arith.addf %88, %90 : vector<16x32xf32>
    %c0_58 = arith.constant 0 : index
    %c0_59 = arith.constant 0 : index
    %92 = vector.load %arg13[%c0_58, %c0_59] : memref<1x32xf32, #tpu.memory_space<vmem>>, vector<1x32xf32>
    %93 = vector.broadcast %92 : vector<1x32xf32> to vector<16x32xf32>
    %94 = arith.addf %91, %93 : vector<16x32xf32>
    %cst_60 = arith.constant 0.000000e+00 : f32
    %95 = vector.broadcast %cst_60 : f32 to vector<16x32xf32>
    %96 = arith.maximumf %94, %95 : vector<16x32xf32>
    %c0_61 = arith.constant 0 : index
    %c0_62 = arith.constant 0 : index
    %97 = vector.load %arg14[%c0_61, %c0_62] : memref<32x32xf32, #tpu.memory_space<vmem>>, vector<32x32xf32>
    %cst_63 = arith.constant dense<0.000000e+00> : vector<16x32xf32>
    %98 = tpu.matmul %96, %97, %cst_63 {dimension_numbers = #tpu.dot_dimension_numbers<[1], [0], [0], [1], [0, 0, 1, 1], [], []>} : vector<16x32xf32>, vector<32x32xf32>, vector<16x32xf32> -> vector<16x32xf32>
    %c0_64 = arith.constant 0 : index
    %c0_65 = arith.constant 0 : index
    %99 = vector.load %arg15[%c0_64, %c0_65] : memref<1x32xf32, #tpu.memory_space<vmem>>, vector<1x32xf32>
    %100 = vector.broadcast %99 : vector<1x32xf32> to vector<16x32xf32>
    %101 = arith.addf %98, %100 : vector<16x32xf32>
    %cst_66 = arith.constant 0.000000e+00 : f32
    %102 = vector.broadcast %cst_66 : f32 to vector<16x32xf32>
    %103 = arith.maximumf %101, %102 : vector<16x32xf32>
    %c0_67 = arith.constant 0 : index
    %c0_68 = arith.constant 0 : index
    %104 = vector.load %arg16[%c0_67, %c0_68] : memref<32x128xf32, #tpu.memory_space<vmem>>, vector<32x128xf32>
    %cst_69 = arith.constant dense<0.000000e+00> : vector<16x128xf32>
    %105 = tpu.matmul %103, %104, %cst_69 {dimension_numbers = #tpu.dot_dimension_numbers<[1], [0], [0], [1], [0, 0, 1, 1], [], []>} : vector<16x32xf32>, vector<32x128xf32>, vector<16x128xf32> -> vector<16x128xf32>
    %c0_70 = arith.constant 0 : index
    %c0_71 = arith.constant 0 : index
    %106 = vector.load %arg17[%c0_70, %c0_71] : memref<1x128xf32, #tpu.memory_space<vmem>>, vector<1x128xf32>
    %107 = vector.broadcast %106 : vector<1x128xf32> to vector<16x128xf32>
    %108 = arith.addf %105, %107 : vector<16x128xf32>
    %cst_72 = arith.constant dense<0xFF800000> : vector<16xf32>
    %109 = vector.multi_reduction <maximumf>, %108, %cst_72 [1] : vector<16x128xf32> to vector<16xf32>
    %110 = vector.shape_cast %109 : vector<16xf32> to vector<16x1xf32>
    %111 = vector.broadcast %110 : vector<16x1xf32> to vector<16x128xf32>
    %112 = arith.subf %108, %111 : vector<16x128xf32>
    %113 = math.exp %112 : vector<16x128xf32>
    %cst_73 = arith.constant dense<0.000000e+00> : vector<16xf32>
    %114 = vector.multi_reduction <add>, %113, %cst_73 [1] : vector<16x128xf32> to vector<16xf32>
    %115 = vector.shape_cast %114 : vector<16xf32> to vector<16x1xf32>
    %116 = math.log %115 : vector<16x1xf32>
    %117 = arith.addf %110, %116 : vector<16x1xf32>
    %118 = vector.broadcast %117 : vector<16x1xf32> to vector<16x128xf32>
    %119 = arith.subf %108, %118 : vector<16x128xf32>
    %c0_74 = arith.constant 0 : index
    %c0_75 = arith.constant 0 : index
    %120 = vector.load %arg18[%c0_74, %c0_75] : memref<16x128xf32, #tpu.memory_space<vmem>>, vector<16x128xf32>
    tpu.vector_store %arg18[%c0_74, %c0_75], %119 {strides = array<i32>} : memref<16x128xf32, #tpu.memory_space<vmem>>, vector<16x128xf32>,
    return
  }
  func.func @transform_0(%arg0: i32) -> (i32, i32, i32) {
    %c0_i32 = arith.constant 0 : i32
    %c0_i32_0 = arith.constant 0 : i32
    %c0_i32_1 = arith.constant 0 : i32
    return %arg0, %c0_i32, %c0_i32_0 : i32, i32, i32
  }
  func.func @transform_1(%arg0: i32) -> (i32, i32) {
    %c0_i32 = arith.constant 0 : i32
    %c0_i32_0 = arith.constant 0 : i32
    %c0_i32_1 = arith.constant 0 : i32
    return %c0_i32, %c0_i32_0 : i32, i32
  }
  func.func @transform_2(%arg0: i32) -> (i32, i32) {
    %c0_i32 = arith.constant 0 : i32
    %c0_i32_0 = arith.constant 0 : i32
    %c0_i32_1 = arith.constant 0 : i32
    return %c0_i32, %c0_i32_0 : i32, i32
  }
  func.func @transform_3(%arg0: i32) -> (i32, i32) {
    %c0_i32 = arith.constant 0 : i32
    %c0_i32_0 = arith.constant 0 : i32
    %c0_i32_1 = arith.constant 0 : i32
    return %c0_i32, %c0_i32_0 : i32, i32
  }
  func.func @transform_4(%arg0: i32) -> (i32, i32) {
    %c0_i32 = arith.constant 0 : i32
    %c0_i32_0 = arith.constant 0 : i32
    %c0_i32_1 = arith.constant 0 : i32
    return %c0_i32, %c0_i32_0 : i32, i32
  }
  func.func @transform_5(%arg0: i32) -> (i32, i32) {
    %c0_i32 = arith.constant 0 : i32
    %c0_i32_0 = arith.constant 0 : i32
    %c0_i32_1 = arith.constant 0 : i32
    return %c0_i32, %c0_i32_0 : i32, i32
  }
  func.func @transform_6(%arg0: i32) -> (i32, i32) {
    %c0_i32 = arith.constant 0 : i32
    %c0_i32_0 = arith.constant 0 : i32
    %c0_i32_1 = arith.constant 0 : i32
    return %c0_i32, %c0_i32_0 : i32, i32
  }
  func.func @transform_7(%arg0: i32) -> (i32, i32) {
    %c0_i32 = arith.constant 0 : i32
    %c0_i32_0 = arith.constant 0 : i32
    %c0_i32_1 = arith.constant 0 : i32
    return %c0_i32, %c0_i32_0 : i32, i32
  }
  func.func @transform_8(%arg0: i32) -> (i32, i32) {
    %c0_i32 = arith.constant 0 : i32
    %c0_i32_0 = arith.constant 0 : i32
    %c0_i32_1 = arith.constant 0 : i32
    return %c0_i32, %c0_i32_0 : i32, i32
  }
  func.func @transform_9(%arg0: i32) -> (i32, i32) {
    %c0_i32 = arith.constant 0 : i32
    %c0_i32_0 = arith.constant 0 : i32
    %c0_i32_1 = arith.constant 0 : i32
    return %c0_i32, %c0_i32_0 : i32, i32
  }
  func.func @transform_10(%arg0: i32) -> (i32, i32) {
    %c0_i32 = arith.constant 0 : i32
    %c0_i32_0 = arith.constant 0 : i32
    %c0_i32_1 = arith.constant 0 : i32
    return %c0_i32, %c0_i32_0 : i32, i32
  }
  func.func @transform_11(%arg0: i32) -> (i32, i32) {
    %c0_i32 = arith.constant 0 : i32
    %c0_i32_0 = arith.constant 0 : i32
    %c0_i32_1 = arith.constant 0 : i32
    return %c0_i32, %c0_i32_0 : i32, i32
  }
  func.func @transform_12(%arg0: i32) -> (i32, i32) {
    %c0_i32 = arith.constant 0 : i32
    %c0_i32_0 = arith.constant 0 : i32
    %c0_i32_1 = arith.constant 0 : i32
    return %c0_i32, %c0_i32_0 : i32, i32
  }
  func.func @transform_13(%arg0: i32) -> (i32, i32) {
    %c0_i32 = arith.constant 0 : i32
    %c0_i32_0 = arith.constant 0 : i32
    %c0_i32_1 = arith.constant 0 : i32
    return %c0_i32, %c0_i32_0 : i32, i32
  }
  func.func @transform_14(%arg0: i32) -> (i32, i32) {
    %c0_i32 = arith.constant 0 : i32
    %c0_i32_0 = arith.constant 0 : i32
    %c0_i32_1 = arith.constant 0 : i32
    return %c0_i32, %c0_i32_0 : i32, i32
  }
  func.func @transform_15(%arg0: i32) -> (i32, i32) {
    %c0_i32 = arith.constant 0 : i32
    %c0_i32_0 = arith.constant 0 : i32
    %c0_i32_1 = arith.constant 0 : i32
    return %c0_i32, %c0_i32_0 : i32, i32
  }
  func.func @transform_16(%arg0: i32) -> (i32, i32) {
    %c0_i32 = arith.constant 0 : i32
    %c0_i32_0 = arith.constant 0 : i32
    %c0_i32_1 = arith.constant 0 : i32
    return %c0_i32, %c0_i32_0 : i32, i32
  }
  func.func @transform_17(%arg0: i32) -> (i32, i32) {
    %c0_i32 = arith.constant 0 : i32
    %c0_i32_0 = arith.constant 0 : i32
    return %arg0, %c0_i32 : i32, i32
  }
}

module attributes {stable_mosaic.version = 11 : i64} {
  func.func @decomposable_attention_kernel(%arg0: i32, %arg1: memref<16x16x32xf32, #tpu.memory_space<vmem>>, %arg2: memref<32x32xf32, #tpu.memory_space<vmem>>, %arg3: memref<1x32xf32, #tpu.memory_space<vmem>>, %arg4: memref<32x32xf32, #tpu.memory_space<vmem>>, %arg5: memref<1x32xf32, #tpu.memory_space<vmem>>, %arg6: memref<32x32xf32, #tpu.memory_space<vmem>>, %arg7: memref<32x32xf32, #tpu.memory_space<vmem>>, %arg8: memref<1x32xf32, #tpu.memory_space<vmem>>, %arg9: memref<32x32xf32, #tpu.memory_space<vmem>>, %arg10: memref<1x32xf32, #tpu.memory_space<vmem>>, %arg11: memref<32x32xf32, #tpu.memory_space<vmem>>, %arg12: memref<32x32xf32, #tpu.memory_space<vmem>>, %arg13: memref<1x32xf32, #tpu.memory_space<vmem>>, %arg14: memref<32x32xf32, #tpu.memory_space<vmem>>, %arg15: memref<1x32xf32, #tpu.memory_space<vmem>>, %arg16: memref<32x128xf32, #tpu.memory_space<vmem>>, %arg17: memref<1x128xf32, #tpu.memory_space<vmem>>, %arg18: memref<16x128xf32, #tpu.memory_space<vmem>>) attributes {dimension_semantics = [#tpu.dimension_semantics<parallel>], iteration_bounds = array<i64: 1>, scalar_prefetch = 0 : i64, scratch_operands = 0 : i64, tpu.core_type = #tpu.core_type<tc>, window_params = [{transform_indices = @transform_0, window_bounds = array<i64: 16, 16, 32>}, {pipeline_mode = #tpu.pipeline_mode<synchronous>, transform_indices = @transform_1, window_bounds = array<i64: 32, 32>}, {pipeline_mode = #tpu.pipeline_mode<synchronous>, transform_indices = @transform_2, window_bounds = array<i64: 1, 32>}, {pipeline_mode = #tpu.pipeline_mode<synchronous>, transform_indices = @transform_3, window_bounds = array<i64: 32, 32>}, {pipeline_mode = #tpu.pipeline_mode<synchronous>, transform_indices = @transform_4, window_bounds = array<i64: 1, 32>}, {pipeline_mode = #tpu.pipeline_mode<synchronous>, transform_indices = @transform_5, window_bounds = array<i64: 32, 32>}, {pipeline_mode = #tpu.pipeline_mode<synchronous>, transform_indices = @transform_6, window_bounds = array<i64: 32, 32>}, {pipeline_mode = #tpu.pipeline_mode<synchronous>, transform_indices = @transform_7, window_bounds = array<i64: 1, 32>}, {pipeline_mode = #tpu.pipeline_mode<synchronous>, transform_indices = @transform_8, window_bounds = array<i64: 32, 32>}, {pipeline_mode = #tpu.pipeline_mode<synchronous>, transform_indices = @transform_9, window_bounds = array<i64: 1, 32>}, {pipeline_mode = #tpu.pipeline_mode<synchronous>, transform_indices = @transform_10, window_bounds = array<i64: 32, 32>}, {pipeline_mode = #tpu.pipeline_mode<synchronous>, transform_indices = @transform_11, window_bounds = array<i64: 32, 32>}, {pipeline_mode = #tpu.pipeline_mode<synchronous>, transform_indices = @transform_12, window_bounds = array<i64: 1, 32>}, {pipeline_mode = #tpu.pipeline_mode<synchronous>, transform_indices = @transform_13, window_bounds = array<i64: 32, 32>}, {pipeline_mode = #tpu.pipeline_mode<synchronous>, transform_indices = @transform_14, window_bounds = array<i64: 1, 32>}, {pipeline_mode = #tpu.pipeline_mode<synchronous>, transform_indices = @transform_15, window_bounds = array<i64: 32, 128>}, {pipeline_mode = #tpu.pipeline_mode<synchronous>, transform_indices = @transform_16, window_bounds = array<i64: 1, 128>}, {transform_indices = @transform_17, window_bounds = array<i64: 16, 128>}]} {
    %c0 = arith.constant 0 : index
    %c0_0 = arith.constant 0 : index
    %c0_1 = arith.constant 0 : index
    %0 = vector.load %arg1[%c0, %c0_0, %c0_1] : memref<16x16x32xf32, #tpu.memory_space<vmem>>, vector<16x16x32xf32>
    %1 = vector.shape_cast %0 : vector<16x16x32xf32> to vector<256x32xf32>
    %c0_2 = arith.constant 0 : index
    %c0_3 = arith.constant 0 : index
    %2 = vector.load %arg2[%c0_2, %c0_3] : memref<32x32xf32, #tpu.memory_space<vmem>>, vector<32x32xf32>
    %cst = arith.constant dense<0.000000e+00> : vector<256x32xf32>
    %3 = tpu.matmul %1, %2, %cst {dimension_numbers = #tpu.dot_dimension_numbers<[1], [0], [0], [1], [0, 0, 1, 1], [], []>} : vector<256x32xf32>, vector<32x32xf32>, vector<256x32xf32> -> vector<256x32xf32>
    %c0_4 = arith.constant 0 : index
    %c0_5 = arith.constant 0 : index
    %4 = vector.load %arg3[%c0_4, %c0_5] : memref<1x32xf32, #tpu.memory_space<vmem>>, vector<1x32xf32>
    %5 = vector.broadcast %4 : vector<1x32xf32> to vector<256x32xf32>
    %6 = arith.addf %3, %5 : vector<256x32xf32>
    %cst_6 = arith.constant 0.000000e+00 : f32
    %7 = vector.broadcast %cst_6 : f32 to vector<256x32xf32>
    %8 = arith.maximumf %6, %7 : vector<256x32xf32>
    %c0_7 = arith.constant 0 : index
    %c0_8 = arith.constant 0 : index
    %9 = vector.load %arg4[%c0_7, %c0_8] : memref<32x32xf32, #tpu.memory_space<vmem>>, vector<32x32xf32>
    %cst_9 = arith.constant dense<0.000000e+00> : vector<256x32xf32>
    %10 = tpu.matmul %8, %9, %cst_9 {dimension_numbers = #tpu.dot_dimension_numbers<[1], [0], [0], [1], [0, 0, 1, 1], [], []>} : vector<256x32xf32>, vector<32x32xf32>, vector<256x32xf32> -> vector<256x32xf32>
    %c0_10 = arith.constant 0 : index
    %c0_11 = arith.constant 0 : index
    %11 = vector.load %arg5[%c0_10, %c0_11] : memref<1x32xf32, #tpu.memory_space<vmem>>, vector<1x32xf32>
    %12 = vector.broadcast %11 : vector<1x32xf32> to vector<256x32xf32>
    %13 = arith.addf %10, %12 : vector<256x32xf32>
    %cst_12 = arith.constant 0.000000e+00 : f32
    %14 = vector.broadcast %cst_12 : f32 to vector<256x32xf32>
    %15 = arith.maximumf %13, %14 : vector<256x32xf32>
    %16 = vector.shape_cast %15 : vector<256x32xf32> to vector<16x16x32xf32>
    %17 = vector.extract_strided_slice %16 {offsets = [0, 0, 0], sizes = [16, 8, 32], strides = [1, 1, 1]} : vector<16x16x32xf32> to vector<16x8x32xf32>
    %18 = vector.extract_strided_slice %16 {offsets = [0, 8, 0], sizes = [16, 8, 32], strides = [1, 1, 1]} : vector<16x16x32xf32> to vector<16x8x32xf32>
    %19 = vector.extract_strided_slice %0 {offsets = [0, 0, 0], sizes = [16, 8, 32], strides = [1, 1, 1]} : vector<16x16x32xf32> to vector<16x8x32xf32>
    %20 = vector.extract_strided_slice %0 {offsets = [0, 8, 0], sizes = [16, 8, 32], strides = [1, 1, 1]} : vector<16x16x32xf32> to vector<16x8x32xf32>
    "tpu.trace_start"() <{level = 10 : i32, message = "bpd,bhd->bph"}> : () -> ()
    %cst_13 = arith.constant dense<0.000000e+00> : vector<16x8x8xf32>
    %21 = tpu.matmul %17, %18, %cst_13 {dimension_numbers = #tpu.dot_dimension_numbers<[2], [2], [1], [1], [0, 0, 0, 1, 1, 1], [0], [0]>} : vector<16x8x32xf32>, vector<16x8x32xf32>, vector<16x8x8xf32> -> vector<16x8x8xf32>
    "tpu.trace_stop"() : () -> ()
    %22 = tpu.transpose %21, [0, 2, 1] : vector<16x8x8xf32> -> vector<16x8x8xf32>
    %cst_14 = arith.constant dense<0xFF800000> : vector<16x8xf32>
    %23 = vector.multi_reduction <maximumf>, %21, %cst_14 [2] : vector<16x8x8xf32> to vector<16x8xf32>
    %24 = vector.shape_cast %23 : vector<16x8xf32> to vector<16x8x1xf32>
    %25 = vector.broadcast %24 : vector<16x8x1xf32> to vector<16x8x8xf32>
    %26 = arith.subf %21, %25 : vector<16x8x8xf32>
    %27 = math.exp %26 : vector<16x8x8xf32>
    %cst_15 = arith.constant dense<0.000000e+00> : vector<16x8xf32>
    %28 = vector.multi_reduction <add>, %27, %cst_15 [2] : vector<16x8x8xf32> to vector<16x8xf32>
    %29 = vector.shape_cast %28 : vector<16x8xf32> to vector<16x8x1xf32>
    %30 = tpu.reciprocal %29 {approx = true} : vector<16x8x1xf32> -> vector<16x8x1xf32>
    %31 = vector.broadcast %30 : vector<16x8x1xf32> to vector<16x8x8xf32>
    %32 = arith.mulf %27, %31 : vector<16x8x8xf32>
    "tpu.trace_start"() <{level = 10 : i32, message = "bph,bhd->bpd"}> : () -> ()
    %cst_16 = arith.constant dense<0.000000e+00> : vector<16x8x32xf32>
    %33 = tpu.matmul %32, %20, %cst_16 {dimension_numbers = #tpu.dot_dimension_numbers<[2], [1], [1], [2], [0, 0, 0, 1, 1, 2], [0], [0]>} : vector<16x8x8xf32>, vector<16x8x32xf32>, vector<16x8x32xf32> -> vector<16x8x32xf32>
    "tpu.trace_stop"() : () -> ()
    %cst_17 = arith.constant dense<0xFF800000> : vector<16x8xf32>
    %34 = vector.multi_reduction <maximumf>, %22, %cst_17 [2] : vector<16x8x8xf32> to vector<16x8xf32>
    %35 = vector.shape_cast %34 : vector<16x8xf32> to vector<16x8x1xf32>
    %36 = vector.broadcast %35 : vector<16x8x1xf32> to vector<16x8x8xf32>
    %37 = arith.subf %22, %36 : vector<16x8x8xf32>
    %38 = math.exp %37 : vector<16x8x8xf32>
    %cst_18 = arith.constant dense<0.000000e+00> : vector<16x8xf32>
    %39 = vector.multi_reduction <add>, %38, %cst_18 [2] : vector<16x8x8xf32> to vector<16x8xf32>
    %40 = vector.shape_cast %39 : vector<16x8xf32> to vector<16x8x1xf32>
    %41 = tpu.reciprocal %40 {approx = true} : vector<16x8x1xf32> -> vector<16x8x1xf32>
    %42 = vector.broadcast %41 : vector<16x8x1xf32> to vector<16x8x8xf32>
    %43 = arith.mulf %38, %42 : vector<16x8x8xf32>
    "tpu.trace_start"() <{level = 10 : i32, message = "bhp,bpd->bhd"}> : () -> ()
    %cst_19 = arith.constant dense<0.000000e+00> : vector<16x8x32xf32>
    %44 = tpu.matmul %43, %19, %cst_19 {dimension_numbers = #tpu.dot_dimension_numbers<[2], [1], [1], [2], [0, 0, 0, 1, 1, 2], [0], [0]>} : vector<16x8x8xf32>, vector<16x8x32xf32>, vector<16x8x32xf32> -> vector<16x8x32xf32>
    "tpu.trace_stop"() : () -> ()
    %45 = vector.shape_cast %19 : vector<16x8x32xf32> to vector<128x32xf32>
    %46 = vector.shape_cast %33 : vector<16x8x32xf32> to vector<128x32xf32>
    %c0_20 = arith.constant 0 : index
    %c0_21 = arith.constant 0 : index
    %47 = vector.load %arg6[%c0_20, %c0_21] : memref<32x32xf32, #tpu.memory_space<vmem>>, vector<32x32xf32>
    %cst_22 = arith.constant dense<0.000000e+00> : vector<128x32xf32>
    %48 = tpu.matmul %45, %47, %cst_22 {dimension_numbers = #tpu.dot_dimension_numbers<[1], [0], [0], [1], [0, 0, 1, 1], [], []>} : vector<128x32xf32>, vector<32x32xf32>, vector<128x32xf32> -> vector<128x32xf32>
    %c0_23 = arith.constant 0 : index
    %c0_24 = arith.constant 0 : index
    %49 = vector.load %arg7[%c0_23, %c0_24] : memref<32x32xf32, #tpu.memory_space<vmem>>, vector<32x32xf32>
    %cst_25 = arith.constant dense<0.000000e+00> : vector<128x32xf32>
    %50 = tpu.matmul %46, %49, %cst_25 {dimension_numbers = #tpu.dot_dimension_numbers<[1], [0], [0], [1], [0, 0, 1, 1], [], []>} : vector<128x32xf32>, vector<32x32xf32>, vector<128x32xf32> -> vector<128x32xf32>
    %51 = arith.addf %48, %50 : vector<128x32xf32>
    %c0_26 = arith.constant 0 : index
    %c0_27 = arith.constant 0 : index
    %52 = vector.load %arg8[%c0_26, %c0_27] : memref<1x32xf32, #tpu.memory_space<vmem>>, vector<1x32xf32>
    %53 = vector.broadcast %52 : vector<1x32xf32> to vector<128x32xf32>
    %54 = arith.addf %51, %53 : vector<128x32xf32>
    %cst_28 = arith.constant 0.000000e+00 : f32
    %55 = vector.broadcast %cst_28 : f32 to vector<128x32xf32>
    %56 = arith.maximumf %54, %55 : vector<128x32xf32>
    %c0_29 = arith.constant 0 : index
    %c0_30 = arith.constant 0 : index
    %57 = vector.load %arg9[%c0_29, %c0_30] : memref<32x32xf32, #tpu.memory_space<vmem>>, vector<32x32xf32>
    %cst_31 = arith.constant dense<0.000000e+00> : vector<128x32xf32>
    %58 = tpu.matmul %56, %57, %cst_31 {dimension_numbers = #tpu.dot_dimension_numbers<[1], [0], [0], [1], [0, 0, 1, 1], [], []>} : vector<128x32xf32>, vector<32x32xf32>, vector<128x32xf32> -> vector<128x32xf32>
    %c0_32 = arith.constant 0 : index
    %c0_33 = arith.constant 0 : index
    %59 = vector.load %arg10[%c0_32, %c0_33] : memref<1x32xf32, #tpu.memory_space<vmem>>, vector<1x32xf32>
    %60 = vector.broadcast %59 : vector<1x32xf32> to vector<128x32xf32>
    %61 = arith.addf %58, %60 : vector<128x32xf32>
    %cst_34 = arith.constant 0.000000e+00 : f32
    %62 = vector.broadcast %cst_34 : f32 to vector<128x32xf32>
    %63 = arith.maximumf %61, %62 : vector<128x32xf32>
    %64 = vector.shape_cast %20 : vector<16x8x32xf32> to vector<128x32xf32>
    %65 = vector.shape_cast %44 : vector<16x8x32xf32> to vector<128x32xf32>
    %c0_35 = arith.constant 0 : index
    %c0_36 = arith.constant 0 : index
    %66 = vector.load %arg6[%c0_35, %c0_36] : memref<32x32xf32, #tpu.memory_space<vmem>>, vector<32x32xf32>
    %cst_37 = arith.constant dense<0.000000e+00> : vector<128x32xf32>
    %67 = tpu.matmul %64, %66, %cst_37 {dimension_numbers = #tpu.dot_dimension_numbers<[1], [0], [0], [1], [0, 0, 1, 1], [], []>} : vector<128x32xf32>, vector<32x32xf32>, vector<128x32xf32> -> vector<128x32xf32>
    %c0_38 = arith.constant 0 : index
    %c0_39 = arith.constant 0 : index
    %68 = vector.load %arg7[%c0_38, %c0_39] : memref<32x32xf32, #tpu.memory_space<vmem>>, vector<32x32xf32>
    %cst_40 = arith.constant dense<0.000000e+00> : vector<128x32xf32>
    %69 = tpu.matmul %65, %68, %cst_40 {dimension_numbers = #tpu.dot_dimension_numbers<[1], [0], [0], [1], [0, 0, 1, 1], [], []>} : vector<128x32xf32>, vector<32x32xf32>, vector<128x32xf32> -> vector<128x32xf32>
    %70 = arith.addf %67, %69 : vector<128x32xf32>
    %c0_41 = arith.constant 0 : index
    %c0_42 = arith.constant 0 : index
    %71 = vector.load %arg8[%c0_41, %c0_42] : memref<1x32xf32, #tpu.memory_space<vmem>>, vector<1x32xf32>
    %72 = vector.broadcast %71 : vector<1x32xf32> to vector<128x32xf32>
    %73 = arith.addf %70, %72 : vector<128x32xf32>
    %cst_43 = arith.constant 0.000000e+00 : f32
    %74 = vector.broadcast %cst_43 : f32 to vector<128x32xf32>
    %75 = arith.maximumf %73, %74 : vector<128x32xf32>
    %c0_44 = arith.constant 0 : index
    %c0_45 = arith.constant 0 : index
    %76 = vector.load %arg9[%c0_44, %c0_45] : memref<32x32xf32, #tpu.memory_space<vmem>>, vector<32x32xf32>
    %cst_46 = arith.constant dense<0.000000e+00> : vector<128x32xf32>
    %77 = tpu.matmul %75, %76, %cst_46 {dimension_numbers = #tpu.dot_dimension_numbers<[1], [0], [0], [1], [0, 0, 1, 1], [], []>} : vector<128x32xf32>, vector<32x32xf32>, vector<128x32xf32> -> vector<128x32xf32>
    %c0_47 = arith.constant 0 : index
    %c0_48 = arith.constant 0 : index
    %78 = vector.load %arg10[%c0_47, %c0_48] : memref<1x32xf32, #tpu.memory_space<vmem>>, vector<1x32xf32>
    %79 = vector.broadcast %78 : vector<1x32xf32> to vector<128x32xf32>
    %80 = arith.addf %77, %79 : vector<128x32xf32>
    %cst_49 = arith.constant 0.000000e+00 : f32
    %81 = vector.broadcast %cst_49 : f32 to vector<128x32xf32>
    %82 = arith.maximumf %80, %81 : vector<128x32xf32>
    %83 = vector.shape_cast %63 : vector<128x32xf32> to vector<16x8x32xf32>
    %cst_50 = arith.constant dense<0.000000e+00> : vector<16x32xf32>
    %84 = vector.multi_reduction <add>, %83, %cst_50 [1] : vector<16x8x32xf32> to vector<16x32xf32>
    %85 = vector.shape_cast %82 : vector<128x32xf32> to vector<16x8x32xf32>
    %cst_51 = arith.constant dense<0.000000e+00> : vector<16x32xf32>
    %86 = vector.multi_reduction <add>, %85, %cst_51 [1] : vector<16x8x32xf32> to vector<16x32xf32>
    %c0_52 = arith.constant 0 : index
    %c0_53 = arith.constant 0 : index
    %87 = vector.load %arg11[%c0_52, %c0_53] : memref<32x32xf32, #tpu.memory_space<vmem>>, vector<32x32xf32>
    %cst_54 = arith.constant dense<0.000000e+00> : vector<16x32xf32>
    %88 = tpu.matmul %84, %87, %cst_54 {dimension_numbers = #tpu.dot_dimension_numbers<[1], [0], [0], [1], [0, 0, 1, 1], [], []>} : vector<16x32xf32>, vector<32x32xf32>, vector<16x32xf32> -> vector<16x32xf32>
    %c0_55 = arith.constant 0 : index
    %c0_56 = arith.constant 0 : index
    %89 = vector.load %arg12[%c0_55, %c0_56] : memref<32x32xf32, #tpu.memory_space<vmem>>, vector<32x32xf32>
    %cst_57 = arith.constant dense<0.000000e+00> : vector<16x32xf32>
    %90 = tpu.matmul %86, %89, %cst_57 {dimension_numbers = #tpu.dot_dimension_numbers<[1], [0], [0], [1], [0, 0, 1, 1], [], []>} : vector<16x32xf32>, vector<32x32xf32>, vector<16x32xf32> -> vector<16x32xf32>
    %91 = arith.addf %88, %90 : vector<16x32xf32>
    %c0_58 = arith.constant 0 : index
    %c0_59 = arith.constant 0 : index
    %92 = vector.load %arg13[%c0_58, %c0_59] : memref<1x32xf32, #tpu.memory_space<vmem>>, vector<1x32xf32>
    %93 = vector.broadcast %92 : vector<1x32xf32> to vector<16x32xf32>
    %94 = arith.addf %91, %93 : vector<16x32xf32>
    %cst_60 = arith.constant 0.000000e+00 : f32
    %95 = vector.broadcast %cst_60 : f32 to vector<16x32xf32>
    %96 = arith.maximumf %94, %95 : vector<16x32xf32>
    %c0_61 = arith.constant 0 : index
    %c0_62 = arith.constant 0 : index
    %97 = vector.load %arg14[%c0_61, %c0_62] : memref<32x32xf32, #tpu.memory_space<vmem>>, vector<32x32xf32>
    %cst_63 = arith.constant dense<0.000000e+00> : vector<16x32xf32>
    %98 = tpu.matmul %96, %97, %cst_63 {dimension_numbers = #tpu.dot_dimension_numbers<[1], [0], [0], [1], [0, 0, 1, 1], [], []>} : vector<16x32xf32>, vector<32x32xf32>, vector<16x32xf32> -> vector<16x32xf32>
    %c0_64 = arith.constant 0 : index
    %c0_65 = arith.constant 0 : index
    %99 = vector.load %arg15[%c0_64, %c0_65] : memref<1x32xf32, #tpu.memory_space<vmem>>, vector<1x32xf32>
    %100 = vector.broadcast %99 : vector<1x32xf32> to vector<16x32xf32>
    %101 = arith.addf %98, %100 : vector<16x32xf32>
    %cst_66 = arith.constant 0.000000e+00 : f32
    %102 = vector.broadcast %cst_66 : f32 to vector<16x32xf32>
    %103 = arith.maximumf %101, %102 : vector<16x32xf32>
    %c0_67 = arith.constant 0 : index
    %c0_68 = arith.constant 0 : index
    %104 = vector.load %arg16[%c0_67, %c0_68] : memref<32x128xf32, #tpu.memory_space<vmem>>, vector<32x128xf32>
    %cst_69 = arith.constant dense<0.000000e+00> : vector<16x128xf32>
    %105 = tpu.matmul %103, %104, %cst_69 {dimension_numbers = #tpu.dot_dimension_numbers<[1], [0], [0], [1], [0, 0, 1, 1], [], []>} : vector<16x32xf32>, vector<32x128xf32>, vector<16x128xf32> -> vector<16x128xf32>
    %c0_70 = arith.constant 0 : index
    %c0_71 = arith.constant 0 : index
    %106 = vector.load %arg17[%c0_70, %c0_71] : memref<1x128xf32, #tpu.memory_space<vmem>>, vector<1x128xf32>
    %107 = vector.broadcast %106 : vector<1x128xf32> to vector<16x128xf32>
    %108 = arith.addf %105, %107 : vector<16x128xf32>
    %cst_72 = arith.constant dense<0xFF800000> : vector<16xf32>
    %109 = vector.multi_reduction <maximumf>, %108, %cst_72 [1] : vector<16x128xf32> to vector<16xf32>
    %110 = vector.shape_cast %109 : vector<16xf32> to vector<16x1xf32>
    %111 = vector.broadcast %110 : vector<16x1xf32> to vector<16x128xf32>
    %112 = arith.subf %108, %111 : vector<16x128xf32>
    %113 = math.exp %112 : vector<16x128xf32>
    %cst_73 = arith.constant dense<0.000000e+00> : vector<16xf32>
    %114 = vector.multi_reduction <add>, %113, %cst_73 [1] : vector<16x128xf32> to vector<16xf32>
    %115 = vector.shape_cast %114 : vector<16xf32> to vector<16x1xf32>
    %116 = math.log %115 : vector<16x1xf32>
    %117 = arith.addf %110, %116 : vector<16x1xf32>
    %118 = vector.broadcast %117 : vector<16x1xf32> to vector<16x128xf32>
    %119 = arith.subf %108, %118 : vector<16x128xf32>
    %c0_74 = arith.constant 0 : index
    %c0_75 = arith.constant 0 : index
    %120 = vector.load %arg18[%c0_74, %c0_75] : memref<16x128xf32, #tpu.memory_space<vmem>>, vector<16x128xf32>
    tpu.vector_store %arg18[%c0_74, %c0_75], %119 {strides = array<i32>} : memref<16x128xf32, #tpu.memory_space<vmem>>, vector<16x128xf32>,
    return
  }
  func.func @transform_0(%arg0: i32) -> (i32, i32, i32) {
    %c0_i32 = arith.constant 0 : i32
    %c0_i32_0 = arith.constant 0 : i32
    %c0_i32_1 = arith.constant 0 : i32
    return %arg0, %c0_i32, %c0_i32_0 : i32, i32, i32
  }
  func.func @transform_1(%arg0: i32) -> (i32, i32) {
    %c0_i32 = arith.constant 0 : i32
    %c0_i32_0 = arith.constant 0 : i32
    %c0_i32_1 = arith.constant 0 : i32
    return %c0_i32, %c0_i32_0 : i32, i32
  }
  func.func @transform_2(%arg0: i32) -> (i32, i32) {
    %c0_i32 = arith.constant 0 : i32
    %c0_i32_0 = arith.constant 0 : i32
    %c0_i32_1 = arith.constant 0 : i32
    return %c0_i32, %c0_i32_0 : i32, i32
  }
  func.func @transform_3(%arg0: i32) -> (i32, i32) {
    %c0_i32 = arith.constant 0 : i32
    %c0_i32_0 = arith.constant 0 : i32
    %c0_i32_1 = arith.constant 0 : i32
    return %c0_i32, %c0_i32_0 : i32, i32
  }
  func.func @transform_4(%arg0: i32) -> (i32, i32) {
    %c0_i32 = arith.constant 0 : i32
    %c0_i32_0 = arith.constant 0 : i32
    %c0_i32_1 = arith.constant 0 : i32
    return %c0_i32, %c0_i32_0 : i32, i32
  }
  func.func @transform_5(%arg0: i32) -> (i32, i32) {
    %c0_i32 = arith.constant 0 : i32
    %c0_i32_0 = arith.constant 0 : i32
    %c0_i32_1 = arith.constant 0 : i32
    return %c0_i32, %c0_i32_0 : i32, i32
  }
  func.func @transform_6(%arg0: i32) -> (i32, i32) {
    %c0_i32 = arith.constant 0 : i32
    %c0_i32_0 = arith.constant 0 : i32
    %c0_i32_1 = arith.constant 0 : i32
    return %c0_i32, %c0_i32_0 : i32, i32
  }
  func.func @transform_7(%arg0: i32) -> (i32, i32) {
    %c0_i32 = arith.constant 0 : i32
    %c0_i32_0 = arith.constant 0 : i32
    %c0_i32_1 = arith.constant 0 : i32
    return %c0_i32, %c0_i32_0 : i32, i32
  }
  func.func @transform_8(%arg0: i32) -> (i32, i32) {
    %c0_i32 = arith.constant 0 : i32
    %c0_i32_0 = arith.constant 0 : i32
    %c0_i32_1 = arith.constant 0 : i32
    return %c0_i32, %c0_i32_0 : i32, i32
  }
  func.func @transform_9(%arg0: i32) -> (i32, i32) {
    %c0_i32 = arith.constant 0 : i32
    %c0_i32_0 = arith.constant 0 : i32
    %c0_i32_1 = arith.constant 0 : i32
    return %c0_i32, %c0_i32_0 : i32, i32
  }
  func.func @transform_10(%arg0: i32) -> (i32, i32) {
    %c0_i32 = arith.constant 0 : i32
    %c0_i32_0 = arith.constant 0 : i32
    %c0_i32_1 = arith.constant 0 : i32
    return %c0_i32, %c0_i32_0 : i32, i32
  }
  func.func @transform_11(%arg0: i32) -> (i32, i32) {
    %c0_i32 = arith.constant 0 : i32
    %c0_i32_0 = arith.constant 0 : i32
    %c0_i32_1 = arith.constant 0 : i32
    return %c0_i32, %c0_i32_0 : i32, i32
  }
  func.func @transform_12(%arg0: i32) -> (i32, i32) {
    %c0_i32 = arith.constant 0 : i32
    %c0_i32_0 = arith.constant 0 : i32
    %c0_i32_1 = arith.constant 0 : i32
    return %c0_i32, %c0_i32_0 : i32, i32
  }
  func.func @transform_13(%arg0: i32) -> (i32, i32) {
    %c0_i32 = arith.constant 0 : i32
    %c0_i32_0 = arith.constant 0 : i32
    %c0_i32_1 = arith.constant 0 : i32
    return %c0_i32, %c0_i32_0 : i32, i32
  }
  func.func @transform_14(%arg0: i32) -> (i32, i32) {
    %c0_i32 = arith.constant 0 : i32
    %c0_i32_0 = arith.constant 0 : i32
    %c0_i32_1 = arith.constant 0 : i32
    return %c0_i32, %c0_i32_0 : i32, i32
  }
  func.func @transform_15(%arg0: i32) -> (i32, i32) {
    %c0_i32 = arith.constant 0 : i32
    %c0_i32_0 = arith.constant 0 : i32
    %c0_i32_1 = arith.constant 0 : i32
    return %c0_i32, %c0_i32_0 : i32, i32
  }
  func.func @transform_16(%arg0: i32) -> (i32, i32) {
    %c0_i32 = arith.constant 0 : i32
    %c0_i32_0 = arith.constant 0 : i32
    %c0_i32_1 = arith.constant 0 : i32
    return %c0_i32, %c0_i32_0 : i32, i32
  }
  func.func @transform_17(%arg0: i32) -> (i32, i32) {
    %c0_i32 = arith.constant 0 : i32
    %c0_i32_0 = arith.constant 0 : i32
    return %arg0, %c0_i32 : i32, i32
  }
}

</mosaic_0001>

<bundles_post_ra>
// kernel: tpu_custom_call.1
= control target key start
LH: loop header
LB: loop body
LE: loop exit
PB: predicated region body
PF: predicated region fallthrough
CT: control target
= control target key end

     0   :  { %s5861_s0 = inlined_call_operand.hbm [shape: f32[16,16,32], index: 0, kind: input, shape index: {}]   ;;  %s5862_s1 = inlined_call_operand.hbm [shape: f32[32,32], index: 1, kind: input, shape index: {}]   ;;  %s5863_s2 = inlined_call_operand.vmem [shape: f32[1,32], index: 2, kind: input, shape index: {}]   ;;  %s5864_s3 = inlined_call_operand.hbm [shape: f32[32,32], index: 3, kind: input, shape index: {}]   ;;  %s5865_s4 = inlined_call_operand.vmem [shape: f32[1,32], index: 4, kind: input, shape index: {}]   ;;  %s5866_s5 = inlined_call_operand.hbm [shape: f32[32,32], index: 5, kind: input, shape index: {}]   ;;  %s5867_s6 = inlined_call_operand.hbm [shape: f32[32,32], index: 6, kind: input, shape index: {}]   ;;  %s5868_s7 = inlined_call_operand.vmem [shape: f32[1,32], index: 7, kind: input, shape index: {}]   ;;  %s5869_s8 = inlined_call_operand.hbm [shape: f32[32,32], index: 8, kind: input, shape index: {}]   ;;  %s5870_s9 = inlined_call_operand.vmem [shape: f32[1,32], index: 9, kind: input, shape index: {}]   ;;  %s5871_s10 = inlined_call_operand.hbm [shape: f32[32,32], index: 10, kind: input, shape index: {}]   ;;  %s5872_s11 = inlined_call_operand.hbm [shape: f32[32,32], index: 11, kind: input, shape index: {}]   ;;  %s5873_s12 = inlined_call_operand.vmem [shape: f32[1,32], index: 12, kind: input, shape index: {}]   ;;  %s5874_s13 = inlined_call_operand.hbm [shape: f32[32,32], index: 13, kind: input, shape index: {}]   ;;  %s5875_s14 = inlined_call_operand.vmem [shape: f32[1,32], index: 14, kind: input, shape index: {}]   ;;  %s5876_s15 = inlined_call_operand.hbm [shape: f32[32,128], index: 15, kind: input, shape index: {}]   ;;  %s5877_s16 = inlined_call_operand.vmem [shape: f32[1,128], index: 16, kind: input, shape index: {}]   ;;  %s5878_s17 = inlined_call_operand.hbm [shape: f32[16,128], index: 17, kind: output, shape index: {}]  }
   0x1   :  { %5879 = sst [smem:[#allocation27_spill]] %s5861_s0 }
   0x2   :  { %5880 = sst [smem:[#allocation28_spill]] %s5862_s1 }
   0x3   :  { %22 = vsyncpa [#allocation3], 0 }
   0x4   :  { %23 = vsyncpa [#allocation6], 0 }
   0x5   :  { %24 = vsyncpa [#allocation9], 0 }
   0x6   :  { %25 = vsyncpa [#allocation12], 0 }
   0x7   :  { %26 = vsyncpa [#allocation15], 0 }
   0x8   :  { %27 = vsyncpa [#allocation18], 0 }
   0x9   :  { %28 = vsyncpa [#allocation4], 0  ;;  %s5881_s26 = sld [smem:[#allocation28_spill]]  ;;  %s4643_s28 = smov [#allocation5]  }
   0xa   :  { %s48_s29 = sshll.u32 %s4643_s28, 4  ;;  %s76_s18 = sshll.u32 %s5866_s5, 4  ;;  %s49_s29 = int_to_ptr.vmem [resolvable:$true] %s48_s29  ;;  %s77_s18 = int_to_ptr.hbm [resolvable:$true] %s76_s18 }
   0xb   :  { %s4644_s19 = smov 128   ;;  %s4645_s1 = smov 8  }
   0xc   :  { %s4646_s20 = smov [#allocation8]   ;;  %s104_s24 = sshll.u32 %s5869_s8, 4  ;;  %s105_s24 = int_to_ptr.hbm [resolvable:$true] %s104_s24 }
   0xd   :  { %s78_s21 = sshll.u32 %s4646_s20, 4  ;;  %s4647_s28 = smov [#allocation11]   ;;  %s79_s21 = int_to_ptr.vmem [resolvable:$true] %s78_s21 }
   0xe   :  { %84 = dma.hbm_to_vmem [thread:$0]  %s77_s18, 512, %s79_s21, [#allocation9], %s4644_s19, %s4644_s19, %s4645_s1  }
   0xf   :  { %s46_s27 = sshll.u32 %s5881_s26, 4  ;;  %s132_s26 = sshll.u32 %s5872_s11, 4  ;;  %s47_s27 = int_to_ptr.hbm [resolvable:$true] %s46_s27  ;;  %s133_s26 = int_to_ptr.hbm [resolvable:$true] %s132_s26 }
  0x10   :  { %54 = dma.hbm_to_vmem [thread:$0]  %s47_s27, 512, %s49_s29, [#allocation6], %s4644_s19, %s4644_s19, %s4645_s1  }
  0x11   :  { %s106_s0 = sshll.u32 %s4647_s28, 4  ;;  %s4648_s27 = smov [#allocation14]   ;;  %s107_s0 = int_to_ptr.vmem [resolvable:$true] %s106_s0 }
  0x12   :  { %112 = dma.hbm_to_vmem [thread:$0]  %s105_s24, 512, %s107_s0, [#allocation12], %s4644_s19, %s4644_s19, %s4645_s1  }
  0x13   :  { %s134_s8 = sshll.u32 %s4648_s27, 4  ;;  %s5882_s20 = sld [smem:[#allocation27_spill]]  ;;  %s135_s8 = int_to_ptr.vmem [resolvable:$true] %s134_s8 }
  0x14   :  { %140 = dma.hbm_to_vmem [thread:$0]  %s133_s26, 512, %s135_s8, [#allocation15], %s4644_s19, %s4644_s19, %s4645_s1  }
  0x15   :  { %s61_s21 = sshll.u32 %s5864_s3, 4  ;;  %s4649_s23 = smov [#allocation2]   ;;  %s62_s21 = int_to_ptr.hbm [resolvable:$true] %s61_s21 }
  0x16   :  { %s35_s5 = sshll.u32 %s4649_s23, 4  ;;  %s4650_s24 = smov [#allocation7]   ;;  %s36_s5 = int_to_ptr.vmem [resolvable:$true] %s35_s5 }
  0x17   :  { %s63_s25 = sshll.u32 %s4650_s24, 4  ;;  %s89_s27 = sshll.u32 %s5867_s6, 4  ;;  %s64_s25 = int_to_ptr.vmem [resolvable:$true] %s63_s25  ;;  %s90_s27 = int_to_ptr.hbm [resolvable:$true] %s89_s27 }
  0x18   :  { %69 = dma.hbm_to_vmem [thread:$0]  %s62_s21, 512, %s64_s25, [#allocation6], %s4644_s19, %s4644_s19, %s4645_s1  }
  0x19   :  { %s33_s22 = sshll.u32 %s5882_s20, 4  ;;  %s119_s8 = sshll.u32 %s5871_s10, 4  ;;  %s34_s22 = int_to_ptr.hbm [resolvable:$true] %s33_s22  ;;  %s120_s8 = int_to_ptr.hbm [resolvable:$true] %s119_s8 }
  0x1a   :  { %41 = dma.hbm_to_vmem [thread:$0]  %s34_s22, 4096, %s36_s5, [#allocation3], %s4644_s19, %s4644_s19, %s4645_s1  }
  0x1b   :  { %s4651_s29 = smov [#allocation10]   ;;  %s4652_s20 = smov [#allocation13]  }
  0x1c   :  { %s91_s30 = sshll.u32 %s4651_s29, 4  ;;  %s121_s6 = sshll.u32 %s4652_s20, 4  ;;  %s92_s30 = int_to_ptr.vmem [resolvable:$true] %s91_s30  ;;  %s122_s6 = int_to_ptr.vmem [resolvable:$true] %s121_s6 }
  0x1d   :  { %97 = dma.hbm_to_vmem [thread:$0]  %s90_s27, 512, %s92_s30, [#allocation9], %s4644_s19, %s4644_s19, %s4645_s1  }
  0x1e   :  { %s147_s18 = sshll.u32 %s5874_s13, 4  ;;  %s162_s23 = sshll.u32 %s5876_s15, 4  ;;  %s148_s18 = int_to_ptr.hbm [resolvable:$true] %s147_s18  ;;  %s163_s23 = int_to_ptr.hbm [resolvable:$true] %s162_s23 }
  0x1f   :  { %127 = dma.hbm_to_vmem [thread:$0]  %s120_s8, 512, %s122_s6, [#allocation12], %s4644_s19, %s4644_s19, %s4645_s1  }
  0x20   :  { %s4653_s5 = smov [#allocation16]   ;;  %s4654_s25 = smov [#allocation17]  }
  0x21   :  { %s149_s24 = sshll.u32 %s4653_s5, 4  ;;  %s164_s13 = sshll.u32 %s4654_s25, 4  ;;  %s150_s24 = int_to_ptr.vmem [resolvable:$true] %s149_s24  ;;  %s165_s13 = int_to_ptr.vmem [resolvable:$true] %s164_s13 }
  0x22   :  { %155 = dma.hbm_to_vmem [thread:$0]  %s148_s18, 512, %s150_s24, [#allocation15], %s4644_s19, %s4644_s19, %s4645_s1  }
  0x23   :  { %170 = dma.hbm_to_vmem [thread:$0]  %s163_s23, 512, %s165_s13, [#allocation18], %s4644_s19, %s4644_s19, %s4645_s1  }
  0x24   :  { %4629 = dma.done.wait [#allocation3], 4096  }
  0x25   :  { %4630 = vsyncadd [#allocation3], 4294963200 }
  0x26   :  { %4631 = dma.done.wait [#allocation6], 1024  }
  0x27   :  { %4632 = vsyncadd [#allocation6], 4294966272 }
  0x28   :  { %4633 = dma.done.wait [#allocation9], 1024  }
  0x29   :  { %4634 = vsyncadd [#allocation9], 4294966272 }
  0x2a   :  { %4635 = dma.done.wait [#allocation12], 1024  }
  0x2b   :  { %4636 = vsyncadd [#allocation12], 4294966272 }
  0x2c   :  { %4637 = dma.done.wait [#allocation15], 1024  }
  0x2d   :  { %4638 = vsyncadd [#allocation15], 4294966272 }
  0x2e   :  { %4639 = dma.done.wait [#allocation18], 512  }
  0x2f   :  { %4640 = vsyncadd [#allocation18], 4294966784  ;;  %v248_v0 = vld [vmem:[#allocation5 + $0x18] sm:$0xff]  ;;  %v247_v1 = vld [vmem:[#allocation5 + $0x10] sm:$0xff]  ;;  %vm253_vm0 = vcmask 261120   ;;  %vm1672_vm1 = vcmask 64512  }
  0x30   :  { %362 = vmatpush.msra.mxu0 %v248_v0  ;;  %v246_v2 = vld [vmem:[#allocation5 + $0x8] sm:$0xff]  ;;  %v245_v3 = vld [vmem:[#allocation5] sm:$0xff]  ;;  %v215_v6 = vld [vmem:[#allocation2 + $0x10] sm:$0xff]  ;;  %vm3707_vm2 = vcmask 1041409   ;;  %vm3709_vm3 = vcmask 1042434   ;;  %vm3711_vm4 = vcmask 1043459  }
  0x31   :  { %v213_v4 = vld [vmem:[#allocation2] sm:$0xff]  ;;  %v4807_v5 = vld [vmem:[#allocation2 + $0x8] sm:$0xff]  ;;  %v4812_v7 = vld [vmem:[#allocation2 + $0x18] sm:$0xff]  ;;  %vm3713_vm5 = vcmask 1044484   ;;  %vm3715_vm6 = vcmask 1045509   ;;  %vm3717_vm7 = vcmask 1046534  }
  0x32   :  { %363 = vmatpush.msra.mxu0 %v247_v1  ;;  %v217_v8 = vld [vmem:[#allocation2 + $0x20] sm:$0xff]  ;;  %v4817_v9 = vld [vmem:[#allocation2 + $0x28] sm:$0xff]  ;;  %v219_v10 = vld [vmem:[#allocation2 + $0x30] sm:$0xff]  ;;  %vm3719_vm8 = vcmask 1047559   ;;  %s3926_s22 = sshll.u32 %s5878_s17, 4  ;;  %s3927_s22 = int_to_ptr.hbm [resolvable:$true] %s3926_s22 }
  0x33   :  { %v4822_v11 = vld [vmem:[#allocation2 + $0x38] sm:$0xff]  ;;  %v221_v12 = vld [vmem:[#allocation2 + $0x40] sm:$0xff]  ;;  %v4827_v13 = vld [vmem:[#allocation2 + $0x48] sm:$0xff] }
  0x34   :  { %364 = vmatpush.msra.mxu0 %v246_v2  ;;  %v498_v14 = vld [vmem:[#allocation7 + $0x18] sm:$0xff]  ;;  %v223_v15 = vld [vmem:[#allocation2 + $0x50] sm:$0xff]  ;;  %v225_v18 = vld [vmem:[#allocation2 + $0x60] sm:$0xff] }
  0x35   :  { %611 = vmatpush.msra.mxu1 %v498_v14  ;;  %v224_v16 = vld [vmem:[#allocation2 + $0x58] sm:$0xff]  ;;  %v497_v17 = vld [vmem:[#allocation7 + $0x10] sm:$0xff]  ;;  %v496_v19 = vld [vmem:[#allocation7 + $0x8] sm:$0xff] }
  0x36   :  { %365 = vmatpush.msra.mxu0 %v245_v3  ;;  %v495_v20 = vld [vmem:[#allocation7] sm:$0xff]  ;;  %v4834_v21 = vld [vmem:[#allocation2 + $0x68] sm:$0xff]  ;;  %v227_v22 = vld [vmem:[#allocation2 + $0x70] sm:$0xff] }
  0x37   :  { %3944 = vmatmul.msk.f32.vlgmr.msra.gmra.mxu0 %vm253_vm0, %v213_v4  ;;  %612 = vmatpush.msra.mxu1 %v497_v17  ;;  %v228_v23 = vld [vmem:[#allocation2 + $0x78] sm:$0xff]  ;;  %v4843_v24 = vld [vmem:[%s5863_s2] ss:$0 sm:$0xff]  ;;  %v230_v30 = vld [vmem:[#allocation2 + $0x88] sm:$0xff] }
  0x38   :  { %v229_v26 = vld [vmem:[#allocation2 + $0x80] sm:$0xff]  ;;  %v231_v34 = vld [vmem:[#allocation2 + $0x90] sm:$0xff]  ;;  %v232_v38 = vld [vmem:[#allocation2 + $0x98] sm:$0xff] }
  0x39   :  { %613 = vmatpush.msra.mxu1 %v496_v19  ;;  %v233_v42 = vld [vmem:[#allocation2 + $0xa0] sm:$0xff]  ;;  %v234_v46 = vld [vmem:[#allocation2 + $0xa8] sm:$0xff]  ;;  %v235_v50 = vld [vmem:[#allocation2 + $0xb0] sm:$0xff] }
  0x3a   :  { %v236_v54 = vld [vmem:[#allocation2 + $0xb8] sm:$0xff]  ;;  %v237_v58 = vld [vmem:[#allocation2 + $0xc0] sm:$0xff]  ;;  %v238_v62 = vld [vmem:[#allocation2 + $0xc8] sm:$0xff] }
  0x3b   :  { %614 = vmatpush.msra.mxu1 %v495_v20  ;;  %v239_v2 = vld [vmem:[#allocation2 + $0xd0] sm:$0xff]  ;;  %v242_v19 = vld [vmem:[#allocation2 + $0xe8] sm:$0xff] }
  0x3f   :  { %3945 = vmatmul.msk.f32.gmra.mxu0 %vm253_vm0, %v4807_v5 }
  0x47   :  { %3946 = vmatmul.msk.f32.gmra.mxu0 %vm253_vm0, %v215_v6 }
  0x4f   :  { %3947 = vmatmul.msk.f32.gmra.mxu0 %vm253_vm0, %v4812_v7 }
  0x57   :  { %3948 = vmatmul.msk.f32.gmra.mxu0 %vm253_vm0, %v217_v8  ;;  %v240_v8 = vld [vmem:[#allocation2 + $0xd8] sm:$0xff] }
  0x5f   :  { %3949 = vmatmul.msk.f32.gmra.mxu0 %vm253_vm0, %v4817_v9 }
  0x67   :  { %3950 = vmatmul.msk.f32.gmra.mxu0 %vm253_vm0, %v219_v10 }
  0x6f   :  { %3951 = vmatmul.msk.f32.gmra.mxu0 %vm253_vm0, %v4822_v11 }
  0x77   :  { %3952 = vmatmul.msk.f32.gmra.mxu0 %vm253_vm0, %v221_v12 }
  0x7f   :  { %3953 = vmatmul.msk.f32.gmra.mxu0 %vm253_vm0, %v4827_v13 }
  0x87   :  { %3954 = vmatmul.msk.f32.gmra.mxu0 %vm253_vm0, %v223_v15  ;;  %v241_v15 = vld [vmem:[#allocation2 + $0xe0] sm:$0xff] }
  0x8f   :  { %3955 = vmatmul.msk.f32.gmra.mxu0 %vm253_vm0, %v224_v16 }
  0x97   :  { %3956 = vmatmul.msk.f32.gmra.mxu0 %vm253_vm0, %v225_v18 }
  0x9f   :  { %3957 = vmatmul.msk.f32.gmra.mxu0 %vm253_vm0, %v4834_v21 }
  0xa7   :  { %3958 = vmatmul.msk.f32.gmra.mxu0 %vm253_vm0, %v227_v22 }
  0xaf   :  { %3959 = vmatmul.msk.f32.gmra.mxu0 %vm253_vm0, %v228_v23 }
  0xb4   :  { %v367_v25 = vpop.f32.mrf.mxu0 }
  0xb5   :  { %v368_v27 = vadd.f32 %v4843_v24, %v367_v25  ;;  %v243_v25 = vld [vmem:[#allocation2 + $0xf0] sm:$0xff] }
  0xb7   :  { %v463_v28 = vmax.f32 %v368_v27, 0.0  ;;  %3960 = vmatmul.msk.f32.gmra.mxu0 %vm253_vm0, %v229_v26 }
  0xb9   :  { %3976 = vmatmul.msk.f32.vlgmr.msra.gmra.mxu1 %vm253_vm0, %v463_v28 }
  0xbc   :  { %v370_v29 = vpop.f32.mrf.mxu0 }
  0xbd   :  { %v371_v31 = vadd.f32 %v4843_v24, %v370_v29  ;;  %v244_v29 = vld [vmem:[#allocation2 + $0xf8] sm:$0xff] }
  0xbf   :  { %v464_v32 = vmax.f32 %v371_v31, 0.0  ;;  %3961 = vmatmul.msk.f32.gmra.mxu0 %vm253_vm0, %v230_v30 }
  0xc1   :  { %3977 = vmatmul.msk.f32.gmra.mxu1 %vm253_vm0, %v464_v32 }
  0xc4   :  { %v373_v33 = vpop.f32.mrf.mxu0 }
  0xc5   :  { %v374_v35 = vadd.f32 %v4843_v24, %v373_v33 }
  0xc7   :  { %v465_v36 = vmax.f32 %v374_v35, 0.0  ;;  %3962 = vmatmul.msk.f32.gmra.mxu0 %vm253_vm0, %v231_v34 }
  0xc9   :  { %3978 = vmatmul.msk.f32.gmra.mxu1 %vm253_vm0, %v465_v36  ;;  %v4898_v36 = vld [vmem:[%s5865_s4] ss:$0 sm:$0xff] }
  0xcc   :  { %v376_v37 = vpop.f32.mrf.mxu0 }
  0xcd   :  { %v377_v39 = vadd.f32 %v4843_v24, %v376_v37 }
  0xcf   :  { %v466_v40 = vmax.f32 %v377_v39, 0.0  ;;  %3963 = vmatmul.msk.f32.gmra.mxu0 %vm253_vm0, %v232_v38 }
  0xd1   :  { %3979 = vmatmul.msk.f32.gmra.mxu1 %vm253_vm0, %v466_v40 }
  0xd4   :  { %v379_v41 = vpop.f32.mrf.mxu0 }
  0xd5   :  { %v380_v43 = vadd.f32 %v4843_v24, %v379_v41 }
  0xd7   :  { %v467_v44 = vmax.f32 %v380_v43, 0.0  ;;  %3964 = vmatmul.msk.f32.gmra.mxu0 %vm253_vm0, %v233_v42 }
  0xd9   :  { %3980 = vmatmul.msk.f32.gmra.mxu1 %vm253_vm0, %v467_v44 }
  0xdc   :  { %v382_v45 = vpop.f32.mrf.mxu0 }
  0xdd   :  { %v383_v47 = vadd.f32 %v4843_v24, %v382_v45 }
  0xdf   :  { %v468_v48 = vmax.f32 %v383_v47, 0.0  ;;  %3965 = vmatmul.msk.f32.gmra.mxu0 %vm253_vm0, %v234_v46 }
  0xe1   :  { %3981 = vmatmul.msk.f32.gmra.mxu1 %vm253_vm0, %v468_v48 }
  0xe4   :  { %v385_v49 = vpop.f32.mrf.mxu0 }
  0xe5   :  { %v386_v51 = vadd.f32 %v4843_v24, %v385_v49 }
  0xe7   :  { %v469_v52 = vmax.f32 %v386_v51, 0.0  ;;  %3966 = vmatmul.msk.f32.gmra.mxu0 %vm253_vm0, %v235_v50 }
  0xe9   :  { %3982 = vmatmul.msk.f32.gmra.mxu1 %vm253_vm0, %v469_v52 }
  0xec   :  { %v388_v53 = vpop.f32.mrf.mxu0 }
  0xed   :  { %v389_v55 = vadd.f32 %v4843_v24, %v388_v53 }
  0xef   :  { %v470_v56 = vmax.f32 %v389_v55, 0.0  ;;  %3967 = vmatmul.msk.f32.gmra.mxu0 %vm253_vm0, %v236_v54 }
  0xf1   :  { %3983 = vmatmul.msk.f32.gmra.mxu1 %vm253_vm0, %v470_v56 }
  0xf4   :  { %v391_v57 = vpop.f32.mrf.mxu0 }
  0xf5   :  { %v392_v59 = vadd.f32 %v4843_v24, %v391_v57 }
  0xf7   :  { %v471_v60 = vmax.f32 %v392_v59, 0.0  ;;  %3968 = vmatmul.msk.f32.gmra.mxu0 %vm253_vm0, %v237_v58 }
  0xf9   :  { %3984 = vmatmul.msk.f32.gmra.mxu1 %vm253_vm0, %v471_v60 }
  0xfc   :  { %v394_v61 = vpop.f32.mrf.mxu0 }
  0xfd   :  { %v395_v63 = vadd.f32 %v4843_v24, %v394_v61 }
  0xff   :  { %v472_v0 = vmax.f32 %v395_v63, 0.0  ;;  %3969 = vmatmul.msk.f32.gmra.mxu0 %vm253_vm0, %v238_v62 }
 0x101   :  { %3985 = vmatmul.msk.f32.gmra.mxu1 %vm253_vm0, %v472_v0 }
 0x104   :  { %v397_v1 = vpop.f32.mrf.mxu0 }
 0x105   :  { %v398_v3 = vadd.f32 %v4843_v24, %v397_v1 }
 0x107   :  { %v473_v4 = vmax.f32 %v398_v3, 0.0  ;;  %3970 = vmatmul.msk.f32.gmra.mxu0 %vm253_vm0, %v239_v2 }
 0x109   :  { %3986 = vmatmul.msk.f32.gmra.mxu1 %vm253_vm0, %v473_v4 }
 0x10c   :  { %v400_v6 = vpop.f32.mrf.mxu0 }
 0x10d   :  { %v401_v10 = vadd.f32 %v4843_v24, %v400_v6 }
 0x10f   :  { %v474_v12 = vmax.f32 %v401_v10, 0.0  ;;  %3971 = vmatmul.msk.f32.gmra.mxu0 %vm253_vm0, %v240_v8 }
 0x111   :  { %3987 = vmatmul.msk.f32.gmra.mxu1 %vm253_vm0, %v474_v12 }
 0x114   :  { %v403_v14 = vpop.f32.mrf.mxu0 }
 0x115   :  { %v404_v16 = vadd.f32 %v4843_v24, %v403_v14 }
 0x117   :  { %v475_v17 = vmax.f32 %v404_v16, 0.0  ;;  %3972 = vmatmul.msk.f32.gmra.mxu0 %vm253_vm0, %v241_v15 }
 0x119   :  { %3988 = vmatmul.msk.f32.gmra.mxu1 %vm253_vm0, %v475_v17 }
 0x11c   :  { %v406_v18 = vpop.f32.mrf.mxu0 }
 0x11d   :  { %v407_v20 = vadd.f32 %v4843_v24, %v406_v18 }
 0x11f   :  { %v476_v22 = vmax.f32 %v407_v20, 0.0  ;;  %3973 = vmatmul.msk.f32.gmra.mxu0 %vm253_vm0, %v242_v19 }
 0x121   :  { %3989 = vmatmul.msk.f32.gmra.mxu1 %vm253_vm0, %v476_v22 }
 0x124   :  { %v409_v23 = vpop.f32.mrf.mxu0 }
 0x125   :  { %v410_v26 = vadd.f32 %v4843_v24, %v409_v23 }
 0x127   :  { %v477_v27 = vmax.f32 %v410_v26, 0.0  ;;  %3974 = vmatmul.msk.f32.gmra.mxu0 %vm253_vm0, %v243_v25 }
 0x129   :  { %3990 = vmatmul.msk.f32.gmra.mxu1 %vm253_vm0, %v477_v27 }
 0x12c   :  { %v412_v28 = vpop.f32.mrf.mxu0 }
 0x12d   :  { %v413_v30 = vadd.f32 %v4843_v24, %v412_v28 }
 0x12f   :  { %v478_v31 = vmax.f32 %v413_v30, 0.0  ;;  %3975 = vmatmul.msk.f32.gmra.mxu0 %vm253_vm0, %v244_v29 }
 0x131   :  { %3991 = vmatmul.msk.f32.gmra.mxu1 %vm253_vm0, %v478_v31 }
 0x134   :  { %v415_v32 = vpop.f32.mrf.mxu0 }
 0x135   :  { %v416_v33 = vadd.f32 %v4843_v24, %v415_v32 }
 0x136   :  { %v616_v34 = vpop.f32.mrf.mxu1 }
 0x137   :  { %v479_v35 = vmax.f32 %v416_v33, 0.0  ;;  %v617_v42 = vadd.f32 %v4898_v36, %v616_v34 }
 0x139   :  { %3992 = vmatmul.msk.f32.gmra.mxu1 %vm253_vm0, %v479_v35  ;;  %v712_v44 = vmax.f32 %v617_v42, 0.0 }
 0x13c   :  { %v418_v37 = vpop.f32.mrf.mxu0 }
 0x13d   :  { %v419_v38 = vadd.f32 %v4843_v24, %v418_v37 }
 0x13e   :  { %v619_v39 = vpop.f32.mrf.mxu1 }
 0x13f   :  { %v620_v40 = vadd.f32 %v4898_v36, %v619_v39  ;;  %v480_v41 = vmax.f32 %v419_v38, 0.0 }
 0x141   :  { %v713_v43 = vmax.f32 %v620_v40, 0.0  ;;  %3993 = vmatmul.msk.f32.gmra.mxu1 %vm253_vm0, %v480_v41 }
 0x143   :  { %4008 = vmatpush.xpose.msk.msrb.mxu0 %vm253_vm0, %v713_v43 }
 0x144   :  { %v421_v45 = vpop.f32.mrf.mxu0 }
 0x145   :  { %v422_v46 = vadd.f32 %v4843_v24, %v421_v45 }
 0x146   :  { %v4906_v47 = vpop.f32.mrf.mxu1  ;;  %4009 = vmatmul.msk.f32.vlgmr.msrb.gmra.mxu0 %vm253_vm0, %v712_v44 }
 0x147   :  { %v481_v48 = vmax.f32 %v422_v46, 0.0 }
 0x149   :  { %3994 = vmatmul.msk.f32.gmra.mxu1 %vm253_vm0, %v481_v48 }
 0x14c   :  { %v424_v49 = vpop.f32.mrf.mxu0 }
 0x14d   :  { %v425_v50 = vadd.f32 %v4843_v24, %v424_v49 }
 0x14e   :  { %v625_v51 = vpop.f32.mrf.mxu1 }
 0x14f   :  { %v626_v52 = vadd.f32 %v4898_v36, %v625_v51  ;;  %v482_v53 = vmax.f32 %v425_v50, 0.0 }
 0x151   :  { %v715_v54 = vmax.f32 %v626_v52, 0.0  ;;  %3995 = vmatmul.msk.f32.gmra.mxu1 %vm253_vm0, %v482_v53 }
 0x153   :  { %4010 = vmatpush.xpose.msk.msrb.mxu1 %vm253_vm0, %v715_v54 }
 0x154   :  { %v427_v55 = vpop.f32.mrf.mxu0 }
 0x155   :  { %v428_v56 = vadd.f32 %v4843_v24, %v427_v55 }
 0x156   :  { %v628_v57 = vpop.f32.mrf.mxu1 }
 0x157   :  { %v483_v58 = vmax.f32 %v428_v56, 0.0  ;;  %v629_v0 = vadd.f32 %v4898_v36, %v628_v57 }
 0x159   :  { %3996 = vmatmul.msk.f32.gmra.mxu1 %vm253_vm0, %v483_v58  ;;  %v716_v2 = vmax.f32 %v629_v0, 0.0 }
 0x15c   :  { %v430_v59 = vpop.f32.mrf.mxu0 }
 0x15d   :  { %v431_v60 = vadd.f32 %v4843_v24, %v430_v59 }
 0x15e   :  { %v631_v61 = vpop.f32.mrf.mxu1 }
 0x15f   :  { %v632_v62 = vadd.f32 %v4898_v36, %v631_v61  ;;  %v484_v63 = vmax.f32 %v431_v60, 0.0 }
 0x161   :  { %v717_v1 = vmax.f32 %v632_v62, 0.0  ;;  %3997 = vmatmul.msk.f32.gmra.mxu1 %vm253_vm0, %v484_v63 }
 0x163   :  { %4012 = vmatpush.xpose.msk.msra.mxu0 %vm253_vm0, %v717_v1 }
 0x164   :  { %v433_v3 = vpop.f32.mrf.mxu0 }
 0x165   :  { %v434_v4 = vadd.f32 %v4843_v24, %v433_v3 }
 0x166   :  { %4013 = vmatmul.msk.f32.vlgmr.msra.gmra.mxu0 %vm253_vm0, %v716_v2  ;;  %v4923_v6 = vpop.f32.mrf.mxu1 }
 0x167   :  { %v485_v8 = vmax.f32 %v434_v4, 0.0 }
 0x169   :  { %3998 = vmatmul.msk.f32.gmra.mxu1 %vm253_vm0, %v485_v8 }
 0x16c   :  { %v436_v10 = vpop.f32.mrf.mxu0 }
 0x16d   :  { %v437_v12 = vadd.f32 %v4843_v24, %v436_v10  ;;  %v623_v10 = vadd.f32 %v4898_v36, %v4906_v47 }
 0x16e   :  { %v637_v14 = vpop.f32.mrf.mxu1 }
 0x16f   :  { %v486_v15 = vmax.f32 %v437_v12, 0.0  ;;  %v638_v16 = vadd.f32 %v4898_v36, %v637_v14  ;;  %v714_v14 = vmax.f32 %v623_v10, 0.0 }
 0x171   :  { %v719_v17 = vmax.f32 %v638_v16, 0.0  ;;  %3999 = vmatmul.msk.f32.gmra.mxu1 %vm253_vm0, %v486_v15 }
 0x173   :  { %4014 = vmatpush.xpose.msk.msra.mxu1 %vm253_vm0, %v719_v17 }
 0x174   :  { %v439_v18 = vpop.f32.mrf.mxu0 }
 0x175   :  { %v440_v19 = vadd.f32 %v4843_v24, %v439_v18 }
 0x176   :  { %v640_v20 = vpop.f32.mrf.mxu1 }
 0x177   :  { %v487_v22 = vmax.f32 %v440_v19, 0.0  ;;  %v641_v26 = vadd.f32 %v4898_v36, %v640_v20 }
 0x179   :  { %4000 = vmatmul.msk.f32.gmra.mxu1 %vm253_vm0, %v487_v22  ;;  %v720_v31 = vmax.f32 %v641_v26, 0.0 }
 0x17c   :  { %v442_v23 = vpop.f32.mrf.mxu0 }
 0x17d   :  { %v443_v25 = vadd.f32 %v4843_v24, %v442_v23 }
 0x17e   :  { %v643_v27 = vpop.f32.mrf.mxu1 }
 0x17f   :  { %v488_v28 = vmax.f32 %v443_v25, 0.0  ;;  %v644_v29 = vadd.f32 %v4898_v36, %v643_v27 }
 0x181   :  { %v721_v30 = vmax.f32 %v644_v29, 0.0  ;;  %4001 = vmatmul.msk.f32.gmra.mxu1 %vm253_vm0, %v488_v28 }
 0x183   :  { %4016 = vmatpush.xpose.msk.msra.mxu2 %vm253_vm0, %v721_v30 }
 0x184   :  { %v445_v32 = vpop.f32.mrf.mxu0 }
 0x185   :  { %v446_v33 = vadd.f32 %v4843_v24, %v445_v32 }
 0x186   :  { %4017 = vmatmul.msk.f32.vlgmr.msra.gmra.mxu2 %vm253_vm0, %v720_v31  ;;  %v646_v34 = vpop.f32.mrf.mxu1 }
 0x187   :  { %v489_v35 = vmax.f32 %v446_v33, 0.0  ;;  %v647_v39 = vadd.f32 %v4898_v36, %v646_v34 }
 0x189   :  { %4002 = vmatmul.msk.f32.gmra.mxu1 %vm253_vm0, %v489_v35  ;;  %v722_v44 = vmax.f32 %v647_v39, 0.0 }
 0x18c   :  { %v448_v37 = vpop.f32.mrf.mxu0 }
 0x18d   :  { %v449_v38 = vadd.f32 %v4843_v24, %v448_v37 }
 0x18e   :  { %v649_v40 = vpop.f32.mrf.mxu1 }
 0x18f   :  { %v490_v41 = vmax.f32 %v449_v38, 0.0  ;;  %v650_v42 = vadd.f32 %v4898_v36, %v649_v40 }
 0x191   :  { %4003 = vmatmul.msk.f32.gmra.mxu1 %vm253_vm0, %v490_v41  ;;  %v723_v43 = vmax.f32 %v650_v42, 0.0 }
 0x193   :  { %4018 = vmatpush.xpose.msk.msra.mxu3 %vm253_vm0, %v723_v43 }
 0x194   :  { %v451_v45 = vpop.f32.mrf.mxu0 }
 0x195   :  { %v452_v46 = vadd.f32 %v4843_v24, %v451_v45 }
 0x196   :  { %v652_v48 = vpop.f32.mrf.mxu1  ;;  %4019 = vmatmul.msk.f32.vlgmr.msra.gmra.mxu3 %vm253_vm0, %v722_v44 }
 0x197   :  { %v491_v49 = vmax.f32 %v452_v46, 0.0  ;;  %v653_v52 = vadd.f32 %v4898_v36, %v652_v48 }
 0x199   :  { %4004 = vmatmul.msk.f32.gmra.mxu1 %vm253_vm0, %v491_v49  ;;  %v724_v57 = vmax.f32 %v653_v52, 0.0 }
 0x19c   :  { %v454_v50 = vpop.f32.mrf.mxu0 }
 0x19d   :  { %v455_v51 = vadd.f32 %v4843_v24, %v454_v50 }
 0x19e   :  { %v655_v53 = vpop.f32.mrf.mxu1 }
 0x19f   :  { %v492_v54 = vmax.f32 %v455_v51, 0.0  ;;  %v656_v55 = vadd.f32 %v4898_v36, %v655_v53 }
 0x1a1   :  { %v725_v56 = vmax.f32 %v656_v55, 0.0  ;;  %4005 = vmatmul.msk.f32.gmra.mxu1 %vm253_vm0, %v492_v54 }
 0x1a3   :  { %4020 = vmatpush.xpose.msk.msrb.mxu2 %vm253_vm0, %v725_v56 }
 0x1a4   :  { %v457_v58 = vpop.f32.mrf.mxu0 }
 0x1a5   :  { %v458_v59 = vadd.f32 %v4843_v24, %v457_v58 }
 0x1a6   :  { %4021 = vmatmul.msk.f32.vlgmr.msrb.gmra.mxu2 %vm253_vm0, %v724_v57  ;;  %v658_v60 = vpop.f32.mrf.mxu1 }
 0x1a7   :  { %v493_v61 = vmax.f32 %v458_v59, 0.0  ;;  %v659_v0 = vadd.f32 %v4898_v36, %v658_v60 }
 0x1a9   :  { %4006 = vmatmul.msk.f32.gmra.mxu1 %vm253_vm0, %v493_v61  ;;  %v726_v8 = vmax.f32 %v659_v0, 0.0 }
 0x1ac   :  { %v460_v62 = vpop.f32.mrf.mxu0 }
 0x1ad   :  { %v461_v63 = vadd.f32 %v4843_v24, %v460_v62  ;;  %v635_v24 = vadd.f32 %v4898_v36, %v4923_v6 }
 0x1ae   :  { %v661_v1 = vpop.f32.mrf.mxu1 }
 0x1af   :  { %v494_v2 = vmax.f32 %v461_v63, 0.0  ;;  %v662_v3 = vadd.f32 %v4898_v36, %v661_v1  ;;  %v718_v17 = vmax.f32 %v635_v24, 0.0 }
 0x1b1   :  { %v727_v4 = vmax.f32 %v662_v3, 0.0  ;;  %4007 = vmatmul.msk.f32.gmra.mxu1 %vm253_vm0, %v494_v2 }
 0x1b3   :  { %4022 = vmatpush.xpose.msk.msrb.mxu3 %vm253_vm0, %v727_v4 }
 0x1b6   :  { %v664_v12 = vpop.f32.mrf.mxu1  ;;  %4023 = vmatmul.msk.f32.vlgmr.msrb.gmra.mxu3 %vm253_vm0, %v726_v8 }
 0x1b7   :  { %v665_v15 = vadd.f32 %v4898_v36, %v664_v12 }
 0x1b9   :  { %4011 = vmatmul.msk.f32.vlgmr.msrb.gmra.mxu1 %vm253_vm0, %v714_v14  ;;  %v728_v47 = vmax.f32 %v665_v15, 0.0 }
 0x1be   :  { %v667_v16 = vpop.f32.mrf.mxu1 }
 0x1bf   :  { %v668_v18 = vadd.f32 %v4898_v36, %v667_v16 }
 0x1c1   :  { %v729_v19 = vmax.f32 %v668_v18, 0.0  ;;  %4015 = vmatmul.msk.f32.vlgmr.msra.gmra.mxu1 %vm253_vm0, %v718_v17 }
 0x1c3   :  { %v4970_v20 = vpop.f32.mrf.mxu0  ;;  %4024 = vmatpush.xpose.msk.msra.mxu2 %vm253_vm0, %v729_v19 }
 0x1c4   :  { %1160 = vxpose.xlu0.b32.start.end [1/1] (short) (narrow) %v4970_v20, 8  ;;  %v1673_v8 = vsel %vm1672_vm1, %v4970_v20, -inf }
 0x1c6   :  { %v670_v22 = vpop.f32.mrf.mxu1  ;;  %4025 = vmatmul.msk.f32.vlgmr.msra.gmra.mxu2 %vm253_vm0, %v728_v47 }
 0x1c7   :  { %v671_v6 = vadd.f32 %v4898_v36, %v670_v22 }
 0x1c9   :  { %v730_v27 = vmax.f32 %v671_v6, 0.0 }
 0x1ce   :  { %v673_v23 = vpop.f32.mrf.mxu1 }
 0x1cf   :  { %v674_v25 = vadd.f32 %v4898_v36, %v673_v23 }
 0x1d1   :  { %v731_v26 = vmax.f32 %v674_v25, 0.0 }
 0x1d3   :  { %4026 = vmatpush.xpose.msk.msra.mxu3 %vm253_vm0, %v731_v26 }
 0x1d6   :  { %v676_v28 = vpop.f32.mrf.mxu1  ;;  %4027 = vmatmul.msk.f32.vlgmr.msra.gmra.mxu3 %vm253_vm0, %v730_v27 }
 0x1d7   :  { %v677_v29 = vadd.f32 %v4898_v36, %v676_v28 }
 0x1d9   :  { %v732_v33 = vmax.f32 %v677_v29, 0.0 }
 0x1de   :  { %v679_v30 = vpop.f32.mrf.mxu1 }
 0x1df   :  { %v680_v31 = vadd.f32 %v4898_v36, %v679_v30 }
 0x1e1   :  { %v733_v32 = vmax.f32 %v680_v31, 0.0 }
 0x1e3   :  { %v4981_v34 = vpop.f32.mrf.mxu0  ;;  %4028 = vmatpush.xpose.msk.msrb.mxu2 %vm253_vm0, %v733_v32 }
 0x1e4   :  { %1224 = vxpose.xlu2.b32.start.end [1/1] (short) (narrow) %v4981_v34, 8  ;;  %v1679_v35 = vsel %vm1672_vm1, %v4981_v34, -inf }
 0x1e5   :  { %1680 = vmax.xlane.f32.xlu1 %v1679_v35 }
 0x1e6   :  { %v682_v37 = vpop.f32.mrf.mxu1  ;;  %4029 = vmatmul.msk.f32.vlgmr.msrb.gmra.mxu2 %vm253_vm0, %v732_v33 }
 0x1e7   :  { %v683_v38 = vadd.f32 %v4898_v36, %v682_v37 }
 0x1e9   :  { %v734_v42 = vmax.f32 %v683_v38, 0.0 }
 0x1ee   :  { %v685_v39 = vpop.f32.mrf.mxu1 }
 0x1ef   :  { %v686_v40 = vadd.f32 %v4898_v36, %v685_v39 }
 0x1f1   :  { %v735_v41 = vmax.f32 %v686_v40, 0.0 }
 0x1f3   :  { %4030 = vmatpush.xpose.msk.msrb.mxu3 %vm253_vm0, %v735_v41 }
 0x1f6   :  { %v688_v43 = vpop.f32.mrf.mxu1  ;;  %4031 = vmatmul.msk.f32.vlgmr.msrb.gmra.mxu3 %vm253_vm0, %v734_v42 }
 0x1f7   :  { %v689_v44 = vadd.f32 %v4898_v36, %v688_v43 }
 0x1f9   :  { %v736_v49 = vmax.f32 %v689_v44, 0.0 }
 0x1fe   :  { %v691_v45 = vpop.f32.mrf.mxu1 }
 0x1ff   :  { %v692_v46 = vadd.f32 %v4898_v36, %v691_v45 }
 0x201   :  { %v737_v48 = vmax.f32 %v692_v46, 0.0 }
 0x203   :  { %4032 = vmatpush.xpose.msk.msra.mxu2 %vm253_vm0, %v737_v48 }
 0x206   :  { %v694_v50 = vpop.f32.mrf.mxu1  ;;  %4033 = vmatmul.msk.f32.vlgmr.msra.gmra.mxu2 %vm253_vm0, %v736_v49 }
 0x207   :  { %v695_v51 = vadd.f32 %v4898_v36, %v694_v50 }
 0x209   :  { %v738_v55 = vmax.f32 %v695_v51, 0.0  ;;  %v5000_v57 = vpop.f32.mrf.mxu2 }
 0x20a   :  { %v1685_v12 = vsel %vm1672_vm1, %v5000_v57, -inf }
 0x20e   :  { %v697_v52 = vpop.f32.mrf.mxu1 }
 0x20f   :  { %v698_v53 = vadd.f32 %v4898_v36, %v697_v52 }
 0x211   :  { %v739_v54 = vmax.f32 %v698_v53, 0.0 }
 0x213   :  { %4034 = vmatpush.xpose.msk.msra.mxu3 %vm253_vm0, %v739_v54 }
 0x216   :  { %v700_v56 = vpop.f32.mrf.mxu1  ;;  %4035 = vmatmul.msk.f32.vlgmr.msra.gmra.mxu3 %vm253_vm0, %v738_v55 }
 0x217   :  { %v701_v58 = vadd.f32 %v4898_v36, %v700_v56 }
 0x219   :  { %v740_v62 = vmax.f32 %v701_v58, 0.0  ;;  %v5029_v14 = vpop.f32.mrf.mxu3 }
 0x21a   :  { %v1688_v24 = vsel %vm1672_vm1, %v5029_v14, -inf }
 0x21e   :  { %v703_v59 = vpop.f32.mrf.mxu1 }
 0x21f   :  { %1288 = vxpose.xlu1.b32.start.end [1/1] (short) (narrow) %v5000_v57, 8  ;;  %v704_v60 = vadd.f32 %v4898_v36, %v703_v59 }
 0x221   :  { %v741_v61 = vmax.f32 %v704_v60, 0.0 }
 0x223   :  { %4036 = vmatpush.xpose.msk.msrb.mxu2 %vm253_vm0, %v741_v61 }
 0x226   :  { %v706_v63 = vpop.f32.mrf.mxu1  ;;  %4037 = vmatmul.msk.f32.vlgmr.msrb.gmra.mxu2 %vm253_vm0, %v740_v62 }
 0x227   :  { %1867 = vmatpush.msra.mxu2 %v4807_v5  ;;  %v707_v0 = vadd.f32 %v4898_v36, %v706_v63 }
 0x229   :  { %1913 = vmatpush.msrb.mxu2 %v4817_v9  ;;  %v742_v4 = vmax.f32 %v707_v0, 0.0 }
 0x22e   :  { %v709_v1 = vpop.f32.mrf.mxu1 }
 0x22f   :  { %v710_v2 = vadd.f32 %v4898_v36, %v709_v1 }
 0x231   :  { %v743_v3 = vmax.f32 %v710_v2, 0.0 }
 0x233   :  { %4038 = vmatpush.xpose.msk.msrb.mxu3 %vm253_vm0, %v743_v3 }
 0x235   :  { %1674 = vmax.xlane.f32.xlu0 %v1673_v8 }
 0x236   :  { %4039 = vmatmul.msk.f32.vlgmr.msrb.gmra.mxu3 %vm253_vm0, %v742_v4  ;;  %v5037_v15 = vpop.f32.mrf.mxu1 }
 0x237   :  { %1890 = vmatpush.msra.mxu3 %v4812_v7  ;;  %v5027_v7 = vpop.f32.mrf.mxu2  ;;  %v1676_v6 = vsel %vm1672_vm1, %v5037_v15, -inf }
 0x239   :  { %1936 = vmatpush.msrb.mxu3 %v4822_v11  ;;  %v1691_v11 = vsel %vm1672_vm1, %v5027_v7, -inf  ;;  %v5040_v16 = vpop.f32.mrf.mxu3 }
 0x23a   :  { %v1694_v47 = vsel %vm1672_vm1, %v5040_v16, -inf }
 0x23e   :  { %v5051_v22 = vpop.f32.mrf.mxu1 }
 0x23f   :  { %v1682_v29 = vsel %vm1672_vm1, %v5051_v22, -inf }
 0x249   :  { %v5056_v23 = vpop.f32.mrf.mxu2 }
 0x24a   :  { %v1697_v25 = vsel %vm1672_vm1, %v5056_v23, -inf }
 0x258   :  { %v5043_v17 = vpop.xlane.xlu1 %1680 }
 0x259   :  { %v5088_v49 = vpop.f32.mrf.mxu3  ;;  %v1723_v62 = vsub.f32 %v4981_v34, %v5043_v17 }
 0x25a   :  { %v1700_v56 = vsel %vm1672_vm1, %v5088_v49, -inf }
 0x25b   :  { %v1741_v63 = vmul.f32 1.442695, %v1723_v62 }
 0x268   :  { %v5017_v5 = vpop.trf.xlu0 }
 0x269   :  { %v2217_v9 = vsel %vm1672_vm1, %v5017_v5, -inf  ;;  %v1027_v59 = vpop.f32.mrf.mxu2 }
 0x26a   :  { %2218 = vmax.xlane.f32.xlu0 %v2217_v9  ;;  %v1703_v60 = vsel %vm1672_vm1, %v1027_v59, -inf }
 0x279   :  { %v5097_v54 = vpop.f32.mrf.mxu3 }
 0x27a   :  { %v1706_v55 = vsel %vm1672_vm1, %v5097_v54, -inf }
 0x27d   :  { %v5021_v36 = vpop.trf.xlu2 }
 0x27e   :  { %v2223_v10 = vsel %vm1672_vm1, %v5021_v36, -inf }
 0x27f   :  { %2224 = vmax.xlane.f32.xlu2 %v2223_v10  ;;  %1686 = vmax.xlane.f32.xlu1 %v1685_v12 }
 0x287   :  { %1692 = vmax.xlane.f32.xlu2 %v1691_v11  ;;  %1689 = vmax.xlane.f32.xlu1 %v1688_v24 }
 0x289   :  { %v5105_v61 = vpop.f32.mrf.mxu2 }
 0x293   :  { %1320 = vxpose.xlu0.b32.start.end [1/1] (short) (narrow) %v5029_v14, 8 }
 0x29b   :  { %1352 = vxpose.xlu0.b32.start.end [1/1] (short) (narrow) %v5027_v7, 8 }
 0x2a8   :  { %v1675_v26 = vpop.xlane.xlu0 %1674 }
 0x2a9   :  { %v1721_v27 = vsub.f32 %v4970_v20, %v1675_v26 }
 0x2ab   :  { %v1737_v28 = vmul.f32 1.442695, %v1721_v27 }
 0x2ad   :  { %4197 = vpow2.f32 %v1737_v28 }
 0x2b0   :  { %1192 = vxpose.xlu2.b32.start.end [1/1] (short) (narrow) %v5037_v15, 8 }
 0x2b3   :  { %v4198_v30 = vpop.eup %4197 }
 0x2b4   :  { %v1769_v31 = vsel %vm1672_vm1, %v4198_v30, 0.0 }
 0x2b8   :  { %1384 = vxpose.xlu2.b32.start.end [1/1] (short) (narrow) %v5040_v16, 8 }
 0x2c3   :  { %v5045_v18 = vpop.trf.xlu1 }
 0x2c4   :  { %v2229_v19 = vsel %vm1672_vm1, %v5045_v18, -inf }
 0x2c5   :  { %2230 = vmax.xlane.f32.xlu1 %v2229_v19 }
 0x2cd   :  { %1695 = vmax.xlane.f32.xlu1 %v1694_v47 }
 0x2dd   :  { %v5064_v32 = vpop.xlane.xlu0 %2218 }
 0x2f2   :  { %v5072_v38 = vpop.xlane.xlu2 %2224  ;;  %v5076_v40 = vpop.xlane.xlu1 %1686 }
 0x2fa   :  { %v5074_v39 = vpop.xlane.xlu2 %1692  ;;  %v5078_v42 = vpop.xlane.xlu1 %1689 }
 0x307   :  { %1256 = vxpose.xlu1.b32.start.end [1/1] (short) (narrow) %v5051_v22, 8 }
 0x30c   :  { %1677 = vmax.xlane.f32.xlu0 %v1676_v6 }
 0x314   :  { %1698 = vmax.xlane.f32.xlu0 %v1697_v25 }
 0x329   :  { %1683 = vmax.xlane.f32.xlu2 %v1682_v29 }
 0x331   :  { %1770 = vadd.xlane.f32.xlu2 %v1769_v31 }
 0x337   :  { %v5067_v33 = vpop.trf.xlu0 }
 0x338   :  { %v2232_v35 = vsel %vm1672_vm1, %v5067_v33, -inf  ;;  %v5082_v44 = vpop.xlane.xlu1 %2230 }
 0x33f   :  { %v1368_v20 = vpop.trf.xlu0 }
 0x340   :  { %v2235_v37 = vsel %vm1672_vm1, %v1368_v20, -inf  ;;  %v5086_v46 = vpop.xlane.xlu1 %1695 }
 0x349   :  { %v1208_v41 = vpop.trf.xlu2 }
 0x34a   :  { %v2220_v58 = vsel %vm1672_vm1, %v1208_v41, -inf }
 0x351   :  { %v5080_v43 = vpop.trf.xlu2 }
 0x35a   :  { %1416 = vxpose.xlu2.b32.start.end [1/1] (short) (narrow) %v5056_v23, 8 }
 0x367   :  { %2233 = vmax.xlane.f32.xlu1 %v2232_v35 }
 0x36f   :  { %2236 = vmax.xlane.f32.xlu1 %v2235_v37  ;;  %v2265_v37 = vsub.f32 %v5017_v5, %v5064_v32 }
 0x37f   :  { %v1678_v5 = vpop.xlane.xlu0 %1677 }
 0x39c   :  { %v5084_v45 = vpop.xlane.xlu2 %1683 }
 0x3a4   :  { %v1771_v48 = vpop.xlane.xlu2 %1770 }
 0x3a5   :  { %4199 = vrcp.f32 %v1771_v48 }
 0x3a6   :  { %4201 = vpow2.f32 %v1741_v63 }
 0x3a9   :  { %1448 = vxpose.xlu1.b32.start.end [1/1] (short) (narrow) %v5088_v49, 8 }
 0x3ab   :  { %v4200_v50 = vpop.eup %4199  ;;  %v5091_v51 = vpop.trf.xlu1 }
 0x3ac   :  { %v1833_v52 = vmul.f32 %v4200_v50, %v4198_v30  ;;  %v2226_v53 = vsel %vm1672_vm1, %v5091_v51, -inf  ;;  %v4202_v0 = vpop.eup %4201  ;;  %v1725_v50 = vsub.f32 %v5000_v57, %v5076_v40  ;;  %v1699_v40 = vpop.xlane.xlu0 %1698 }
 0x3ad   :  { %2227 = vmax.xlane.f32.xlu0 %v2226_v53  ;;  %v1775_v1 = vsel %vm1672_vm1, %v4202_v0, 0.0 }
 0x3ae   :  { %4040 = vmatmul.msk.f32.vlgmr.msra.gmra.mxu2 %vm1672_vm1, %v1833_v52  ;;  %v1745_v53 = vmul.f32 1.442695, %v1725_v50 }
 0x3af   :  { %1959 = vmatpush.msra.mxu2 %v4827_v13  ;;  %v5108_v13 = vpop.f32.mrf.mxu2 }
 0x3b0   :  { %v1715_v62 = vsel %vm1672_vm1, %v5108_v13, -inf }
 0x3b5   :  { %1707 = vmax.xlane.f32.xlu0 %v1706_v55  ;;  %v2267_v55 = vsub.f32 %v5021_v36, %v5072_v38 }
 0x3b7   :  { %v2285_v32 = vmul.f32 1.442695, %v2267_v55 }
 0x3cb   :  { %1701 = vmax.xlane.f32.xlu2 %v1700_v56 }
 0x3d3   :  { %2221 = vmax.xlane.f32.xlu2 %v2220_v58 }
 0x3da   :  { %v5116_v3 = vpop.xlane.xlu1 %2233 }
 0x3db   :  { %1704 = vmax.xlane.f32.xlu2 %v1703_v60 }
 0x3de   :  { %1544 = vxpose.xlu0.b32.start.end [1/1] (short) (narrow) %v5105_v61, 8 }
 0x3e2   :  { %v2237_v8 = vpop.xlane.xlu1 %2236 }
 0x3e3   :  { %v2271_v9 = vsub.f32 %v1368_v20, %v2237_v8 }
 0x3e5   :  { %v2293_v34 = vmul.f32 1.442695, %v2271_v9 }
 0x3e6   :  { %1608 = vxpose.xlu0.b32.start.end [1/1] (short) (narrow) %v5108_v13, 8 }
 0x3e7   :  { %4203 = vpow2.f32 %v2293_v34 }
 0x3ed   :  { %v5122_v19 = vpop.eup %4203 }
 0x3ee   :  { %v2331_v6 = vsel %vm1672_vm1, %v5122_v19, 0.0 }
 0x3f3   :  { %v5114_v2 = vpop.trf.xlu2 }
 0x3f4   :  { %v2241_v10 = vsel %vm1672_vm1, %v5114_v2, -inf }
 0x3f5   :  { %2242 = vmax.xlane.f32.xlu2 %v2241_v10 }
 0x409   :  { %1776 = vadd.xlane.f32.xlu1 %v1775_v1  ;;  %v2269_v1 = vsub.f32 %v5045_v18, %v5082_v44  ;;  %v1729_v18 = vsub.f32 %v5056_v23, %v1699_v40 }
 0x40b   :  { %v2289_v8 = vmul.f32 1.442695, %v2269_v1 }
 0x420   :  { %v5159_v60 = vpop.xlane.xlu0 %2227 }
 0x43e   :  { %v5118_v4 = vpop.xlane.xlu2 %1701 }
 0x443   :  { %1480 = vxpose.xlu1.b32.start.end [1/1] (short) (narrow) %v1027_v59, 8 }
 0x446   :  { %v2222_v12 = vpop.xlane.xlu2 %2221 }
 0x447   :  { %v2266_v11 = vsub.f32 %v1208_v41, %v2222_v12  ;;  %v2281_v41 = vmul.f32 1.442695, %v2265_v37  ;;  %v1728_v12 = vsub.f32 %v5040_v16, %v5086_v46 }
 0x449   :  { %v2283_v24 = vmul.f32 1.442695, %v2266_v11  ;;  %v1751_v34 = vmul.f32 1.442695, %v1728_v12 }
 0x44b   :  { %4205 = vpow2.f32 %v2283_v24  ;;  %v1753_v24 = vmul.f32 1.442695, %v1729_v18 }
 0x44d   :  { %v5134_v30 = vpop.trf.xlu1 }
 0x44e   :  { %v1705_v17 = vpop.xlane.xlu2 %1704 }
 0x44f   :  { %v1731_v47 = vsub.f32 %v1027_v59, %v1705_v17  ;;  %v1722_v59 = vsub.f32 %v5037_v15, %v1678_v5 }
 0x451   :  { %v5126_v25 = vpop.eup %4205  ;;  %v1757_v26 = vmul.f32 1.442695, %v1731_v47  ;;  %v1739_v38 = vmul.f32 1.442695, %v1722_v59  ;;  %v1726_v47 = vsub.f32 %v5029_v14, %v5078_v42 }
 0x452   :  { %v2316_v27 = vsel %vm1672_vm1, %v5126_v25, 0.0 }
 0x453   :  { %4207 = vpow2.f32 %v1757_v26  ;;  %v1747_v46 = vmul.f32 1.442695, %v1726_v47 }
 0x457   :  { %2332 = vadd.xlane.f32.xlu0 %v2331_v6 }
 0x459   :  { %v5130_v28 = vpop.eup %4207 }
 0x45a   :  { %v1799_v29 = vsel %vm1672_vm1, %v5130_v28, 0.0 }
 0x45f   :  { %2317 = vadd.xlane.f32.xlu0 %v2316_v27 }
 0x467   :  { %1800 = vadd.xlane.f32.xlu0 %v1799_v29 }
 0x468   :  { %v2243_v6 = vpop.xlane.xlu2 %2242 }
 0x469   :  { %v2273_v29 = vsub.f32 %v5114_v2, %v2243_v6 }
 0x47c   :  { %v1777_v31 = vpop.xlane.xlu1 %1776 }
 0x47d   :  { %4209 = vrcp.f32 %v1777_v31  ;;  %v2297_v31 = vmul.f32 1.442695, %v2273_v29 }
 0x47e   :  { %4211 = vpow2.f32 %v2281_v41 }
 0x47f   :  { %4213 = vpow2.f32 %v1745_v53 }
 0x480   :  { %4215 = vpow2.f32 %v2285_v32  ;;  %v1724_v32 = vsub.f32 %v5051_v22, %v5084_v45 }
 0x481   :  { %4217 = vpow2.f32 %v1739_v38  ;;  %v1730_v38 = vsub.f32 %v5088_v49, %v5118_v4 }
 0x482   :  { %4219 = vpow2.f32 %v2289_v8  ;;  %v1743_v59 = vmul.f32 1.442695, %v1724_v32 }
 0x483   :  { %v4210_v35 = vpop.eup %4209  ;;  %4221 = vpow2.f32 %v1751_v34  ;;  %v1755_v22 = vmul.f32 1.442695, %v1730_v38 }
 0x484   :  { %v1835_v20 = vmul.f32 %v4210_v35, %v4202_v0  ;;  %v5140_v48 = vpop.eup %4211  ;;  %v1708_v0 = vpop.xlane.xlu0 %1707  ;;  %4223 = vpow2.f32 %v1753_v24  ;;  %v1727_v35 = vsub.f32 %v5027_v7, %v5074_v39 }
 0x485   :  { %v2313_v52 = vsel %vm1672_vm1, %v5140_v48, 0.0  ;;  %v5150_v56 = vpop.eup %4213  ;;  %4225 = vpow2.f32 %v1747_v46  ;;  %v1732_v2 = vsub.f32 %v5097_v54, %v1708_v0 }
 0x486   :  { %4042 = vmatmul.msk.f32.vlgmr.msrb.gmra.mxu2 %vm1672_vm1, %v1835_v20  ;;  %v1781_v57 = vsel %vm1672_vm1, %v5150_v56, 0.0  ;;  %v5154_v58 = vpop.eup %4215  ;;  %4227 = vpow2.f32 %v2297_v31  ;;  %v1749_v50 = vmul.f32 1.442695, %v1727_v35  ;;  %v5256_v31 = vld [vmem:[#allocation2 + $0x58] sm:$0xff] }
 0x487   :  { %2005 = vmatpush.msrb.mxu2 %v4834_v21  ;;  %v1709_v21 = vsel %vm1672_vm1, %v5105_v61, -inf  ;;  %v2319_v36 = vsel %vm1672_vm1, %v5154_v58, 0.0  ;;  %v5163_v63 = vpop.eup %4217  ;;  %v1759_v53 = vmul.f32 1.442695, %v1732_v2 }
 0x488   :  { %v1772_v15 = vsel %vm1672_vm1, %v5163_v63, 0.0  ;;  %v5175_v11 = vpop.eup %4219  ;;  %4229 = vpow2.f32 %v1749_v50 }
 0x489   :  { %v2325_v44 = vsel %vm1672_vm1, %v5175_v11, 0.0  ;;  %v5180_v17 = vpop.eup %4221  ;;  %4231 = vpow2.f32 %v1759_v53 }
 0x48a   :  { %v1790_v16 = vsel %vm1672_vm1, %v5180_v17, 0.0  ;;  %v5186_v26 = vpop.eup %4223  ;;  %4233 = vpow2.f32 %v1743_v59 }
 0x48b   :  { %v1793_v14 = vsel %vm1672_vm1, %v5186_v26, 0.0  ;;  %v5195_v42 = vpop.eup %4225  ;;  %4235 = vpow2.f32 %v1755_v22 }
 0x48c   :  { %v5169_v9 = vpop.trf.xlu0  ;;  %v1784_v37 = vsel %vm1672_vm1, %v5195_v42, 0.0  ;;  %v5208_v55 = vpop.eup %4227 }
 0x48d   :  { %v2253_v10 = vsel %vm1672_vm1, %v5169_v9, -inf  ;;  %v2337_v39 = vsel %vm1672_vm1, %v5208_v55, 0.0 }
 0x494   :  { %v5199_v20 = vpop.trf.xlu0 }
 0x495   :  { %v2259_v41 = vsel %vm1672_vm1, %v5199_v20, -inf }
 0x4a3   :  { %2314 = vadd.xlane.f32.xlu1 %v2313_v52  ;;  %v5206_v52 = vpop.f32.mrf.mxu3 }
 0x4a4   :  { %v1712_v7 = vsel %vm1672_vm1, %v5206_v52, -inf }
 0x4ab   :  { %1710 = vmax.xlane.f32.xlu1 %v1709_v21  ;;  %v5214_v21 = vpop.eup %4229 }
 0x4ac   :  { %v5216_v5 = vpop.eup %4231 }
 0x4ad   :  { %v1802_v40 = vsel %vm1672_vm1, %v5216_v5, 0.0  ;;  %v5230_v45 = vpop.eup %4233 }
 0x4ae   :  { %v1778_v0 = vsel %vm1672_vm1, %v5230_v45, 0.0  ;;  %v5234_v1 = vpop.eup %4235 }
 0x4af   :  { %v1796_v8 = vsel %vm1672_vm1, %v5234_v1, 0.0 }
 0x4b3   :  { %1782 = vadd.xlane.f32.xlu1 %v1781_v57  ;;  %v1787_v57 = vsel %vm1672_vm1, %v5214_v21, 0.0 }
 0x4bb   :  { %2320 = vadd.xlane.f32.xlu1 %v2319_v36  ;;  %v5224_v36 = vpop.f32.mrf.mxu3 }
 0x4c3   :  { %1716 = vmax.xlane.f32.xlu1 %v1715_v62  ;;  %v1718_v62 = vsel %vm1672_vm1, %v5224_v36, -inf }
 0x4cb   :  { %1773 = vadd.xlane.f32.xlu1 %v1772_v15 }
 0x4d3   :  { %2254 = vmax.xlane.f32.xlu1 %v2253_v10  ;;  %v2238_v10 = vsel %vm1672_vm1, %v5080_v43, -inf }
 0x4db   :  { %2326 = vadd.xlane.f32.xlu1 %v2325_v44 }
 0x4e3   :  { %1791 = vadd.xlane.f32.xlu1 %v1790_v16 }
 0x4e7   :  { %v5188_v23 = vpop.trf.xlu1 }
 0x4e8   :  { %v2247_v27 = vsel %vm1672_vm1, %v5188_v23, -inf }
 0x4e9   :  { %2248 = vmax.xlane.f32.xlu2 %v2247_v27 }
 0x4eb   :  { %1794 = vadd.xlane.f32.xlu1 %v1793_v14 }
 0x4f1   :  { %1785 = vadd.xlane.f32.xlu2 %v1784_v37 }
 0x4f3   :  { %2260 = vmax.xlane.f32.xlu1 %v2259_v41 }
 0x4f9   :  { %1713 = vmax.xlane.f32.xlu2 %v1712_v7 }
 0x4fb   :  { %2338 = vadd.xlane.f32.xlu1 %v2337_v39 }
 0x501   :  { %1788 = vadd.xlane.f32.xlu2 %v1787_v57 }
 0x503   :  { %1803 = vadd.xlane.f32.xlu1 %v1802_v40 }
 0x509   :  { %1719 = vmax.xlane.f32.xlu2 %v1718_v62 }
 0x511   :  { %1779 = vadd.xlane.f32.xlu2 %v1778_v0 }
 0x516   :  { %v5236_v15 = vpop.xlane.xlu1 %2314 }
 0x519   :  { %1797 = vadd.xlane.f32.xlu2 %v1796_v8 }
 0x51e   :  { %v1711_v49 = vpop.xlane.xlu1 %1710 }
 0x51f   :  { %v1733_v4 = vsub.f32 %v5105_v61, %v1711_v49  ;;  %v5251_v61 = vld [vmem:[#allocation2 + $0x88] sm:$0xff] }
 0x521   :  { %v1761_v12 = vmul.f32 1.442695, %v1733_v4  ;;  %2239 = vmax.xlane.f32.xlu2 %v2238_v10 }
 0x523   :  { %4237 = vpow2.f32 %v1761_v12 }
 0x526   :  { %v1783_v34 = vpop.xlane.xlu1 %1782 }
 0x527   :  { %4239 = vrcp.f32 %v1783_v34 }
 0x529   :  { %v5243_v18 = vpop.eup %4237 }
 0x52a   :  { %v1805_v44 = vsel %vm1672_vm1, %v5243_v18, 0.0 }
 0x52b   :  { %1806 = vadd.xlane.f32.xlu2 %v1805_v44 }
 0x52d   :  { %v4240_v24 = vpop.eup %4239 }
 0x52e   :  { %v1837_v47 = vmul.f32 %v4240_v24, %v5150_v56  ;;  %v5248_v16 = vpop.xlane.xlu1 %2320 }
 0x530   :  { %4044 = vmatmul.msk.f32.vlgmr.msra.gmra.mxu2 %vm1672_vm1, %v1837_v47 }
 0x531   :  { %2051 = vmatpush.msra.mxu2 %v5251_v61 }
 0x536   :  { %v1717_v46 = vpop.xlane.xlu1 %1716 }
 0x537   :  { %v1735_v22 = vsub.f32 %v5108_v13, %v1717_v46 }
 0x539   :  { %v1765_v4 = vmul.f32 1.442695, %v1735_v22  ;;  %v5317_v22 = vld [vmem:[#allocation2 + $0x78] sm:$0xff] }
 0x53e   :  { %v1774_v6 = vpop.xlane.xlu1 %1773 }
 0x53f   :  { %4241 = vrcp.f32 %v1774_v6 }
 0x545   :  { %v4242_v27 = vpop.eup %4241 }
 0x546   :  { %v1834_v29 = vmul.f32 %v4242_v27, %v5163_v63  ;;  %v2255_v14 = vpop.xlane.xlu1 %2254  ;;  %v2270_v27 = vsub.f32 %v5067_v33, %v5116_v3  ;;  %v5304_v3 = vld [vmem:[#allocation2 + $0xc8] sm:$0xff] }
 0x547   :  { %v2277_v50 = vsub.f32 %v5169_v9, %v2255_v14  ;;  %v5295_v14 = vld [vmem:[#allocation2 + $0xa8] sm:$0xff] }
 0x548   :  { %4041 = vmatmul.msk.f32.vlgmr.msra.gmra.mxu3 %vm1672_vm1, %v1834_v29 }
 0x549   :  { %1982 = vmatpush.msra.mxu3 %v5256_v31  ;;  %v2305_v63 = vmul.f32 1.442695, %v2277_v50 }
 0x54e   :  { %v5259_v56 = vpop.xlane.xlu1 %2326 }
 0x556   :  { %v5261_v35 = vpop.xlane.xlu1 %1791 }
 0x55c   :  { %v2249_v37 = vpop.xlane.xlu2 %2248 }
 0x55d   :  { %v2275_v41 = vsub.f32 %v5188_v23, %v2249_v37  ;;  %v5270_v23 = vpop.xlane.xlu0 %2332 }
 0x55e   :  { %v1795_v2 = vpop.xlane.xlu1 %1794 }
 0x55f   :  { %v2301_v53 = vmul.f32 1.442695, %v2275_v41 }
 0x561   :  { %4243 = vpow2.f32 %v2301_v53 }
 0x562   :  { %4245 = vpow2.f32 %v2305_v63  ;;  %v2244_v63 = vsel %vm1672_vm1, %v5134_v30, -inf }
 0x564   :  { %v1786_v7 = vpop.xlane.xlu2 %1785 }
 0x565   :  { %v5282_v12 = vpop.xlane.xlu0 %2317 }
 0x566   :  { %v2261_v39 = vpop.xlane.xlu1 %2260 }
 0x567   :  { %v5265_v32 = vpop.eup %4243  ;;  %v2279_v57 = vsub.f32 %v5199_v20, %v2261_v39 }
 0x568   :  { %v2343_v40 = vsel %vm1672_vm1, %v5265_v32, 0.0  ;;  %v5272_v9 = vpop.eup %4245 }
 0x569   :  { %v2309_v59 = vmul.f32 1.442695, %v2279_v57  ;;  %2344 = vadd.xlane.f32.xlu2 %v2343_v40  ;;  %v2349_v8 = vsel %vm1672_vm1, %v5272_v9, 0.0 }
 0x56b   :  { %4247 = vpow2.f32 %v2309_v59 }
 0x56c   :  { %v1714_v38 = vpop.xlane.xlu2 %1713 }
 0x56d   :  { %v1734_v62 = vsub.f32 %v5206_v52, %v1714_v38  ;;  %v1801_v37 = vpop.xlane.xlu0 %1800 }
 0x56f   :  { %v1763_v0 = vmul.f32 1.442695, %v1734_v62 }
 0x571   :  { %v5278_v20 = vpop.eup %4247  ;;  %4249 = vpow2.f32 %v1763_v0  ;;  %2350 = vadd.xlane.f32.xlu2 %v2349_v8  ;;  %v5320_v0 = vld [vmem:[#allocation2 + $0xe8] sm:$0xff]  ;;  %v5327_v8 = vpop.xlane.xlu1 %2338 }
 0x572   :  { %v2355_v49 = vsel %vm1672_vm1, %v5278_v20, 0.0 }
 0x573   :  { %2356 = vadd.xlane.f32.xlu1 %v2355_v49 }
 0x574   :  { %v1789_v10 = vpop.xlane.xlu2 %1788 }
 0x575   :  { %4251 = vrcp.f32 %v1789_v10 }
 0x576   :  { %4253 = vpow2.f32 %v1765_v4  ;;  %v5332_v4 = vld [vmem:[#allocation2 + $0x98] sm:$0xff] }
 0x577   :  { %v5284_v34 = vpop.eup %4249  ;;  %4255 = vrcp.f32 %v1795_v2  ;;  %v2291_v2 = vmul.f32 1.442695, %v2270_v27 }
 0x578   :  { %v1808_v13 = vsel %vm1672_vm1, %v5284_v34, 0.0 }
 0x579   :  { %1809 = vadd.xlane.f32.xlu0 %v1808_v13 }
 0x57b   :  { %v4252_v44 = vpop.eup %4251 }
 0x57c   :  { %v1839_v24 = vmul.f32 %v4252_v44, %v5214_v21  ;;  %v1720_v47 = vpop.xlane.xlu2 %1719  ;;  %v5289_v46 = vpop.eup %4253 }
 0x57d   :  { %v1736_v6 = vsub.f32 %v5224_v36, %v1720_v47  ;;  %v1811_v41 = vsel %vm1672_vm1, %v5289_v46, 0.0  ;;  %v4256_v21 = vpop.eup %4255 }
 0x57e   :  { %4046 = vmatmul.msk.f32.vlgmr.msrb.gmra.mxu2 %vm1672_vm1, %v1839_v24  ;;  %v1841_v50 = vmul.f32 %v4256_v21, %v5186_v26 }
 0x57f   :  { %v1767_v29 = vmul.f32 1.442695, %v1736_v6  ;;  %2097 = vmatpush.msrb.mxu2 %v5295_v14 }
 0x581   :  { %4257 = vpow2.f32 %v1767_v29  ;;  %1812 = vadd.xlane.f32.xlu0 %v1811_v41  ;;  %v5343_v29 = vld [vmem:[#allocation2 + $0xd8] sm:$0xff] }
 0x582   :  { %4259 = vrcp.f32 %v1801_v37  ;;  %v5347_v37 = vld [vmem:[#allocation2] sm:$0xff] }
 0x584   :  { %v1780_v53 = vpop.xlane.xlu2 %1779 }
 0x585   :  { %4261 = vrcp.f32 %v1780_v53  ;;  %v5364_v53 = vld [vmem:[#allocation2 + $0x10] sm:$0xff] }
 0x586   :  { %4048 = vmatmul.msk.f32.vlgmr.msra.gmra.mxu2 %vm1672_vm1, %v1841_v50  ;;  %4263 = vpow2.f32 %v2291_v2 }
 0x587   :  { %v5302_v33 = vpop.eup %4257  ;;  %2143 = vmatpush.msra.mxu2 %v5304_v3  ;;  %4265 = vrcp.f32 %v1786_v7 }
 0x588   :  { %v1814_v39 = vsel %vm1672_vm1, %v5302_v33, 0.0  ;;  %v4260_v57 = vpop.eup %4259  ;;  %4267 = vrcp.f32 %v5261_v35  ;;  %v5337_v35 = vld [vmem:[#allocation2 + $0xb8] sm:$0xff] }
 0x589   :  { %2245 = vmax.xlane.f32.xlu0 %v2244_v63  ;;  %1815 = vadd.xlane.f32.xlu2 %v1814_v39  ;;  %v1843_v40 = vmul.f32 %v4260_v57, %v5130_v28 }
 0x58b   :  { %v4262_v26 = vpop.eup %4261 }
 0x58c   :  { %v1836_v59 = vmul.f32 %v4262_v26, %v5230_v45  ;;  %v1798_v38 = vpop.xlane.xlu2 %1797  ;;  %v5313_v62 = vpop.eup %4263 }
 0x58d   :  { %v2328_v28 = vsel %vm1672_vm1, %v5313_v62, 0.0  ;;  %v4266_v7 = vpop.eup %4265  ;;  %4269 = vrcp.f32 %v1798_v38 }
 0x58e   :  { %4043 = vmatmul.msk.f32.vlgmr.msrb.gmra.mxu3 %vm1672_vm1, %v1836_v59  ;;  %4050 = vmatmul.msk.f32.vlgmr.msrb.gmra.mxu2 %vm1672_vm1, %v1843_v40  ;;  %v1838_v45 = vmul.f32 %v4266_v7, %v5195_v42  ;;  %v4268_v10 = vpop.eup %4267  ;;  %v1804_v42 = vpop.xlane.xlu1 %1803  ;;  %v5386_v59 = vld [vmem:[#allocation2 + $0x30] sm:$0xff] }
 0x58f   :  { %2028 = vmatpush.msrb.mxu3 %v5317_v22  ;;  %2189 = vmatpush.msrb.mxu2 %v5320_v0  ;;  %v1840_v13 = vmul.f32 %v4268_v10, %v5180_v17  ;;  %v5399_v7 = vld [vmem:[#allocation2 + $0x50] sm:$0xff] }
 0x591   :  { %2329 = vadd.xlane.f32.xlu2 %v2328_v28  ;;  %v5396_v28 = vld [vmem:[#allocation2 + $0x60] sm:$0xff] }
 0x593   :  { %v4270_v24 = vpop.eup %4269 }
 0x594   :  { %v5329_v49 = vpop.xlane.xlu2 %2239  ;;  %v1842_v47 = vmul.f32 %v4270_v24, %v5234_v1  ;;  %v5353_v1 = vld [vmem:[#allocation2 + $0xf8] sm:$0xff]  ;;  %v5412_v24 = vld [vmem:[#allocation2 + $0xa0] sm:$0xff] }
 0x596   :  { %4045 = vmatmul.msk.f32.vlgmr.msra.gmra.mxu3 %vm1672_vm1, %v1838_v45  ;;  %v5405_v45 = vld [vmem:[#allocation2 + $0x80] sm:$0xff] }
 0x597   :  { %2074 = vmatpush.msra.mxu3 %v5332_v4 }
 0x59e   :  { %v1807_v44 = vpop.xlane.xlu2 %1806  ;;  %4047 = vmatmul.msk.f32.vlgmr.msrb.gmra.mxu3 %vm1672_vm1, %v1840_v13 }
 0x59f   :  { %4271 = vrcp.f32 %v1807_v44  ;;  %2120 = vmatpush.msrb.mxu3 %v5337_v35 }
 0x5a0   :  { %4273 = vrcp.f32 %v1804_v42 }
 0x5a5   :  { %v4272_v6 = vpop.eup %4271 }
 0x5a6   :  { %v1845_v27 = vmul.f32 %v4272_v6, %v5243_v18  ;;  %4049 = vmatmul.msk.f32.vlgmr.msra.gmra.mxu3 %vm1672_vm1, %v1842_v47  ;;  %v4274_v17 = vpop.eup %4273  ;;  %v2766_v6 = vld [vmem:[#allocation10 + $0x8] sm:$0xff] }
 0x5a7   :  { %2166 = vmatpush.msra.mxu3 %v5343_v29  ;;  %v1844_v41 = vmul.f32 %v4274_v17, %v5216_v5 }
 0x5a8   :  { %4052 = vmatmul.msk.f32.vlgmr.msra.gmra.mxu2 %vm1672_vm1, %v1845_v27  ;;  %v5420_v27 = vld [vmem:[#allocation2 + $0xc0] sm:$0xff] }
 0x5a9   :  { %2411 = vmatpush.msra.mxu2 %v5347_v37 }
 0x5ad   :  { %1512 = vxpose.xlu1.b32.start.end [1/1] (short) (narrow) %v5097_v54, 8 }
 0x5ae   :  { %4051 = vmatmul.msk.f32.vlgmr.msrb.gmra.mxu3 %vm1672_vm1, %v1844_v41 }
 0x5af   :  { %2212 = vmatpush.msrb.mxu3 %v5353_v1 }
 0x5b2   :  { %1576 = vxpose.xlu0.b32.start.end [1/1] (short) (narrow) %v5206_v52, 8  ;;  %v2268_v52 = vsub.f32 %v5091_v51, %v5159_v60 }
 0x5b4   :  { %v2287_v57 = vmul.f32 1.442695, %v2268_v52 }
 0x5ba   :  { %1640 = vxpose.xlu2.b32.start.end [1/1] (short) (narrow) %v5224_v36, 8 }
 0x5cb   :  { %v1892_v52 = vpop.f32.mrf.mxu3 }
 0x5dc   :  { %v5358_v18 = vpop.xlane.xlu2 %2344 }
 0x5e4   :  { %v5360_v50 = vpop.xlane.xlu2 %2350 }
 0x5ec   :  { %v1810_v21 = vpop.xlane.xlu0 %1809 }
 0x5ed   :  { %4275 = vrcp.f32 %v1810_v21  ;;  %v2357_v21 = vpop.xlane.xlu1 %2356 }
 0x5f3   :  { %v4276_v2 = vpop.eup %4275 }
 0x5f4   :  { %v1846_v5 = vmul.f32 %v4276_v2, %v5284_v34  ;;  %v1813_v54 = vpop.xlane.xlu0 %1812  ;;  %v5372_v34 = vld [vmem:[#allocation2 + $0x20] sm:$0xff] }
 0x5f5   :  { %4277 = vrcp.f32 %v1813_v54 }
 0x5f6   :  { %4053 = vmatmul.msk.f32.vlgmr.msra.gmra.mxu3 %vm1672_vm1, %v1846_v5  ;;  %4279 = vrcp.f32 %v5236_v15 }
 0x5f7   :  { %2434 = vmatpush.msra.mxu3 %v5364_v53 }
 0x5fb   :  { %v4278_v36 = vpop.eup %4277 }
 0x5fc   :  { %v1847_v63 = vmul.f32 %v4278_v36, %v5289_v46  ;;  %v1816_v39 = vpop.xlane.xlu2 %1815  ;;  %v4280_v26 = vpop.eup %4279  ;;  %v5383_v46 = vld [vmem:[#allocation2 + $0x40] sm:$0xff] }
 0x5fd   :  { %4281 = vrcp.f32 %v1816_v39  ;;  %v2377_v51 = vmul.f32 %v4280_v26, %v5140_v48 }
 0x5fe   :  { %4054 = vmatmul.msk.f32.vlgmr.msrb.gmra.mxu2 %vm1672_vm1, %v1847_v63  ;;  %4283 = vpow2.f32 %v2287_v57  ;;  %v2272_v63 = vsub.f32 %v5080_v43, %v5329_v49 }
 0x5ff   :  { %2457 = vmatpush.msrb.mxu2 %v5372_v34  ;;  %4285 = vrcp.f32 %v5282_v12 }
 0x600   :  { %4287 = vrcp.f32 %v5248_v16  ;;  %v2295_v57 = vmul.f32 1.442695, %v2272_v63 }
 0x601   :  { %4289 = vrcp.f32 %v5259_v56 }
 0x602   :  { %4291 = vrcp.f32 %v5270_v23  ;;  %v2768_v23 = vld [vmem:[#allocation10 + $0x18] sm:$0xff] }
 0x603   :  { %v4282_v40 = vpop.eup %4281  ;;  %4293 = vrcp.f32 %v5327_v8  ;;  %3180 = vmatpush.msrb.mxu1 %v2768_v23 }
 0x604   :  { %v1848_v60 = vmul.f32 %v4282_v40, %v5302_v33  ;;  %v5381_v15 = vpop.eup %4283  ;;  %v2330_v43 = vpop.xlane.xlu2 %2329 }
 0x605   :  { %v4286_v12 = vpop.eup %4285  ;;  %v2322_v38 = vsel %vm1672_vm1, %v5381_v15, 0.0 }
 0x606   :  { %4055 = vmatmul.msk.f32.vlgmr.msrb.gmra.mxu3 %vm1672_vm1, %v1848_v60  ;;  %4056 = vmatmul.msk.f32.vlgmr.msra.gmra.mxu2 %vm1672_vm1, %v2377_v51  ;;  %v4288_v16 = vpop.eup %4287  ;;  %v2378_v48 = vmul.f32 %v4286_v12, %v5126_v25 }
 0x607   :  { %2503 = vmatpush.msra.mxu2 %v5383_v46  ;;  %2480 = vmatpush.msrb.mxu3 %v5386_v59  ;;  %v2379_v33 = vmul.f32 %v4288_v16, %v5154_v58  ;;  %v4290_v56 = vpop.eup %4289  ;;  %v2246_v58 = vpop.xlane.xlu0 %2245 }
 0x608   :  { %v2381_v25 = vmul.f32 %v4290_v56, %v5175_v11  ;;  %v4292_v10 = vpop.eup %4291  ;;  %v2274_v13 = vsub.f32 %v5134_v30, %v2246_v58  ;;  %v2767_v11 = vld [vmem:[#allocation10 + $0x10] sm:$0xff] }
 0x609   :  { %v2383_v44 = vmul.f32 %v4292_v10, %v5122_v19  ;;  %v4294_v47 = vpop.eup %4293  ;;  %3181 = vmatpush.msrb.mxu1 %v2767_v11  ;;  %v2765_v19 = vld [vmem:[#allocation10] sm:$0xff] }
 0x60a   :  { %v2299_v42 = vmul.f32 1.442695, %v2274_v13  ;;  %v2385_v30 = vmul.f32 %v4294_v47, %v5208_v55  ;;  %v5428_v55 = vld [vmem:[#allocation2 + $0xe0] sm:$0xff] }
 0x60b   :  { %3182 = vmatpush.msrb.mxu1 %v2766_v6 }
 0x60c   :  { %4295 = vpow2.f32 %v2299_v42 }
 0x60d   :  { %2323 = vadd.xlane.f32.xlu1 %v2322_v38  ;;  %4297 = vrcp.f32 %v5358_v18  ;;  %3183 = vmatpush.msrb.mxu1 %v2765_v19 }
 0x60e   :  { %4057 = vmatmul.msk.f32.vlgmr.msra.gmra.mxu3 %vm1672_vm1, %v2378_v48  ;;  %4058 = vmatmul.msk.f32.vlgmr.msrb.gmra.mxu2 %vm1672_vm1, %v2379_v33  ;;  %4299 = vrcp.f32 %v5360_v50 }
 0x60f   :  { %2549 = vmatpush.msrb.mxu2 %v5396_v28  ;;  %2526 = vmatpush.msra.mxu3 %v5399_v7  ;;  %4301 = vrcp.f32 %v2357_v21 }
 0x610   :  { %4303 = vpow2.f32 %v2295_v57 }
 0x612   :  { %v5418_v8 = vpop.eup %4295 }
 0x613   :  { %v4298_v17 = vpop.eup %4297  ;;  %v2340_v41 = vsel %vm1672_vm1, %v5418_v8, 0.0 }
 0x614   :  { %v2387_v18 = vmul.f32 %v4298_v17, %v5265_v32  ;;  %v4300_v2 = vpop.eup %4299  ;;  %v1869_v32 = vpop.f32.mrf.mxu2 }
 0x615   :  { %v2389_v5 = vmul.f32 %v4300_v2, %v5272_v9  ;;  %v4302_v54 = vpop.eup %4301  ;;  %v1938_v9 = vpop.f32.mrf.mxu3  ;;  %v5478_v2 = vld [vmem:[#allocation8 + $0x18] sm:$0xff] }
 0x616   :  { %4060 = vmatmul.msk.f32.vlgmr.msra.gmra.mxu2 %vm1672_vm1, %v2381_v25  ;;  %v2391_v50 = vmul.f32 %v4302_v54, %v5278_v20  ;;  %v5448_v60 = vpop.eup %4303  ;;  %v5487_v54 = vld [vmem:[#allocation8] sm:$0xff] }
 0x617   :  { %2595 = vmatpush.msra.mxu2 %v5405_v45  ;;  %v2334_v16 = vsel %vm1672_vm1, %v5448_v60, 0.0 }
 0x61c   :  { %v1915_v36 = vpop.f32.mrf.mxu2 }
 0x61d   :  { %v1984_v49 = vpop.f32.mrf.mxu3 }
 0x61e   :  { %4062 = vmatmul.msk.f32.vlgmr.msrb.gmra.mxu2 %vm1672_vm1, %v2383_v44 }
 0x61f   :  { %2641 = vmatpush.msrb.mxu2 %v5412_v24 }
 0x624   :  { %v1961_v26 = vpop.f32.mrf.mxu2 }
 0x625   :  { %v2030_v33 = vpop.f32.mrf.mxu3 }
 0x626   :  { %4064 = vmatmul.msk.f32.vlgmr.msra.gmra.mxu2 %vm1672_vm1, %v2385_v30 }
 0x627   :  { %2687 = vmatpush.msra.mxu2 %v5420_v27 }
 0x62b   :  { %2341 = vadd.xlane.f32.xlu2 %v2340_v41 }
 0x62c   :  { %v2007_v12 = vpop.f32.mrf.mxu2 }
 0x62d   :  { %v2076_v25 = vpop.f32.mrf.mxu3 }
 0x62e   :  { %4066 = vmatmul.msk.f32.vlgmr.msrb.gmra.mxu2 %vm1672_vm1, %v2387_v18 }
 0x62f   :  { %2733 = vmatpush.msrb.mxu2 %v5428_v55 }
 0x634   :  { %v2053_v56 = vpop.f32.mrf.mxu2 }
 0x635   :  { %v2122_v13 = vpop.f32.mrf.mxu3 }
 0x636   :  { %4068 = vmatmul.msk.f32.vlgmr.msra.gmra.mxu2 %vm1672_vm1, %v2389_v5  ;;  %v5483_v5 = vld [vmem:[#allocation8 + $0x8] sm:$0xff] }
 0x637   :  { %2829 = vmatpush.msra.mxu2 %v2768_v23 }
 0x639   :  { %2830 = vmatpush.msra.mxu2 %v2767_v11 }
 0x63b   :  { %2831 = vmatpush.msra.mxu2 %v2766_v6 }
 0x63c   :  { %v2099_v58 = vpop.f32.mrf.mxu2 }
 0x63d   :  { %2832 = vmatpush.msra.mxu2 %v2765_v19  ;;  %v5465_v19 = vld [vmem:[#allocation2 + $0x70] sm:$0xff] }
 0x63e   :  { %4070 = vmatmul.msk.f32.vlgmr.msrb.gmra.mxu2 %vm1672_vm1, %v2391_v50 }
 0x63f   :  { %3245 = vmatpush.msrb.mxu2 %v5478_v2 }
 0x644   :  { %v2145_v10 = vpop.f32.mrf.mxu2 }
 0x646   :  { %4072 = vmatmul.msk.f32.vlgmr.msra.gmra.mxu2 %vm253_vm0, %v1869_v32 }
 0x64e   :  { %4073 = vmatmul.msk.f32.gmra.mxu2 %vm253_vm0, %v1892_v52  ;;  %v4356_v52 = vld [vmem:[#allocation2 + $0x8] sm:$0xff] }
 0x651   :  { %v5439_v39 = vpop.trf.xlu1 }
 0x652   :  { %v2250_v20 = vsel %vm1672_vm1, %v5439_v39, -inf }
 0x653   :  { %2251 = vmax.xlane.f32.xlu0 %v2250_v20  ;;  %v5453_v48 = vpop.trf.xlu2 }
 0x654   :  { %v2262_v38 = vsel %vm1672_vm1, %v5453_v48, -inf }
 0x656   :  { %v5443_v40 = vpop.trf.xlu0  ;;  %4074 = vmatmul.msk.f32.gmra.mxu2 %vm253_vm0, %v1915_v36 }
 0x657   :  { %v2256_v51 = vsel %vm1672_vm1, %v5443_v40, -inf }
 0x658   :  { %2257 = vmax.xlane.f32.xlu1 %v2256_v51  ;;  %v4357_v51 = vld [vmem:[#allocation2 + $0x18] sm:$0xff] }
 0x65e   :  { %4075 = vmatmul.msk.f32.gmra.mxu2 %vm253_vm0, %v1938_v9 }
 0x660   :  { %2335 = vadd.xlane.f32.xlu1 %v2334_v16 }
 0x666   :  { %4076 = vmatmul.msk.f32.gmra.mxu2 %vm253_vm0, %v1961_v26 }
 0x668   :  { %2263 = vmax.xlane.f32.xlu1 %v2262_v38 }
 0x66e   :  { %4077 = vmatmul.msk.f32.gmra.mxu2 %vm253_vm0, %v1984_v49 }
 0x676   :  { %4078 = vmatmul.msk.f32.gmra.mxu2 %vm253_vm0, %v2007_v12 }
 0x679   :  { %v2168_v42 = vpop.f32.mrf.mxu3 }
 0x67e   :  { %4079 = vmatmul.msk.f32.gmra.mxu2 %vm253_vm0, %v2030_v33 }
 0x680   :  { %v2324_v44 = vpop.xlane.xlu1 %2323 }
 0x681   :  { %4305 = vrcp.f32 %v2324_v44  ;;  %v2191_v23 = vpop.f32.mrf.mxu2 }
 0x682   :  { %4307 = vrcp.f32 %v2330_v43 }
 0x686   :  { %4080 = vmatmul.msk.f32.gmra.mxu2 %vm253_vm0, %v2053_v56 }
 0x687   :  { %v4306_v11 = vpop.eup %4305 }
 0x688   :  { %v2380_v47 = vmul.f32 %v4306_v11, %v5381_v15  ;;  %v4308_v17 = vpop.eup %4307  ;;  %v5472_v15 = vld [vmem:[#allocation2 + $0x90] sm:$0xff] }
 0x689   :  { %v2214_v6 = vpop.f32.mrf.mxu3  ;;  %v2413_v30 = vpop.f32.mrf.mxu2  ;;  %v2382_v41 = vmul.f32 %v4308_v17, %v5313_v62  ;;  %v5481_v62 = vld [vmem:[#allocation8 + $0x10] sm:$0xff] }
 0x68a   :  { %4059 = vmatmul.msk.f32.vlgmr.msrb.gmra.mxu3 %vm1672_vm1, %v2380_v47  ;;  %4120 = vmatmul.msk.f32.vlgmr.msrb.gmra.mxu1 %vm253_vm0, %v2413_v30  ;;  %v5527_v30 = vld [vmem:[#allocation2 + $0xd0] sm:$0xff] }
 0x68b   :  { %2572 = vmatpush.msrb.mxu3 %v5465_v19  ;;  %3246 = vmatpush.msrb.mxu2 %v5481_v62 }
 0x68d   :  { %3247 = vmatpush.msrb.mxu2 %v5483_v5 }
 0x68e   :  { %4081 = vmatmul.msk.f32.gmra.mxu2 %vm253_vm0, %v2076_v25 }
 0x68f   :  { %3248 = vmatpush.msrb.mxu2 %v5487_v54 }
 0x691   :  { %v2436_v18 = vpop.f32.mrf.mxu3  ;;  %v2459_v21 = vpop.f32.mrf.mxu2 }
 0x692   :  { %4061 = vmatmul.msk.f32.vlgmr.msra.gmra.mxu3 %vm1672_vm1, %v2382_v41  ;;  %4121 = vmatmul.msk.f32.gmra.mxu1 %vm253_vm0, %v2436_v18 }
 0x693   :  { %2618 = vmatpush.msra.mxu3 %v5472_v15 }
 0x696   :  { %4082 = vmatmul.msk.f32.gmra.mxu2 %vm253_vm0, %v2099_v58 }
 0x699   :  { %v5493_v50 = vpop.f32.mrf.mxu2 }
 0x69a   :  { %4122 = vmatmul.msk.f32.gmra.mxu1 %vm253_vm0, %v2459_v21 }
 0x69e   :  { %4083 = vmatmul.msk.f32.gmra.mxu2 %vm253_vm0, %v2122_v13 }
 0x6a1   :  { %v5496_v32 = vpop.f32.mrf.mxu2 }
 0x6a6   :  { %4084 = vmatmul.msk.f32.gmra.mxu2 %vm253_vm0, %v2145_v10 }
 0x6a9   :  { %v5502_v43 = vpop.f32.mrf.mxu2 }
 0x6ae   :  { %4085 = vmatmul.msk.f32.gmra.mxu2 %vm253_vm0, %v2168_v42  ;;  %v4359_v42 = vld [vmem:[#allocation2 + $0x38] sm:$0xff] }
 0x6b1   :  { %v5511_v56 = vpop.f32.mrf.mxu2 }
 0x6b6   :  { %4086 = vmatmul.msk.f32.gmra.mxu2 %vm253_vm0, %v2191_v23  ;;  %v5519_v23 = vld [vmem:[#allocation2 + $0xb0] sm:$0xff] }
 0x6be   :  { %4087 = vmatmul.msk.f32.gmra.mxu2 %vm253_vm0, %v2214_v6  ;;  %v5523_v6 = vpop.f32.mrf.mxu2 }
 0x6c6   :  { %4136 = vmatmul.msk.f32.vlgmr.msrb.gmra.mxu2 %vm253_vm0, %v4356_v52  ;;  %v2252_v36 = vpop.xlane.xlu0 %2251  ;;  %v5531_v41 = vpop.f32.mrf.mxu2 }
 0x6c7   :  { %v2276_v63 = vsub.f32 %v5439_v39, %v2252_v36  ;;  %v4358_v39 = vld [vmem:[#allocation2 + $0x28] sm:$0xff] }
 0x6c9   :  { %v2303_v9 = vmul.f32 1.442695, %v2276_v63 }
 0x6cb   :  { %4309 = vpow2.f32 %v2303_v9  ;;  %v2258_v57 = vpop.xlane.xlu1 %2257 }
 0x6cc   :  { %v2278_v20 = vsub.f32 %v5443_v40, %v2258_v57  ;;  %v2342_v40 = vpop.xlane.xlu2 %2341 }
 0x6ce   :  { %v2307_v26 = vmul.f32 1.442695, %v2278_v20  ;;  %4137 = vmatmul.msk.f32.gmra.mxu2 %vm253_vm0, %v4357_v51  ;;  %v5536_v18 = vpop.f32.mrf.mxu2 }
 0x6d0   :  { %4311 = vpow2.f32 %v2307_v26 }
 0x6d1   :  { %v5504_v49 = vpop.eup %4309 }
 0x6d2   :  { %v2346_v12 = vsel %vm1672_vm1, %v5504_v49, 0.0 }
 0x6d3   :  { %2347 = vadd.xlane.f32.xlu1 %v2346_v12  ;;  %v2336_v16 = vpop.xlane.xlu1 %2335 }
 0x6d4   :  { %4313 = vrcp.f32 %v2336_v16 }
 0x6d5   :  { %4315 = vrcp.f32 %v2342_v40 }
 0x6d6   :  { %4138 = vmatmul.msk.f32.gmra.mxu2 %vm253_vm0, %v4358_v39  ;;  %v5509_v33 = vpop.eup %4311  ;;  %v5540_v21 = vpop.f32.mrf.mxu2 }
 0x6d7   :  { %v2352_v25 = vsel %vm1672_vm1, %v5509_v33, 0.0 }
 0x6da   :  { %v4314_v38 = vpop.eup %4313 }
 0x6db   :  { %v2384_v58 = vmul.f32 %v4314_v38, %v5448_v60  ;;  %2353 = vadd.xlane.f32.xlu1 %v2352_v25  ;;  %v2264_v10 = vpop.xlane.xlu1 %2263  ;;  %v4316_v11 = vpop.eup %4315 }
 0x6dc   :  { %v2280_v13 = vsub.f32 %v5453_v48, %v2264_v10  ;;  %v2386_v47 = vmul.f32 %v4316_v11, %v5418_v8  ;;  %v4361_v48 = vld [vmem:[#allocation2 + $0x48] sm:$0xff] }
 0x6dd   :  { %4063 = vmatmul.msk.f32.vlgmr.msrb.gmra.mxu3 %vm1672_vm1, %v2384_v58  ;;  %v4363_v8 = vld [vmem:[#allocation2 + $0x68] sm:$0xff] }
 0x6de   :  { %v2311_v44 = vmul.f32 1.442695, %v2280_v13  ;;  %4139 = vmatmul.msk.f32.gmra.mxu2 %vm253_vm0, %v4359_v42  ;;  %2664 = vmatpush.msrb.mxu3 %v5519_v23  ;;  %v5544_v52 = vpop.f32.mrf.mxu2 }
 0x6e0   :  { %4317 = vpow2.f32 %v2311_v44 }
 0x6e5   :  { %4065 = vmatmul.msk.f32.vlgmr.msra.gmra.mxu3 %vm1672_vm1, %v2386_v47 }
 0x6e6   :  { %v4318_v60 = vpop.eup %4317  ;;  %4140 = vmatmul.msk.f32.gmra.mxu2 %vm253_vm0, %v4361_v48  ;;  %2710 = vmatpush.msra.mxu3 %v5527_v30 }
 0x6e7   :  { %v2358_v17 = vsel %vm1672_vm1, %v4318_v60, 0.0 }
 0x6e8   :  { %2359 = vadd.xlane.f32.xlu1 %v2358_v17 }
 0x6ee   :  { %4141 = vmatmul.msk.f32.gmra.mxu2 %vm253_vm0, %v5256_v31  ;;  %v5549_v31 = vpop.f32.mrf.mxu2 }
 0x6f6   :  { %4142 = vmatmul.msk.f32.gmra.mxu2 %vm253_vm0, %v4363_v8 }
 0x6fe   :  { %4143 = vmatmul.msk.f32.gmra.mxu2 %vm253_vm0, %v5317_v22 }
 0x706   :  { %4144 = vmatmul.msk.f32.gmra.mxu2 %vm253_vm0, %v5251_v61  ;;  %v5558_v61 = vpop.f32.mrf.mxu2 }
 0x70d   :  { %v2482_v36 = vpop.f32.mrf.mxu3 }
 0x70e   :  { %4123 = vmatmul.msk.f32.gmra.mxu1 %vm253_vm0, %v2482_v36  ;;  %4145 = vmatmul.msk.f32.gmra.mxu2 %vm253_vm0, %v5332_v4  ;;  %v5564_v4 = vpop.f32.mrf.mxu2 }
 0x715   :  { %v2528_v22 = vpop.f32.mrf.mxu3 }
 0x716   :  { %4124 = vmatmul.msk.f32.gmra.mxu1 %vm253_vm0, %v5493_v50  ;;  %4146 = vmatmul.msk.f32.gmra.mxu2 %vm253_vm0, %v5295_v14  ;;  %v5568_v14 = vpop.f32.mrf.mxu2 }
 0x71e   :  { %4125 = vmatmul.msk.f32.gmra.mxu1 %vm253_vm0, %v2528_v22  ;;  %4147 = vmatmul.msk.f32.gmra.mxu2 %vm253_vm0, %v5337_v35  ;;  %v5572_v50 = vpop.f32.mrf.mxu2 }
 0x726   :  { %4126 = vmatmul.msk.f32.gmra.mxu1 %vm253_vm0, %v5496_v32  ;;  %4148 = vmatmul.msk.f32.gmra.mxu2 %vm253_vm0, %v5304_v3 }
 0x72e   :  { %4149 = vmatmul.msk.f32.gmra.mxu2 %vm253_vm0, %v5343_v29  ;;  %v5578_v29 = vld [vmem:[#allocation2 + $0xf0] sm:$0xff] }
 0x736   :  { %4150 = vmatmul.msk.f32.gmra.mxu2 %vm253_vm0, %v5320_v0 }
 0x73e   :  { %4151 = vmatmul.msk.f32.gmra.mxu2 %vm253_vm0, %v5353_v1 }
 0x746   :  { %v2348_v35 = vpop.xlane.xlu1 %2347 }
 0x747   :  { %4319 = vrcp.f32 %v2348_v35 }
 0x74d   :  { %v4320_v32 = vpop.eup %4319 }
 0x74e   :  { %v2388_v3 = vmul.f32 %v4320_v32, %v5504_v49  ;;  %v2354_v63 = vpop.xlane.xlu1 %2353 }
 0x74f   :  { %4321 = vrcp.f32 %v2354_v63 }
 0x750   :  { %4067 = vmatmul.msk.f32.vlgmr.msrb.gmra.mxu3 %vm1672_vm1, %v2388_v3 }
 0x751   :  { %2756 = vmatpush.msrb.mxu3 %v5578_v29 }
 0x755   :  { %v4322_v9 = vpop.eup %4321 }
 0x756   :  { %v2390_v0 = vmul.f32 %v4322_v9, %v5509_v33 }
 0x758   :  { %4069 = vmatmul.msk.f32.vlgmr.msra.gmra.mxu3 %vm1672_vm1, %v2390_v0 }
 0x759   :  { %2894 = vmatpush.msra.mxu3 %v5478_v2 }
 0x75b   :  { %v2360_v1 = vpop.xlane.xlu1 %2359  ;;  %2895 = vmatpush.msra.mxu3 %v5481_v62  ;;  %v5600_v62 = vpop.f32.mrf.mxu2 }
 0x75c   :  { %4323 = vrcp.f32 %v2360_v1 }
 0x75d   :  { %2896 = vmatpush.msra.mxu3 %v5483_v5 }
 0x75f   :  { %2897 = vmatpush.msra.mxu3 %v5487_v54  ;;  %v3185_v54 = vpop.f32.mrf.mxu1 }
 0x760   :  { %v2574_v57 = vpop.f32.mrf.mxu3 }
 0x761   :  { %4127 = vmatmul.msk.f32.gmra.mxu1 %vm253_vm0, %v2574_v57 }
 0x762   :  { %v4324_v20 = vpop.eup %4323 }
 0x763   :  { %v2392_v26 = vmul.f32 %v4324_v20, %v4318_v60  ;;  %v5604_v5 = vpop.f32.mrf.mxu2 }
 0x765   :  { %4071 = vmatmul.msk.f32.vlgmr.msrb.gmra.mxu3 %vm1672_vm1, %v2392_v26 }
 0x767   :  { %v3188_v49 = vpop.f32.mrf.mxu1 }
 0x768   :  { %v2620_v2 = vpop.f32.mrf.mxu3 }
 0x769   :  { %4128 = vmatmul.msk.f32.gmra.mxu1 %vm253_vm0, %v5502_v43 }
 0x76d   :  { %4088 = vmatmul.msk.f32.vlgmr.msra.gmra.mxu3 %vm253_vm0, %v5347_v37  ;;  %v5608_v37 = vpop.f32.mrf.mxu2 }
 0x76f   :  { %v3191_v33 = vpop.f32.mrf.mxu1 }
 0x771   :  { %4129 = vmatmul.msk.f32.gmra.mxu1 %vm253_vm0, %v2620_v2 }
 0x775   :  { %4089 = vmatmul.msk.f32.gmra.mxu3 %vm253_vm0, %v5364_v53  ;;  %v5612_v53 = vpop.f32.mrf.mxu2 }
 0x779   :  { %4130 = vmatmul.msk.f32.gmra.mxu1 %vm253_vm0, %v5511_v56 }
 0x77d   :  { %4090 = vmatmul.msk.f32.gmra.mxu3 %vm253_vm0, %v5372_v34  ;;  %v5618_v34 = vpop.f32.mrf.mxu2 }
 0x785   :  { %4091 = vmatmul.msk.f32.gmra.mxu3 %vm253_vm0, %v5386_v59  ;;  %v5622_v59 = vpop.f32.mrf.mxu2 }
 0x78b   :  { %v3194_v58 = vpop.f32.mrf.mxu1 }
 0x78d   :  { %4092 = vmatmul.msk.f32.gmra.mxu3 %vm253_vm0, %v5383_v46  ;;  %v5626_v46 = vpop.f32.mrf.mxu2 }
 0x793   :  { %v3197_v60 = vpop.f32.mrf.mxu1 }
 0x795   :  { %4093 = vmatmul.msk.f32.gmra.mxu3 %vm253_vm0, %v5399_v7  ;;  %v5630_v7 = vpop.f32.mrf.mxu2 }
 0x79b   :  { %v3200_v32 = vpop.f32.mrf.mxu1 }
 0x79d   :  { %4094 = vmatmul.msk.f32.gmra.mxu3 %vm253_vm0, %v5396_v28  ;;  %v2986_v28 = vld [vmem:[#allocation11 + $0x18] sm:$0xff] }
 0x79e   :  { %3390 = vmatpush.msrb.mxu3 %v2986_v28  ;;  %3051 = vmatpush.msrb.mxu0 %v2986_v28 }
 0x7a3   :  { %v3203_v2 = vpop.f32.mrf.mxu1 }
 0x7a5   :  { %4095 = vmatmul.msk.f32.gmra.mxu3 %vm253_vm0, %v5465_v19  ;;  %v2985_v19 = vld [vmem:[#allocation11 + $0x10] sm:$0xff] }
 0x7a6   :  { %3391 = vmatpush.msrb.mxu3 %v2985_v19  ;;  %3052 = vmatpush.msrb.mxu0 %v2985_v19 }
 0x7ad   :  { %4096 = vmatmul.msk.f32.gmra.mxu3 %vm253_vm0, %v5405_v45  ;;  %v2984_v45 = vld [vmem:[#allocation11 + $0x8] sm:$0xff] }
 0x7ae   :  { %3392 = vmatpush.msrb.mxu3 %v2984_v45  ;;  %3053 = vmatpush.msrb.mxu0 %v2984_v45 }
 0x7b5   :  { %4097 = vmatmul.msk.f32.gmra.mxu3 %vm253_vm0, %v5472_v15  ;;  %v2983_v15 = vld [vmem:[#allocation11] sm:$0xff] }
 0x7b6   :  { %3054 = vmatpush.msrb.mxu0 %v2983_v15  ;;  %3393 = vmatpush.msrb.mxu3 %v2983_v15 }
 0x7bd   :  { %4098 = vmatmul.msk.f32.gmra.mxu3 %vm253_vm0, %v5412_v24  ;;  %v3250_v24 = vpop.f32.mrf.mxu2 }
 0x7be   :  { %v3251_v16 = vadd.f32 %v3250_v24, %v3185_v54 }
 0x7c5   :  { %4099 = vmatmul.msk.f32.gmra.mxu3 %vm253_vm0, %v5519_v23  ;;  %v3253_v43 = vpop.f32.mrf.mxu2 }
 0x7c6   :  { %v3254_v25 = vadd.f32 %v3253_v43, %v3188_v49 }
 0x7cd   :  { %4100 = vmatmul.msk.f32.gmra.mxu3 %vm253_vm0, %v5420_v27  ;;  %v5646_v27 = vld [vmem:[%s5868_s7] ss:$0 sm:$0xff]  ;;  %v3256_v39 = vpop.f32.mrf.mxu2 }
 0x7ce   :  { %v3298_v40 = vadd.f32 %v5646_v27, %v3251_v16  ;;  %v3299_v10 = vadd.f32 %v5646_v27, %v3254_v25  ;;  %v3257_v23 = vadd.f32 %v3256_v39, %v3191_v33 }
 0x7d0   :  { %v3314_v56 = vmax.f32 %v3298_v40, 0.0  ;;  %v3315_v42 = vmax.f32 %v3299_v10, 0.0  ;;  %v3300_v48 = vadd.f32 %v5646_v27, %v3257_v23 }
 0x7d3   :  { %v2666_v51 = vpop.f32.mrf.mxu3 }
 0x7d4   :  { %4131 = vmatmul.msk.f32.gmra.mxu1 %vm253_vm0, %v2666_v51 }
 0x7d5   :  { %4101 = vmatmul.msk.f32.gmra.mxu3 %vm253_vm0, %v5527_v30 }
 0x7db   :  { %v2712_v12 = vpop.f32.mrf.mxu3 }
 0x7dc   :  { %4132 = vmatmul.msk.f32.gmra.mxu1 %vm253_vm0, %v5523_v6 }
 0x7dd   :  { %4102 = vmatmul.msk.f32.gmra.mxu3 %vm253_vm0, %v5428_v55  ;;  %v3259_v55 = vpop.f32.mrf.mxu2 }
 0x7de   :  { %v3260_v8 = vadd.f32 %v3259_v55, %v3194_v58  ;;  %v3206_v43 = vpop.f32.mrf.mxu1 }
 0x7e0   :  { %v3301_v22 = vadd.f32 %v5646_v27, %v3260_v8 }
 0x7e4   :  { %4133 = vmatmul.msk.f32.gmra.mxu1 %vm253_vm0, %v2712_v12 }
 0x7e5   :  { %4103 = vmatmul.msk.f32.gmra.mxu3 %vm253_vm0, %v5578_v29  ;;  %v3262_v47 = vpop.f32.mrf.mxu2  ;;  %v3317_v29 = vmax.f32 %v3301_v22, 0.0 }
 0x7e6   :  { %v3263_v9 = vadd.f32 %v3262_v47, %v3197_v60  ;;  %v3209_v55 = vpop.f32.mrf.mxu1 }
 0x7e8   :  { %v2758_v38 = vpop.f32.mrf.mxu3  ;;  %v3302_v1 = vadd.f32 %v5646_v27, %v3263_v9 }
 0x7ea   :  { %v3318_v28 = vmax.f32 %v3302_v1, 0.0 }
 0x7ec   :  { %4134 = vmatmul.msk.f32.gmra.mxu1 %vm253_vm0, %v5531_v41  ;;  %v3316_v41 = vmax.f32 %v3300_v48, 0.0 }
 0x7ed   :  { %4152 = vmatmul.msk.f32.vlgmr.msrb.gmra.mxu3 %vm253_vm0, %v3314_v56  ;;  %v3265_v35 = vpop.f32.mrf.mxu2 }
 0x7ee   :  { %v3266_v19 = vadd.f32 %v3265_v35, %v3200_v32 }
 0x7f0   :  { %v2899_v13 = vpop.f32.mrf.mxu3  ;;  %v3303_v15 = vadd.f32 %v5646_v27, %v3266_v19 }
 0x7f1   :  { %v2900_v44 = vadd.f32 %v2899_v13, %v5536_v18 }
 0x7f2   :  { %v3319_v49 = vmax.f32 %v3303_v15, 0.0 }
 0x7f3   :  { %v2951_v11 = vadd.f32 %v5646_v27, %v2900_v44 }
 0x7f4   :  { %4135 = vmatmul.msk.f32.gmra.mxu1 %vm253_vm0, %v2758_v38 }
 0x7f5   :  { %v2967_v6 = vmax.f32 %v2951_v11, 0.0  ;;  %4153 = vmatmul.msk.f32.gmra.mxu3 %vm253_vm0, %v3315_v42  ;;  %v3268_v20 = vpop.f32.mrf.mxu2 }
 0x7f6   :  { %v3269_v12 = vadd.f32 %v3268_v20, %v3203_v2 }
 0x7f7   :  { %4104 = vmatmul.msk.f32.vlgmr.msrb.gmra.mxu0 %vm253_vm0, %v2967_v6  ;;  %v3212_v6 = vpop.f32.mrf.mxu1 }
 0x7f8   :  { %v2902_v30 = vpop.f32.mrf.mxu3  ;;  %v3304_v39 = vadd.f32 %v5646_v27, %v3269_v12 }
 0x7f9   :  { %v2903_v17 = vadd.f32 %v2902_v30, %v5540_v21 }
 0x7fa   :  { %v3320_v38 = vmax.f32 %v3304_v39, 0.0 }
 0x7fb   :  { %v2952_v18 = vadd.f32 %v5646_v27, %v2903_v17 }
 0x7fd   :  { %v2968_v36 = vmax.f32 %v2952_v18, 0.0  ;;  %4154 = vmatmul.msk.f32.gmra.mxu3 %vm253_vm0, %v3316_v41  ;;  %v3271_v54 = vpop.f32.mrf.mxu2 }
 0x7fe   :  { %v3272_v56 = vadd.f32 %v3271_v54, %v3206_v43 }
 0x7ff   :  { %4105 = vmatmul.msk.f32.gmra.mxu0 %vm253_vm0, %v2968_v36  ;;  %v3215_v22 = vpop.f32.mrf.mxu1 }
 0x800   :  { %v2905_v3 = vpop.f32.mrf.mxu3  ;;  %v3305_v10 = vadd.f32 %v5646_v27, %v3272_v56 }
 0x801   :  { %v2906_v63 = vadd.f32 %v2905_v3, %v5544_v52 }
 0x802   :  { %v3321_v42 = vmax.f32 %v3305_v10, 0.0 }
 0x803   :  { %v2953_v21 = vadd.f32 %v5646_v27, %v2906_v63 }
 0x805   :  { %v2969_v0 = vmax.f32 %v2953_v21, 0.0  ;;  %4155 = vmatmul.msk.f32.gmra.mxu3 %vm253_vm0, %v3317_v29  ;;  %v3274_v25 = vpop.f32.mrf.mxu2 }
 0x806   :  { %v3275_v23 = vadd.f32 %v3274_v25, %v3209_v55 }
 0x807   :  { %4106 = vmatmul.msk.f32.gmra.mxu0 %vm253_vm0, %v2969_v0 }
 0x808   :  { %v2908_v57 = vpop.f32.mrf.mxu3  ;;  %v3306_v60 = vadd.f32 %v5646_v27, %v3275_v23 }
 0x809   :  { %v2909_v26 = vadd.f32 %v2908_v57, %v5549_v31 }
 0x80a   :  { %v3322_v17 = vmax.f32 %v3306_v60, 0.0 }
 0x80b   :  { %v2954_v52 = vadd.f32 %v5646_v27, %v2909_v26 }
 0x80d   :  { %v2970_v45 = vmax.f32 %v2954_v52, 0.0  ;;  %4156 = vmatmul.msk.f32.gmra.mxu3 %vm253_vm0, %v3318_v28  ;;  %v3277_v11 = vpop.f32.mrf.mxu2 }
 0x80e   :  { %v3278_v41 = vadd.f32 %v3277_v11, %v3212_v6 }
 0x80f   :  { %4107 = vmatmul.msk.f32.gmra.mxu0 %vm253_vm0, %v2970_v45 }
 0x810   :  { %v2911_v24 = vpop.f32.mrf.mxu3  ;;  %v3307_v18 = vadd.f32 %v5646_v27, %v3278_v41 }
 0x811   :  { %v2912_v51 = vadd.f32 %v2911_v24, %v5558_v61 }
 0x812   :  { %v3323_v3 = vmax.f32 %v3307_v18, 0.0 }
 0x813   :  { %v2955_v31 = vadd.f32 %v5646_v27, %v2912_v51 }
 0x815   :  { %v2971_v16 = vmax.f32 %v2955_v31, 0.0  ;;  %4157 = vmatmul.msk.f32.gmra.mxu3 %vm253_vm0, %v3319_v49  ;;  %v3280_v36 = vpop.f32.mrf.mxu2 }
 0x816   :  { %v3281_v63 = vadd.f32 %v3280_v36, %v3215_v22 }
 0x817   :  { %4108 = vmatmul.msk.f32.gmra.mxu0 %vm253_vm0, %v2971_v16 }
 0x818   :  { %v2914_v33 = vpop.f32.mrf.mxu3  ;;  %v3308_v9 = vadd.f32 %v5646_v27, %v3281_v63  ;;  %v5737_v63 = vld [vmem:[%s5870_s9] ss:$0 sm:$0xff] }
 0x819   :  { %v2915_v40 = vadd.f32 %v2914_v33, %v5564_v4 }
 0x81a   :  { %v3324_v1 = vmax.f32 %v3308_v9, 0.0 }
 0x81b   :  { %v2956_v61 = vadd.f32 %v5646_v27, %v2915_v40 }
 0x81d   :  { %v2972_v58 = vmax.f32 %v2956_v61, 0.0  ;;  %4158 = vmatmul.msk.f32.gmra.mxu3 %vm253_vm0, %v3320_v38  ;;  %v3283_v19 = vpop.f32.mrf.mxu2 }
 0x81f   :  { %4109 = vmatmul.msk.f32.gmra.mxu0 %vm253_vm0, %v2972_v58 }
 0x820   :  { %v2917_v13 = vpop.f32.mrf.mxu3 }
 0x821   :  { %v2918_v44 = vadd.f32 %v2917_v13, %v5568_v14 }
 0x823   :  { %v2957_v4 = vadd.f32 %v5646_v27, %v2918_v44 }
 0x825   :  { %v2973_v47 = vmax.f32 %v2957_v4, 0.0  ;;  %4159 = vmatmul.msk.f32.gmra.mxu3 %vm253_vm0, %v3321_v42  ;;  %v3286_v43 = vpop.f32.mrf.mxu2 }
 0x827   :  { %4110 = vmatmul.msk.f32.gmra.mxu0 %vm253_vm0, %v2973_v47 }
 0x828   :  { %v2920_v48 = vpop.f32.mrf.mxu3 }
 0x829   :  { %v2921_v30 = vadd.f32 %v2920_v48, %v5572_v50 }
 0x82b   :  { %v2958_v14 = vadd.f32 %v5646_v27, %v2921_v30 }
 0x82d   :  { %v2974_v8 = vmax.f32 %v2958_v14, 0.0  ;;  %4160 = vmatmul.msk.f32.gmra.mxu3 %vm253_vm0, %v3322_v17  ;;  %v3289_v38 = vpop.f32.mrf.mxu2 }
 0x82f   :  { %4111 = vmatmul.msk.f32.gmra.mxu0 %vm253_vm0, %v2974_v8 }
 0x830   :  { %v2923_v35 = vpop.f32.mrf.mxu3 }
 0x831   :  { %v2924_v32 = vadd.f32 %v2923_v35, %v5600_v62 }
 0x833   :  { %v2959_v50 = vadd.f32 %v5646_v27, %v2924_v32 }
 0x835   :  { %v2975_v29 = vmax.f32 %v2959_v50, 0.0  ;;  %4161 = vmatmul.msk.f32.gmra.mxu3 %vm253_vm0, %v3323_v3  ;;  %v3292_v23 = vpop.f32.mrf.mxu2 }
 0x837   :  { %4112 = vmatmul.msk.f32.gmra.mxu0 %vm253_vm0, %v2975_v29 }
 0x838   :  { %v2926_v21 = vpop.f32.mrf.mxu3 }
 0x839   :  { %v2927_v0 = vadd.f32 %v2926_v21, %v5604_v5 }
 0x83b   :  { %v2960_v57 = vadd.f32 %v5646_v27, %v2927_v0 }
 0x83d   :  { %v2976_v20 = vmax.f32 %v2960_v57, 0.0  ;;  %4162 = vmatmul.msk.f32.gmra.mxu3 %vm253_vm0, %v3324_v1  ;;  %v3295_v41 = vpop.f32.mrf.mxu2 }
 0x83f   :  { %4113 = vmatmul.msk.f32.gmra.mxu0 %vm253_vm0, %v2976_v20 }
 0x840   :  { %v2929_v62 = vpop.f32.mrf.mxu3 }
 0x841   :  { %v2930_v26 = vadd.f32 %v2929_v62, %v5608_v37 }
 0x843   :  { %v2961_v2 = vadd.f32 %v5646_v27, %v2930_v26 }
 0x845   :  { %v2977_v28 = vmax.f32 %v2961_v2, 0.0 }
 0x847   :  { %4114 = vmatmul.msk.f32.gmra.mxu0 %vm253_vm0, %v2977_v28 }
 0x848   :  { %v2932_v52 = vpop.f32.mrf.mxu3 }
 0x849   :  { %v2933_v5 = vadd.f32 %v2932_v52, %v5612_v53 }
 0x84b   :  { %v2962_v45 = vadd.f32 %v5646_v27, %v2933_v5 }
 0x84d   :  { %v2978_v15 = vmax.f32 %v2962_v45, 0.0 }
 0x84f   :  { %4115 = vmatmul.msk.f32.gmra.mxu0 %vm253_vm0, %v2978_v15 }
 0x850   :  { %v2935_v24 = vpop.f32.mrf.mxu3 }
 0x851   :  { %v2936_v54 = vadd.f32 %v2935_v24, %v5618_v34  ;;  %v3218_v51 = vpop.f32.mrf.mxu1 }
 0x852   :  { %v3284_v37 = vadd.f32 %v3283_v19, %v3218_v51 }
 0x853   :  { %v2963_v49 = vadd.f32 %v5646_v27, %v2936_v54 }
 0x854   :  { %v3309_v12 = vadd.f32 %v5646_v27, %v3284_v37  ;;  %v3690_v37 = vld [vmem:[#allocation14 + $0x18] sm:$0xff] }
 0x855   :  { %v2979_v31 = vmax.f32 %v2963_v49, 0.0  ;;  %3744 = vmatpush.msra.mxu0 %v3690_v37 }
 0x856   :  { %v3325_v16 = vmax.f32 %v3309_v12, 0.0 }
 0x857   :  { %4116 = vmatmul.msk.f32.gmra.mxu0 %vm253_vm0, %v2979_v31 }
 0x858   :  { %v2938_v53 = vpop.f32.mrf.mxu3  ;;  %4163 = vmatmul.msk.f32.gmra.mxu3 %vm253_vm0, %v3325_v16 }
 0x859   :  { %v2939_v39 = vadd.f32 %v2938_v53, %v5622_v59  ;;  %v3221_v33 = vpop.f32.mrf.mxu1  ;;  %v3689_v53 = vld [vmem:[#allocation14 + $0x10] sm:$0xff] }
 0x85a   :  { %v3287_v40 = vadd.f32 %v3286_v43, %v3221_v33  ;;  %3745 = vmatpush.msra.mxu0 %v3689_v53 }
 0x85b   :  { %v2964_v34 = vadd.f32 %v5646_v27, %v2939_v39 }
 0x85c   :  { %v3310_v56 = vadd.f32 %v5646_v27, %v3287_v40 }
 0x85d   :  { %v2980_v25 = vmax.f32 %v2964_v34, 0.0 }
 0x85e   :  { %v3326_v61 = vmax.f32 %v3310_v56, 0.0 }
 0x85f   :  { %4117 = vmatmul.msk.f32.gmra.mxu0 %vm253_vm0, %v2980_v25 }
 0x860   :  { %v2941_v55 = vpop.f32.mrf.mxu3  ;;  %4164 = vmatmul.msk.f32.gmra.mxu3 %vm253_vm0, %v3326_v61  ;;  %v3688_v61 = vld [vmem:[#allocation14 + $0x8] sm:$0xff] }
 0x861   :  { %v2942_v58 = vadd.f32 %v2941_v55, %v5626_v46  ;;  %v3224_v10 = vpop.f32.mrf.mxu1  ;;  %v3686_v55 = vld [vmem:[#allocation13 + $0x18] sm:$0xff]  ;;  %3746 = vmatpush.msra.mxu0 %v3688_v61 }
 0x862   :  { %v3290_v13 = vadd.f32 %v3289_v38, %v3224_v10  ;;  %3801 = vmatpush.msra.mxu1 %v3686_v55 }
 0x863   :  { %v2965_v59 = vadd.f32 %v5646_v27, %v2942_v58 }
 0x864   :  { %v3311_v44 = vadd.f32 %v5646_v27, %v3290_v13 }
 0x865   :  { %v2981_v42 = vmax.f32 %v2965_v59, 0.0 }
 0x866   :  { %v3327_v4 = vmax.f32 %v3311_v44, 0.0 }
 0x867   :  { %4118 = vmatmul.msk.f32.gmra.mxu0 %vm253_vm0, %v2981_v42  ;;  %v3687_v42 = vld [vmem:[#allocation14] sm:$0xff] }
 0x868   :  { %v2944_v11 = vpop.f32.mrf.mxu3  ;;  %4165 = vmatmul.msk.f32.gmra.mxu3 %vm253_vm0, %v3327_v4  ;;  %3747 = vmatpush.msra.mxu0 %v3687_v42 }
 0x869   :  { %v2945_v47 = vadd.f32 %v2944_v11, %v5630_v7  ;;  %v3227_v6 = vpop.f32.mrf.mxu1 }
 0x86a   :  { %v3293_v60 = vadd.f32 %v3292_v23, %v3227_v6  ;;  %v3685_v23 = vld [vmem:[#allocation13 + $0x10] sm:$0xff] }
 0x86b   :  { %v2966_v46 = vadd.f32 %v5646_v27, %v2945_v47  ;;  %3802 = vmatpush.msra.mxu1 %v3685_v23 }
 0x86c   :  { %v3312_v48 = vadd.f32 %v5646_v27, %v3293_v60 }
 0x86d   :  { %v2982_v30 = vmax.f32 %v2966_v46, 0.0 }
 0x86e   :  { %v3328_v17 = vmax.f32 %v3312_v48, 0.0 }
 0x86f   :  { %4119 = vmatmul.msk.f32.gmra.mxu0 %vm253_vm0, %v2982_v30 }
 0x870   :  { %v3395_v14 = vpop.f32.mrf.mxu3  ;;  %4166 = vmatmul.msk.f32.gmra.mxu3 %vm253_vm0, %v3328_v17 }
 0x871   :  { %v3230_v8 = vpop.f32.mrf.mxu1  ;;  %v3396_v29 = vadd.f32 %v5737_v63, %v3395_v14 }
 0x872   :  { %v3296_v18 = vadd.f32 %v3295_v41, %v3230_v8  ;;  %v3684_v41 = vld [vmem:[#allocation13 + $0x8] sm:$0xff] }
 0x873   :  { %v3443_v0 = vmax.f32 %v3396_v29, 0.0  ;;  %3803 = vmatpush.msra.mxu1 %v3684_v41 }
 0x874   :  { %v3313_v36 = vadd.f32 %v5646_v27, %v3296_v18  ;;  %v3056_v22 = vpop.f32.mrf.mxu0 }
 0x875   :  { %v3057_v9 = vadd.f32 %v5737_v63, %v3056_v22  ;;  %v3571_v20 = vsel %vm253_vm0, %v3443_v0, 0.0 }
 0x876   :  { %v3329_v7 = vmax.f32 %v3313_v36, 0.0  ;;  %v3572_v2 = vrot.slane %v3571_v20, 4 }
 0x877   :  { %v3104_v1 = vmax.f32 %v3057_v9, 0.0 }
 0x878   :  { %v3398_v35 = vpop.f32.mrf.mxu3  ;;  %4167 = vmatmul.msk.f32.gmra.mxu3 %vm253_vm0, %v3329_v7  ;;  %v3573_v24 = vadd.f32 %v3572_v2, %v3571_v20 }
 0x879   :  { %v3399_v27 = vadd.f32 %v5737_v63, %v3398_v35  ;;  %v3459_v26 = vsel %vm253_vm0, %v3104_v1, 0.0  ;;  %v3683_v35 = vld [vmem:[#allocation13] sm:$0xff] }
 0x87a   :  { %v3460_v5 = vrot.slane %v3459_v26, 4  ;;  %v3574_v40 = vrot.slane %v3573_v24, 2  ;;  %3804 = vmatpush.msra.mxu1 %v3683_v35 }
 0x87b   :  { %v3444_v62 = vmax.f32 %v3399_v27, 0.0 }
 0x87c   :  { %v3059_v32 = vpop.f32.mrf.mxu0  ;;  %v3461_v31 = vadd.f32 %v3460_v5, %v3459_v26  ;;  %v3575_v60 = vadd.f32 %v3574_v40, %v3573_v24 }
 0x87d   :  { %v3060_v52 = vadd.f32 %v5737_v63, %v3059_v32  ;;  %v3578_v45 = vsel %vm253_vm0, %v3444_v62, 0.0 }
 0x87e   :  { %v3579_v49 = vrot.slane %v3578_v45, 4  ;;  %v3462_v59 = vrot.slane %v3461_v31, 2  ;;  %v3576_v9 = vrot.slane %v3575_v60, 1 }
 0x87f   :  { %v3105_v12 = vmax.f32 %v3060_v52, 0.0 }
 0x880   :  { %v3401_v3 = vpop.f32.mrf.mxu3  ;;  %v3580_v58 = vadd.f32 %v3579_v49, %v3578_v45  ;;  %v3463_v36 = vadd.f32 %v3462_v59, %v3461_v31  ;;  %v3577_v24 = vadd.f32 %v3576_v9, %v3575_v60 }
 0x881   :  { %v3402_v28 = vadd.f32 %v5737_v63, %v3401_v3  ;;  %v3466_v10 = vsel %vm253_vm0, %v3105_v12, 0.0 }
 0x882   :  { %v3467_v46 = vrot.slane %v3466_v10, 4  ;;  %v3581_v14 = vrot.slane %v3580_v58, 2  ;;  %v3464_v2 = vrot.slane %v3463_v36, 1 }
 0x883   :  { %v3445_v54 = vmax.f32 %v3402_v28, 0.0 }
 0x884   :  { %v3062_v50 = vpop.f32.mrf.mxu0  ;;  %v5766_v53 = vadd.f32 %v3464_v2, %v3463_v36 }
 0x885   :  { %v3063_v16 = vadd.f32 %v5737_v63, %v3062_v50  ;;  %v3585_v34 = vsel %vm253_vm0, %v3445_v54, 0.0 }
 0x886   :  { %v3586_v4 = vrot.slane %v3585_v34, 4 }
 0x887   :  { %v3106_v44 = vmax.f32 %v3063_v16, 0.0 }
 0x888   :  { %v3404_v21 = vpop.f32.mrf.mxu3  ;;  %v3587_v32 = vadd.f32 %v3586_v4, %v3585_v34 }
 0x889   :  { %v3405_v15 = vadd.f32 %v5737_v63, %v3404_v21  ;;  %v3473_v22 = vsel %vm253_vm0, %v3106_v44, 0.0  ;;  %v3468_v21 = vadd.f32 %v3467_v46, %v3466_v10 }
 0x88a   :  { %v3474_v20 = vrot.slane %v3473_v22, 4  ;;  %v3588_v52 = vrot.slane %v3587_v32, 2 }
 0x88b   :  { %v3446_v39 = vmax.f32 %v3405_v15, 0.0  ;;  %v3469_v54 = vrot.slane %v3468_v21, 2 }
 0x88c   :  { %v3065_v57 = vpop.f32.mrf.mxu0  ;;  %v3475_v12 = vadd.f32 %v3474_v20, %v3473_v22  ;;  %v3589_v34 = vadd.f32 %v3588_v52, %v3587_v32 }
 0x88d   :  { %v3066_v33 = vadd.f32 %v5737_v63, %v3065_v57  ;;  %v3592_v11 = vsel %vm253_vm0, %v3446_v39, 0.0  ;;  %v3582_v57 = vadd.f32 %v3581_v14, %v3580_v58  ;;  %v3470_v61 = vadd.f32 %v3469_v54, %v3468_v21 }
 0x88e   :  { %v3593_v7 = vrot.slane %v3592_v11, 4  ;;  %v3476_v44 = vrot.slane %v3475_v12, 2  ;;  %v3590_v60 = vrot.slane %v3589_v34, 1 }
 0x88f   :  { %v3107_v47 = vmax.f32 %v3066_v33, 0.0  ;;  %v3583_v49 = vrot.slane %v3582_v57, 1 }
 0x890   :  { %v3407_v19 = vpop.f32.mrf.mxu3  ;;  %v3594_v28 = vadd.f32 %v3593_v7, %v3592_v11  ;;  %v3477_v36 = vadd.f32 %v3476_v44, %v3475_v12  ;;  %v3591_v9 = vadd.f32 %v3590_v60, %v3589_v34 }
 0x891   :  { %v3408_v51 = vadd.f32 %v5737_v63, %v3407_v19  ;;  %v3480_v3 = vsel %vm253_vm0, %v3107_v47, 0.0  ;;  %v3584_v59 = vadd.f32 %v3583_v49, %v3582_v57 }
 0x892   :  { %v3481_v19 = vrot.slane %v3480_v3, 4  ;;  %v3595_v39 = vrot.slane %v3594_v28, 2 }
 0x893   :  { %v3447_v38 = vmax.f32 %v3408_v51, 0.0 }
 0x894   :  { %v3068_v43 = vpop.f32.mrf.mxu0  ;;  %v3482_v33 = vadd.f32 %v3481_v19, %v3480_v3  ;;  %v3596_v4 = vadd.f32 %v3595_v39, %v3594_v28 }
 0x895   :  { %v3069_v56 = vadd.f32 %v5737_v63, %v3068_v43  ;;  %v3599_v48 = vsel %vm253_vm0, %v3447_v38, 0.0 }
 0x896   :  { %v3600_v50 = vrot.slane %v3599_v48, 4  ;;  %v3483_v11 = vrot.slane %v3482_v33, 2  ;;  %v3597_v32 = vrot.slane %v3596_v4, 1 }
 0x897   :  { %v3108_v30 = vmax.f32 %v3069_v56, 0.0 }
 0x898   :  { %v3410_v25 = vpop.f32.mrf.mxu3  ;;  %v3601_v5 = vadd.f32 %v3600_v50, %v3599_v48  ;;  %v3484_v3 = vadd.f32 %v3483_v11, %v3482_v33  ;;  %v3598_v52 = vadd.f32 %v3597_v32, %v3596_v4 }
 0x899   :  { %v3411_v13 = vadd.f32 %v5737_v63, %v3410_v25  ;;  %v3487_v0 = vsel %vm253_vm0, %v3108_v30, 0.0 }
 0x89a   :  { %v3488_v45 = vrot.slane %v3487_v0, 4  ;;  %v3602_v38 = vrot.slane %v3601_v5, 2 }
 0x89b   :  { %v3448_v6 = vmax.f32 %v3411_v13, 0.0 }
 0x89c   :  { %v3071_v17 = vpop.f32.mrf.mxu0  ;;  %v3489_v56 = vadd.f32 %v3488_v45, %v3487_v0  ;;  %v3603_v46 = vadd.f32 %v3602_v38, %v3601_v5  ;;  %v3485_v5 = vrot.slane %v3484_v3, 1 }
 0x89d   :  { %v3606_v8 = vsel %vm253_vm0, %v3448_v6, 0.0  ;;  %v3072_v18 = vadd.f32 %v5737_v63, %v3071_v17  ;;  %v3471_v17 = vrot.slane %v3470_v61, 1 }
 0x89e   :  { %v3607_v27 = vrot.slane %v3606_v8, 4  ;;  %v3490_v48 = vrot.slane %v3489_v56, 2  ;;  %v3604_v21 = vrot.slane %v3603_v46, 1  ;;  %v3486_v38 = vadd.f32 %v3485_v5, %v3484_v3 }
 0x89f   :  { %v3109_v29 = vmax.f32 %v3072_v18, 0.0  ;;  %v3472_v54 = vadd.f32 %v3471_v17, %v3470_v61 }
 0x8a0   :  { %v3413_v1 = vpop.f32.mrf.mxu3  ;;  %v3608_v51 = vadd.f32 %v3607_v27, %v3606_v8  ;;  %v3491_v0 = vadd.f32 %v3490_v48, %v3489_v56 }
 0x8a1   :  { %v3494_v62 = vsel %vm253_vm0, %v3109_v29, 0.0  ;;  %v3414_v26 = vadd.f32 %v5737_v63, %v3413_v1  ;;  %v3708_v1 = vsel %vm3707_vm2, %v3584_v59, %v3577_v24  ;;  %v3771_v61 = vsel %vm3707_vm2, %v3472_v54, %v5766_v53 }
 0x8a2   :  { %v3495_v43 = vrot.slane %v3494_v62, 4  ;;  %v3609_v55 = vrot.slane %v3608_v51, 2 }
 0x8a3   :  { %v3449_v15 = vmax.f32 %v3414_v26, 0.0  ;;  %v3478_v26 = vrot.slane %v3477_v36, 1 }
 0x8a4   :  { %v3074_v37 = vpop.f32.mrf.mxu0  ;;  %v3496_v58 = vadd.f32 %v3495_v43, %v3494_v62  ;;  %v3610_v41 = vadd.f32 %v3609_v55, %v3608_v51  ;;  %v3710_v51 = vsel %vm3709_vm3, %v3591_v9, %v3708_v1  ;;  %v3605_v43 = vadd.f32 %v3604_v21, %v3603_v46 }
 0x8a5   :  { %v3613_v31 = vsel %vm253_vm0, %v3449_v15, 0.0  ;;  %v3075_v16 = vadd.f32 %v5737_v63, %v3074_v37  ;;  %v3492_v37 = vrot.slane %v3491_v0, 1  ;;  %v3479_v39 = vadd.f32 %v3478_v26, %v3477_v36 }
 0x8a6   :  { %v3614_v40 = vrot.slane %v3613_v31, 4  ;;  %v3497_v14 = vrot.slane %v3496_v58, 2  ;;  %v3611_v57 = vrot.slane %v3610_v41, 1  ;;  %v3712_v34 = vsel %vm3711_vm4, %v3598_v52, %v3710_v51 }
 0x8a7   :  { %v3110_v25 = vmax.f32 %v3075_v16, 0.0  ;;  %v3714_v55 = vsel %vm3713_vm5, %v3605_v43, %v3712_v34 }
 0x8a8   :  { %v3615_v10 = vadd.f32 %v3614_v40, %v3613_v31  ;;  %v3416_v13 = vpop.f32.mrf.mxu3  ;;  %v3498_v20 = vadd.f32 %v3497_v14, %v3496_v58  ;;  %v3612_v49 = vadd.f32 %v3611_v57, %v3610_v41  ;;  %v3493_v58 = vadd.f32 %v3492_v37, %v3491_v0 }
 0x8a9   :  { %v3501_v42 = vsel %vm253_vm0, %v3110_v25, 0.0  ;;  %v3417_v23 = vadd.f32 %v5737_v63, %v3416_v13 }
 0x8aa   :  { %v3616_v47 = vrot.slane %v3615_v10, 2  ;;  %v3502_v6 = vrot.slane %v3501_v42, 4  ;;  %v3499_v12 = vrot.slane %v3498_v20, 1 }
 0x8ab   :  { %v3450_v30 = vmax.f32 %v3417_v23, 0.0 }
 0x8ac   :  { %v3503_v8 = vadd.f32 %v3502_v6, %v3501_v42  ;;  %v3077_v18 = vpop.f32.mrf.mxu0  ;;  %v3617_v22 = vadd.f32 %v3616_v47, %v3615_v10  ;;  %v3716_v10 = vsel %vm3715_vm6, %v3612_v49, %v3714_v55  ;;  %v3500_v13 = vadd.f32 %v3499_v12, %v3498_v20 }
 0x8ad   :  { %v3620_v7 = vsel %vm253_vm0, %v3450_v30, 0.0  ;;  %v3078_v35 = vadd.f32 %v5737_v63, %v3077_v18  ;;  %v3772_v42 = vsel %vm3709_vm3, %v3479_v39, %v3771_v61 }
 0x8ae   :  { %v3504_v50 = vrot.slane %v3503_v8, 2  ;;  %v3621_v29 = vrot.slane %v3620_v7, 4  ;;  %v3618_v2 = vrot.slane %v3617_v22, 1  ;;  %v3773_v11 = vsel %vm3711_vm4, %v3486_v38, %v3772_v42 }
 0x8af   :  { %v3111_v27 = vmax.f32 %v3078_v35, 0.0  ;;  %v3774_v53 = vsel %vm3713_vm5, %v3493_v58, %v3773_v11 }
 0x8b0   :  { %v3622_v62 = vadd.f32 %v3621_v29, %v3620_v7  ;;  %v3505_v28 = vadd.f32 %v3504_v50, %v3503_v8  ;;  %v3619_v33 = vadd.f32 %v3618_v2, %v3617_v22  ;;  %v3775_v60 = vsel %vm3715_vm6, %v3500_v13, %v3774_v53  ;;  %v3419_v41 = vpop.f32.mrf.mxu3 }
 0x8b1   :  { %v3508_v19 = vsel %vm253_vm0, %v3111_v27, 0.0 }
 0x8b2   :  { %v3623_v45 = vrot.slane %v3622_v62, 2  ;;  %v3509_v15 = vrot.slane %v3508_v19, 4  ;;  %v3506_v40 = vrot.slane %v3505_v28, 1  ;;  %v3718_v4 = vsel %vm3717_vm7, %v3619_v33, %v3716_v10 }
 0x8b4   :  { %v3624_v24 = vadd.f32 %v3623_v45, %v3622_v62  ;;  %v3510_v31 = vadd.f32 %v3509_v15, %v3508_v19  ;;  %v3080_v16 = vpop.f32.mrf.mxu0  ;;  %v3507_v23 = vadd.f32 %v3506_v40, %v3505_v28  ;;  %v3420_v62 = vadd.f32 %v5737_v63, %v3419_v41 }
 0x8b5   :  { %v3081_v36 = vadd.f32 %v5737_v63, %v3080_v16 }
 0x8b6   :  { %v3625_v56 = vrot.slane %v3624_v24, 1  ;;  %v3511_v25 = vrot.slane %v3510_v31, 2  ;;  %v3776_v30 = vsel %vm3717_vm7, %v3507_v23, %v3775_v60  ;;  %v3451_v54 = vmax.f32 %v3420_v62, 0.0 }
 0x8b7   :  { %v3112_v3 = vmax.f32 %v3081_v36, 0.0 }
 0x8b8   :  { %v3626_v59 = vadd.f32 %v3625_v56, %v3624_v24  ;;  %v3512_v44 = vadd.f32 %v3511_v25, %v3510_v31  ;;  %v3422_v8 = vpop.f32.mrf.mxu3  ;;  %v3627_v34 = vsel %vm253_vm0, %v3451_v54, 0.0 }
 0x8b9   :  { %v3515_v0 = vsel %vm253_vm0, %v3112_v3, 0.0  ;;  %v3423_v49 = vadd.f32 %v5737_v63, %v3422_v8 }
 0x8ba   :  { %v3513_v47 = vrot.slane %v3512_v44, 1  ;;  %v3720_v6 = vsel %vm3719_vm8, %v3626_v59, %v3718_v4  ;;  %v3516_v28 = vrot.slane %v3515_v0, 4  ;;  %v3628_v4 = vrot.slane %v3627_v34, 4 }
 0x8bb   :  { %4168 = vmatmul.msk.f32.vlgmr.msra.gmra.mxu0 %vm253_vm0, %v3720_v6  ;;  %v3452_v61 = vmax.f32 %v3423_v49, 0.0 }
 0x8bc   :  { %v3514_v46 = vadd.f32 %v3513_v47, %v3512_v44  ;;  %v3083_v48 = vpop.f32.mrf.mxu0  ;;  %v3517_v37 = vadd.f32 %v3516_v28, %v3515_v0 }
 0x8bd   :  { %v3084_v35 = vadd.f32 %v5737_v63, %v3083_v48  ;;  %v3634_v6 = vsel %vm253_vm0, %v3452_v61, 0.0 }
 0x8be   :  { %v3777_v17 = vsel %vm3719_vm8, %v3514_v46, %v3776_v30  ;;  %v3518_v25 = vrot.slane %v3517_v37, 2 }
 0x8bf   :  { %4170 = vmatmul.msk.f32.vlgmr.msra.gmra.mxu1 %vm253_vm0, %v3777_v17  ;;  %v3113_v9 = vmax.f32 %v3084_v35, 0.0  ;;  %v5813_v35 = vadd.f32 %v3628_v4, %v3627_v34 }
 0x8c0   :  { %v3425_v22 = vpop.f32.mrf.mxu3  ;;  %v3519_v48 = vadd.f32 %v3518_v25, %v3517_v37 }
 0x8c1   :  { %v3522_v26 = vsel %vm253_vm0, %v3113_v9, 0.0  ;;  %v3426_v24 = vadd.f32 %v5737_v63, %v3425_v22 }
 0x8c2   :  { %v3523_v45 = vrot.slane %v3522_v26, 4  ;;  %v3520_v62 = vrot.slane %v3519_v48, 1 }
 0x8c3   :  { %v3453_v10 = vmax.f32 %v3426_v24, 0.0 }
 0x8c4   :  { %v3086_v14 = vpop.f32.mrf.mxu0  ;;  %v3524_v39 = vadd.f32 %v3523_v45, %v3522_v26  ;;  %v3521_v34 = vadd.f32 %v3520_v62, %v3519_v48 }
 0x8c5   :  { %v3087_v32 = vadd.f32 %v5737_v63, %v3086_v14  ;;  %v3641_v30 = vsel %vm253_vm0, %v3453_v10, 0.0 }
 0x8c6   :  { %v3525_v42 = vrot.slane %v3524_v39, 2 }
 0x8c7   :  { %v3114_v21 = vmax.f32 %v3087_v32, 0.0  ;;  %v3635_v32 = vrot.slane %v3634_v6, 4 }
 0x8c8   :  { %v3526_v8 = vadd.f32 %v3525_v42, %v3524_v39 }
 0x8c9   :  { %v3529_v19 = vsel %vm253_vm0, %v3114_v21, 0.0  ;;  %v3636_v37 = vadd.f32 %v3635_v32, %v3634_v6 }
 0x8ca   :  { %v3530_v51 = vrot.slane %v3529_v19, 4  ;;  %v3527_v26 = vrot.slane %v3526_v8, 1 }
 0x8cc   :  { %v3089_v18 = vpop.f32.mrf.mxu0  ;;  %v3531_v38 = vadd.f32 %v3530_v51, %v3529_v19 }
 0x8cd   :  { %v3090_v50 = vadd.f32 %v5737_v63, %v3089_v18 }
 0x8ce   :  { %v3532_v11 = vrot.slane %v3531_v38, 2 }
 0x8cf   :  { %v3115_v27 = vmax.f32 %v3090_v50, 0.0 }
 0x8d0   :  { %v3533_v3 = vadd.f32 %v3532_v11, %v3531_v38 }
 0x8d1   :  { %v3536_v52 = vsel %vm253_vm0, %v3115_v27, 0.0  ;;  %v3642_v27 = vrot.slane %v3641_v30, 4 }
 0x8d2   :  { %v3537_v12 = vrot.slane %v3536_v52, 4  ;;  %v3534_v19 = vrot.slane %v3533_v3, 1 }
 0x8d3   :  { %v3643_v49 = vadd.f32 %v3642_v27, %v3641_v30 }
 0x8d4   :  { %v3092_v7 = vpop.f32.mrf.mxu0  ;;  %v3538_v55 = vadd.f32 %v3537_v12, %v3536_v52  ;;  %v3535_v38 = vadd.f32 %v3534_v19, %v3533_v3 }
 0x8d5   :  { %v3093_v29 = vadd.f32 %v5737_v63, %v3092_v7 }
 0x8d6   :  { %v3539_v53 = vrot.slane %v3538_v55, 2 }
 0x8d7   :  { %v3116_v57 = vmax.f32 %v3093_v29, 0.0 }
 0x8d8   :  { %v3540_v29 = vadd.f32 %v3539_v53, %v3538_v55 }
 0x8d9   :  { %v3543_v15 = vsel %vm253_vm0, %v3116_v57, 0.0 }
 0x8da   :  { %v3544_v31 = vrot.slane %v3543_v15, 4  ;;  %v3541_v54 = vrot.slane %v3540_v29, 1 }
 0x8db   :  { %v3428_v1 = vpop.f32.mrf.mxu3 }
 0x8dc   :  { %v3095_v20 = vpop.f32.mrf.mxu0  ;;  %v3429_v58 = vadd.f32 %v5737_v63, %v3428_v1  ;;  %v3545_v13 = vadd.f32 %v3544_v31, %v3543_v15  ;;  %v3630_v15 = vrot.slane %v5813_v35, 2  ;;  %v3542_v61 = vadd.f32 %v3541_v54, %v3540_v29 }
 0x8dd   :  { %v3096_v2 = vadd.f32 %v5737_v63, %v3095_v20 }
 0x8de   :  { %v3454_v60 = vmax.f32 %v3429_v58, 0.0  ;;  %v3546_v17 = vrot.slane %v3545_v13, 2 }
 0x8df   :  { %v3117_v5 = vmax.f32 %v3096_v2, 0.0 }
 0x8e0   :  { %v3648_v9 = vsel %vm253_vm0, %v3454_v60, 0.0  ;;  %v3547_v1 = vadd.f32 %v3546_v17, %v3545_v13  ;;  %v3637_v13 = vrot.slane %v3636_v37, 2 }
 0x8e1   :  { %v3550_v43 = vsel %vm253_vm0, %v3117_v5, 0.0  ;;  %v3649_v52 = vrot.slane %v3648_v9, 4 }
 0x8e2   :  { %v3551_v33 = vrot.slane %v3550_v43, 4  ;;  %v3548_v12 = vrot.slane %v3547_v1, 1 }
 0x8e3   :  { %v3431_v16 = vpop.f32.mrf.mxu3 }
 0x8e4   :  { %v3098_v40 = vpop.f32.mrf.mxu0  ;;  %v3432_v59 = vadd.f32 %v5737_v63, %v3431_v16  ;;  %v3552_v23 = vadd.f32 %v3551_v33, %v3550_v43  ;;  %v3528_v16 = vadd.f32 %v3527_v26, %v3526_v8 }
 0x8e5   :  { %v3099_v56 = vadd.f32 %v5737_v63, %v3098_v40 }
 0x8e6   :  { %v3455_v41 = vmax.f32 %v3432_v59, 0.0  ;;  %v3553_v18 = vrot.slane %v3552_v23, 2  ;;  %v3644_v59 = vrot.slane %v3643_v49, 2 }
 0x8e7   :  { %v3118_v44 = vmax.f32 %v3099_v56, 0.0  ;;  %v3650_v56 = vadd.f32 %v3649_v52, %v3648_v9 }
 0x8e8   :  { %v3655_v57 = vsel %vm253_vm0, %v3455_v41, 0.0  ;;  %v3554_v2 = vadd.f32 %v3553_v18, %v3552_v23  ;;  %v3778_v23 = vsel %vm3707_vm2, %v3528_v16, %v3521_v34  ;;  %v3638_v41 = vadd.f32 %v3637_v13, %v3636_v37  ;;  %v3820_v13 = vld [vmem:[#allocation16] sm:$0xff] }
 0x8e9   :  { %v3557_v47 = vsel %vm253_vm0, %v3118_v44, 0.0  ;;  %v3656_v51 = vrot.slane %v3655_v57, 4  ;;  %v3549_v44 = vadd.f32 %v3548_v12, %v3547_v1  ;;  %v3779_v6 = vsel %vm3709_vm3, %v3535_v38, %v3778_v23 }
 0x8ea   :  { %v3558_v46 = vrot.slane %v3557_v47, 4  ;;  %v3555_v39 = vrot.slane %v3554_v2, 1  ;;  %v3651_v53 = vrot.slane %v3650_v56, 2  ;;  %v3780_v17 = vsel %vm3711_vm4, %v3542_v61, %v3779_v6 }
 0x8eb   :  { %v3434_v14 = vpop.f32.mrf.mxu3  ;;  %v3657_v55 = vadd.f32 %v3656_v51, %v3655_v57  ;;  %v3639_v57 = vrot.slane %v3638_v41, 1 }
 0x8ec   :  { %v3559_v36 = vadd.f32 %v3558_v46, %v3557_v47  ;;  %v3435_v22 = vadd.f32 %v5737_v63, %v3434_v14  ;;  %v3101_v7 = vpop.f32.mrf.mxu0  ;;  %v3556_v4 = vadd.f32 %v3555_v39, %v3554_v2  ;;  %v3652_v29 = vadd.f32 %v3651_v53, %v3650_v56 }
 0x8ed   :  { %v3102_v50 = vadd.f32 %v5737_v63, %v3101_v7  ;;  %v3658_v48 = vrot.slane %v3657_v55, 2  ;;  %v3640_v52 = vadd.f32 %v3639_v57, %v3638_v41  ;;  %v3859_v41 = vld [vmem:[#allocation17] sm:$0xff] }
 0x8ee   :  { %v3560_v21 = vrot.slane %v3559_v36, 2  ;;  %v3456_v0 = vmax.f32 %v3435_v22, 0.0  ;;  %v3645_v22 = vadd.f32 %v3644_v59, %v3643_v49  ;;  %v4194_v59 = vld [vmem:[%s5873_s12] ss:$0 sm:$0xff] }
 0x8ef   :  { %v3119_v20 = vmax.f32 %v3102_v50, 0.0  ;;  %v3631_v50 = vadd.f32 %v3630_v15, %v5813_v35 }
 0x8f0   :  { %v3662_v28 = vsel %vm253_vm0, %v3456_v0, 0.0  ;;  %v3561_v5 = vadd.f32 %v3560_v21, %v3559_v36  ;;  %v3781_v36 = vsel %vm3713_vm5, %v3549_v44, %v3780_v17  ;;  %v3659_v0 = vadd.f32 %v3658_v48, %v3657_v55  ;;  %v3823_v55 = vld [vmem:[#allocation16 + $0x18] sm:$0xff]  ;;  %v3860_v17 = vld [vmem:[#allocation17 + $0x8] sm:$0xff] }
 0x8f1   :  { %v3564_v45 = vsel %vm253_vm0, %v3119_v20, 0.0  ;;  %v3663_v24 = vrot.slane %v3662_v28, 4  ;;  %v3782_v3 = vsel %vm3715_vm6, %v3556_v4, %v3781_v36  ;;  %v3646_v62 = vrot.slane %v3645_v22, 1  ;;  %3846 = vmatpush.msrb.mxu0 %v3823_v55 }
 0x8f2   :  { %v3565_v43 = vrot.slane %v3564_v45, 4  ;;  %v3562_v25 = vrot.slane %v3561_v5, 1  ;;  %v3632_v2 = vrot.slane %v3631_v50, 1  ;;  %v3660_v35 = vrot.slane %v3659_v0, 1 }
 0x8f3   :  { %v3437_v31 = vpop.f32.mrf.mxu3  ;;  %v3664_v42 = vadd.f32 %v3663_v24, %v3662_v28  ;;  %v3653_v28 = vrot.slane %v3652_v29, 1  ;;  %v3647_v15 = vadd.f32 %v3646_v62, %v3645_v22 }
 0x8f4   :  { %v3566_v33 = vadd.f32 %v3565_v43, %v3564_v45  ;;  %v3438_v40 = vadd.f32 %v5737_v63, %v3437_v31  ;;  %v3563_v60 = vadd.f32 %v3562_v25, %v3561_v5  ;;  %v3633_v51 = vadd.f32 %v3632_v2, %v3631_v50 }
 0x8f5   :  { %v3665_v14 = vrot.slane %v3664_v42, 2  ;;  %v3654_v43 = vadd.f32 %v3653_v28, %v3652_v29  ;;  %v3661_v49 = vadd.f32 %v3660_v35, %v3659_v0 }
 0x8f6   :  { %v3567_v58 = vrot.slane %v3566_v33, 2  ;;  %v3457_v10 = vmax.f32 %v3438_v40, 0.0  ;;  %v3783_v21 = vsel %vm3717_vm7, %v3563_v60, %v3782_v3  ;;  %v3721_v12 = vsel %vm3707_vm2, %v3640_v52, %v3633_v51  ;;  %v4196_v3 = vld [vmem:[%s5877_s16] ss:$0 sm:$0xff] }
 0x8f7   :  { %v3666_v20 = vadd.f32 %v3665_v14, %v3664_v42  ;;  %v3722_v16 = vsel %vm3709_vm3, %v3647_v15, %v3721_v12  ;;  %v4195_v14 = vld [vmem:[%s5875_s14] ss:$0 sm:$0xff]  ;;  %s4655_s14 = smov [#allocation19]  }
 0x8f8   :  { %v3568_v11 = vadd.f32 %v3567_v58, %v3566_v33  ;;  %v3669_v47 = vsel %vm253_vm0, %v3457_v10, 0.0  ;;  %v3723_v40 = vsel %vm3711_vm4, %v3654_v43, %v3722_v16  ;;  %v3822_v58 = vld [vmem:[#allocation16 + $0x10] sm:$0xff]  ;;  %v3821_v10 = vld [vmem:[#allocation16 + $0x8] sm:$0xff]  ;;  %s3924_s16 = sshll.u32 %s4655_s14, 4  ;;  %s3925_s16 = int_to_ptr.vmem [resolvable:$true] %s3924_s16 }
 0x8f9   :  { %v3670_v46 = vrot.slane %v3669_v47, 4  ;;  %v3667_v5 = vrot.slane %v3666_v20, 1  ;;  %v3724_v34 = vsel %vm3713_vm5, %v3661_v49, %v3723_v40  ;;  %3847 = vmatpush.msrb.mxu0 %v3822_v58 }
 0x8fa   :  { %v3569_v30 = vrot.slane %v3568_v11, 1 }
 0x8fb   :  { %v3671_v8 = vadd.f32 %v3670_v46, %v3669_v47  ;;  %v3440_v18 = vpop.f32.mrf.mxu3  ;;  %v3668_v24 = vadd.f32 %v3667_v5, %v3666_v20  ;;  %3848 = vmatpush.msrb.mxu0 %v3821_v10  ;;  %v3862_v47 = vld [vmem:[#allocation17 + $0x18] sm:$0xff] }
 0x8fc   :  { %v3441_v7 = vadd.f32 %v5737_v63, %v3440_v18  ;;  %v3570_v32 = vadd.f32 %v3569_v30, %v3568_v11  ;;  %3885 = vmatpush.msrb.mxu1 %v3862_v47  ;;  %v3861_v30 = vld [vmem:[#allocation17 + $0x10] sm:$0xff] }
 0x8fd   :  { %v3672_v9 = vrot.slane %v3671_v8, 2  ;;  %v3725_v56 = vsel %vm3715_vm6, %v3668_v24, %v3724_v34  ;;  %3849 = vmatpush.msrb.mxu0 %v3820_v13 }
 0x8fe   :  { %v3458_v27 = vmax.f32 %v3441_v7, 0.0  ;;  %v3784_v1 = vsel %vm3719_vm8, %v3570_v32, %v3783_v21  ;;  %3886 = vmatpush.msrb.mxu1 %v3861_v30 }
 0x8ff   :  { %4171 = vmatmul.msk.f32.gmra.mxu1 %vm253_vm0, %v3784_v1  ;;  %v3673_v26 = vadd.f32 %v3672_v9, %v3671_v8 }
 0x900   :  { %v3676_v63 = vsel %vm253_vm0, %v3458_v27, 0.0  ;;  %3887 = vmatpush.msrb.mxu1 %v3860_v17 }
 0x901   :  { %v3677_v19 = vrot.slane %v3676_v63, 4  ;;  %v3674_v54 = vrot.slane %v3673_v26, 1 }
 0x902   :  { %3888 = vmatpush.msrb.mxu1 %v3859_v41 }
 0x903   :  { %v3678_v45 = vadd.f32 %v3677_v19, %v3676_v63  ;;  %v3675_v39 = vadd.f32 %v3674_v54, %v3673_v26 }
 0x905   :  { %v3679_v37 = vrot.slane %v3678_v45, 2  ;;  %v3726_v25 = vsel %vm3717_vm7, %v3675_v39, %v3725_v56 }
 0x907   :  { %v3680_v31 = vadd.f32 %v3679_v37, %v3678_v45 }
 0x909   :  { %v3681_v33 = vrot.slane %v3680_v31, 1 }
 0x90b   :  { %v3682_v38 = vadd.f32 %v3681_v33, %v3680_v31 }
 0x90d   :  { %v3727_v61 = vsel %vm3719_vm8, %v3682_v38, %v3726_v25 }
 0x90e   :  { %4169 = vmatmul.msk.f32.gmra.mxu0 %vm253_vm0, %v3727_v61 }
 0x938   :  { %v3749_v44 = vpop.f32.mrf.mxu0 }
 0x93c   :  { %v3806_v42 = vpop.f32.mrf.mxu1 }
 0x93d   :  { %v3807_v23 = vadd.f32 %v3806_v42, %v3749_v44 }
 0x93f   :  { %v3816_v4 = vadd.f32 %v4194_v59, %v3807_v23 }
 0x941   :  { %v3818_v11 = vmax.f32 %v3816_v4, 0.0 }
 0x943   :  { %4172 = vmatmul.msk.f32.vlgmr.msrb.gmra.mxu0 %vm253_vm0, %v3818_v11 }
 0x97c   :  { %v3809_v6 = vpop.f32.mrf.mxu1 }
 0x98b   :  { %v3752_v53 = vpop.f32.mrf.mxu0 }
 0x98c   :  { %v3810_v60 = vadd.f32 %v3809_v6, %v3752_v53 }
 0x98e   :  { %v3817_v46 = vadd.f32 %v4194_v59, %v3810_v60 }
 0x990   :  { %v3819_v48 = vmax.f32 %v3817_v46, 0.0 }
 0x992   :  { %4173 = vmatmul.msk.f32.gmra.mxu0 %vm253_vm0, %v3819_v48 }
 0x9c0   :  { %v3851_v8 = vpop.f32.mrf.mxu0 }
 0x9c1   :  { %v3852_v18 = vadd.f32 %v4195_v14, %v3851_v8 }
 0x9c3   :  { %v3857_v36 = vmax.f32 %v3852_v18, 0.0 }
 0x9c5   :  { %4174 = vmatmul.msk.f32.vlgmr.msrb.gmra.mxu1 %vm253_vm0, %v3857_v36 }
 0xa0f   :  { %v3854_v22 = vpop.f32.mrf.mxu0 }
 0xa10   :  { %v3855_v7 = vadd.f32 %v4195_v14, %v3854_v22 }
 0xa12   :  { %v3858_v32 = vmax.f32 %v3855_v7, 0.0 }
 0xa14   :  { %4175 = vmatmul.msk.f32.gmra.mxu1 %vm253_vm0, %v3858_v32 }
 0xa42   :  { %v3890_v50 = vpop.f32.mrf.mxu1 }
 0xa43   :  { %v3891_v29 = vadd.f32 %v4196_v3, %v3890_v50 }
 0xa45   :  { %3896 = vmax.xlane.f32.xlu1 %v3891_v29 }
 0xa91   :  { %v3893_v9 = vpop.f32.mrf.mxu1 }
 0xa92   :  { %v3894_v21 = vadd.f32 %v4196_v3, %v3893_v9 }
 0xa94   :  { %3898 = vmax.xlane.f32.xlu1 %v3894_v21 }
 0xab8   :  { %v3897_v0 = vpop.xlane.xlu1 %3896 }
 0xab9   :  { %v3900_v27 = vsub.f32 %v3891_v29, %v3897_v0 }
 0xabb   :  { %v3902_v1 = vmul.f32 1.442695, %v3900_v27 }
 0xabd   :  { %4325 = vpow2.f32 %v3902_v1 }
 0xac3   :  { %v4326_v57 = vpop.eup %4325 }
 0xac4   :  { %3906 = vadd.xlane.f32.xlu1 %v4326_v57 }
 0xb07   :  { %v3899_v20 = vpop.xlane.xlu1 %3898 }
 0xb08   :  { %v3901_v62 = vsub.f32 %v3894_v21, %v3899_v20 }
 0xb0a   :  { %v3904_v26 = vmul.f32 1.442695, %v3901_v62 }
 0xb0c   :  { %4327 = vpow2.f32 %v3904_v26 }
 0xb12   :  { %v4328_v63 = vpop.eup %4327 }
 0xb13   :  { %3908 = vadd.xlane.f32.xlu0 %v4328_v63 }
 0xb37   :  { %v3907_v2 = vpop.xlane.xlu1 %3906 }
 0xb38   :  { %4329 = vlog2.f32 %v3907_v2 }
 0xb3e   :  { %v4330_v28 = vpop.eup %4329 }
 0xb3f   :  { %v3911_v19 = vmul.f32 0.6931472, %v4330_v28 }
 0xb41   :  { %v3914_v35 = vadd.f32 %v3911_v19, %v3897_v0 }
 0xb43   :  { %v3916_v52 = vsub.f32 %v3891_v29, %v3914_v35 }
 0xb45   :  { %3918 = vst [vmem:[#allocation19] sm:$0xff] %v3916_v52 }
 0xb86   :  { %v3909_v5 = vpop.xlane.xlu0 %3908 }
 0xb87   :  { %4331 = vlog2.f32 %v3909_v5 }
 0xb8d   :  { %v4332_v45 = vpop.eup %4331 }
 0xb8e   :  { %v3913_v15 = vmul.f32 0.6931472, %v4332_v45 }
 0xb90   :  { %v3915_v54 = vadd.f32 %v3913_v15, %v3899_v20 }
 0xb92   :  { %v3917_v51 = vsub.f32 %v3894_v21, %v3915_v54 }
 0xb94   :  { %3919 = vst [vmem:[#allocation19 + $0x8] sm:$0xff] %v3917_v51 }
 0xb95   :  { %3932 = dma.vmem_to_hbm [thread:$0]  %s3925_s16, 256, %s3927_s22, [#allocation4], %s4644_s19, %s4644_s19, %s4645_s1  }
 0xb96   :  { %4641 = dma.done.wait [#allocation4], 256  }
 0xb97   :  { %4642 = vsyncadd [#allocation4], 4294967040 }
 0xb98   :  { %3937 = vsyncpa [#allocation3], 1 }
 0xb99   :  { %3938 = vsyncpa [#allocation6], 1 }
 0xb9a   :  { %3939 = vsyncpa [#allocation9], 1 }
 0xb9b   :  { %3940 = vsyncpa [#allocation12], 1 }
 0xb9c   :  { %3941 = vsyncpa [#allocation15], 1 }
 0xb9d   :  { %3942 = vsyncpa [#allocation18], 1 }
 0xb9e   :  { %3943 = vsyncpa [#allocation4], 1 }

// kernel: tpu_custom_call.1
= control target key start
LH: loop header
LB: loop body
LE: loop exit
PB: predicated region body
PF: predicated region fallthrough
CT: control target
= control target key end

     0   :  { %s5861_s0 = inlined_call_operand.hbm [shape: f32[16,16,32], index: 0, kind: input, shape index: {}]   ;;  %s5862_s1 = inlined_call_operand.hbm [shape: f32[32,32], index: 1, kind: input, shape index: {}]   ;;  %s5863_s2 = inlined_call_operand.vmem [shape: f32[1,32], index: 2, kind: input, shape index: {}]   ;;  %s5864_s3 = inlined_call_operand.hbm [shape: f32[32,32], index: 3, kind: input, shape index: {}]   ;;  %s5865_s4 = inlined_call_operand.vmem [shape: f32[1,32], index: 4, kind: input, shape index: {}]   ;;  %s5866_s5 = inlined_call_operand.hbm [shape: f32[32,32], index: 5, kind: input, shape index: {}]   ;;  %s5867_s6 = inlined_call_operand.hbm [shape: f32[32,32], index: 6, kind: input, shape index: {}]   ;;  %s5868_s7 = inlined_call_operand.vmem [shape: f32[1,32], index: 7, kind: input, shape index: {}]   ;;  %s5869_s8 = inlined_call_operand.hbm [shape: f32[32,32], index: 8, kind: input, shape index: {}]   ;;  %s5870_s9 = inlined_call_operand.vmem [shape: f32[1,32], index: 9, kind: input, shape index: {}]   ;;  %s5871_s10 = inlined_call_operand.hbm [shape: f32[32,32], index: 10, kind: input, shape index: {}]   ;;  %s5872_s11 = inlined_call_operand.hbm [shape: f32[32,32], index: 11, kind: input, shape index: {}]   ;;  %s5873_s12 = inlined_call_operand.vmem [shape: f32[1,32], index: 12, kind: input, shape index: {}]   ;;  %s5874_s13 = inlined_call_operand.hbm [shape: f32[32,32], index: 13, kind: input, shape index: {}]   ;;  %s5875_s14 = inlined_call_operand.vmem [shape: f32[1,32], index: 14, kind: input, shape index: {}]   ;;  %s5876_s15 = inlined_call_operand.hbm [shape: f32[32,128], index: 15, kind: input, shape index: {}]   ;;  %s5877_s16 = inlined_call_operand.vmem [shape: f32[1,128], index: 16, kind: input, shape index: {}]   ;;  %s5878_s17 = inlined_call_operand.hbm [shape: f32[16,128], index: 17, kind: output, shape index: {}]  }
   0x1   :  { %5879 = sst [smem:[#allocation27_spill]] %s5861_s0 }
   0x2   :  { %5880 = sst [smem:[#allocation28_spill]] %s5862_s1 }
   0x3   :  { %22 = vsyncpa [#allocation3], 0 }
   0x4   :  { %23 = vsyncpa [#allocation6], 0 }
   0x5   :  { %24 = vsyncpa [#allocation9], 0 }
   0x6   :  { %25 = vsyncpa [#allocation12], 0 }
   0x7   :  { %26 = vsyncpa [#allocation15], 0 }
   0x8   :  { %27 = vsyncpa [#allocation18], 0 }
   0x9   :  { %28 = vsyncpa [#allocation4], 0  ;;  %s5881_s26 = sld [smem:[#allocation28_spill]]  ;;  %s4643_s28 = smov [#allocation5]  }
   0xa   :  { %s48_s29 = sshll.u32 %s4643_s28, 4  ;;  %s76_s18 = sshll.u32 %s5866_s5, 4  ;;  %s49_s29 = int_to_ptr.vmem [resolvable:$true] %s48_s29  ;;  %s77_s18 = int_to_ptr.hbm [resolvable:$true] %s76_s18 }
   0xb   :  { %s4644_s19 = smov 128   ;;  %s4645_s1 = smov 8  }
   0xc   :  { %s4646_s20 = smov [#allocation8]   ;;  %s104_s24 = sshll.u32 %s5869_s8, 4  ;;  %s105_s24 = int_to_ptr.hbm [resolvable:$true] %s104_s24 }
   0xd   :  { %s78_s21 = sshll.u32 %s4646_s20, 4  ;;  %s4647_s28 = smov [#allocation11]   ;;  %s79_s21 = int_to_ptr.vmem [resolvable:$true] %s78_s21 }
   0xe   :  { %84 = dma.hbm_to_vmem [thread:$0]  %s77_s18, 512, %s79_s21, [#allocation9], %s4644_s19, %s4644_s19, %s4645_s1  }
   0xf   :  { %s46_s27 = sshll.u32 %s5881_s26, 4  ;;  %s132_s26 = sshll.u32 %s5872_s11, 4  ;;  %s47_s27 = int_to_ptr.hbm [resolvable:$true] %s46_s27  ;;  %s133_s26 = int_to_ptr.hbm [resolvable:$true] %s132_s26 }
  0x10   :  { %54 = dma.hbm_to_vmem [thread:$0]  %s47_s27, 512, %s49_s29, [#allocation6], %s4644_s19, %s4644_s19, %s4645_s1  }
  0x11   :  { %s106_s0 = sshll.u32 %s4647_s28, 4  ;;  %s4648_s27 = smov [#allocation14]   ;;  %s107_s0 = int_to_ptr.vmem [resolvable:$true] %s106_s0 }
  0x12   :  { %112 = dma.hbm_to_vmem [thread:$0]  %s105_s24, 512, %s107_s0, [#allocation12], %s4644_s19, %s4644_s19, %s4645_s1  }
  0x13   :  { %s134_s8 = sshll.u32 %s4648_s27, 4  ;;  %s5882_s20 = sld [smem:[#allocation27_spill]]  ;;  %s135_s8 = int_to_ptr.vmem [resolvable:$true] %s134_s8 }
  0x14   :  { %140 = dma.hbm_to_vmem [thread:$0]  %s133_s26, 512, %s135_s8, [#allocation15], %s4644_s19, %s4644_s19, %s4645_s1  }
  0x15   :  { %s61_s21 = sshll.u32 %s5864_s3, 4  ;;  %s4649_s23 = smov [#allocation2]   ;;  %s62_s21 = int_to_ptr.hbm [resolvable:$true] %s61_s21 }
  0x16   :  { %s35_s5 = sshll.u32 %s4649_s23, 4  ;;  %s4650_s24 = smov [#allocation7]   ;;  %s36_s5 = int_to_ptr.vmem [resolvable:$true] %s35_s5 }
  0x17   :  { %s63_s25 = sshll.u32 %s4650_s24, 4  ;;  %s89_s27 = sshll.u32 %s5867_s6, 4  ;;  %s64_s25 = int_to_ptr.vmem [resolvable:$true] %s63_s25  ;;  %s90_s27 = int_to_ptr.hbm [resolvable:$true] %s89_s27 }
  0x18   :  { %69 = dma.hbm_to_vmem [thread:$0]  %s62_s21, 512, %s64_s25, [#allocation6], %s4644_s19, %s4644_s19, %s4645_s1  }
  0x19   :  { %s33_s22 = sshll.u32 %s5882_s20, 4  ;;  %s119_s8 = sshll.u32 %s5871_s10, 4  ;;  %s34_s22 = int_to_ptr.hbm [resolvable:$true] %s33_s22  ;;  %s120_s8 = int_to_ptr.hbm [resolvable:$true] %s119_s8 }
  0x1a   :  { %41 = dma.hbm_to_vmem [thread:$0]  %s34_s22, 4096, %s36_s5, [#allocation3], %s4644_s19, %s4644_s19, %s4645_s1  }
  0x1b   :  { %s4651_s29 = smov [#allocation10]   ;;  %s4652_s20 = smov [#allocation13]  }
  0x1c   :  { %s91_s30 = sshll.u32 %s4651_s29, 4  ;;  %s121_s6 = sshll.u32 %s4652_s20, 4  ;;  %s92_s30 = int_to_ptr.vmem [resolvable:$true] %s91_s30  ;;  %s122_s6 = int_to_ptr.vmem [resolvable:$true] %s121_s6 }
  0x1d   :  { %97 = dma.hbm_to_vmem [thread:$0]  %s90_s27, 512, %s92_s30, [#allocation9], %s4644_s19, %s4644_s19, %s4645_s1  }
  0x1e   :  { %s147_s18 = sshll.u32 %s5874_s13, 4  ;;  %s162_s23 = sshll.u32 %s5876_s15, 4  ;;  %s148_s18 = int_to_ptr.hbm [resolvable:$true] %s147_s18  ;;  %s163_s23 = int_to_ptr.hbm [resolvable:$true] %s162_s23 }
  0x1f   :  { %127 = dma.hbm_to_vmem [thread:$0]  %s120_s8, 512, %s122_s6, [#allocation12], %s4644_s19, %s4644_s19, %s4645_s1  }
  0x20   :  { %s4653_s5 = smov [#allocation16]   ;;  %s4654_s25 = smov [#allocation17]  }
  0x21   :  { %s149_s24 = sshll.u32 %s4653_s5, 4  ;;  %s164_s13 = sshll.u32 %s4654_s25, 4  ;;  %s150_s24 = int_to_ptr.vmem [resolvable:$true] %s149_s24  ;;  %s165_s13 = int_to_ptr.vmem [resolvable:$true] %s164_s13 }
  0x22   :  { %155 = dma.hbm_to_vmem [thread:$0]  %s148_s18, 512, %s150_s24, [#allocation15], %s4644_s19, %s4644_s19, %s4645_s1  }
  0x23   :  { %170 = dma.hbm_to_vmem [thread:$0]  %s163_s23, 512, %s165_s13, [#allocation18], %s4644_s19, %s4644_s19, %s4645_s1  }
  0x24   :  { %4629 = dma.done.wait [#allocation3], 4096  }
  0x25   :  { %4630 = vsyncadd [#allocation3], 4294963200 }
  0x26   :  { %4631 = dma.done.wait [#allocation6], 1024  }
  0x27   :  { %4632 = vsyncadd [#allocation6], 4294966272 }
  0x28   :  { %4633 = dma.done.wait [#allocation9], 1024  }
  0x29   :  { %4634 = vsyncadd [#allocation9], 4294966272 }
  0x2a   :  { %4635 = dma.done.wait [#allocation12], 1024  }
  0x2b   :  { %4636 = vsyncadd [#allocation12], 4294966272 }
  0x2c   :  { %4637 = dma.done.wait [#allocation15], 1024  }
  0x2d   :  { %4638 = vsyncadd [#allocation15], 4294966272 }
  0x2e   :  { %4639 = dma.done.wait [#allocation18], 512  }
  0x2f   :  { %4640 = vsyncadd [#allocation18], 4294966784  ;;  %v248_v0 = vld [vmem:[#allocation5 + $0x18] sm:$0xff]  ;;  %v247_v1 = vld [vmem:[#allocation5 + $0x10] sm:$0xff]  ;;  %vm253_vm0 = vcmask 261120   ;;  %vm1672_vm1 = vcmask 64512  }
  0x30   :  { %362 = vmatpush.msra.mxu0 %v248_v0  ;;  %v246_v2 = vld [vmem:[#allocation5 + $0x8] sm:$0xff]  ;;  %v245_v3 = vld [vmem:[#allocation5] sm:$0xff]  ;;  %v215_v6 = vld [vmem:[#allocation2 + $0x10] sm:$0xff]  ;;  %vm3707_vm2 = vcmask 1041409   ;;  %vm3709_vm3 = vcmask 1042434   ;;  %vm3711_vm4 = vcmask 1043459  }
  0x31   :  { %v213_v4 = vld [vmem:[#allocation2] sm:$0xff]  ;;  %v4807_v5 = vld [vmem:[#allocation2 + $0x8] sm:$0xff]  ;;  %v4812_v7 = vld [vmem:[#allocation2 + $0x18] sm:$0xff]  ;;  %vm3713_vm5 = vcmask 1044484   ;;  %vm3715_vm6 = vcmask 1045509   ;;  %vm3717_vm7 = vcmask 1046534  }
  0x32   :  { %363 = vmatpush.msra.mxu0 %v247_v1  ;;  %v217_v8 = vld [vmem:[#allocation2 + $0x20] sm:$0xff]  ;;  %v4817_v9 = vld [vmem:[#allocation2 + $0x28] sm:$0xff]  ;;  %v219_v10 = vld [vmem:[#allocation2 + $0x30] sm:$0xff]  ;;  %vm3719_vm8 = vcmask 1047559   ;;  %s3926_s22 = sshll.u32 %s5878_s17, 4  ;;  %s3927_s22 = int_to_ptr.hbm [resolvable:$true] %s3926_s22 }
  0x33   :  { %v4822_v11 = vld [vmem:[#allocation2 + $0x38] sm:$0xff]  ;;  %v221_v12 = vld [vmem:[#allocation2 + $0x40] sm:$0xff]  ;;  %v4827_v13 = vld [vmem:[#allocation2 + $0x48] sm:$0xff] }
  0x34   :  { %364 = vmatpush.msra.mxu0 %v246_v2  ;;  %v498_v14 = vld [vmem:[#allocation7 + $0x18] sm:$0xff]  ;;  %v223_v15 = vld [vmem:[#allocation2 + $0x50] sm:$0xff]  ;;  %v225_v18 = vld [vmem:[#allocation2 + $0x60] sm:$0xff] }
  0x35   :  { %611 = vmatpush.msra.mxu1 %v498_v14  ;;  %v224_v16 = vld [vmem:[#allocation2 + $0x58] sm:$0xff]  ;;  %v497_v17 = vld [vmem:[#allocation7 + $0x10] sm:$0xff]  ;;  %v496_v19 = vld [vmem:[#allocation7 + $0x8] sm:$0xff] }
  0x36   :  { %365 = vmatpush.msra.mxu0 %v245_v3  ;;  %v495_v20 = vld [vmem:[#allocation7] sm:$0xff]  ;;  %v4834_v21 = vld [vmem:[#allocation2 + $0x68] sm:$0xff]  ;;  %v227_v22 = vld [vmem:[#allocation2 + $0x70] sm:$0xff] }
  0x37   :  { %3944 = vmatmul.msk.f32.vlgmr.msra.gmra.mxu0 %vm253_vm0, %v213_v4  ;;  %612 = vmatpush.msra.mxu1 %v497_v17  ;;  %v228_v23 = vld [vmem:[#allocation2 + $0x78] sm:$0xff]  ;;  %v4843_v24 = vld [vmem:[%s5863_s2] ss:$0 sm:$0xff]  ;;  %v230_v30 = vld [vmem:[#allocation2 + $0x88] sm:$0xff] }
  0x38   :  { %v229_v26 = vld [vmem:[#allocation2 + $0x80] sm:$0xff]  ;;  %v231_v34 = vld [vmem:[#allocation2 + $0x90] sm:$0xff]  ;;  %v232_v38 = vld [vmem:[#allocation2 + $0x98] sm:$0xff] }
  0x39   :  { %613 = vmatpush.msra.mxu1 %v496_v19  ;;  %v233_v42 = vld [vmem:[#allocation2 + $0xa0] sm:$0xff]  ;;  %v234_v46 = vld [vmem:[#allocation2 + $0xa8] sm:$0xff]  ;;  %v235_v50 = vld [vmem:[#allocation2 + $0xb0] sm:$0xff] }
  0x3a   :  { %v236_v54 = vld [vmem:[#allocation2 + $0xb8] sm:$0xff]  ;;  %v237_v58 = vld [vmem:[#allocation2 + $0xc0] sm:$0xff]  ;;  %v238_v62 = vld [vmem:[#allocation2 + $0xc8] sm:$0xff] }
  0x3b   :  { %614 = vmatpush.msra.mxu1 %v495_v20  ;;  %v239_v2 = vld [vmem:[#allocation2 + $0xd0] sm:$0xff]  ;;  %v242_v19 = vld [vmem:[#allocation2 + $0xe8] sm:$0xff] }
  0x3f   :  { %3945 = vmatmul.msk.f32.gmra.mxu0 %vm253_vm0, %v4807_v5 }
  0x47   :  { %3946 = vmatmul.msk.f32.gmra.mxu0 %vm253_vm0, %v215_v6 }
  0x4f   :  { %3947 = vmatmul.msk.f32.gmra.mxu0 %vm253_vm0, %v4812_v7 }
  0x57   :  { %3948 = vmatmul.msk.f32.gmra.mxu0 %vm253_vm0, %v217_v8  ;;  %v240_v8 = vld [vmem:[#allocation2 + $0xd8] sm:$0xff] }
  0x5f   :  { %3949 = vmatmul.msk.f32.gmra.mxu0 %vm253_vm0, %v4817_v9 }
  0x67   :  { %3950 = vmatmul.msk.f32.gmra.mxu0 %vm253_vm0, %v219_v10 }
  0x6f   :  { %3951 = vmatmul.msk.f32.gmra.mxu0 %vm253_vm0, %v4822_v11 }
  0x77   :  { %3952 = vmatmul.msk.f32.gmra.mxu0 %vm253_vm0, %v221_v12 }
  0x7f   :  { %3953 = vmatmul.msk.f32.gmra.mxu0 %vm253_vm0, %v4827_v13 }
  0x87   :  { %3954 = vmatmul.msk.f32.gmra.mxu0 %vm253_vm0, %v223_v15  ;;  %v241_v15 = vld [vmem:[#allocation2 + $0xe0] sm:$0xff] }
  0x8f   :  { %3955 = vmatmul.msk.f32.gmra.mxu0 %vm253_vm0, %v224_v16 }
  0x97   :  { %3956 = vmatmul.msk.f32.gmra.mxu0 %vm253_vm0, %v225_v18 }
  0x9f   :  { %3957 = vmatmul.msk.f32.gmra.mxu0 %vm253_vm0, %v4834_v21 }
  0xa7   :  { %3958 = vmatmul.msk.f32.gmra.mxu0 %vm253_vm0, %v227_v22 }
  0xaf   :  { %3959 = vmatmul.msk.f32.gmra.mxu0 %vm253_vm0, %v228_v23 }
  0xb4   :  { %v367_v25 = vpop.f32.mrf.mxu0 }
  0xb5   :  { %v368_v27 = vadd.f32 %v4843_v24, %v367_v25  ;;  %v243_v25 = vld [vmem:[#allocation2 + $0xf0] sm:$0xff] }
  0xb7   :  { %v463_v28 = vmax.f32 %v368_v27, 0.0  ;;  %3960 = vmatmul.msk.f32.gmra.mxu0 %vm253_vm0, %v229_v26 }
  0xb9   :  { %3976 = vmatmul.msk.f32.vlgmr.msra.gmra.mxu1 %vm253_vm0, %v463_v28 }
  0xbc   :  { %v370_v29 = vpop.f32.mrf.mxu0 }
  0xbd   :  { %v371_v31 = vadd.f32 %v4843_v24, %v370_v29  ;;  %v244_v29 = vld [vmem:[#allocation2 + $0xf8] sm:$0xff] }
  0xbf   :  { %v464_v32 = vmax.f32 %v371_v31, 0.0  ;;  %3961 = vmatmul.msk.f32.gmra.mxu0 %vm253_vm0, %v230_v30 }
  0xc1   :  { %3977 = vmatmul.msk.f32.gmra.mxu1 %vm253_vm0, %v464_v32 }
  0xc4   :  { %v373_v33 = vpop.f32.mrf.mxu0 }
  0xc5   :  { %v374_v35 = vadd.f32 %v4843_v24, %v373_v33 }
  0xc7   :  { %v465_v36 = vmax.f32 %v374_v35, 0.0  ;;  %3962 = vmatmul.msk.f32.gmra.mxu0 %vm253_vm0, %v231_v34 }
  0xc9   :  { %3978 = vmatmul.msk.f32.gmra.mxu1 %vm253_vm0, %v465_v36  ;;  %v4898_v36 = vld [vmem:[%s5865_s4] ss:$0 sm:$0xff] }
  0xcc   :  { %v376_v37 = vpop.f32.mrf.mxu0 }
  0xcd   :  { %v377_v39 = vadd.f32 %v4843_v24, %v376_v37 }
  0xcf   :  { %v466_v40 = vmax.f32 %v377_v39, 0.0  ;;  %3963 = vmatmul.msk.f32.gmra.mxu0 %vm253_vm0, %v232_v38 }
  0xd1   :  { %3979 = vmatmul.msk.f32.gmra.mxu1 %vm253_vm0, %v466_v40 }
  0xd4   :  { %v379_v41 = vpop.f32.mrf.mxu0 }
  0xd5   :  { %v380_v43 = vadd.f32 %v4843_v24, %v379_v41 }
  0xd7   :  { %v467_v44 = vmax.f32 %v380_v43, 0.0  ;;  %3964 = vmatmul.msk.f32.gmra.mxu0 %vm253_vm0, %v233_v42 }
  0xd9   :  { %3980 = vmatmul.msk.f32.gmra.mxu1 %vm253_vm0, %v467_v44 }
  0xdc   :  { %v382_v45 = vpop.f32.mrf.mxu0 }
  0xdd   :  { %v383_v47 = vadd.f32 %v4843_v24, %v382_v45 }
  0xdf   :  { %v468_v48 = vmax.f32 %v383_v47, 0.0  ;;  %3965 = vmatmul.msk.f32.gmra.mxu0 %vm253_vm0, %v234_v46 }
  0xe1   :  { %3981 = vmatmul.msk.f32.gmra.mxu1 %vm253_vm0, %v468_v48 }
  0xe4   :  { %v385_v49 = vpop.f32.mrf.mxu0 }
  0xe5   :  { %v386_v51 = vadd.f32 %v4843_v24, %v385_v49 }
  0xe7   :  { %v469_v52 = vmax.f32 %v386_v51, 0.0  ;;  %3966 = vmatmul.msk.f32.gmra.mxu0 %vm253_vm0, %v235_v50 }
  0xe9   :  { %3982 = vmatmul.msk.f32.gmra.mxu1 %vm253_vm0, %v469_v52 }
  0xec   :  { %v388_v53 = vpop.f32.mrf.mxu0 }
  0xed   :  { %v389_v55 = vadd.f32 %v4843_v24, %v388_v53 }
  0xef   :  { %v470_v56 = vmax.f32 %v389_v55, 0.0  ;;  %3967 = vmatmul.msk.f32.gmra.mxu0 %vm253_vm0, %v236_v54 }
  0xf1   :  { %3983 = vmatmul.msk.f32.gmra.mxu1 %vm253_vm0, %v470_v56 }
  0xf4   :  { %v391_v57 = vpop.f32.mrf.mxu0 }
  0xf5   :  { %v392_v59 = vadd.f32 %v4843_v24, %v391_v57 }
  0xf7   :  { %v471_v60 = vmax.f32 %v392_v59, 0.0  ;;  %3968 = vmatmul.msk.f32.gmra.mxu0 %vm253_vm0, %v237_v58 }
  0xf9   :  { %3984 = vmatmul.msk.f32.gmra.mxu1 %vm253_vm0, %v471_v60 }
  0xfc   :  { %v394_v61 = vpop.f32.mrf.mxu0 }
  0xfd   :  { %v395_v63 = vadd.f32 %v4843_v24, %v394_v61 }
  0xff   :  { %v472_v0 = vmax.f32 %v395_v63, 0.0  ;;  %3969 = vmatmul.msk.f32.gmra.mxu0 %vm253_vm0, %v238_v62 }
 0x101   :  { %3985 = vmatmul.msk.f32.gmra.mxu1 %vm253_vm0, %v472_v0 }
 0x104   :  { %v397_v1 = vpop.f32.mrf.mxu0 }
 0x105   :  { %v398_v3 = vadd.f32 %v4843_v24, %v397_v1 }
 0x107   :  { %v473_v4 = vmax.f32 %v398_v3, 0.0  ;;  %3970 = vmatmul.msk.f32.gmra.mxu0 %vm253_vm0, %v239_v2 }
 0x109   :  { %3986 = vmatmul.msk.f32.gmra.mxu1 %vm253_vm0, %v473_v4 }
 0x10c   :  { %v400_v6 = vpop.f32.mrf.mxu0 }
 0x10d   :  { %v401_v10 = vadd.f32 %v4843_v24, %v400_v6 }
 0x10f   :  { %v474_v12 = vmax.f32 %v401_v10, 0.0  ;;  %3971 = vmatmul.msk.f32.gmra.mxu0 %vm253_vm0, %v240_v8 }
 0x111   :  { %3987 = vmatmul.msk.f32.gmra.mxu1 %vm253_vm0, %v474_v12 }
 0x114   :  { %v403_v14 = vpop.f32.mrf.mxu0 }
 0x115   :  { %v404_v16 = vadd.f32 %v4843_v24, %v403_v14 }
 0x117   :  { %v475_v17 = vmax.f32 %v404_v16, 0.0  ;;  %3972 = vmatmul.msk.f32.gmra.mxu0 %vm253_vm0, %v241_v15 }
 0x119   :  { %3988 = vmatmul.msk.f32.gmra.mxu1 %vm253_vm0, %v475_v17 }
 0x11c   :  { %v406_v18 = vpop.f32.mrf.mxu0 }
 0x11d   :  { %v407_v20 = vadd.f32 %v4843_v24, %v406_v18 }
 0x11f   :  { %v476_v22 = vmax.f32 %v407_v20, 0.0  ;;  %3973 = vmatmul.msk.f32.gmra.mxu0 %vm253_vm0, %v242_v19 }
 0x121   :  { %3989 = vmatmul.msk.f32.gmra.mxu1 %vm253_vm0, %v476_v22 }
 0x124   :  { %v409_v23 = vpop.f32.mrf.mxu0 }
 0x125   :  { %v410_v26 = vadd.f32 %v4843_v24, %v409_v23 }
 0x127   :  { %v477_v27 = vmax.f32 %v410_v26, 0.0  ;;  %3974 = vmatmul.msk.f32.gmra.mxu0 %vm253_vm0, %v243_v25 }
 0x129   :  { %3990 = vmatmul.msk.f32.gmra.mxu1 %vm253_vm0, %v477_v27 }
 0x12c   :  { %v412_v28 = vpop.f32.mrf.mxu0 }
 0x12d   :  { %v413_v30 = vadd.f32 %v4843_v24, %v412_v28 }
 0x12f   :  { %v478_v31 = vmax.f32 %v413_v30, 0.0  ;;  %3975 = vmatmul.msk.f32.gmra.mxu0 %vm253_vm0, %v244_v29 }
 0x131   :  { %3991 = vmatmul.msk.f32.gmra.mxu1 %vm253_vm0, %v478_v31 }
 0x134   :  { %v415_v32 = vpop.f32.mrf.mxu0 }
 0x135   :  { %v416_v33 = vadd.f32 %v4843_v24, %v415_v32 }
 0x136   :  { %v616_v34 = vpop.f32.mrf.mxu1 }
 0x137   :  { %v479_v35 = vmax.f32 %v416_v33, 0.0  ;;  %v617_v42 = vadd.f32 %v4898_v36, %v616_v34 }
 0x139   :  { %3992 = vmatmul.msk.f32.gmra.mxu1 %vm253_vm0, %v479_v35  ;;  %v712_v44 = vmax.f32 %v617_v42, 0.0 }
 0x13c   :  { %v418_v37 = vpop.f32.mrf.mxu0 }
 0x13d   :  { %v419_v38 = vadd.f32 %v4843_v24, %v418_v37 }
 0x13e   :  { %v619_v39 = vpop.f32.mrf.mxu1 }
 0x13f   :  { %v620_v40 = vadd.f32 %v4898_v36, %v619_v39  ;;  %v480_v41 = vmax.f32 %v419_v38, 0.0 }
 0x141   :  { %v713_v43 = vmax.f32 %v620_v40, 0.0  ;;  %3993 = vmatmul.msk.f32.gmra.mxu1 %vm253_vm0, %v480_v41 }
 0x143   :  { %4008 = vmatpush.xpose.msk.msrb.mxu0 %vm253_vm0, %v713_v43 }
 0x144   :  { %v421_v45 = vpop.f32.mrf.mxu0 }
 0x145   :  { %v422_v46 = vadd.f32 %v4843_v24, %v421_v45 }
 0x146   :  { %v4906_v47 = vpop.f32.mrf.mxu1  ;;  %4009 = vmatmul.msk.f32.vlgmr.msrb.gmra.mxu0 %vm253_vm0, %v712_v44 }
 0x147   :  { %v481_v48 = vmax.f32 %v422_v46, 0.0 }
 0x149   :  { %3994 = vmatmul.msk.f32.gmra.mxu1 %vm253_vm0, %v481_v48 }
 0x14c   :  { %v424_v49 = vpop.f32.mrf.mxu0 }
 0x14d   :  { %v425_v50 = vadd.f32 %v4843_v24, %v424_v49 }
 0x14e   :  { %v625_v51 = vpop.f32.mrf.mxu1 }
 0x14f   :  { %v626_v52 = vadd.f32 %v4898_v36, %v625_v51  ;;  %v482_v53 = vmax.f32 %v425_v50, 0.0 }
 0x151   :  { %v715_v54 = vmax.f32 %v626_v52, 0.0  ;;  %3995 = vmatmul.msk.f32.gmra.mxu1 %vm253_vm0, %v482_v53 }
 0x153   :  { %4010 = vmatpush.xpose.msk.msrb.mxu1 %vm253_vm0, %v715_v54 }
 0x154   :  { %v427_v55 = vpop.f32.mrf.mxu0 }
 0x155   :  { %v428_v56 = vadd.f32 %v4843_v24, %v427_v55 }
 0x156   :  { %v628_v57 = vpop.f32.mrf.mxu1 }
 0x157   :  { %v483_v58 = vmax.f32 %v428_v56, 0.0  ;;  %v629_v0 = vadd.f32 %v4898_v36, %v628_v57 }
 0x159   :  { %3996 = vmatmul.msk.f32.gmra.mxu1 %vm253_vm0, %v483_v58  ;;  %v716_v2 = vmax.f32 %v629_v0, 0.0 }
 0x15c   :  { %v430_v59 = vpop.f32.mrf.mxu0 }
 0x15d   :  { %v431_v60 = vadd.f32 %v4843_v24, %v430_v59 }
 0x15e   :  { %v631_v61 = vpop.f32.mrf.mxu1 }
 0x15f   :  { %v632_v62 = vadd.f32 %v4898_v36, %v631_v61  ;;  %v484_v63 = vmax.f32 %v431_v60, 0.0 }
 0x161   :  { %v717_v1 = vmax.f32 %v632_v62, 0.0  ;;  %3997 = vmatmul.msk.f32.gmra.mxu1 %vm253_vm0, %v484_v63 }
 0x163   :  { %4012 = vmatpush.xpose.msk.msra.mxu0 %vm253_vm0, %v717_v1 }
 0x164   :  { %v433_v3 = vpop.f32.mrf.mxu0 }
 0x165   :  { %v434_v4 = vadd.f32 %v4843_v24, %v433_v3 }
 0x166   :  { %4013 = vmatmul.msk.f32.vlgmr.msra.gmra.mxu0 %vm253_vm0, %v716_v2  ;;  %v4923_v6 = vpop.f32.mrf.mxu1 }
 0x167   :  { %v485_v8 = vmax.f32 %v434_v4, 0.0 }
 0x169   :  { %3998 = vmatmul.msk.f32.gmra.mxu1 %vm253_vm0, %v485_v8 }
 0x16c   :  { %v436_v10 = vpop.f32.mrf.mxu0 }
 0x16d   :  { %v437_v12 = vadd.f32 %v4843_v24, %v436_v10  ;;  %v623_v10 = vadd.f32 %v4898_v36, %v4906_v47 }
 0x16e   :  { %v637_v14 = vpop.f32.mrf.mxu1 }
 0x16f   :  { %v486_v15 = vmax.f32 %v437_v12, 0.0  ;;  %v638_v16 = vadd.f32 %v4898_v36, %v637_v14  ;;  %v714_v14 = vmax.f32 %v623_v10, 0.0 }
 0x171   :  { %v719_v17 = vmax.f32 %v638_v16, 0.0  ;;  %3999 = vmatmul.msk.f32.gmra.mxu1 %vm253_vm0, %v486_v15 }
 0x173   :  { %4014 = vmatpush.xpose.msk.msra.mxu1 %vm253_vm0, %v719_v17 }
 0x174   :  { %v439_v18 = vpop.f32.mrf.mxu0 }
 0x175   :  { %v440_v19 = vadd.f32 %v4843_v24, %v439_v18 }
 0x176   :  { %v640_v20 = vpop.f32.mrf.mxu1 }
 0x177   :  { %v487_v22 = vmax.f32 %v440_v19, 0.0  ;;  %v641_v26 = vadd.f32 %v4898_v36, %v640_v20 }
 0x179   :  { %4000 = vmatmul.msk.f32.gmra.mxu1 %vm253_vm0, %v487_v22  ;;  %v720_v31 = vmax.f32 %v641_v26, 0.0 }
 0x17c   :  { %v442_v23 = vpop.f32.mrf.mxu0 }
 0x17d   :  { %v443_v25 = vadd.f32 %v4843_v24, %v442_v23 }
 0x17e   :  { %v643_v27 = vpop.f32.mrf.mxu1 }
 0x17f   :  { %v488_v28 = vmax.f32 %v443_v25, 0.0  ;;  %v644_v29 = vadd.f32 %v4898_v36, %v643_v27 }
 0x181   :  { %v721_v30 = vmax.f32 %v644_v29, 0.0  ;;  %4001 = vmatmul.msk.f32.gmra.mxu1 %vm253_vm0, %v488_v28 }
 0x183   :  { %4016 = vmatpush.xpose.msk.msra.mxu2 %vm253_vm0, %v721_v30 }
 0x184   :  { %v445_v32 = vpop.f32.mrf.mxu0 }
 0x185   :  { %v446_v33 = vadd.f32 %v4843_v24, %v445_v32 }
 0x186   :  { %4017 = vmatmul.msk.f32.vlgmr.msra.gmra.mxu2 %vm253_vm0, %v720_v31  ;;  %v646_v34 = vpop.f32.mrf.mxu1 }
 0x187   :  { %v489_v35 = vmax.f32 %v446_v33, 0.0  ;;  %v647_v39 = vadd.f32 %v4898_v36, %v646_v34 }
 0x189   :  { %4002 = vmatmul.msk.f32.gmra.mxu1 %vm253_vm0, %v489_v35  ;;  %v722_v44 = vmax.f32 %v647_v39, 0.0 }
 0x18c   :  { %v448_v37 = vpop.f32.mrf.mxu0 }
 0x18d   :  { %v449_v38 = vadd.f32 %v4843_v24, %v448_v37 }
 0x18e   :  { %v649_v40 = vpop.f32.mrf.mxu1 }
 0x18f   :  { %v490_v41 = vmax.f32 %v449_v38, 0.0  ;;  %v650_v42 = vadd.f32 %v4898_v36, %v649_v40 }
 0x191   :  { %4003 = vmatmul.msk.f32.gmra.mxu1 %vm253_vm0, %v490_v41  ;;  %v723_v43 = vmax.f32 %v650_v42, 0.0 }
 0x193   :  { %4018 = vmatpush.xpose.msk.msra.mxu3 %vm253_vm0, %v723_v43 }
 0x194   :  { %v451_v45 = vpop.f32.mrf.mxu0 }
 0x195   :  { %v452_v46 = vadd.f32 %v4843_v24, %v451_v45 }
 0x196   :  { %v652_v48 = vpop.f32.mrf.mxu1  ;;  %4019 = vmatmul.msk.f32.vlgmr.msra.gmra.mxu3 %vm253_vm0, %v722_v44 }
 0x197   :  { %v491_v49 = vmax.f32 %v452_v46, 0.0  ;;  %v653_v52 = vadd.f32 %v4898_v36, %v652_v48 }
 0x199   :  { %4004 = vmatmul.msk.f32.gmra.mxu1 %vm253_vm0, %v491_v49  ;;  %v724_v57 = vmax.f32 %v653_v52, 0.0 }
 0x19c   :  { %v454_v50 = vpop.f32.mrf.mxu0 }
 0x19d   :  { %v455_v51 = vadd.f32 %v4843_v24, %v454_v50 }
 0x19e   :  { %v655_v53 = vpop.f32.mrf.mxu1 }
 0x19f   :  { %v492_v54 = vmax.f32 %v455_v51, 0.0  ;;  %v656_v55 = vadd.f32 %v4898_v36, %v655_v53 }
 0x1a1   :  { %v725_v56 = vmax.f32 %v656_v55, 0.0  ;;  %4005 = vmatmul.msk.f32.gmra.mxu1 %vm253_vm0, %v492_v54 }
 0x1a3   :  { %4020 = vmatpush.xpose.msk.msrb.mxu2 %vm253_vm0, %v725_v56 }
 0x1a4   :  { %v457_v58 = vpop.f32.mrf.mxu0 }
 0x1a5   :  { %v458_v59 = vadd.f32 %v4843_v24, %v457_v58 }
 0x1a6   :  { %4021 = vmatmul.msk.f32.vlgmr.msrb.gmra.mxu2 %vm253_vm0, %v724_v57  ;;  %v658_v60 = vpop.f32.mrf.mxu1 }
 0x1a7   :  { %v493_v61 = vmax.f32 %v458_v59, 0.0  ;;  %v659_v0 = vadd.f32 %v4898_v36, %v658_v60 }
 0x1a9   :  { %4006 = vmatmul.msk.f32.gmra.mxu1 %vm253_vm0, %v493_v61  ;;  %v726_v8 = vmax.f32 %v659_v0, 0.0 }
 0x1ac   :  { %v460_v62 = vpop.f32.mrf.mxu0 }
 0x1ad   :  { %v461_v63 = vadd.f32 %v4843_v24, %v460_v62  ;;  %v635_v24 = vadd.f32 %v4898_v36, %v4923_v6 }
 0x1ae   :  { %v661_v1 = vpop.f32.mrf.mxu1 }
 0x1af   :  { %v494_v2 = vmax.f32 %v461_v63, 0.0  ;;  %v662_v3 = vadd.f32 %v4898_v36, %v661_v1  ;;  %v718_v17 = vmax.f32 %v635_v24, 0.0 }
 0x1b1   :  { %v727_v4 = vmax.f32 %v662_v3, 0.0  ;;  %4007 = vmatmul.msk.f32.gmra.mxu1 %vm253_vm0, %v494_v2 }
 0x1b3   :  { %4022 = vmatpush.xpose.msk.msrb.mxu3 %vm253_vm0, %v727_v4 }
 0x1b6   :  { %v664_v12 = vpop.f32.mrf.mxu1  ;;  %4023 = vmatmul.msk.f32.vlgmr.msrb.gmra.mxu3 %vm253_vm0, %v726_v8 }
 0x1b7   :  { %v665_v15 = vadd.f32 %v4898_v36, %v664_v12 }
 0x1b9   :  { %4011 = vmatmul.msk.f32.vlgmr.msrb.gmra.mxu1 %vm253_vm0, %v714_v14  ;;  %v728_v47 = vmax.f32 %v665_v15, 0.0 }
 0x1be   :  { %v667_v16 = vpop.f32.mrf.mxu1 }
 0x1bf   :  { %v668_v18 = vadd.f32 %v4898_v36, %v667_v16 }
 0x1c1   :  { %v729_v19 = vmax.f32 %v668_v18, 0.0  ;;  %4015 = vmatmul.msk.f32.vlgmr.msra.gmra.mxu1 %vm253_vm0, %v718_v17 }
 0x1c3   :  { %v4970_v20 = vpop.f32.mrf.mxu0  ;;  %4024 = vmatpush.xpose.msk.msra.mxu2 %vm253_vm0, %v729_v19 }
 0x1c4   :  { %1160 = vxpose.xlu0.b32.start.end [1/1] (short) (narrow) %v4970_v20, 8  ;;  %v1673_v8 = vsel %vm1672_vm1, %v4970_v20, -inf }
 0x1c6   :  { %v670_v22 = vpop.f32.mrf.mxu1  ;;  %4025 = vmatmul.msk.f32.vlgmr.msra.gmra.mxu2 %vm253_vm0, %v728_v47 }
 0x1c7   :  { %v671_v6 = vadd.f32 %v4898_v36, %v670_v22 }
 0x1c9   :  { %v730_v27 = vmax.f32 %v671_v6, 0.0 }
 0x1ce   :  { %v673_v23 = vpop.f32.mrf.mxu1 }
 0x1cf   :  { %v674_v25 = vadd.f32 %v4898_v36, %v673_v23 }
 0x1d1   :  { %v731_v26 = vmax.f32 %v674_v25, 0.0 }
 0x1d3   :  { %4026 = vmatpush.xpose.msk.msra.mxu3 %vm253_vm0, %v731_v26 }
 0x1d6   :  { %v676_v28 = vpop.f32.mrf.mxu1  ;;  %4027 = vmatmul.msk.f32.vlgmr.msra.gmra.mxu3 %vm253_vm0, %v730_v27 }
 0x1d7   :  { %v677_v29 = vadd.f32 %v4898_v36, %v676_v28 }
 0x1d9   :  { %v732_v33 = vmax.f32 %v677_v29, 0.0 }
 0x1de   :  { %v679_v30 = vpop.f32.mrf.mxu1 }
 0x1df   :  { %v680_v31 = vadd.f32 %v4898_v36, %v679_v30 }
 0x1e1   :  { %v733_v32 = vmax.f32 %v680_v31, 0.0 }
 0x1e3   :  { %v4981_v34 = vpop.f32.mrf.mxu0  ;;  %4028 = vmatpush.xpose.msk.msrb.mxu2 %vm253_vm0, %v733_v32 }
 0x1e4   :  { %1224 = vxpose.xlu2.b32.start.end [1/1] (short) (narrow) %v4981_v34, 8  ;;  %v1679_v35 = vsel %vm1672_vm1, %v4981_v34, -inf }
 0x1e5   :  { %1680 = vmax.xlane.f32.xlu1 %v1679_v35 }
 0x1e6   :  { %v682_v37 = vpop.f32.mrf.mxu1  ;;  %4029 = vmatmul.msk.f32.vlgmr.msrb.gmra.mxu2 %vm253_vm0, %v732_v33 }
 0x1e7   :  { %v683_v38 = vadd.f32 %v4898_v36, %v682_v37 }
 0x1e9   :  { %v734_v42 = vmax.f32 %v683_v38, 0.0 }
 0x1ee   :  { %v685_v39 = vpop.f32.mrf.mxu1 }
 0x1ef   :  { %v686_v40 = vadd.f32 %v4898_v36, %v685_v39 }
 0x1f1   :  { %v735_v41 = vmax.f32 %v686_v40, 0.0 }
 0x1f3   :  { %4030 = vmatpush.xpose.msk.msrb.mxu3 %vm253_vm0, %v735_v41 }
 0x1f6   :  { %v688_v43 = vpop.f32.mrf.mxu1  ;;  %4031 = vmatmul.msk.f32.vlgmr.msrb.gmra.mxu3 %vm253_vm0, %v734_v42 }
 0x1f7   :  { %v689_v44 = vadd.f32 %v4898_v36, %v688_v43 }
 0x1f9   :  { %v736_v49 = vmax.f32 %v689_v44, 0.0 }
 0x1fe   :  { %v691_v45 = vpop.f32.mrf.mxu1 }
 0x1ff   :  { %v692_v46 = vadd.f32 %v4898_v36, %v691_v45 }
 0x201   :  { %v737_v48 = vmax.f32 %v692_v46, 0.0 }
 0x203   :  { %4032 = vmatpush.xpose.msk.msra.mxu2 %vm253_vm0, %v737_v48 }
 0x206   :  { %v694_v50 = vpop.f32.mrf.mxu1  ;;  %4033 = vmatmul.msk.f32.vlgmr.msra.gmra.mxu2 %vm253_vm0, %v736_v49 }
 0x207   :  { %v695_v51 = vadd.f32 %v4898_v36, %v694_v50 }
 0x209   :  { %v738_v55 = vmax.f32 %v695_v51, 0.0  ;;  %v5000_v57 = vpop.f32.mrf.mxu2 }
 0x20a   :  { %v1685_v12 = vsel %vm1672_vm1, %v5000_v57, -inf }
 0x20e   :  { %v697_v52 = vpop.f32.mrf.mxu1 }
 0x20f   :  { %v698_v53 = vadd.f32 %v4898_v36, %v697_v52 }
 0x211   :  { %v739_v54 = vmax.f32 %v698_v53, 0.0 }
 0x213   :  { %4034 = vmatpush.xpose.msk.msra.mxu3 %vm253_vm0, %v739_v54 }
 0x216   :  { %v700_v56 = vpop.f32.mrf.mxu1  ;;  %4035 = vmatmul.msk.f32.vlgmr.msra.gmra.mxu3 %vm253_vm0, %v738_v55 }
 0x217   :  { %v701_v58 = vadd.f32 %v4898_v36, %v700_v56 }
 0x219   :  { %v740_v62 = vmax.f32 %v701_v58, 0.0  ;;  %v5029_v14 = vpop.f32.mrf.mxu3 }
 0x21a   :  { %v1688_v24 = vsel %vm1672_vm1, %v5029_v14, -inf }
 0x21e   :  { %v703_v59 = vpop.f32.mrf.mxu1 }
 0x21f   :  { %1288 = vxpose.xlu1.b32.start.end [1/1] (short) (narrow) %v5000_v57, 8  ;;  %v704_v60 = vadd.f32 %v4898_v36, %v703_v59 }
 0x221   :  { %v741_v61 = vmax.f32 %v704_v60, 0.0 }
 0x223   :  { %4036 = vmatpush.xpose.msk.msrb.mxu2 %vm253_vm0, %v741_v61 }
 0x226   :  { %v706_v63 = vpop.f32.mrf.mxu1  ;;  %4037 = vmatmul.msk.f32.vlgmr.msrb.gmra.mxu2 %vm253_vm0, %v740_v62 }
 0x227   :  { %1867 = vmatpush.msra.mxu2 %v4807_v5  ;;  %v707_v0 = vadd.f32 %v4898_v36, %v706_v63 }
 0x229   :  { %1913 = vmatpush.msrb.mxu2 %v4817_v9  ;;  %v742_v4 = vmax.f32 %v707_v0, 0.0 }
 0x22e   :  { %v709_v1 = vpop.f32.mrf.mxu1 }
 0x22f   :  { %v710_v2 = vadd.f32 %v4898_v36, %v709_v1 }
 0x231   :  { %v743_v3 = vmax.f32 %v710_v2, 0.0 }
 0x233   :  { %4038 = vmatpush.xpose.msk.msrb.mxu3 %vm253_vm0, %v743_v3 }
 0x235   :  { %1674 = vmax.xlane.f32.xlu0 %v1673_v8 }
 0x236   :  { %4039 = vmatmul.msk.f32.vlgmr.msrb.gmra.mxu3 %vm253_vm0, %v742_v4  ;;  %v5037_v15 = vpop.f32.mrf.mxu1 }
 0x237   :  { %1890 = vmatpush.msra.mxu3 %v4812_v7  ;;  %v5027_v7 = vpop.f32.mrf.mxu2  ;;  %v1676_v6 = vsel %vm1672_vm1, %v5037_v15, -inf }
 0x239   :  { %1936 = vmatpush.msrb.mxu3 %v4822_v11  ;;  %v1691_v11 = vsel %vm1672_vm1, %v5027_v7, -inf  ;;  %v5040_v16 = vpop.f32.mrf.mxu3 }
 0x23a   :  { %v1694_v47 = vsel %vm1672_vm1, %v5040_v16, -inf }
 0x23e   :  { %v5051_v22 = vpop.f32.mrf.mxu1 }
 0x23f   :  { %v1682_v29 = vsel %vm1672_vm1, %v5051_v22, -inf }
 0x249   :  { %v5056_v23 = vpop.f32.mrf.mxu2 }
 0x24a   :  { %v1697_v25 = vsel %vm1672_vm1, %v5056_v23, -inf }
 0x258   :  { %v5043_v17 = vpop.xlane.xlu1 %1680 }
 0x259   :  { %v5088_v49 = vpop.f32.mrf.mxu3  ;;  %v1723_v62 = vsub.f32 %v4981_v34, %v5043_v17 }
 0x25a   :  { %v1700_v56 = vsel %vm1672_vm1, %v5088_v49, -inf }
 0x25b   :  { %v1741_v63 = vmul.f32 1.442695, %v1723_v62 }
 0x268   :  { %v5017_v5 = vpop.trf.xlu0 }
 0x269   :  { %v2217_v9 = vsel %vm1672_vm1, %v5017_v5, -inf  ;;  %v1027_v59 = vpop.f32.mrf.mxu2 }
 0x26a   :  { %2218 = vmax.xlane.f32.xlu0 %v2217_v9  ;;  %v1703_v60 = vsel %vm1672_vm1, %v1027_v59, -inf }
 0x279   :  { %v5097_v54 = vpop.f32.mrf.mxu3 }
 0x27a   :  { %v1706_v55 = vsel %vm1672_vm1, %v5097_v54, -inf }
 0x27d   :  { %v5021_v36 = vpop.trf.xlu2 }
 0x27e   :  { %v2223_v10 = vsel %vm1672_vm1, %v5021_v36, -inf }
 0x27f   :  { %2224 = vmax.xlane.f32.xlu2 %v2223_v10  ;;  %1686 = vmax.xlane.f32.xlu1 %v1685_v12 }
 0x287   :  { %1692 = vmax.xlane.f32.xlu2 %v1691_v11  ;;  %1689 = vmax.xlane.f32.xlu1 %v1688_v24 }
 0x289   :  { %v5105_v61 = vpop.f32.mrf.mxu2 }
 0x293   :  { %1320 = vxpose.xlu0.b32.start.end [1/1] (short) (narrow) %v5029_v14, 8 }
 0x29b   :  { %1352 = vxpose.xlu0.b32.start.end [1/1] (short) (narrow) %v5027_v7, 8 }
 0x2a8   :  { %v1675_v26 = vpop.xlane.xlu0 %1674 }
 0x2a9   :  { %v1721_v27 = vsub.f32 %v4970_v20, %v1675_v26 }
 0x2ab   :  { %v1737_v28 = vmul.f32 1.442695, %v1721_v27 }
 0x2ad   :  { %4197 = vpow2.f32 %v1737_v28 }
 0x2b0   :  { %1192 = vxpose.xlu2.b32.start.end [1/1] (short) (narrow) %v5037_v15, 8 }
 0x2b3   :  { %v4198_v30 = vpop.eup %4197 }
 0x2b4   :  { %v1769_v31 = vsel %vm1672_vm1, %v4198_v30, 0.0 }
 0x2b8   :  { %1384 = vxpose.xlu2.b32.start.end [1/1] (short) (narrow) %v5040_v16, 8 }
 0x2c3   :  { %v5045_v18 = vpop.trf.xlu1 }
 0x2c4   :  { %v2229_v19 = vsel %vm1672_vm1, %v5045_v18, -inf }
 0x2c5   :  { %2230 = vmax.xlane.f32.xlu1 %v2229_v19 }
 0x2cd   :  { %1695 = vmax.xlane.f32.xlu1 %v1694_v47 }
 0x2dd   :  { %v5064_v32 = vpop.xlane.xlu0 %2218 }
 0x2f2   :  { %v5072_v38 = vpop.xlane.xlu2 %2224  ;;  %v5076_v40 = vpop.xlane.xlu1 %1686 }
 0x2fa   :  { %v5074_v39 = vpop.xlane.xlu2 %1692  ;;  %v5078_v42 = vpop.xlane.xlu1 %1689 }
 0x307   :  { %1256 = vxpose.xlu1.b32.start.end [1/1] (short) (narrow) %v5051_v22, 8 }
 0x30c   :  { %1677 = vmax.xlane.f32.xlu0 %v1676_v6 }
 0x314   :  { %1698 = vmax.xlane.f32.xlu0 %v1697_v25 }
 0x329   :  { %1683 = vmax.xlane.f32.xlu2 %v1682_v29 }
 0x331   :  { %1770 = vadd.xlane.f32.xlu2 %v1769_v31 }
 0x337   :  { %v5067_v33 = vpop.trf.xlu0 }
 0x338   :  { %v2232_v35 = vsel %vm1672_vm1, %v5067_v33, -inf  ;;  %v5082_v44 = vpop.xlane.xlu1 %2230 }
 0x33f   :  { %v1368_v20 = vpop.trf.xlu0 }
 0x340   :  { %v2235_v37 = vsel %vm1672_vm1, %v1368_v20, -inf  ;;  %v5086_v46 = vpop.xlane.xlu1 %1695 }
 0x349   :  { %v1208_v41 = vpop.trf.xlu2 }
 0x34a   :  { %v2220_v58 = vsel %vm1672_vm1, %v1208_v41, -inf }
 0x351   :  { %v5080_v43 = vpop.trf.xlu2 }
 0x35a   :  { %1416 = vxpose.xlu2.b32.start.end [1/1] (short) (narrow) %v5056_v23, 8 }
 0x367   :  { %2233 = vmax.xlane.f32.xlu1 %v2232_v35 }
 0x36f   :  { %2236 = vmax.xlane.f32.xlu1 %v2235_v37  ;;  %v2265_v37 = vsub.f32 %v5017_v5, %v5064_v32 }
 0x37f   :  { %v1678_v5 = vpop.xlane.xlu0 %1677 }
 0x39c   :  { %v5084_v45 = vpop.xlane.xlu2 %1683 }
 0x3a4   :  { %v1771_v48 = vpop.xlane.xlu2 %1770 }
 0x3a5   :  { %4199 = vrcp.f32 %v1771_v48 }
 0x3a6   :  { %4201 = vpow2.f32 %v1741_v63 }
 0x3a9   :  { %1448 = vxpose.xlu1.b32.start.end [1/1] (short) (narrow) %v5088_v49, 8 }
 0x3ab   :  { %v4200_v50 = vpop.eup %4199  ;;  %v5091_v51 = vpop.trf.xlu1 }
 0x3ac   :  { %v1833_v52 = vmul.f32 %v4200_v50, %v4198_v30  ;;  %v2226_v53 = vsel %vm1672_vm1, %v5091_v51, -inf  ;;  %v4202_v0 = vpop.eup %4201  ;;  %v1725_v50 = vsub.f32 %v5000_v57, %v5076_v40  ;;  %v1699_v40 = vpop.xlane.xlu0 %1698 }
 0x3ad   :  { %2227 = vmax.xlane.f32.xlu0 %v2226_v53  ;;  %v1775_v1 = vsel %vm1672_vm1, %v4202_v0, 0.0 }
 0x3ae   :  { %4040 = vmatmul.msk.f32.vlgmr.msra.gmra.mxu2 %vm1672_vm1, %v1833_v52  ;;  %v1745_v53 = vmul.f32 1.442695, %v1725_v50 }
 0x3af   :  { %1959 = vmatpush.msra.mxu2 %v4827_v13  ;;  %v5108_v13 = vpop.f32.mrf.mxu2 }
 0x3b0   :  { %v1715_v62 = vsel %vm1672_vm1, %v5108_v13, -inf }
 0x3b5   :  { %1707 = vmax.xlane.f32.xlu0 %v1706_v55  ;;  %v2267_v55 = vsub.f32 %v5021_v36, %v5072_v38 }
 0x3b7   :  { %v2285_v32 = vmul.f32 1.442695, %v2267_v55 }
 0x3cb   :  { %1701 = vmax.xlane.f32.xlu2 %v1700_v56 }
 0x3d3   :  { %2221 = vmax.xlane.f32.xlu2 %v2220_v58 }
 0x3da   :  { %v5116_v3 = vpop.xlane.xlu1 %2233 }
 0x3db   :  { %1704 = vmax.xlane.f32.xlu2 %v1703_v60 }
 0x3de   :  { %1544 = vxpose.xlu0.b32.start.end [1/1] (short) (narrow) %v5105_v61, 8 }
 0x3e2   :  { %v2237_v8 = vpop.xlane.xlu1 %2236 }
 0x3e3   :  { %v2271_v9 = vsub.f32 %v1368_v20, %v2237_v8 }
 0x3e5   :  { %v2293_v34 = vmul.f32 1.442695, %v2271_v9 }
 0x3e6   :  { %1608 = vxpose.xlu0.b32.start.end [1/1] (short) (narrow) %v5108_v13, 8 }
 0x3e7   :  { %4203 = vpow2.f32 %v2293_v34 }
 0x3ed   :  { %v5122_v19 = vpop.eup %4203 }
 0x3ee   :  { %v2331_v6 = vsel %vm1672_vm1, %v5122_v19, 0.0 }
 0x3f3   :  { %v5114_v2 = vpop.trf.xlu2 }
 0x3f4   :  { %v2241_v10 = vsel %vm1672_vm1, %v5114_v2, -inf }
 0x3f5   :  { %2242 = vmax.xlane.f32.xlu2 %v2241_v10 }
 0x409   :  { %1776 = vadd.xlane.f32.xlu1 %v1775_v1  ;;  %v2269_v1 = vsub.f32 %v5045_v18, %v5082_v44  ;;  %v1729_v18 = vsub.f32 %v5056_v23, %v1699_v40 }
 0x40b   :  { %v2289_v8 = vmul.f32 1.442695, %v2269_v1 }
 0x420   :  { %v5159_v60 = vpop.xlane.xlu0 %2227 }
 0x43e   :  { %v5118_v4 = vpop.xlane.xlu2 %1701 }
 0x443   :  { %1480 = vxpose.xlu1.b32.start.end [1/1] (short) (narrow) %v1027_v59, 8 }
 0x446   :  { %v2222_v12 = vpop.xlane.xlu2 %2221 }
 0x447   :  { %v2266_v11 = vsub.f32 %v1208_v41, %v2222_v12  ;;  %v2281_v41 = vmul.f32 1.442695, %v2265_v37  ;;  %v1728_v12 = vsub.f32 %v5040_v16, %v5086_v46 }
 0x449   :  { %v2283_v24 = vmul.f32 1.442695, %v2266_v11  ;;  %v1751_v34 = vmul.f32 1.442695, %v1728_v12 }
 0x44b   :  { %4205 = vpow2.f32 %v2283_v24  ;;  %v1753_v24 = vmul.f32 1.442695, %v1729_v18 }
 0x44d   :  { %v5134_v30 = vpop.trf.xlu1 }
 0x44e   :  { %v1705_v17 = vpop.xlane.xlu2 %1704 }
 0x44f   :  { %v1731_v47 = vsub.f32 %v1027_v59, %v1705_v17  ;;  %v1722_v59 = vsub.f32 %v5037_v15, %v1678_v5 }
 0x451   :  { %v5126_v25 = vpop.eup %4205  ;;  %v1757_v26 = vmul.f32 1.442695, %v1731_v47  ;;  %v1739_v38 = vmul.f32 1.442695, %v1722_v59  ;;  %v1726_v47 = vsub.f32 %v5029_v14, %v5078_v42 }
 0x452   :  { %v2316_v27 = vsel %vm1672_vm1, %v5126_v25, 0.0 }
 0x453   :  { %4207 = vpow2.f32 %v1757_v26  ;;  %v1747_v46 = vmul.f32 1.442695, %v1726_v47 }
 0x457   :  { %2332 = vadd.xlane.f32.xlu0 %v2331_v6 }
 0x459   :  { %v5130_v28 = vpop.eup %4207 }
 0x45a   :  { %v1799_v29 = vsel %vm1672_vm1, %v5130_v28, 0.0 }
 0x45f   :  { %2317 = vadd.xlane.f32.xlu0 %v2316_v27 }
 0x467   :  { %1800 = vadd.xlane.f32.xlu0 %v1799_v29 }
 0x468   :  { %v2243_v6 = vpop.xlane.xlu2 %2242 }
 0x469   :  { %v2273_v29 = vsub.f32 %v5114_v2, %v2243_v6 }
 0x47c   :  { %v1777_v31 = vpop.xlane.xlu1 %1776 }
 0x47d   :  { %4209 = vrcp.f32 %v1777_v31  ;;  %v2297_v31 = vmul.f32 1.442695, %v2273_v29 }
 0x47e   :  { %4211 = vpow2.f32 %v2281_v41 }
 0x47f   :  { %4213 = vpow2.f32 %v1745_v53 }
 0x480   :  { %4215 = vpow2.f32 %v2285_v32  ;;  %v1724_v32 = vsub.f32 %v5051_v22, %v5084_v45 }
 0x481   :  { %4217 = vpow2.f32 %v1739_v38  ;;  %v1730_v38 = vsub.f32 %v5088_v49, %v5118_v4 }
 0x482   :  { %4219 = vpow2.f32 %v2289_v8  ;;  %v1743_v59 = vmul.f32 1.442695, %v1724_v32 }
 0x483   :  { %v4210_v35 = vpop.eup %4209  ;;  %4221 = vpow2.f32 %v1751_v34  ;;  %v1755_v22 = vmul.f32 1.442695, %v1730_v38 }
 0x484   :  { %v1835_v20 = vmul.f32 %v4210_v35, %v4202_v0  ;;  %v5140_v48 = vpop.eup %4211  ;;  %v1708_v0 = vpop.xlane.xlu0 %1707  ;;  %4223 = vpow2.f32 %v1753_v24  ;;  %v1727_v35 = vsub.f32 %v5027_v7, %v5074_v39 }
 0x485   :  { %v2313_v52 = vsel %vm1672_vm1, %v5140_v48, 0.0  ;;  %v5150_v56 = vpop.eup %4213  ;;  %4225 = vpow2.f32 %v1747_v46  ;;  %v1732_v2 = vsub.f32 %v5097_v54, %v1708_v0 }
 0x486   :  { %4042 = vmatmul.msk.f32.vlgmr.msrb.gmra.mxu2 %vm1672_vm1, %v1835_v20  ;;  %v1781_v57 = vsel %vm1672_vm1, %v5150_v56, 0.0  ;;  %v5154_v58 = vpop.eup %4215  ;;  %4227 = vpow2.f32 %v2297_v31  ;;  %v1749_v50 = vmul.f32 1.442695, %v1727_v35  ;;  %v5256_v31 = vld [vmem:[#allocation2 + $0x58] sm:$0xff] }
 0x487   :  { %2005 = vmatpush.msrb.mxu2 %v4834_v21  ;;  %v1709_v21 = vsel %vm1672_vm1, %v5105_v61, -inf  ;;  %v2319_v36 = vsel %vm1672_vm1, %v5154_v58, 0.0  ;;  %v5163_v63 = vpop.eup %4217  ;;  %v1759_v53 = vmul.f32 1.442695, %v1732_v2 }
 0x488   :  { %v1772_v15 = vsel %vm1672_vm1, %v5163_v63, 0.0  ;;  %v5175_v11 = vpop.eup %4219  ;;  %4229 = vpow2.f32 %v1749_v50 }
 0x489   :  { %v2325_v44 = vsel %vm1672_vm1, %v5175_v11, 0.0  ;;  %v5180_v17 = vpop.eup %4221  ;;  %4231 = vpow2.f32 %v1759_v53 }
 0x48a   :  { %v1790_v16 = vsel %vm1672_vm1, %v5180_v17, 0.0  ;;  %v5186_v26 = vpop.eup %4223  ;;  %4233 = vpow2.f32 %v1743_v59 }
 0x48b   :  { %v1793_v14 = vsel %vm1672_vm1, %v5186_v26, 0.0  ;;  %v5195_v42 = vpop.eup %4225  ;;  %4235 = vpow2.f32 %v1755_v22 }
 0x48c   :  { %v5169_v9 = vpop.trf.xlu0  ;;  %v1784_v37 = vsel %vm1672_vm1, %v5195_v42, 0.0  ;;  %v5208_v55 = vpop.eup %4227 }
 0x48d   :  { %v2253_v10 = vsel %vm1672_vm1, %v5169_v9, -inf  ;;  %v2337_v39 = vsel %vm1672_vm1, %v5208_v55, 0.0 }
 0x494   :  { %v5199_v20 = vpop.trf.xlu0 }
 0x495   :  { %v2259_v41 = vsel %vm1672_vm1, %v5199_v20, -inf }
 0x4a3   :  { %2314 = vadd.xlane.f32.xlu1 %v2313_v52  ;;  %v5206_v52 = vpop.f32.mrf.mxu3 }
 0x4a4   :  { %v1712_v7 = vsel %vm1672_vm1, %v5206_v52, -inf }
 0x4ab   :  { %1710 = vmax.xlane.f32.xlu1 %v1709_v21  ;;  %v5214_v21 = vpop.eup %4229 }
 0x4ac   :  { %v5216_v5 = vpop.eup %4231 }
 0x4ad   :  { %v1802_v40 = vsel %vm1672_vm1, %v5216_v5, 0.0  ;;  %v5230_v45 = vpop.eup %4233 }
 0x4ae   :  { %v1778_v0 = vsel %vm1672_vm1, %v5230_v45, 0.0  ;;  %v5234_v1 = vpop.eup %4235 }
 0x4af   :  { %v1796_v8 = vsel %vm1672_vm1, %v5234_v1, 0.0 }
 0x4b3   :  { %1782 = vadd.xlane.f32.xlu1 %v1781_v57  ;;  %v1787_v57 = vsel %vm1672_vm1, %v5214_v21, 0.0 }
 0x4bb   :  { %2320 = vadd.xlane.f32.xlu1 %v2319_v36  ;;  %v5224_v36 = vpop.f32.mrf.mxu3 }
 0x4c3   :  { %1716 = vmax.xlane.f32.xlu1 %v1715_v62  ;;  %v1718_v62 = vsel %vm1672_vm1, %v5224_v36, -inf }
 0x4cb   :  { %1773 = vadd.xlane.f32.xlu1 %v1772_v15 }
 0x4d3   :  { %2254 = vmax.xlane.f32.xlu1 %v2253_v10  ;;  %v2238_v10 = vsel %vm1672_vm1, %v5080_v43, -inf }
 0x4db   :  { %2326 = vadd.xlane.f32.xlu1 %v2325_v44 }
 0x4e3   :  { %1791 = vadd.xlane.f32.xlu1 %v1790_v16 }
 0x4e7   :  { %v5188_v23 = vpop.trf.xlu1 }
 0x4e8   :  { %v2247_v27 = vsel %vm1672_vm1, %v5188_v23, -inf }
 0x4e9   :  { %2248 = vmax.xlane.f32.xlu2 %v2247_v27 }
 0x4eb   :  { %1794 = vadd.xlane.f32.xlu1 %v1793_v14 }
 0x4f1   :  { %1785 = vadd.xlane.f32.xlu2 %v1784_v37 }
 0x4f3   :  { %2260 = vmax.xlane.f32.xlu1 %v2259_v41 }
 0x4f9   :  { %1713 = vmax.xlane.f32.xlu2 %v1712_v7 }
 0x4fb   :  { %2338 = vadd.xlane.f32.xlu1 %v2337_v39 }
 0x501   :  { %1788 = vadd.xlane.f32.xlu2 %v1787_v57 }
 0x503   :  { %1803 = vadd.xlane.f32.xlu1 %v1802_v40 }
 0x509   :  { %1719 = vmax.xlane.f32.xlu2 %v1718_v62 }
 0x511   :  { %1779 = vadd.xlane.f32.xlu2 %v1778_v0 }
 0x516   :  { %v5236_v15 = vpop.xlane.xlu1 %2314 }
 0x519   :  { %1797 = vadd.xlane.f32.xlu2 %v1796_v8 }
 0x51e   :  { %v1711_v49 = vpop.xlane.xlu1 %1710 }
 0x51f   :  { %v1733_v4 = vsub.f32 %v5105_v61, %v1711_v49  ;;  %v5251_v61 = vld [vmem:[#allocation2 + $0x88] sm:$0xff] }
 0x521   :  { %v1761_v12 = vmul.f32 1.442695, %v1733_v4  ;;  %2239 = vmax.xlane.f32.xlu2 %v2238_v10 }
 0x523   :  { %4237 = vpow2.f32 %v1761_v12 }
 0x526   :  { %v1783_v34 = vpop.xlane.xlu1 %1782 }
 0x527   :  { %4239 = vrcp.f32 %v1783_v34 }
 0x529   :  { %v5243_v18 = vpop.eup %4237 }
 0x52a   :  { %v1805_v44 = vsel %vm1672_vm1, %v5243_v18, 0.0 }
 0x52b   :  { %1806 = vadd.xlane.f32.xlu2 %v1805_v44 }
 0x52d   :  { %v4240_v24 = vpop.eup %4239 }
 0x52e   :  { %v1837_v47 = vmul.f32 %v4240_v24, %v5150_v56  ;;  %v5248_v16 = vpop.xlane.xlu1 %2320 }
 0x530   :  { %4044 = vmatmul.msk.f32.vlgmr.msra.gmra.mxu2 %vm1672_vm1, %v1837_v47 }
 0x531   :  { %2051 = vmatpush.msra.mxu2 %v5251_v61 }
 0x536   :  { %v1717_v46 = vpop.xlane.xlu1 %1716 }
 0x537   :  { %v1735_v22 = vsub.f32 %v5108_v13, %v1717_v46 }
 0x539   :  { %v1765_v4 = vmul.f32 1.442695, %v1735_v22  ;;  %v5317_v22 = vld [vmem:[#allocation2 + $0x78] sm:$0xff] }
 0x53e   :  { %v1774_v6 = vpop.xlane.xlu1 %1773 }
 0x53f   :  { %4241 = vrcp.f32 %v1774_v6 }
 0x545   :  { %v4242_v27 = vpop.eup %4241 }
 0x546   :  { %v1834_v29 = vmul.f32 %v4242_v27, %v5163_v63  ;;  %v2255_v14 = vpop.xlane.xlu1 %2254  ;;  %v2270_v27 = vsub.f32 %v5067_v33, %v5116_v3  ;;  %v5304_v3 = vld [vmem:[#allocation2 + $0xc8] sm:$0xff] }
 0x547   :  { %v2277_v50 = vsub.f32 %v5169_v9, %v2255_v14  ;;  %v5295_v14 = vld [vmem:[#allocation2 + $0xa8] sm:$0xff] }
 0x548   :  { %4041 = vmatmul.msk.f32.vlgmr.msra.gmra.mxu3 %vm1672_vm1, %v1834_v29 }
 0x549   :  { %1982 = vmatpush.msra.mxu3 %v5256_v31  ;;  %v2305_v63 = vmul.f32 1.442695, %v2277_v50 }
 0x54e   :  { %v5259_v56 = vpop.xlane.xlu1 %2326 }
 0x556   :  { %v5261_v35 = vpop.xlane.xlu1 %1791 }
 0x55c   :  { %v2249_v37 = vpop.xlane.xlu2 %2248 }
 0x55d   :  { %v2275_v41 = vsub.f32 %v5188_v23, %v2249_v37  ;;  %v5270_v23 = vpop.xlane.xlu0 %2332 }
 0x55e   :  { %v1795_v2 = vpop.xlane.xlu1 %1794 }
 0x55f   :  { %v2301_v53 = vmul.f32 1.442695, %v2275_v41 }
 0x561   :  { %4243 = vpow2.f32 %v2301_v53 }
 0x562   :  { %4245 = vpow2.f32 %v2305_v63  ;;  %v2244_v63 = vsel %vm1672_vm1, %v5134_v30, -inf }
 0x564   :  { %v1786_v7 = vpop.xlane.xlu2 %1785 }
 0x565   :  { %v5282_v12 = vpop.xlane.xlu0 %2317 }
 0x566   :  { %v2261_v39 = vpop.xlane.xlu1 %2260 }
 0x567   :  { %v5265_v32 = vpop.eup %4243  ;;  %v2279_v57 = vsub.f32 %v5199_v20, %v2261_v39 }
 0x568   :  { %v2343_v40 = vsel %vm1672_vm1, %v5265_v32, 0.0  ;;  %v5272_v9 = vpop.eup %4245 }
 0x569   :  { %v2309_v59 = vmul.f32 1.442695, %v2279_v57  ;;  %2344 = vadd.xlane.f32.xlu2 %v2343_v40  ;;  %v2349_v8 = vsel %vm1672_vm1, %v5272_v9, 0.0 }
 0x56b   :  { %4247 = vpow2.f32 %v2309_v59 }
 0x56c   :  { %v1714_v38 = vpop.xlane.xlu2 %1713 }
 0x56d   :  { %v1734_v62 = vsub.f32 %v5206_v52, %v1714_v38  ;;  %v1801_v37 = vpop.xlane.xlu0 %1800 }
 0x56f   :  { %v1763_v0 = vmul.f32 1.442695, %v1734_v62 }
 0x571   :  { %v5278_v20 = vpop.eup %4247  ;;  %4249 = vpow2.f32 %v1763_v0  ;;  %2350 = vadd.xlane.f32.xlu2 %v2349_v8  ;;  %v5320_v0 = vld [vmem:[#allocation2 + $0xe8] sm:$0xff]  ;;  %v5327_v8 = vpop.xlane.xlu1 %2338 }
 0x572   :  { %v2355_v49 = vsel %vm1672_vm1, %v5278_v20, 0.0 }
 0x573   :  { %2356 = vadd.xlane.f32.xlu1 %v2355_v49 }
 0x574   :  { %v1789_v10 = vpop.xlane.xlu2 %1788 }
 0x575   :  { %4251 = vrcp.f32 %v1789_v10 }
 0x576   :  { %4253 = vpow2.f32 %v1765_v4  ;;  %v5332_v4 = vld [vmem:[#allocation2 + $0x98] sm:$0xff] }
 0x577   :  { %v5284_v34 = vpop.eup %4249  ;;  %4255 = vrcp.f32 %v1795_v2  ;;  %v2291_v2 = vmul.f32 1.442695, %v2270_v27 }
 0x578   :  { %v1808_v13 = vsel %vm1672_vm1, %v5284_v34, 0.0 }
 0x579   :  { %1809 = vadd.xlane.f32.xlu0 %v1808_v13 }
 0x57b   :  { %v4252_v44 = vpop.eup %4251 }
 0x57c   :  { %v1839_v24 = vmul.f32 %v4252_v44, %v5214_v21  ;;  %v1720_v47 = vpop.xlane.xlu2 %1719  ;;  %v5289_v46 = vpop.eup %4253 }
 0x57d   :  { %v1736_v6 = vsub.f32 %v5224_v36, %v1720_v47  ;;  %v1811_v41 = vsel %vm1672_vm1, %v5289_v46, 0.0  ;;  %v4256_v21 = vpop.eup %4255 }
 0x57e   :  { %4046 = vmatmul.msk.f32.vlgmr.msrb.gmra.mxu2 %vm1672_vm1, %v1839_v24  ;;  %v1841_v50 = vmul.f32 %v4256_v21, %v5186_v26 }
 0x57f   :  { %v1767_v29 = vmul.f32 1.442695, %v1736_v6  ;;  %2097 = vmatpush.msrb.mxu2 %v5295_v14 }
 0x581   :  { %4257 = vpow2.f32 %v1767_v29  ;;  %1812 = vadd.xlane.f32.xlu0 %v1811_v41  ;;  %v5343_v29 = vld [vmem:[#allocation2 + $0xd8] sm:$0xff] }
 0x582   :  { %4259 = vrcp.f32 %v1801_v37  ;;  %v5347_v37 = vld [vmem:[#allocation2] sm:$0xff] }
 0x584   :  { %v1780_v53 = vpop.xlane.xlu2 %1779 }
 0x585   :  { %4261 = vrcp.f32 %v1780_v53  ;;  %v5364_v53 = vld [vmem:[#allocation2 + $0x10] sm:$0xff] }
 0x586   :  { %4048 = vmatmul.msk.f32.vlgmr.msra.gmra.mxu2 %vm1672_vm1, %v1841_v50  ;;  %4263 = vpow2.f32 %v2291_v2 }
 0x587   :  { %v5302_v33 = vpop.eup %4257  ;;  %2143 = vmatpush.msra.mxu2 %v5304_v3  ;;  %4265 = vrcp.f32 %v1786_v7 }
 0x588   :  { %v1814_v39 = vsel %vm1672_vm1, %v5302_v33, 0.0  ;;  %v4260_v57 = vpop.eup %4259  ;;  %4267 = vrcp.f32 %v5261_v35  ;;  %v5337_v35 = vld [vmem:[#allocation2 + $0xb8] sm:$0xff] }
 0x589   :  { %2245 = vmax.xlane.f32.xlu0 %v2244_v63  ;;  %1815 = vadd.xlane.f32.xlu2 %v1814_v39  ;;  %v1843_v40 = vmul.f32 %v4260_v57, %v5130_v28 }
 0x58b   :  { %v4262_v26 = vpop.eup %4261 }
 0x58c   :  { %v1836_v59 = vmul.f32 %v4262_v26, %v5230_v45  ;;  %v1798_v38 = vpop.xlane.xlu2 %1797  ;;  %v5313_v62 = vpop.eup %4263 }
 0x58d   :  { %v2328_v28 = vsel %vm1672_vm1, %v5313_v62, 0.0  ;;  %v4266_v7 = vpop.eup %4265  ;;  %4269 = vrcp.f32 %v1798_v38 }
 0x58e   :  { %4043 = vmatmul.msk.f32.vlgmr.msrb.gmra.mxu3 %vm1672_vm1, %v1836_v59  ;;  %4050 = vmatmul.msk.f32.vlgmr.msrb.gmra.mxu2 %vm1672_vm1, %v1843_v40  ;;  %v1838_v45 = vmul.f32 %v4266_v7, %v5195_v42  ;;  %v4268_v10 = vpop.eup %4267  ;;  %v1804_v42 = vpop.xlane.xlu1 %1803  ;;  %v5386_v59 = vld [vmem:[#allocation2 + $0x30] sm:$0xff] }
 0x58f   :  { %2028 = vmatpush.msrb.mxu3 %v5317_v22  ;;  %2189 = vmatpush.msrb.mxu2 %v5320_v0  ;;  %v1840_v13 = vmul.f32 %v4268_v10, %v5180_v17  ;;  %v5399_v7 = vld [vmem:[#allocation2 + $0x50] sm:$0xff] }
 0x591   :  { %2329 = vadd.xlane.f32.xlu2 %v2328_v28  ;;  %v5396_v28 = vld [vmem:[#allocation2 + $0x60] sm:$0xff] }
 0x593   :  { %v4270_v24 = vpop.eup %4269 }
 0x594   :  { %v5329_v49 = vpop.xlane.xlu2 %2239  ;;  %v1842_v47 = vmul.f32 %v4270_v24, %v5234_v1  ;;  %v5353_v1 = vld [vmem:[#allocation2 + $0xf8] sm:$0xff]  ;;  %v5412_v24 = vld [vmem:[#allocation2 + $0xa0] sm:$0xff] }
 0x596   :  { %4045 = vmatmul.msk.f32.vlgmr.msra.gmra.mxu3 %vm1672_vm1, %v1838_v45  ;;  %v5405_v45 = vld [vmem:[#allocation2 + $0x80] sm:$0xff] }
 0x597   :  { %2074 = vmatpush.msra.mxu3 %v5332_v4 }
 0x59e   :  { %v1807_v44 = vpop.xlane.xlu2 %1806  ;;  %4047 = vmatmul.msk.f32.vlgmr.msrb.gmra.mxu3 %vm1672_vm1, %v1840_v13 }
 0x59f   :  { %4271 = vrcp.f32 %v1807_v44  ;;  %2120 = vmatpush.msrb.mxu3 %v5337_v35 }
 0x5a0   :  { %4273 = vrcp.f32 %v1804_v42 }
 0x5a5   :  { %v4272_v6 = vpop.eup %4271 }
 0x5a6   :  { %v1845_v27 = vmul.f32 %v4272_v6, %v5243_v18  ;;  %4049 = vmatmul.msk.f32.vlgmr.msra.gmra.mxu3 %vm1672_vm1, %v1842_v47  ;;  %v4274_v17 = vpop.eup %4273  ;;  %v2766_v6 = vld [vmem:[#allocation10 + $0x8] sm:$0xff] }
 0x5a7   :  { %2166 = vmatpush.msra.mxu3 %v5343_v29  ;;  %v1844_v41 = vmul.f32 %v4274_v17, %v5216_v5 }
 0x5a8   :  { %4052 = vmatmul.msk.f32.vlgmr.msra.gmra.mxu2 %vm1672_vm1, %v1845_v27  ;;  %v5420_v27 = vld [vmem:[#allocation2 + $0xc0] sm:$0xff] }
 0x5a9   :  { %2411 = vmatpush.msra.mxu2 %v5347_v37 }
 0x5ad   :  { %1512 = vxpose.xlu1.b32.start.end [1/1] (short) (narrow) %v5097_v54, 8 }
 0x5ae   :  { %4051 = vmatmul.msk.f32.vlgmr.msrb.gmra.mxu3 %vm1672_vm1, %v1844_v41 }
 0x5af   :  { %2212 = vmatpush.msrb.mxu3 %v5353_v1 }
 0x5b2   :  { %1576 = vxpose.xlu0.b32.start.end [1/1] (short) (narrow) %v5206_v52, 8  ;;  %v2268_v52 = vsub.f32 %v5091_v51, %v5159_v60 }
 0x5b4   :  { %v2287_v57 = vmul.f32 1.442695, %v2268_v52 }
 0x5ba   :  { %1640 = vxpose.xlu2.b32.start.end [1/1] (short) (narrow) %v5224_v36, 8 }
 0x5cb   :  { %v1892_v52 = vpop.f32.mrf.mxu3 }
 0x5dc   :  { %v5358_v18 = vpop.xlane.xlu2 %2344 }
 0x5e4   :  { %v5360_v50 = vpop.xlane.xlu2 %2350 }
 0x5ec   :  { %v1810_v21 = vpop.xlane.xlu0 %1809 }
 0x5ed   :  { %4275 = vrcp.f32 %v1810_v21  ;;  %v2357_v21 = vpop.xlane.xlu1 %2356 }
 0x5f3   :  { %v4276_v2 = vpop.eup %4275 }
 0x5f4   :  { %v1846_v5 = vmul.f32 %v4276_v2, %v5284_v34  ;;  %v1813_v54 = vpop.xlane.xlu0 %1812  ;;  %v5372_v34 = vld [vmem:[#allocation2 + $0x20] sm:$0xff] }
 0x5f5   :  { %4277 = vrcp.f32 %v1813_v54 }
 0x5f6   :  { %4053 = vmatmul.msk.f32.vlgmr.msra.gmra.mxu3 %vm1672_vm1, %v1846_v5  ;;  %4279 = vrcp.f32 %v5236_v15 }
 0x5f7   :  { %2434 = vmatpush.msra.mxu3 %v5364_v53 }
 0x5fb   :  { %v4278_v36 = vpop.eup %4277 }
 0x5fc   :  { %v1847_v63 = vmul.f32 %v4278_v36, %v5289_v46  ;;  %v1816_v39 = vpop.xlane.xlu2 %1815  ;;  %v4280_v26 = vpop.eup %4279  ;;  %v5383_v46 = vld [vmem:[#allocation2 + $0x40] sm:$0xff] }
 0x5fd   :  { %4281 = vrcp.f32 %v1816_v39  ;;  %v2377_v51 = vmul.f32 %v4280_v26, %v5140_v48 }
 0x5fe   :  { %4054 = vmatmul.msk.f32.vlgmr.msrb.gmra.mxu2 %vm1672_vm1, %v1847_v63  ;;  %4283 = vpow2.f32 %v2287_v57  ;;  %v2272_v63 = vsub.f32 %v5080_v43, %v5329_v49 }
 0x5ff   :  { %2457 = vmatpush.msrb.mxu2 %v5372_v34  ;;  %4285 = vrcp.f32 %v5282_v12 }
 0x600   :  { %4287 = vrcp.f32 %v5248_v16  ;;  %v2295_v57 = vmul.f32 1.442695, %v2272_v63 }
 0x601   :  { %4289 = vrcp.f32 %v5259_v56 }
 0x602   :  { %4291 = vrcp.f32 %v5270_v23  ;;  %v2768_v23 = vld [vmem:[#allocation10 + $0x18] sm:$0xff] }
 0x603   :  { %v4282_v40 = vpop.eup %4281  ;;  %4293 = vrcp.f32 %v5327_v8  ;;  %3180 = vmatpush.msrb.mxu1 %v2768_v23 }
 0x604   :  { %v1848_v60 = vmul.f32 %v4282_v40, %v5302_v33  ;;  %v5381_v15 = vpop.eup %4283  ;;  %v2330_v43 = vpop.xlane.xlu2 %2329 }
 0x605   :  { %v4286_v12 = vpop.eup %4285  ;;  %v2322_v38 = vsel %vm1672_vm1, %v5381_v15, 0.0 }
 0x606   :  { %4055 = vmatmul.msk.f32.vlgmr.msrb.gmra.mxu3 %vm1672_vm1, %v1848_v60  ;;  %4056 = vmatmul.msk.f32.vlgmr.msra.gmra.mxu2 %vm1672_vm1, %v2377_v51  ;;  %v4288_v16 = vpop.eup %4287  ;;  %v2378_v48 = vmul.f32 %v4286_v12, %v5126_v25 }
 0x607   :  { %2503 = vmatpush.msra.mxu2 %v5383_v46  ;;  %2480 = vmatpush.msrb.mxu3 %v5386_v59  ;;  %v2379_v33 = vmul.f32 %v4288_v16, %v5154_v58  ;;  %v4290_v56 = vpop.eup %4289  ;;  %v2246_v58 = vpop.xlane.xlu0 %2245 }
 0x608   :  { %v2381_v25 = vmul.f32 %v4290_v56, %v5175_v11  ;;  %v4292_v10 = vpop.eup %4291  ;;  %v2274_v13 = vsub.f32 %v5134_v30, %v2246_v58  ;;  %v2767_v11 = vld [vmem:[#allocation10 + $0x10] sm:$0xff] }
 0x609   :  { %v2383_v44 = vmul.f32 %v4292_v10, %v5122_v19  ;;  %v4294_v47 = vpop.eup %4293  ;;  %3181 = vmatpush.msrb.mxu1 %v2767_v11  ;;  %v2765_v19 = vld [vmem:[#allocation10] sm:$0xff] }
 0x60a   :  { %v2299_v42 = vmul.f32 1.442695, %v2274_v13  ;;  %v2385_v30 = vmul.f32 %v4294_v47, %v5208_v55  ;;  %v5428_v55 = vld [vmem:[#allocation2 + $0xe0] sm:$0xff] }
 0x60b   :  { %3182 = vmatpush.msrb.mxu1 %v2766_v6 }
 0x60c   :  { %4295 = vpow2.f32 %v2299_v42 }
 0x60d   :  { %2323 = vadd.xlane.f32.xlu1 %v2322_v38  ;;  %4297 = vrcp.f32 %v5358_v18  ;;  %3183 = vmatpush.msrb.mxu1 %v2765_v19 }
 0x60e   :  { %4057 = vmatmul.msk.f32.vlgmr.msra.gmra.mxu3 %vm1672_vm1, %v2378_v48  ;;  %4058 = vmatmul.msk.f32.vlgmr.msrb.gmra.mxu2 %vm1672_vm1, %v2379_v33  ;;  %4299 = vrcp.f32 %v5360_v50 }
 0x60f   :  { %2549 = vmatpush.msrb.mxu2 %v5396_v28  ;;  %2526 = vmatpush.msra.mxu3 %v5399_v7  ;;  %4301 = vrcp.f32 %v2357_v21 }
 0x610   :  { %4303 = vpow2.f32 %v2295_v57 }
 0x612   :  { %v5418_v8 = vpop.eup %4295 }
 0x613   :  { %v4298_v17 = vpop.eup %4297  ;;  %v2340_v41 = vsel %vm1672_vm1, %v5418_v8, 0.0 }
 0x614   :  { %v2387_v18 = vmul.f32 %v4298_v17, %v5265_v32  ;;  %v4300_v2 = vpop.eup %4299  ;;  %v1869_v32 = vpop.f32.mrf.mxu2 }
 0x615   :  { %v2389_v5 = vmul.f32 %v4300_v2, %v5272_v9  ;;  %v4302_v54 = vpop.eup %4301  ;;  %v1938_v9 = vpop.f32.mrf.mxu3  ;;  %v5478_v2 = vld [vmem:[#allocation8 + $0x18] sm:$0xff] }
 0x616   :  { %4060 = vmatmul.msk.f32.vlgmr.msra.gmra.mxu2 %vm1672_vm1, %v2381_v25  ;;  %v2391_v50 = vmul.f32 %v4302_v54, %v5278_v20  ;;  %v5448_v60 = vpop.eup %4303  ;;  %v5487_v54 = vld [vmem:[#allocation8] sm:$0xff] }
 0x617   :  { %2595 = vmatpush.msra.mxu2 %v5405_v45  ;;  %v2334_v16 = vsel %vm1672_vm1, %v5448_v60, 0.0 }
 0x61c   :  { %v1915_v36 = vpop.f32.mrf.mxu2 }
 0x61d   :  { %v1984_v49 = vpop.f32.mrf.mxu3 }
 0x61e   :  { %4062 = vmatmul.msk.f32.vlgmr.msrb.gmra.mxu2 %vm1672_vm1, %v2383_v44 }
 0x61f   :  { %2641 = vmatpush.msrb.mxu2 %v5412_v24 }
 0x624   :  { %v1961_v26 = vpop.f32.mrf.mxu2 }
 0x625   :  { %v2030_v33 = vpop.f32.mrf.mxu3 }
 0x626   :  { %4064 = vmatmul.msk.f32.vlgmr.msra.gmra.mxu2 %vm1672_vm1, %v2385_v30 }
 0x627   :  { %2687 = vmatpush.msra.mxu2 %v5420_v27 }
 0x62b   :  { %2341 = vadd.xlane.f32.xlu2 %v2340_v41 }
 0x62c   :  { %v2007_v12 = vpop.f32.mrf.mxu2 }
 0x62d   :  { %v2076_v25 = vpop.f32.mrf.mxu3 }
 0x62e   :  { %4066 = vmatmul.msk.f32.vlgmr.msrb.gmra.mxu2 %vm1672_vm1, %v2387_v18 }
 0x62f   :  { %2733 = vmatpush.msrb.mxu2 %v5428_v55 }
 0x634   :  { %v2053_v56 = vpop.f32.mrf.mxu2 }
 0x635   :  { %v2122_v13 = vpop.f32.mrf.mxu3 }
 0x636   :  { %4068 = vmatmul.msk.f32.vlgmr.msra.gmra.mxu2 %vm1672_vm1, %v2389_v5  ;;  %v5483_v5 = vld [vmem:[#allocation8 + $0x8] sm:$0xff] }
 0x637   :  { %2829 = vmatpush.msra.mxu2 %v2768_v23 }
 0x639   :  { %2830 = vmatpush.msra.mxu2 %v2767_v11 }
 0x63b   :  { %2831 = vmatpush.msra.mxu2 %v2766_v6 }
 0x63c   :  { %v2099_v58 = vpop.f32.mrf.mxu2 }
 0x63d   :  { %2832 = vmatpush.msra.mxu2 %v2765_v19  ;;  %v5465_v19 = vld [vmem:[#allocation2 + $0x70] sm:$0xff] }
 0x63e   :  { %4070 = vmatmul.msk.f32.vlgmr.msrb.gmra.mxu2 %vm1672_vm1, %v2391_v50 }
 0x63f   :  { %3245 = vmatpush.msrb.mxu2 %v5478_v2 }
 0x644   :  { %v2145_v10 = vpop.f32.mrf.mxu2 }
 0x646   :  { %4072 = vmatmul.msk.f32.vlgmr.msra.gmra.mxu2 %vm253_vm0, %v1869_v32 }
 0x64e   :  { %4073 = vmatmul.msk.f32.gmra.mxu2 %vm253_vm0, %v1892_v52  ;;  %v4356_v52 = vld [vmem:[#allocation2 + $0x8] sm:$0xff] }
 0x651   :  { %v5439_v39 = vpop.trf.xlu1 }
 0x652   :  { %v2250_v20 = vsel %vm1672_vm1, %v5439_v39, -inf }
 0x653   :  { %2251 = vmax.xlane.f32.xlu0 %v2250_v20  ;;  %v5453_v48 = vpop.trf.xlu2 }
 0x654   :  { %v2262_v38 = vsel %vm1672_vm1, %v5453_v48, -inf }
 0x656   :  { %v5443_v40 = vpop.trf.xlu0  ;;  %4074 = vmatmul.msk.f32.gmra.mxu2 %vm253_vm0, %v1915_v36 }
 0x657   :  { %v2256_v51 = vsel %vm1672_vm1, %v5443_v40, -inf }
 0x658   :  { %2257 = vmax.xlane.f32.xlu1 %v2256_v51  ;;  %v4357_v51 = vld [vmem:[#allocation2 + $0x18] sm:$0xff] }
 0x65e   :  { %4075 = vmatmul.msk.f32.gmra.mxu2 %vm253_vm0, %v1938_v9 }
 0x660   :  { %2335 = vadd.xlane.f32.xlu1 %v2334_v16 }
 0x666   :  { %4076 = vmatmul.msk.f32.gmra.mxu2 %vm253_vm0, %v1961_v26 }
 0x668   :  { %2263 = vmax.xlane.f32.xlu1 %v2262_v38 }
 0x66e   :  { %4077 = vmatmul.msk.f32.gmra.mxu2 %vm253_vm0, %v1984_v49 }
 0x676   :  { %4078 = vmatmul.msk.f32.gmra.mxu2 %vm253_vm0, %v2007_v12 }
 0x679   :  { %v2168_v42 = vpop.f32.mrf.mxu3 }
 0x67e   :  { %4079 = vmatmul.msk.f32.gmra.mxu2 %vm253_vm0, %v2030_v33 }
 0x680   :  { %v2324_v44 = vpop.xlane.xlu1 %2323 }
 0x681   :  { %4305 = vrcp.f32 %v2324_v44  ;;  %v2191_v23 = vpop.f32.mrf.mxu2 }
 0x682   :  { %4307 = vrcp.f32 %v2330_v43 }
 0x686   :  { %4080 = vmatmul.msk.f32.gmra.mxu2 %vm253_vm0, %v2053_v56 }
 0x687   :  { %v4306_v11 = vpop.eup %4305 }
 0x688   :  { %v2380_v47 = vmul.f32 %v4306_v11, %v5381_v15  ;;  %v4308_v17 = vpop.eup %4307  ;;  %v5472_v15 = vld [vmem:[#allocation2 + $0x90] sm:$0xff] }
 0x689   :  { %v2214_v6 = vpop.f32.mrf.mxu3  ;;  %v2413_v30 = vpop.f32.mrf.mxu2  ;;  %v2382_v41 = vmul.f32 %v4308_v17, %v5313_v62  ;;  %v5481_v62 = vld [vmem:[#allocation8 + $0x10] sm:$0xff] }
 0x68a   :  { %4059 = vmatmul.msk.f32.vlgmr.msrb.gmra.mxu3 %vm1672_vm1, %v2380_v47  ;;  %4120 = vmatmul.msk.f32.vlgmr.msrb.gmra.mxu1 %vm253_vm0, %v2413_v30  ;;  %v5527_v30 = vld [vmem:[#allocation2 + $0xd0] sm:$0xff] }
 0x68b   :  { %2572 = vmatpush.msrb.mxu3 %v5465_v19  ;;  %3246 = vmatpush.msrb.mxu2 %v5481_v62 }
 0x68d   :  { %3247 = vmatpush.msrb.mxu2 %v5483_v5 }
 0x68e   :  { %4081 = vmatmul.msk.f32.gmra.mxu2 %vm253_vm0, %v2076_v25 }
 0x68f   :  { %3248 = vmatpush.msrb.mxu2 %v5487_v54 }
 0x691   :  { %v2436_v18 = vpop.f32.mrf.mxu3  ;;  %v2459_v21 = vpop.f32.mrf.mxu2 }
 0x692   :  { %4061 = vmatmul.msk.f32.vlgmr.msra.gmra.mxu3 %vm1672_vm1, %v2382_v41  ;;  %4121 = vmatmul.msk.f32.gmra.mxu1 %vm253_vm0, %v2436_v18 }
 0x693   :  { %2618 = vmatpush.msra.mxu3 %v5472_v15 }
 0x696   :  { %4082 = vmatmul.msk.f32.gmra.mxu2 %vm253_vm0, %v2099_v58 }
 0x699   :  { %v5493_v50 = vpop.f32.mrf.mxu2 }
 0x69a   :  { %4122 = vmatmul.msk.f32.gmra.mxu1 %vm253_vm0, %v2459_v21 }
 0x69e   :  { %4083 = vmatmul.msk.f32.gmra.mxu2 %vm253_vm0, %v2122_v13 }
 0x6a1   :  { %v5496_v32 = vpop.f32.mrf.mxu2 }
 0x6a6   :  { %4084 = vmatmul.msk.f32.gmra.mxu2 %vm253_vm0, %v2145_v10 }
 0x6a9   :  { %v5502_v43 = vpop.f32.mrf.mxu2 }
 0x6ae   :  { %4085 = vmatmul.msk.f32.gmra.mxu2 %vm253_vm0, %v2168_v42  ;;  %v4359_v42 = vld [vmem:[#allocation2 + $0x38] sm:$0xff] }
 0x6b1   :  { %v5511_v56 = vpop.f32.mrf.mxu2 }
 0x6b6   :  { %4086 = vmatmul.msk.f32.gmra.mxu2 %vm253_vm0, %v2191_v23  ;;  %v5519_v23 = vld [vmem:[#allocation2 + $0xb0] sm:$0xff] }
 0x6be   :  { %4087 = vmatmul.msk.f32.gmra.mxu2 %vm253_vm0, %v2214_v6  ;;  %v5523_v6 = vpop.f32.mrf.mxu2 }
 0x6c6   :  { %4136 = vmatmul.msk.f32.vlgmr.msrb.gmra.mxu2 %vm253_vm0, %v4356_v52  ;;  %v2252_v36 = vpop.xlane.xlu0 %2251  ;;  %v5531_v41 = vpop.f32.mrf.mxu2 }
 0x6c7   :  { %v2276_v63 = vsub.f32 %v5439_v39, %v2252_v36  ;;  %v4358_v39 = vld [vmem:[#allocation2 + $0x28] sm:$0xff] }
 0x6c9   :  { %v2303_v9 = vmul.f32 1.442695, %v2276_v63 }
 0x6cb   :  { %4309 = vpow2.f32 %v2303_v9  ;;  %v2258_v57 = vpop.xlane.xlu1 %2257 }
 0x6cc   :  { %v2278_v20 = vsub.f32 %v5443_v40, %v2258_v57  ;;  %v2342_v40 = vpop.xlane.xlu2 %2341 }
 0x6ce   :  { %v2307_v26 = vmul.f32 1.442695, %v2278_v20  ;;  %4137 = vmatmul.msk.f32.gmra.mxu2 %vm253_vm0, %v4357_v51  ;;  %v5536_v18 = vpop.f32.mrf.mxu2 }
 0x6d0   :  { %4311 = vpow2.f32 %v2307_v26 }
 0x6d1   :  { %v5504_v49 = vpop.eup %4309 }
 0x6d2   :  { %v2346_v12 = vsel %vm1672_vm1, %v5504_v49, 0.0 }
 0x6d3   :  { %2347 = vadd.xlane.f32.xlu1 %v2346_v12  ;;  %v2336_v16 = vpop.xlane.xlu1 %2335 }
 0x6d4   :  { %4313 = vrcp.f32 %v2336_v16 }
 0x6d5   :  { %4315 = vrcp.f32 %v2342_v40 }
 0x6d6   :  { %4138 = vmatmul.msk.f32.gmra.mxu2 %vm253_vm0, %v4358_v39  ;;  %v5509_v33 = vpop.eup %4311  ;;  %v5540_v21 = vpop.f32.mrf.mxu2 }
 0x6d7   :  { %v2352_v25 = vsel %vm1672_vm1, %v5509_v33, 0.0 }
 0x6da   :  { %v4314_v38 = vpop.eup %4313 }
 0x6db   :  { %v2384_v58 = vmul.f32 %v4314_v38, %v5448_v60  ;;  %2353 = vadd.xlane.f32.xlu1 %v2352_v25  ;;  %v2264_v10 = vpop.xlane.xlu1 %2263  ;;  %v4316_v11 = vpop.eup %4315 }
 0x6dc   :  { %v2280_v13 = vsub.f32 %v5453_v48, %v2264_v10  ;;  %v2386_v47 = vmul.f32 %v4316_v11, %v5418_v8  ;;  %v4361_v48 = vld [vmem:[#allocation2 + $0x48] sm:$0xff] }
 0x6dd   :  { %4063 = vmatmul.msk.f32.vlgmr.msrb.gmra.mxu3 %vm1672_vm1, %v2384_v58  ;;  %v4363_v8 = vld [vmem:[#allocation2 + $0x68] sm:$0xff] }
 0x6de   :  { %v2311_v44 = vmul.f32 1.442695, %v2280_v13  ;;  %4139 = vmatmul.msk.f32.gmra.mxu2 %vm253_vm0, %v4359_v42  ;;  %2664 = vmatpush.msrb.mxu3 %v5519_v23  ;;  %v5544_v52 = vpop.f32.mrf.mxu2 }
 0x6e0   :  { %4317 = vpow2.f32 %v2311_v44 }
 0x6e5   :  { %4065 = vmatmul.msk.f32.vlgmr.msra.gmra.mxu3 %vm1672_vm1, %v2386_v47 }
 0x6e6   :  { %v4318_v60 = vpop.eup %4317  ;;  %4140 = vmatmul.msk.f32.gmra.mxu2 %vm253_vm0, %v4361_v48  ;;  %2710 = vmatpush.msra.mxu3 %v5527_v30 }
 0x6e7   :  { %v2358_v17 = vsel %vm1672_vm1, %v4318_v60, 0.0 }
 0x6e8   :  { %2359 = vadd.xlane.f32.xlu1 %v2358_v17 }
 0x6ee   :  { %4141 = vmatmul.msk.f32.gmra.mxu2 %vm253_vm0, %v5256_v31  ;;  %v5549_v31 = vpop.f32.mrf.mxu2 }
 0x6f6   :  { %4142 = vmatmul.msk.f32.gmra.mxu2 %vm253_vm0, %v4363_v8 }
 0x6fe   :  { %4143 = vmatmul.msk.f32.gmra.mxu2 %vm253_vm0, %v5317_v22 }
 0x706   :  { %4144 = vmatmul.msk.f32.gmra.mxu2 %vm253_vm0, %v5251_v61  ;;  %v5558_v61 = vpop.f32.mrf.mxu2 }
 0x70d   :  { %v2482_v36 = vpop.f32.mrf.mxu3 }
 0x70e   :  { %4123 = vmatmul.msk.f32.gmra.mxu1 %vm253_vm0, %v2482_v36  ;;  %4145 = vmatmul.msk.f32.gmra.mxu2 %vm253_vm0, %v5332_v4  ;;  %v5564_v4 = vpop.f32.mrf.mxu2 }
 0x715   :  { %v2528_v22 = vpop.f32.mrf.mxu3 }
 0x716   :  { %4124 = vmatmul.msk.f32.gmra.mxu1 %vm253_vm0, %v5493_v50  ;;  %4146 = vmatmul.msk.f32.gmra.mxu2 %vm253_vm0, %v5295_v14  ;;  %v5568_v14 = vpop.f32.mrf.mxu2 }
 0x71e   :  { %4125 = vmatmul.msk.f32.gmra.mxu1 %vm253_vm0, %v2528_v22  ;;  %4147 = vmatmul.msk.f32.gmra.mxu2 %vm253_vm0, %v5337_v35  ;;  %v5572_v50 = vpop.f32.mrf.mxu2 }
 0x726   :  { %4126 = vmatmul.msk.f32.gmra.mxu1 %vm253_vm0, %v5496_v32  ;;  %4148 = vmatmul.msk.f32.gmra.mxu2 %vm253_vm0, %v5304_v3 }
 0x72e   :  { %4149 = vmatmul.msk.f32.gmra.mxu2 %vm253_vm0, %v5343_v29  ;;  %v5578_v29 = vld [vmem:[#allocation2 + $0xf0] sm:$0xff] }
 0x736   :  { %4150 = vmatmul.msk.f32.gmra.mxu2 %vm253_vm0, %v5320_v0 }
 0x73e   :  { %4151 = vmatmul.msk.f32.gmra.mxu2 %vm253_vm0, %v5353_v1 }
 0x746   :  { %v2348_v35 = vpop.xlane.xlu1 %2347 }
 0x747   :  { %4319 = vrcp.f32 %v2348_v35 }
 0x74d   :  { %v4320_v32 = vpop.eup %4319 }
 0x74e   :  { %v2388_v3 = vmul.f32 %v4320_v32, %v5504_v49  ;;  %v2354_v63 = vpop.xlane.xlu1 %2353 }
 0x74f   :  { %4321 = vrcp.f32 %v2354_v63 }
 0x750   :  { %4067 = vmatmul.msk.f32.vlgmr.msrb.gmra.mxu3 %vm1672_vm1, %v2388_v3 }
 0x751   :  { %2756 = vmatpush.msrb.mxu3 %v5578_v29 }
 0x755   :  { %v4322_v9 = vpop.eup %4321 }
 0x756   :  { %v2390_v0 = vmul.f32 %v4322_v9, %v5509_v33 }
 0x758   :  { %4069 = vmatmul.msk.f32.vlgmr.msra.gmra.mxu3 %vm1672_vm1, %v2390_v0 }
 0x759   :  { %2894 = vmatpush.msra.mxu3 %v5478_v2 }
 0x75b   :  { %v2360_v1 = vpop.xlane.xlu1 %2359  ;;  %2895 = vmatpush.msra.mxu3 %v5481_v62  ;;  %v5600_v62 = vpop.f32.mrf.mxu2 }
 0x75c   :  { %4323 = vrcp.f32 %v2360_v1 }
 0x75d   :  { %2896 = vmatpush.msra.mxu3 %v5483_v5 }
 0x75f   :  { %2897 = vmatpush.msra.mxu3 %v5487_v54  ;;  %v3185_v54 = vpop.f32.mrf.mxu1 }
 0x760   :  { %v2574_v57 = vpop.f32.mrf.mxu3 }
 0x761   :  { %4127 = vmatmul.msk.f32.gmra.mxu1 %vm253_vm0, %v2574_v57 }
 0x762   :  { %v4324_v20 = vpop.eup %4323 }
 0x763   :  { %v2392_v26 = vmul.f32 %v4324_v20, %v4318_v60  ;;  %v5604_v5 = vpop.f32.mrf.mxu2 }
 0x765   :  { %4071 = vmatmul.msk.f32.vlgmr.msrb.gmra.mxu3 %vm1672_vm1, %v2392_v26 }
 0x767   :  { %v3188_v49 = vpop.f32.mrf.mxu1 }
 0x768   :  { %v2620_v2 = vpop.f32.mrf.mxu3 }
 0x769   :  { %4128 = vmatmul.msk.f32.gmra.mxu1 %vm253_vm0, %v5502_v43 }
 0x76d   :  { %4088 = vmatmul.msk.f32.vlgmr.msra.gmra.mxu3 %vm253_vm0, %v5347_v37  ;;  %v5608_v37 = vpop.f32.mrf.mxu2 }
 0x76f   :  { %v3191_v33 = vpop.f32.mrf.mxu1 }
 0x771   :  { %4129 = vmatmul.msk.f32.gmra.mxu1 %vm253_vm0, %v2620_v2 }
 0x775   :  { %4089 = vmatmul.msk.f32.gmra.mxu3 %vm253_vm0, %v5364_v53  ;;  %v5612_v53 = vpop.f32.mrf.mxu2 }
 0x779   :  { %4130 = vmatmul.msk.f32.gmra.mxu1 %vm253_vm0, %v5511_v56 }
 0x77d   :  { %4090 = vmatmul.msk.f32.gmra.mxu3 %vm253_vm0, %v5372_v34  ;;  %v5618_v34 = vpop.f32.mrf.mxu2 }
 0x785   :  { %4091 = vmatmul.msk.f32.gmra.mxu3 %vm253_vm0, %v5386_v59  ;;  %v5622_v59 = vpop.f32.mrf.mxu2 }
 0x78b   :  { %v3194_v58 = vpop.f32.mrf.mxu1 }
 0x78d   :  { %4092 = vmatmul.msk.f32.gmra.mxu3 %vm253_vm0, %v5383_v46  ;;  %v5626_v46 = vpop.f32.mrf.mxu2 }
 0x793   :  { %v3197_v60 = vpop.f32.mrf.mxu1 }
 0x795   :  { %4093 = vmatmul.msk.f32.gmra.mxu3 %vm253_vm0, %v5399_v7  ;;  %v5630_v7 = vpop.f32.mrf.mxu2 }
 0x79b   :  { %v3200_v32 = vpop.f32.mrf.mxu1 }
 0x79d   :  { %4094 = vmatmul.msk.f32.gmra.mxu3 %vm253_vm0, %v5396_v28  ;;  %v2986_v28 = vld [vmem:[#allocation11 + $0x18] sm:$0xff] }
 0x79e   :  { %3390 = vmatpush.msrb.mxu3 %v2986_v28  ;;  %3051 = vmatpush.msrb.mxu0 %v2986_v28 }
 0x7a3   :  { %v3203_v2 = vpop.f32.mrf.mxu1 }
 0x7a5   :  { %4095 = vmatmul.msk.f32.gmra.mxu3 %vm253_vm0, %v5465_v19  ;;  %v2985_v19 = vld [vmem:[#allocation11 + $0x10] sm:$0xff] }
 0x7a6   :  { %3391 = vmatpush.msrb.mxu3 %v2985_v19  ;;  %3052 = vmatpush.msrb.mxu0 %v2985_v19 }
 0x7ad   :  { %4096 = vmatmul.msk.f32.gmra.mxu3 %vm253_vm0, %v5405_v45  ;;  %v2984_v45 = vld [vmem:[#allocation11 + $0x8] sm:$0xff] }
 0x7ae   :  { %3392 = vmatpush.msrb.mxu3 %v2984_v45  ;;  %3053 = vmatpush.msrb.mxu0 %v2984_v45 }
 0x7b5   :  { %4097 = vmatmul.msk.f32.gmra.mxu3 %vm253_vm0, %v5472_v15  ;;  %v2983_v15 = vld [vmem:[#allocation11] sm:$0xff] }
 0x7b6   :  { %3054 = vmatpush.msrb.mxu0 %v2983_v15  ;;  %3393 = vmatpush.msrb.mxu3 %v2983_v15 }
 0x7bd   :  { %4098 = vmatmul.msk.f32.gmra.mxu3 %vm253_vm0, %v5412_v24  ;;  %v3250_v24 = vpop.f32.mrf.mxu2 }
 0x7be   :  { %v3251_v16 = vadd.f32 %v3250_v24, %v3185_v54 }
 0x7c5   :  { %4099 = vmatmul.msk.f32.gmra.mxu3 %vm253_vm0, %v5519_v23  ;;  %v3253_v43 = vpop.f32.mrf.mxu2 }
 0x7c6   :  { %v3254_v25 = vadd.f32 %v3253_v43, %v3188_v49 }
 0x7cd   :  { %4100 = vmatmul.msk.f32.gmra.mxu3 %vm253_vm0, %v5420_v27  ;;  %v5646_v27 = vld [vmem:[%s5868_s7] ss:$0 sm:$0xff]  ;;  %v3256_v39 = vpop.f32.mrf.mxu2 }
 0x7ce   :  { %v3298_v40 = vadd.f32 %v5646_v27, %v3251_v16  ;;  %v3299_v10 = vadd.f32 %v5646_v27, %v3254_v25  ;;  %v3257_v23 = vadd.f32 %v3256_v39, %v3191_v33 }
 0x7d0   :  { %v3314_v56 = vmax.f32 %v3298_v40, 0.0  ;;  %v3315_v42 = vmax.f32 %v3299_v10, 0.0  ;;  %v3300_v48 = vadd.f32 %v5646_v27, %v3257_v23 }
 0x7d3   :  { %v2666_v51 = vpop.f32.mrf.mxu3 }
 0x7d4   :  { %4131 = vmatmul.msk.f32.gmra.mxu1 %vm253_vm0, %v2666_v51 }
 0x7d5   :  { %4101 = vmatmul.msk.f32.gmra.mxu3 %vm253_vm0, %v5527_v30 }
 0x7db   :  { %v2712_v12 = vpop.f32.mrf.mxu3 }
 0x7dc   :  { %4132 = vmatmul.msk.f32.gmra.mxu1 %vm253_vm0, %v5523_v6 }
 0x7dd   :  { %4102 = vmatmul.msk.f32.gmra.mxu3 %vm253_vm0, %v5428_v55  ;;  %v3259_v55 = vpop.f32.mrf.mxu2 }
 0x7de   :  { %v3260_v8 = vadd.f32 %v3259_v55, %v3194_v58  ;;  %v3206_v43 = vpop.f32.mrf.mxu1 }
 0x7e0   :  { %v3301_v22 = vadd.f32 %v5646_v27, %v3260_v8 }
 0x7e4   :  { %4133 = vmatmul.msk.f32.gmra.mxu1 %vm253_vm0, %v2712_v12 }
 0x7e5   :  { %4103 = vmatmul.msk.f32.gmra.mxu3 %vm253_vm0, %v5578_v29  ;;  %v3262_v47 = vpop.f32.mrf.mxu2  ;;  %v3317_v29 = vmax.f32 %v3301_v22, 0.0 }
 0x7e6   :  { %v3263_v9 = vadd.f32 %v3262_v47, %v3197_v60  ;;  %v3209_v55 = vpop.f32.mrf.mxu1 }
 0x7e8   :  { %v2758_v38 = vpop.f32.mrf.mxu3  ;;  %v3302_v1 = vadd.f32 %v5646_v27, %v3263_v9 }
 0x7ea   :  { %v3318_v28 = vmax.f32 %v3302_v1, 0.0 }
 0x7ec   :  { %4134 = vmatmul.msk.f32.gmra.mxu1 %vm253_vm0, %v5531_v41  ;;  %v3316_v41 = vmax.f32 %v3300_v48, 0.0 }
 0x7ed   :  { %4152 = vmatmul.msk.f32.vlgmr.msrb.gmra.mxu3 %vm253_vm0, %v3314_v56  ;;  %v3265_v35 = vpop.f32.mrf.mxu2 }
 0x7ee   :  { %v3266_v19 = vadd.f32 %v3265_v35, %v3200_v32 }
 0x7f0   :  { %v2899_v13 = vpop.f32.mrf.mxu3  ;;  %v3303_v15 = vadd.f32 %v5646_v27, %v3266_v19 }
 0x7f1   :  { %v2900_v44 = vadd.f32 %v2899_v13, %v5536_v18 }
 0x7f2   :  { %v3319_v49 = vmax.f32 %v3303_v15, 0.0 }
 0x7f3   :  { %v2951_v11 = vadd.f32 %v5646_v27, %v2900_v44 }
 0x7f4   :  { %4135 = vmatmul.msk.f32.gmra.mxu1 %vm253_vm0, %v2758_v38 }
 0x7f5   :  { %v2967_v6 = vmax.f32 %v2951_v11, 0.0  ;;  %4153 = vmatmul.msk.f32.gmra.mxu3 %vm253_vm0, %v3315_v42  ;;  %v3268_v20 = vpop.f32.mrf.mxu2 }
 0x7f6   :  { %v3269_v12 = vadd.f32 %v3268_v20, %v3203_v2 }
 0x7f7   :  { %4104 = vmatmul.msk.f32.vlgmr.msrb.gmra.mxu0 %vm253_vm0, %v2967_v6  ;;  %v3212_v6 = vpop.f32.mrf.mxu1 }
 0x7f8   :  { %v2902_v30 = vpop.f32.mrf.mxu3  ;;  %v3304_v39 = vadd.f32 %v5646_v27, %v3269_v12 }
 0x7f9   :  { %v2903_v17 = vadd.f32 %v2902_v30, %v5540_v21 }
 0x7fa   :  { %v3320_v38 = vmax.f32 %v3304_v39, 0.0 }
 0x7fb   :  { %v2952_v18 = vadd.f32 %v5646_v27, %v2903_v17 }
 0x7fd   :  { %v2968_v36 = vmax.f32 %v2952_v18, 0.0  ;;  %4154 = vmatmul.msk.f32.gmra.mxu3 %vm253_vm0, %v3316_v41  ;;  %v3271_v54 = vpop.f32.mrf.mxu2 }
 0x7fe   :  { %v3272_v56 = vadd.f32 %v3271_v54, %v3206_v43 }
 0x7ff   :  { %4105 = vmatmul.msk.f32.gmra.mxu0 %vm253_vm0, %v2968_v36  ;;  %v3215_v22 = vpop.f32.mrf.mxu1 }
 0x800   :  { %v2905_v3 = vpop.f32.mrf.mxu3  ;;  %v3305_v10 = vadd.f32 %v5646_v27, %v3272_v56 }
 0x801   :  { %v2906_v63 = vadd.f32 %v2905_v3, %v5544_v52 }
 0x802   :  { %v3321_v42 = vmax.f32 %v3305_v10, 0.0 }
 0x803   :  { %v2953_v21 = vadd.f32 %v5646_v27, %v2906_v63 }
 0x805   :  { %v2969_v0 = vmax.f32 %v2953_v21, 0.0  ;;  %4155 = vmatmul.msk.f32.gmra.mxu3 %vm253_vm0, %v3317_v29  ;;  %v3274_v25 = vpop.f32.mrf.mxu2 }
 0x806   :  { %v3275_v23 = vadd.f32 %v3274_v25, %v3209_v55 }
 0x807   :  { %4106 = vmatmul.msk.f32.gmra.mxu0 %vm253_vm0, %v2969_v0 }
 0x808   :  { %v2908_v57 = vpop.f32.mrf.mxu3  ;;  %v3306_v60 = vadd.f32 %v5646_v27, %v3275_v23 }
 0x809   :  { %v2909_v26 = vadd.f32 %v2908_v57, %v5549_v31 }
 0x80a   :  { %v3322_v17 = vmax.f32 %v3306_v60, 0.0 }
 0x80b   :  { %v2954_v52 = vadd.f32 %v5646_v27, %v2909_v26 }
 0x80d   :  { %v2970_v45 = vmax.f32 %v2954_v52, 0.0  ;;  %4156 = vmatmul.msk.f32.gmra.mxu3 %vm253_vm0, %v3318_v28  ;;  %v3277_v11 = vpop.f32.mrf.mxu2 }
 0x80e   :  { %v3278_v41 = vadd.f32 %v3277_v11, %v3212_v6 }
 0x80f   :  { %4107 = vmatmul.msk.f32.gmra.mxu0 %vm253_vm0, %v2970_v45 }
 0x810   :  { %v2911_v24 = vpop.f32.mrf.mxu3  ;;  %v3307_v18 = vadd.f32 %v5646_v27, %v3278_v41 }
 0x811   :  { %v2912_v51 = vadd.f32 %v2911_v24, %v5558_v61 }
 0x812   :  { %v3323_v3 = vmax.f32 %v3307_v18, 0.0 }
 0x813   :  { %v2955_v31 = vadd.f32 %v5646_v27, %v2912_v51 }
 0x815   :  { %v2971_v16 = vmax.f32 %v2955_v31, 0.0  ;;  %4157 = vmatmul.msk.f32.gmra.mxu3 %vm253_vm0, %v3319_v49  ;;  %v3280_v36 = vpop.f32.mrf.mxu2 }
 0x816   :  { %v3281_v63 = vadd.f32 %v3280_v36, %v3215_v22 }
 0x817   :  { %4108 = vmatmul.msk.f32.gmra.mxu0 %vm253_vm0, %v2971_v16 }
 0x818   :  { %v2914_v33 = vpop.f32.mrf.mxu3  ;;  %v3308_v9 = vadd.f32 %v5646_v27, %v3281_v63  ;;  %v5737_v63 = vld [vmem:[%s5870_s9] ss:$0 sm:$0xff] }
 0x819   :  { %v2915_v40 = vadd.f32 %v2914_v33, %v5564_v4 }
 0x81a   :  { %v3324_v1 = vmax.f32 %v3308_v9, 0.0 }
 0x81b   :  { %v2956_v61 = vadd.f32 %v5646_v27, %v2915_v40 }
 0x81d   :  { %v2972_v58 = vmax.f32 %v2956_v61, 0.0  ;;  %4158 = vmatmul.msk.f32.gmra.mxu3 %vm253_vm0, %v3320_v38  ;;  %v3283_v19 = vpop.f32.mrf.mxu2 }
 0x81f   :  { %4109 = vmatmul.msk.f32.gmra.mxu0 %vm253_vm0, %v2972_v58 }
 0x820   :  { %v2917_v13 = vpop.f32.mrf.mxu3 }
 0x821   :  { %v2918_v44 = vadd.f32 %v2917_v13, %v5568_v14 }
 0x823   :  { %v2957_v4 = vadd.f32 %v5646_v27, %v2918_v44 }
 0x825   :  { %v2973_v47 = vmax.f32 %v2957_v4, 0.0  ;;  %4159 = vmatmul.msk.f32.gmra.mxu3 %vm253_vm0, %v3321_v42  ;;  %v3286_v43 = vpop.f32.mrf.mxu2 }
 0x827   :  { %4110 = vmatmul.msk.f32.gmra.mxu0 %vm253_vm0, %v2973_v47 }
 0x828   :  { %v2920_v48 = vpop.f32.mrf.mxu3 }
 0x829   :  { %v2921_v30 = vadd.f32 %v2920_v48, %v5572_v50 }
 0x82b   :  { %v2958_v14 = vadd.f32 %v5646_v27, %v2921_v30 }
 0x82d   :  { %v2974_v8 = vmax.f32 %v2958_v14, 0.0  ;;  %4160 = vmatmul.msk.f32.gmra.mxu3 %vm253_vm0, %v3322_v17  ;;  %v3289_v38 = vpop.f32.mrf.mxu2 }
 0x82f   :  { %4111 = vmatmul.msk.f32.gmra.mxu0 %vm253_vm0, %v2974_v8 }
 0x830   :  { %v2923_v35 = vpop.f32.mrf.mxu3 }
 0x831   :  { %v2924_v32 = vadd.f32 %v2923_v35, %v5600_v62 }
 0x833   :  { %v2959_v50 = vadd.f32 %v5646_v27, %v2924_v32 }
 0x835   :  { %v2975_v29 = vmax.f32 %v2959_v50, 0.0  ;;  %4161 = vmatmul.msk.f32.gmra.mxu3 %vm253_vm0, %v3323_v3  ;;  %v3292_v23 = vpop.f32.mrf.mxu2 }
 0x837   :  { %4112 = vmatmul.msk.f32.gmra.mxu0 %vm253_vm0, %v2975_v29 }
 0x838   :  { %v2926_v21 = vpop.f32.mrf.mxu3 }
 0x839   :  { %v2927_v0 = vadd.f32 %v2926_v21, %v5604_v5 }
 0x83b   :  { %v2960_v57 = vadd.f32 %v5646_v27, %v2927_v0 }
 0x83d   :  { %v2976_v20 = vmax.f32 %v2960_v57, 0.0  ;;  %4162 = vmatmul.msk.f32.gmra.mxu3 %vm253_vm0, %v3324_v1  ;;  %v3295_v41 = vpop.f32.mrf.mxu2 }
 0x83f   :  { %4113 = vmatmul.msk.f32.gmra.mxu0 %vm253_vm0, %v2976_v20 }
 0x840   :  { %v2929_v62 = vpop.f32.mrf.mxu3 }
 0x841   :  { %v2930_v26 = vadd.f32 %v2929_v62, %v5608_v37 }
 0x843   :  { %v2961_v2 = vadd.f32 %v5646_v27, %v2930_v26 }
 0x845   :  { %v2977_v28 = vmax.f32 %v2961_v2, 0.0 }
 0x847   :  { %4114 = vmatmul.msk.f32.gmra.mxu0 %vm253_vm0, %v2977_v28 }
 0x848   :  { %v2932_v52 = vpop.f32.mrf.mxu3 }
 0x849   :  { %v2933_v5 = vadd.f32 %v2932_v52, %v5612_v53 }
 0x84b   :  { %v2962_v45 = vadd.f32 %v5646_v27, %v2933_v5 }
 0x84d   :  { %v2978_v15 = vmax.f32 %v2962_v45, 0.0 }
 0x84f   :  { %4115 = vmatmul.msk.f32.gmra.mxu0 %vm253_vm0, %v2978_v15 }
 0x850   :  { %v2935_v24 = vpop.f32.mrf.mxu3 }
 0x851   :  { %v2936_v54 = vadd.f32 %v2935_v24, %v5618_v34  ;;  %v3218_v51 = vpop.f32.mrf.mxu1 }
 0x852   :  { %v3284_v37 = vadd.f32 %v3283_v19, %v3218_v51 }
 0x853   :  { %v2963_v49 = vadd.f32 %v5646_v27, %v2936_v54 }
 0x854   :  { %v3309_v12 = vadd.f32 %v5646_v27, %v3284_v37  ;;  %v3690_v37 = vld [vmem:[#allocation14 + $0x18] sm:$0xff] }
 0x855   :  { %v2979_v31 = vmax.f32 %v2963_v49, 0.0  ;;  %3744 = vmatpush.msra.mxu0 %v3690_v37 }
 0x856   :  { %v3325_v16 = vmax.f32 %v3309_v12, 0.0 }
 0x857   :  { %4116 = vmatmul.msk.f32.gmra.mxu0 %vm253_vm0, %v2979_v31 }
 0x858   :  { %v2938_v53 = vpop.f32.mrf.mxu3  ;;  %4163 = vmatmul.msk.f32.gmra.mxu3 %vm253_vm0, %v3325_v16 }
 0x859   :  { %v2939_v39 = vadd.f32 %v2938_v53, %v5622_v59  ;;  %v3221_v33 = vpop.f32.mrf.mxu1  ;;  %v3689_v53 = vld [vmem:[#allocation14 + $0x10] sm:$0xff] }
 0x85a   :  { %v3287_v40 = vadd.f32 %v3286_v43, %v3221_v33  ;;  %3745 = vmatpush.msra.mxu0 %v3689_v53 }
 0x85b   :  { %v2964_v34 = vadd.f32 %v5646_v27, %v2939_v39 }
 0x85c   :  { %v3310_v56 = vadd.f32 %v5646_v27, %v3287_v40 }
 0x85d   :  { %v2980_v25 = vmax.f32 %v2964_v34, 0.0 }
 0x85e   :  { %v3326_v61 = vmax.f32 %v3310_v56, 0.0 }
 0x85f   :  { %4117 = vmatmul.msk.f32.gmra.mxu0 %vm253_vm0, %v2980_v25 }
 0x860   :  { %v2941_v55 = vpop.f32.mrf.mxu3  ;;  %4164 = vmatmul.msk.f32.gmra.mxu3 %vm253_vm0, %v3326_v61  ;;  %v3688_v61 = vld [vmem:[#allocation14 + $0x8] sm:$0xff] }
 0x861   :  { %v2942_v58 = vadd.f32 %v2941_v55, %v5626_v46  ;;  %v3224_v10 = vpop.f32.mrf.mxu1  ;;  %v3686_v55 = vld [vmem:[#allocation13 + $0x18] sm:$0xff]  ;;  %3746 = vmatpush.msra.mxu0 %v3688_v61 }
 0x862   :  { %v3290_v13 = vadd.f32 %v3289_v38, %v3224_v10  ;;  %3801 = vmatpush.msra.mxu1 %v3686_v55 }
 0x863   :  { %v2965_v59 = vadd.f32 %v5646_v27, %v2942_v58 }
 0x864   :  { %v3311_v44 = vadd.f32 %v5646_v27, %v3290_v13 }
 0x865   :  { %v2981_v42 = vmax.f32 %v2965_v59, 0.0 }
 0x866   :  { %v3327_v4 = vmax.f32 %v3311_v44, 0.0 }
 0x867   :  { %4118 = vmatmul.msk.f32.gmra.mxu0 %vm253_vm0, %v2981_v42  ;;  %v3687_v42 = vld [vmem:[#allocation14] sm:$0xff] }
 0x868   :  { %v2944_v11 = vpop.f32.mrf.mxu3  ;;  %4165 = vmatmul.msk.f32.gmra.mxu3 %vm253_vm0, %v3327_v4  ;;  %3747 = vmatpush.msra.mxu0 %v3687_v42 }
 0x869   :  { %v2945_v47 = vadd.f32 %v2944_v11, %v5630_v7  ;;  %v3227_v6 = vpop.f32.mrf.mxu1 }
 0x86a   :  { %v3293_v60 = vadd.f32 %v3292_v23, %v3227_v6  ;;  %v3685_v23 = vld [vmem:[#allocation13 + $0x10] sm:$0xff] }
 0x86b   :  { %v2966_v46 = vadd.f32 %v5646_v27, %v2945_v47  ;;  %3802 = vmatpush.msra.mxu1 %v3685_v23 }
 0x86c   :  { %v3312_v48 = vadd.f32 %v5646_v27, %v3293_v60 }
 0x86d   :  { %v2982_v30 = vmax.f32 %v2966_v46, 0.0 }
 0x86e   :  { %v3328_v17 = vmax.f32 %v3312_v48, 0.0 }
 0x86f   :  { %4119 = vmatmul.msk.f32.gmra.mxu0 %vm253_vm0, %v2982_v30 }
 0x870   :  { %v3395_v14 = vpop.f32.mrf.mxu3  ;;  %4166 = vmatmul.msk.f32.gmra.mxu3 %vm253_vm0, %v3328_v17 }
 0x871   :  { %v3230_v8 = vpop.f32.mrf.mxu1  ;;  %v3396_v29 = vadd.f32 %v5737_v63, %v3395_v14 }
 0x872   :  { %v3296_v18 = vadd.f32 %v3295_v41, %v3230_v8  ;;  %v3684_v41 = vld [vmem:[#allocation13 + $0x8] sm:$0xff] }
 0x873   :  { %v3443_v0 = vmax.f32 %v3396_v29, 0.0  ;;  %3803 = vmatpush.msra.mxu1 %v3684_v41 }
 0x874   :  { %v3313_v36 = vadd.f32 %v5646_v27, %v3296_v18  ;;  %v3056_v22 = vpop.f32.mrf.mxu0 }
 0x875   :  { %v3057_v9 = vadd.f32 %v5737_v63, %v3056_v22  ;;  %v3571_v20 = vsel %vm253_vm0, %v3443_v0, 0.0 }
 0x876   :  { %v3329_v7 = vmax.f32 %v3313_v36, 0.0  ;;  %v3572_v2 = vrot.slane %v3571_v20, 4 }
 0x877   :  { %v3104_v1 = vmax.f32 %v3057_v9, 0.0 }
 0x878   :  { %v3398_v35 = vpop.f32.mrf.mxu3  ;;  %4167 = vmatmul.msk.f32.gmra.mxu3 %vm253_vm0, %v3329_v7  ;;  %v3573_v24 = vadd.f32 %v3572_v2, %v3571_v20 }
 0x879   :  { %v3399_v27 = vadd.f32 %v5737_v63, %v3398_v35  ;;  %v3459_v26 = vsel %vm253_vm0, %v3104_v1, 0.0  ;;  %v3683_v35 = vld [vmem:[#allocation13] sm:$0xff] }
 0x87a   :  { %v3460_v5 = vrot.slane %v3459_v26, 4  ;;  %v3574_v40 = vrot.slane %v3573_v24, 2  ;;  %3804 = vmatpush.msra.mxu1 %v3683_v35 }
 0x87b   :  { %v3444_v62 = vmax.f32 %v3399_v27, 0.0 }
 0x87c   :  { %v3059_v32 = vpop.f32.mrf.mxu0  ;;  %v3461_v31 = vadd.f32 %v3460_v5, %v3459_v26  ;;  %v3575_v60 = vadd.f32 %v3574_v40, %v3573_v24 }
 0x87d   :  { %v3060_v52 = vadd.f32 %v5737_v63, %v3059_v32  ;;  %v3578_v45 = vsel %vm253_vm0, %v3444_v62, 0.0 }
 0x87e   :  { %v3579_v49 = vrot.slane %v3578_v45, 4  ;;  %v3462_v59 = vrot.slane %v3461_v31, 2  ;;  %v3576_v9 = vrot.slane %v3575_v60, 1 }
 0x87f   :  { %v3105_v12 = vmax.f32 %v3060_v52, 0.0 }
 0x880   :  { %v3401_v3 = vpop.f32.mrf.mxu3  ;;  %v3580_v58 = vadd.f32 %v3579_v49, %v3578_v45  ;;  %v3463_v36 = vadd.f32 %v3462_v59, %v3461_v31  ;;  %v3577_v24 = vadd.f32 %v3576_v9, %v3575_v60 }
 0x881   :  { %v3402_v28 = vadd.f32 %v5737_v63, %v3401_v3  ;;  %v3466_v10 = vsel %vm253_vm0, %v3105_v12, 0.0 }
 0x882   :  { %v3467_v46 = vrot.slane %v3466_v10, 4  ;;  %v3581_v14 = vrot.slane %v3580_v58, 2  ;;  %v3464_v2 = vrot.slane %v3463_v36, 1 }
 0x883   :  { %v3445_v54 = vmax.f32 %v3402_v28, 0.0 }
 0x884   :  { %v3062_v50 = vpop.f32.mrf.mxu0  ;;  %v5766_v53 = vadd.f32 %v3464_v2, %v3463_v36 }
 0x885   :  { %v3063_v16 = vadd.f32 %v5737_v63, %v3062_v50  ;;  %v3585_v34 = vsel %vm253_vm0, %v3445_v54, 0.0 }
 0x886   :  { %v3586_v4 = vrot.slane %v3585_v34, 4 }
 0x887   :  { %v3106_v44 = vmax.f32 %v3063_v16, 0.0 }
 0x888   :  { %v3404_v21 = vpop.f32.mrf.mxu3  ;;  %v3587_v32 = vadd.f32 %v3586_v4, %v3585_v34 }
 0x889   :  { %v3405_v15 = vadd.f32 %v5737_v63, %v3404_v21  ;;  %v3473_v22 = vsel %vm253_vm0, %v3106_v44, 0.0  ;;  %v3468_v21 = vadd.f32 %v3467_v46, %v3466_v10 }
 0x88a   :  { %v3474_v20 = vrot.slane %v3473_v22, 4  ;;  %v3588_v52 = vrot.slane %v3587_v32, 2 }
 0x88b   :  { %v3446_v39 = vmax.f32 %v3405_v15, 0.0  ;;  %v3469_v54 = vrot.slane %v3468_v21, 2 }
 0x88c   :  { %v3065_v57 = vpop.f32.mrf.mxu0  ;;  %v3475_v12 = vadd.f32 %v3474_v20, %v3473_v22  ;;  %v3589_v34 = vadd.f32 %v3588_v52, %v3587_v32 }
 0x88d   :  { %v3066_v33 = vadd.f32 %v5737_v63, %v3065_v57  ;;  %v3592_v11 = vsel %vm253_vm0, %v3446_v39, 0.0  ;;  %v3582_v57 = vadd.f32 %v3581_v14, %v3580_v58  ;;  %v3470_v61 = vadd.f32 %v3469_v54, %v3468_v21 }
 0x88e   :  { %v3593_v7 = vrot.slane %v3592_v11, 4  ;;  %v3476_v44 = vrot.slane %v3475_v12, 2  ;;  %v3590_v60 = vrot.slane %v3589_v34, 1 }
 0x88f   :  { %v3107_v47 = vmax.f32 %v3066_v33, 0.0  ;;  %v3583_v49 = vrot.slane %v3582_v57, 1 }
 0x890   :  { %v3407_v19 = vpop.f32.mrf.mxu3  ;;  %v3594_v28 = vadd.f32 %v3593_v7, %v3592_v11  ;;  %v3477_v36 = vadd.f32 %v3476_v44, %v3475_v12  ;;  %v3591_v9 = vadd.f32 %v3590_v60, %v3589_v34 }
 0x891   :  { %v3408_v51 = vadd.f32 %v5737_v63, %v3407_v19  ;;  %v3480_v3 = vsel %vm253_vm0, %v3107_v47, 0.0  ;;  %v3584_v59 = vadd.f32 %v3583_v49, %v3582_v57 }
 0x892   :  { %v3481_v19 = vrot.slane %v3480_v3, 4  ;;  %v3595_v39 = vrot.slane %v3594_v28, 2 }
 0x893   :  { %v3447_v38 = vmax.f32 %v3408_v51, 0.0 }
 0x894   :  { %v3068_v43 = vpop.f32.mrf.mxu0  ;;  %v3482_v33 = vadd.f32 %v3481_v19, %v3480_v3  ;;  %v3596_v4 = vadd.f32 %v3595_v39, %v3594_v28 }
 0x895   :  { %v3069_v56 = vadd.f32 %v5737_v63, %v3068_v43  ;;  %v3599_v48 = vsel %vm253_vm0, %v3447_v38, 0.0 }
 0x896   :  { %v3600_v50 = vrot.slane %v3599_v48, 4  ;;  %v3483_v11 = vrot.slane %v3482_v33, 2  ;;  %v3597_v32 = vrot.slane %v3596_v4, 1 }
 0x897   :  { %v3108_v30 = vmax.f32 %v3069_v56, 0.0 }
 0x898   :  { %v3410_v25 = vpop.f32.mrf.mxu3  ;;  %v3601_v5 = vadd.f32 %v3600_v50, %v3599_v48  ;;  %v3484_v3 = vadd.f32 %v3483_v11, %v3482_v33  ;;  %v3598_v52 = vadd.f32 %v3597_v32, %v3596_v4 }
 0x899   :  { %v3411_v13 = vadd.f32 %v5737_v63, %v3410_v25  ;;  %v3487_v0 = vsel %vm253_vm0, %v3108_v30, 0.0 }
 0x89a   :  { %v3488_v45 = vrot.slane %v3487_v0, 4  ;;  %v3602_v38 = vrot.slane %v3601_v5, 2 }
 0x89b   :  { %v3448_v6 = vmax.f32 %v3411_v13, 0.0 }
 0x89c   :  { %v3071_v17 = vpop.f32.mrf.mxu0  ;;  %v3489_v56 = vadd.f32 %v3488_v45, %v3487_v0  ;;  %v3603_v46 = vadd.f32 %v3602_v38, %v3601_v5  ;;  %v3485_v5 = vrot.slane %v3484_v3, 1 }
 0x89d   :  { %v3606_v8 = vsel %vm253_vm0, %v3448_v6, 0.0  ;;  %v3072_v18 = vadd.f32 %v5737_v63, %v3071_v17  ;;  %v3471_v17 = vrot.slane %v3470_v61, 1 }
 0x89e   :  { %v3607_v27 = vrot.slane %v3606_v8, 4  ;;  %v3490_v48 = vrot.slane %v3489_v56, 2  ;;  %v3604_v21 = vrot.slane %v3603_v46, 1  ;;  %v3486_v38 = vadd.f32 %v3485_v5, %v3484_v3 }
 0x89f   :  { %v3109_v29 = vmax.f32 %v3072_v18, 0.0  ;;  %v3472_v54 = vadd.f32 %v3471_v17, %v3470_v61 }
 0x8a0   :  { %v3413_v1 = vpop.f32.mrf.mxu3  ;;  %v3608_v51 = vadd.f32 %v3607_v27, %v3606_v8  ;;  %v3491_v0 = vadd.f32 %v3490_v48, %v3489_v56 }
 0x8a1   :  { %v3494_v62 = vsel %vm253_vm0, %v3109_v29, 0.0  ;;  %v3414_v26 = vadd.f32 %v5737_v63, %v3413_v1  ;;  %v3708_v1 = vsel %vm3707_vm2, %v3584_v59, %v3577_v24  ;;  %v3771_v61 = vsel %vm3707_vm2, %v3472_v54, %v5766_v53 }
 0x8a2   :  { %v3495_v43 = vrot.slane %v3494_v62, 4  ;;  %v3609_v55 = vrot.slane %v3608_v51, 2 }
 0x8a3   :  { %v3449_v15 = vmax.f32 %v3414_v26, 0.0  ;;  %v3478_v26 = vrot.slane %v3477_v36, 1 }
 0x8a4   :  { %v3074_v37 = vpop.f32.mrf.mxu0  ;;  %v3496_v58 = vadd.f32 %v3495_v43, %v3494_v62  ;;  %v3610_v41 = vadd.f32 %v3609_v55, %v3608_v51  ;;  %v3710_v51 = vsel %vm3709_vm3, %v3591_v9, %v3708_v1  ;;  %v3605_v43 = vadd.f32 %v3604_v21, %v3603_v46 }
 0x8a5   :  { %v3613_v31 = vsel %vm253_vm0, %v3449_v15, 0.0  ;;  %v3075_v16 = vadd.f32 %v5737_v63, %v3074_v37  ;;  %v3492_v37 = vrot.slane %v3491_v0, 1  ;;  %v3479_v39 = vadd.f32 %v3478_v26, %v3477_v36 }
 0x8a6   :  { %v3614_v40 = vrot.slane %v3613_v31, 4  ;;  %v3497_v14 = vrot.slane %v3496_v58, 2  ;;  %v3611_v57 = vrot.slane %v3610_v41, 1  ;;  %v3712_v34 = vsel %vm3711_vm4, %v3598_v52, %v3710_v51 }
 0x8a7   :  { %v3110_v25 = vmax.f32 %v3075_v16, 0.0  ;;  %v3714_v55 = vsel %vm3713_vm5, %v3605_v43, %v3712_v34 }
 0x8a8   :  { %v3615_v10 = vadd.f32 %v3614_v40, %v3613_v31  ;;  %v3416_v13 = vpop.f32.mrf.mxu3  ;;  %v3498_v20 = vadd.f32 %v3497_v14, %v3496_v58  ;;  %v3612_v49 = vadd.f32 %v3611_v57, %v3610_v41  ;;  %v3493_v58 = vadd.f32 %v3492_v37, %v3491_v0 }
 0x8a9   :  { %v3501_v42 = vsel %vm253_vm0, %v3110_v25, 0.0  ;;  %v3417_v23 = vadd.f32 %v5737_v63, %v3416_v13 }
 0x8aa   :  { %v3616_v47 = vrot.slane %v3615_v10, 2  ;;  %v3502_v6 = vrot.slane %v3501_v42, 4  ;;  %v3499_v12 = vrot.slane %v3498_v20, 1 }
 0x8ab   :  { %v3450_v30 = vmax.f32 %v3417_v23, 0.0 }
 0x8ac   :  { %v3503_v8 = vadd.f32 %v3502_v6, %v3501_v42  ;;  %v3077_v18 = vpop.f32.mrf.mxu0  ;;  %v3617_v22 = vadd.f32 %v3616_v47, %v3615_v10  ;;  %v3716_v10 = vsel %vm3715_vm6, %v3612_v49, %v3714_v55  ;;  %v3500_v13 = vadd.f32 %v3499_v12, %v3498_v20 }
 0x8ad   :  { %v3620_v7 = vsel %vm253_vm0, %v3450_v30, 0.0  ;;  %v3078_v35 = vadd.f32 %v5737_v63, %v3077_v18  ;;  %v3772_v42 = vsel %vm3709_vm3, %v3479_v39, %v3771_v61 }
 0x8ae   :  { %v3504_v50 = vrot.slane %v3503_v8, 2  ;;  %v3621_v29 = vrot.slane %v3620_v7, 4  ;;  %v3618_v2 = vrot.slane %v3617_v22, 1  ;;  %v3773_v11 = vsel %vm3711_vm4, %v3486_v38, %v3772_v42 }
 0x8af   :  { %v3111_v27 = vmax.f32 %v3078_v35, 0.0  ;;  %v3774_v53 = vsel %vm3713_vm5, %v3493_v58, %v3773_v11 }
 0x8b0   :  { %v3622_v62 = vadd.f32 %v3621_v29, %v3620_v7  ;;  %v3505_v28 = vadd.f32 %v3504_v50, %v3503_v8  ;;  %v3619_v33 = vadd.f32 %v3618_v2, %v3617_v22  ;;  %v3775_v60 = vsel %vm3715_vm6, %v3500_v13, %v3774_v53  ;;  %v3419_v41 = vpop.f32.mrf.mxu3 }
 0x8b1   :  { %v3508_v19 = vsel %vm253_vm0, %v3111_v27, 0.0 }
 0x8b2   :  { %v3623_v45 = vrot.slane %v3622_v62, 2  ;;  %v3509_v15 = vrot.slane %v3508_v19, 4  ;;  %v3506_v40 = vrot.slane %v3505_v28, 1  ;;  %v3718_v4 = vsel %vm3717_vm7, %v3619_v33, %v3716_v10 }
 0x8b4   :  { %v3624_v24 = vadd.f32 %v3623_v45, %v3622_v62  ;;  %v3510_v31 = vadd.f32 %v3509_v15, %v3508_v19  ;;  %v3080_v16 = vpop.f32.mrf.mxu0  ;;  %v3507_v23 = vadd.f32 %v3506_v40, %v3505_v28  ;;  %v3420_v62 = vadd.f32 %v5737_v63, %v3419_v41 }
 0x8b5   :  { %v3081_v36 = vadd.f32 %v5737_v63, %v3080_v16 }
 0x8b6   :  { %v3625_v56 = vrot.slane %v3624_v24, 1  ;;  %v3511_v25 = vrot.slane %v3510_v31, 2  ;;  %v3776_v30 = vsel %vm3717_vm7, %v3507_v23, %v3775_v60  ;;  %v3451_v54 = vmax.f32 %v3420_v62, 0.0 }
 0x8b7   :  { %v3112_v3 = vmax.f32 %v3081_v36, 0.0 }
 0x8b8   :  { %v3626_v59 = vadd.f32 %v3625_v56, %v3624_v24  ;;  %v3512_v44 = vadd.f32 %v3511_v25, %v3510_v31  ;;  %v3422_v8 = vpop.f32.mrf.mxu3  ;;  %v3627_v34 = vsel %vm253_vm0, %v3451_v54, 0.0 }
 0x8b9   :  { %v3515_v0 = vsel %vm253_vm0, %v3112_v3, 0.0  ;;  %v3423_v49 = vadd.f32 %v5737_v63, %v3422_v8 }
 0x8ba   :  { %v3513_v47 = vrot.slane %v3512_v44, 1  ;;  %v3720_v6 = vsel %vm3719_vm8, %v3626_v59, %v3718_v4  ;;  %v3516_v28 = vrot.slane %v3515_v0, 4  ;;  %v3628_v4 = vrot.slane %v3627_v34, 4 }
 0x8bb   :  { %4168 = vmatmul.msk.f32.vlgmr.msra.gmra.mxu0 %vm253_vm0, %v3720_v6  ;;  %v3452_v61 = vmax.f32 %v3423_v49, 0.0 }
 0x8bc   :  { %v3514_v46 = vadd.f32 %v3513_v47, %v3512_v44  ;;  %v3083_v48 = vpop.f32.mrf.mxu0  ;;  %v3517_v37 = vadd.f32 %v3516_v28, %v3515_v0 }
 0x8bd   :  { %v3084_v35 = vadd.f32 %v5737_v63, %v3083_v48  ;;  %v3634_v6 = vsel %vm253_vm0, %v3452_v61, 0.0 }
 0x8be   :  { %v3777_v17 = vsel %vm3719_vm8, %v3514_v46, %v3776_v30  ;;  %v3518_v25 = vrot.slane %v3517_v37, 2 }
 0x8bf   :  { %4170 = vmatmul.msk.f32.vlgmr.msra.gmra.mxu1 %vm253_vm0, %v3777_v17  ;;  %v3113_v9 = vmax.f32 %v3084_v35, 0.0  ;;  %v5813_v35 = vadd.f32 %v3628_v4, %v3627_v34 }
 0x8c0   :  { %v3425_v22 = vpop.f32.mrf.mxu3  ;;  %v3519_v48 = vadd.f32 %v3518_v25, %v3517_v37 }
 0x8c1   :  { %v3522_v26 = vsel %vm253_vm0, %v3113_v9, 0.0  ;;  %v3426_v24 = vadd.f32 %v5737_v63, %v3425_v22 }
 0x8c2   :  { %v3523_v45 = vrot.slane %v3522_v26, 4  ;;  %v3520_v62 = vrot.slane %v3519_v48, 1 }
 0x8c3   :  { %v3453_v10 = vmax.f32 %v3426_v24, 0.0 }
 0x8c4   :  { %v3086_v14 = vpop.f32.mrf.mxu0  ;;  %v3524_v39 = vadd.f32 %v3523_v45, %v3522_v26  ;;  %v3521_v34 = vadd.f32 %v3520_v62, %v3519_v48 }
 0x8c5   :  { %v3087_v32 = vadd.f32 %v5737_v63, %v3086_v14  ;;  %v3641_v30 = vsel %vm253_vm0, %v3453_v10, 0.0 }
 0x8c6   :  { %v3525_v42 = vrot.slane %v3524_v39, 2 }
 0x8c7   :  { %v3114_v21 = vmax.f32 %v3087_v32, 0.0  ;;  %v3635_v32 = vrot.slane %v3634_v6, 4 }
 0x8c8   :  { %v3526_v8 = vadd.f32 %v3525_v42, %v3524_v39 }
 0x8c9   :  { %v3529_v19 = vsel %vm253_vm0, %v3114_v21, 0.0  ;;  %v3636_v37 = vadd.f32 %v3635_v32, %v3634_v6 }
 0x8ca   :  { %v3530_v51 = vrot.slane %v3529_v19, 4  ;;  %v3527_v26 = vrot.slane %v3526_v8, 1 }
 0x8cc   :  { %v3089_v18 = vpop.f32.mrf.mxu0  ;;  %v3531_v38 = vadd.f32 %v3530_v51, %v3529_v19 }
 0x8cd   :  { %v3090_v50 = vadd.f32 %v5737_v63, %v3089_v18 }
 0x8ce   :  { %v3532_v11 = vrot.slane %v3531_v38, 2 }
 0x8cf   :  { %v3115_v27 = vmax.f32 %v3090_v50, 0.0 }
 0x8d0   :  { %v3533_v3 = vadd.f32 %v3532_v11, %v3531_v38 }
 0x8d1   :  { %v3536_v52 = vsel %vm253_vm0, %v3115_v27, 0.0  ;;  %v3642_v27 = vrot.slane %v3641_v30, 4 }
 0x8d2   :  { %v3537_v12 = vrot.slane %v3536_v52, 4  ;;  %v3534_v19 = vrot.slane %v3533_v3, 1 }
 0x8d3   :  { %v3643_v49 = vadd.f32 %v3642_v27, %v3641_v30 }
 0x8d4   :  { %v3092_v7 = vpop.f32.mrf.mxu0  ;;  %v3538_v55 = vadd.f32 %v3537_v12, %v3536_v52  ;;  %v3535_v38 = vadd.f32 %v3534_v19, %v3533_v3 }
 0x8d5   :  { %v3093_v29 = vadd.f32 %v5737_v63, %v3092_v7 }
 0x8d6   :  { %v3539_v53 = vrot.slane %v3538_v55, 2 }
 0x8d7   :  { %v3116_v57 = vmax.f32 %v3093_v29, 0.0 }
 0x8d8   :  { %v3540_v29 = vadd.f32 %v3539_v53, %v3538_v55 }
 0x8d9   :  { %v3543_v15 = vsel %vm253_vm0, %v3116_v57, 0.0 }
 0x8da   :  { %v3544_v31 = vrot.slane %v3543_v15, 4  ;;  %v3541_v54 = vrot.slane %v3540_v29, 1 }
 0x8db   :  { %v3428_v1 = vpop.f32.mrf.mxu3 }
 0x8dc   :  { %v3095_v20 = vpop.f32.mrf.mxu0  ;;  %v3429_v58 = vadd.f32 %v5737_v63, %v3428_v1  ;;  %v3545_v13 = vadd.f32 %v3544_v31, %v3543_v15  ;;  %v3630_v15 = vrot.slane %v5813_v35, 2  ;;  %v3542_v61 = vadd.f32 %v3541_v54, %v3540_v29 }
 0x8dd   :  { %v3096_v2 = vadd.f32 %v5737_v63, %v3095_v20 }
 0x8de   :  { %v3454_v60 = vmax.f32 %v3429_v58, 0.0  ;;  %v3546_v17 = vrot.slane %v3545_v13, 2 }
 0x8df   :  { %v3117_v5 = vmax.f32 %v3096_v2, 0.0 }
 0x8e0   :  { %v3648_v9 = vsel %vm253_vm0, %v3454_v60, 0.0  ;;  %v3547_v1 = vadd.f32 %v3546_v17, %v3545_v13  ;;  %v3637_v13 = vrot.slane %v3636_v37, 2 }
 0x8e1   :  { %v3550_v43 = vsel %vm253_vm0, %v3117_v5, 0.0  ;;  %v3649_v52 = vrot.slane %v3648_v9, 4 }
 0x8e2   :  { %v3551_v33 = vrot.slane %v3550_v43, 4  ;;  %v3548_v12 = vrot.slane %v3547_v1, 1 }
 0x8e3   :  { %v3431_v16 = vpop.f32.mrf.mxu3 }
 0x8e4   :  { %v3098_v40 = vpop.f32.mrf.mxu0  ;;  %v3432_v59 = vadd.f32 %v5737_v63, %v3431_v16  ;;  %v3552_v23 = vadd.f32 %v3551_v33, %v3550_v43  ;;  %v3528_v16 = vadd.f32 %v3527_v26, %v3526_v8 }
 0x8e5   :  { %v3099_v56 = vadd.f32 %v5737_v63, %v3098_v40 }
 0x8e6   :  { %v3455_v41 = vmax.f32 %v3432_v59, 0.0  ;;  %v3553_v18 = vrot.slane %v3552_v23, 2  ;;  %v3644_v59 = vrot.slane %v3643_v49, 2 }
 0x8e7   :  { %v3118_v44 = vmax.f32 %v3099_v56, 0.0  ;;  %v3650_v56 = vadd.f32 %v3649_v52, %v3648_v9 }
 0x8e8   :  { %v3655_v57 = vsel %vm253_vm0, %v3455_v41, 0.0  ;;  %v3554_v2 = vadd.f32 %v3553_v18, %v3552_v23  ;;  %v3778_v23 = vsel %vm3707_vm2, %v3528_v16, %v3521_v34  ;;  %v3638_v41 = vadd.f32 %v3637_v13, %v3636_v37  ;;  %v3820_v13 = vld [vmem:[#allocation16] sm:$0xff] }
 0x8e9   :  { %v3557_v47 = vsel %vm253_vm0, %v3118_v44, 0.0  ;;  %v3656_v51 = vrot.slane %v3655_v57, 4  ;;  %v3549_v44 = vadd.f32 %v3548_v12, %v3547_v1  ;;  %v3779_v6 = vsel %vm3709_vm3, %v3535_v38, %v3778_v23 }
 0x8ea   :  { %v3558_v46 = vrot.slane %v3557_v47, 4  ;;  %v3555_v39 = vrot.slane %v3554_v2, 1  ;;  %v3651_v53 = vrot.slane %v3650_v56, 2  ;;  %v3780_v17 = vsel %vm3711_vm4, %v3542_v61, %v3779_v6 }
 0x8eb   :  { %v3434_v14 = vpop.f32.mrf.mxu3  ;;  %v3657_v55 = vadd.f32 %v3656_v51, %v3655_v57  ;;  %v3639_v57 = vrot.slane %v3638_v41, 1 }
 0x8ec   :  { %v3559_v36 = vadd.f32 %v3558_v46, %v3557_v47  ;;  %v3435_v22 = vadd.f32 %v5737_v63, %v3434_v14  ;;  %v3101_v7 = vpop.f32.mrf.mxu0  ;;  %v3556_v4 = vadd.f32 %v3555_v39, %v3554_v2  ;;  %v3652_v29 = vadd.f32 %v3651_v53, %v3650_v56 }
 0x8ed   :  { %v3102_v50 = vadd.f32 %v5737_v63, %v3101_v7  ;;  %v3658_v48 = vrot.slane %v3657_v55, 2  ;;  %v3640_v52 = vadd.f32 %v3639_v57, %v3638_v41  ;;  %v3859_v41 = vld [vmem:[#allocation17] sm:$0xff] }
 0x8ee   :  { %v3560_v21 = vrot.slane %v3559_v36, 2  ;;  %v3456_v0 = vmax.f32 %v3435_v22, 0.0  ;;  %v3645_v22 = vadd.f32 %v3644_v59, %v3643_v49  ;;  %v4194_v59 = vld [vmem:[%s5873_s12] ss:$0 sm:$0xff] }
 0x8ef   :  { %v3119_v20 = vmax.f32 %v3102_v50, 0.0  ;;  %v3631_v50 = vadd.f32 %v3630_v15, %v5813_v35 }
 0x8f0   :  { %v3662_v28 = vsel %vm253_vm0, %v3456_v0, 0.0  ;;  %v3561_v5 = vadd.f32 %v3560_v21, %v3559_v36  ;;  %v3781_v36 = vsel %vm3713_vm5, %v3549_v44, %v3780_v17  ;;  %v3659_v0 = vadd.f32 %v3658_v48, %v3657_v55  ;;  %v3823_v55 = vld [vmem:[#allocation16 + $0x18] sm:$0xff]  ;;  %v3860_v17 = vld [vmem:[#allocation17 + $0x8] sm:$0xff] }
 0x8f1   :  { %v3564_v45 = vsel %vm253_vm0, %v3119_v20, 0.0  ;;  %v3663_v24 = vrot.slane %v3662_v28, 4  ;;  %v3782_v3 = vsel %vm3715_vm6, %v3556_v4, %v3781_v36  ;;  %v3646_v62 = vrot.slane %v3645_v22, 1  ;;  %3846 = vmatpush.msrb.mxu0 %v3823_v55 }
 0x8f2   :  { %v3565_v43 = vrot.slane %v3564_v45, 4  ;;  %v3562_v25 = vrot.slane %v3561_v5, 1  ;;  %v3632_v2 = vrot.slane %v3631_v50, 1  ;;  %v3660_v35 = vrot.slane %v3659_v0, 1 }
 0x8f3   :  { %v3437_v31 = vpop.f32.mrf.mxu3  ;;  %v3664_v42 = vadd.f32 %v3663_v24, %v3662_v28  ;;  %v3653_v28 = vrot.slane %v3652_v29, 1  ;;  %v3647_v15 = vadd.f32 %v3646_v62, %v3645_v22 }
 0x8f4   :  { %v3566_v33 = vadd.f32 %v3565_v43, %v3564_v45  ;;  %v3438_v40 = vadd.f32 %v5737_v63, %v3437_v31  ;;  %v3563_v60 = vadd.f32 %v3562_v25, %v3561_v5  ;;  %v3633_v51 = vadd.f32 %v3632_v2, %v3631_v50 }
 0x8f5   :  { %v3665_v14 = vrot.slane %v3664_v42, 2  ;;  %v3654_v43 = vadd.f32 %v3653_v28, %v3652_v29  ;;  %v3661_v49 = vadd.f32 %v3660_v35, %v3659_v0 }
 0x8f6   :  { %v3567_v58 = vrot.slane %v3566_v33, 2  ;;  %v3457_v10 = vmax.f32 %v3438_v40, 0.0  ;;  %v3783_v21 = vsel %vm3717_vm7, %v3563_v60, %v3782_v3  ;;  %v3721_v12 = vsel %vm3707_vm2, %v3640_v52, %v3633_v51  ;;  %v4196_v3 = vld [vmem:[%s5877_s16] ss:$0 sm:$0xff] }
 0x8f7   :  { %v3666_v20 = vadd.f32 %v3665_v14, %v3664_v42  ;;  %v3722_v16 = vsel %vm3709_vm3, %v3647_v15, %v3721_v12  ;;  %v4195_v14 = vld [vmem:[%s5875_s14] ss:$0 sm:$0xff]  ;;  %s4655_s14 = smov [#allocation19]  }
 0x8f8   :  { %v3568_v11 = vadd.f32 %v3567_v58, %v3566_v33  ;;  %v3669_v47 = vsel %vm253_vm0, %v3457_v10, 0.0  ;;  %v3723_v40 = vsel %vm3711_vm4, %v3654_v43, %v3722_v16  ;;  %v3822_v58 = vld [vmem:[#allocation16 + $0x10] sm:$0xff]  ;;  %v3821_v10 = vld [vmem:[#allocation16 + $0x8] sm:$0xff]  ;;  %s3924_s16 = sshll.u32 %s4655_s14, 4  ;;  %s3925_s16 = int_to_ptr.vmem [resolvable:$true] %s3924_s16 }
 0x8f9   :  { %v3670_v46 = vrot.slane %v3669_v47, 4  ;;  %v3667_v5 = vrot.slane %v3666_v20, 1  ;;  %v3724_v34 = vsel %vm3713_vm5, %v3661_v49, %v3723_v40  ;;  %3847 = vmatpush.msrb.mxu0 %v3822_v58 }
 0x8fa   :  { %v3569_v30 = vrot.slane %v3568_v11, 1 }
 0x8fb   :  { %v3671_v8 = vadd.f32 %v3670_v46, %v3669_v47  ;;  %v3440_v18 = vpop.f32.mrf.mxu3  ;;  %v3668_v24 = vadd.f32 %v3667_v5, %v3666_v20  ;;  %3848 = vmatpush.msrb.mxu0 %v3821_v10  ;;  %v3862_v47 = vld [vmem:[#allocation17 + $0x18] sm:$0xff] }
 0x8fc   :  { %v3441_v7 = vadd.f32 %v5737_v63, %v3440_v18  ;;  %v3570_v32 = vadd.f32 %v3569_v30, %v3568_v11  ;;  %3885 = vmatpush.msrb.mxu1 %v3862_v47  ;;  %v3861_v30 = vld [vmem:[#allocation17 + $0x10] sm:$0xff] }
 0x8fd   :  { %v3672_v9 = vrot.slane %v3671_v8, 2  ;;  %v3725_v56 = vsel %vm3715_vm6, %v3668_v24, %v3724_v34  ;;  %3849 = vmatpush.msrb.mxu0 %v3820_v13 }
 0x8fe   :  { %v3458_v27 = vmax.f32 %v3441_v7, 0.0  ;;  %v3784_v1 = vsel %vm3719_vm8, %v3570_v32, %v3783_v21  ;;  %3886 = vmatpush.msrb.mxu1 %v3861_v30 }
 0x8ff   :  { %4171 = vmatmul.msk.f32.gmra.mxu1 %vm253_vm0, %v3784_v1  ;;  %v3673_v26 = vadd.f32 %v3672_v9, %v3671_v8 }
 0x900   :  { %v3676_v63 = vsel %vm253_vm0, %v3458_v27, 0.0  ;;  %3887 = vmatpush.msrb.mxu1 %v3860_v17 }
 0x901   :  { %v3677_v19 = vrot.slane %v3676_v63, 4  ;;  %v3674_v54 = vrot.slane %v3673_v26, 1 }
 0x902   :  { %3888 = vmatpush.msrb.mxu1 %v3859_v41 }
 0x903   :  { %v3678_v45 = vadd.f32 %v3677_v19, %v3676_v63  ;;  %v3675_v39 = vadd.f32 %v3674_v54, %v3673_v26 }
 0x905   :  { %v3679_v37 = vrot.slane %v3678_v45, 2  ;;  %v3726_v25 = vsel %vm3717_vm7, %v3675_v39, %v3725_v56 }
 0x907   :  { %v3680_v31 = vadd.f32 %v3679_v37, %v3678_v45 }
 0x909   :  { %v3681_v33 = vrot.slane %v3680_v31, 1 }
 0x90b   :  { %v3682_v38 = vadd.f32 %v3681_v33, %v3680_v31 }
 0x90d   :  { %v3727_v61 = vsel %vm3719_vm8, %v3682_v38, %v3726_v25 }
 0x90e   :  { %4169 = vmatmul.msk.f32.gmra.mxu0 %vm253_vm0, %v3727_v61 }
 0x938   :  { %v3749_v44 = vpop.f32.mrf.mxu0 }
 0x93c   :  { %v3806_v42 = vpop.f32.mrf.mxu1 }
 0x93d   :  { %v3807_v23 = vadd.f32 %v3806_v42, %v3749_v44 }
 0x93f   :  { %v3816_v4 = vadd.f32 %v4194_v59, %v3807_v23 }
 0x941   :  { %v3818_v11 = vmax.f32 %v3816_v4, 0.0 }
 0x943   :  { %4172 = vmatmul.msk.f32.vlgmr.msrb.gmra.mxu0 %vm253_vm0, %v3818_v11 }
 0x97c   :  { %v3809_v6 = vpop.f32.mrf.mxu1 }
 0x98b   :  { %v3752_v53 = vpop.f32.mrf.mxu0 }
 0x98c   :  { %v3810_v60 = vadd.f32 %v3809_v6, %v3752_v53 }
 0x98e   :  { %v3817_v46 = vadd.f32 %v4194_v59, %v3810_v60 }
 0x990   :  { %v3819_v48 = vmax.f32 %v3817_v46, 0.0 }
 0x992   :  { %4173 = vmatmul.msk.f32.gmra.mxu0 %vm253_vm0, %v3819_v48 }
 0x9c0   :  { %v3851_v8 = vpop.f32.mrf.mxu0 }
 0x9c1   :  { %v3852_v18 = vadd.f32 %v4195_v14, %v3851_v8 }
 0x9c3   :  { %v3857_v36 = vmax.f32 %v3852_v18, 0.0 }
 0x9c5   :  { %4174 = vmatmul.msk.f32.vlgmr.msrb.gmra.mxu1 %vm253_vm0, %v3857_v36 }
 0xa0f   :  { %v3854_v22 = vpop.f32.mrf.mxu0 }
 0xa10   :  { %v3855_v7 = vadd.f32 %v4195_v14, %v3854_v22 }
 0xa12   :  { %v3858_v32 = vmax.f32 %v3855_v7, 0.0 }
 0xa14   :  { %4175 = vmatmul.msk.f32.gmra.mxu1 %vm253_vm0, %v3858_v32 }
 0xa42   :  { %v3890_v50 = vpop.f32.mrf.mxu1 }
 0xa43   :  { %v3891_v29 = vadd.f32 %v4196_v3, %v3890_v50 }
 0xa45   :  { %3896 = vmax.xlane.f32.xlu1 %v3891_v29 }
 0xa91   :  { %v3893_v9 = vpop.f32.mrf.mxu1 }
 0xa92   :  { %v3894_v21 = vadd.f32 %v4196_v3, %v3893_v9 }
 0xa94   :  { %3898 = vmax.xlane.f32.xlu1 %v3894_v21 }
 0xab8   :  { %v3897_v0 = vpop.xlane.xlu1 %3896 }
 0xab9   :  { %v3900_v27 = vsub.f32 %v3891_v29, %v3897_v0 }
 0xabb   :  { %v3902_v1 = vmul.f32 1.442695, %v3900_v27 }
 0xabd   :  { %4325 = vpow2.f32 %v3902_v1 }
 0xac3   :  { %v4326_v57 = vpop.eup %4325 }
 0xac4   :  { %3906 = vadd.xlane.f32.xlu1 %v4326_v57 }
 0xb07   :  { %v3899_v20 = vpop.xlane.xlu1 %3898 }
 0xb08   :  { %v3901_v62 = vsub.f32 %v3894_v21, %v3899_v20 }
 0xb0a   :  { %v3904_v26 = vmul.f32 1.442695, %v3901_v62 }
 0xb0c   :  { %4327 = vpow2.f32 %v3904_v26 }
 0xb12   :  { %v4328_v63 = vpop.eup %4327 }
 0xb13   :  { %3908 = vadd.xlane.f32.xlu0 %v4328_v63 }
 0xb37   :  { %v3907_v2 = vpop.xlane.xlu1 %3906 }
 0xb38   :  { %4329 = vlog2.f32 %v3907_v2 }
 0xb3e   :  { %v4330_v28 = vpop.eup %4329 }
 0xb3f   :  { %v3911_v19 = vmul.f32 0.6931472, %v4330_v28 }
 0xb41   :  { %v3914_v35 = vadd.f32 %v3911_v19, %v3897_v0 }
 0xb43   :  { %v3916_v52 = vsub.f32 %v3891_v29, %v3914_v35 }
 0xb45   :  { %3918 = vst [vmem:[#allocation19] sm:$0xff] %v3916_v52 }
 0xb86   :  { %v3909_v5 = vpop.xlane.xlu0 %3908 }
 0xb87   :  { %4331 = vlog2.f32 %v3909_v5 }
 0xb8d   :  { %v4332_v45 = vpop.eup %4331 }
 0xb8e   :  { %v3913_v15 = vmul.f32 0.6931472, %v4332_v45 }
 0xb90   :  { %v3915_v54 = vadd.f32 %v3913_v15, %v3899_v20 }
 0xb92   :  { %v3917_v51 = vsub.f32 %v3894_v21, %v3915_v54 }
 0xb94   :  { %3919 = vst [vmem:[#allocation19 + $0x8] sm:$0xff] %v3917_v51 }
 0xb95   :  { %3932 = dma.vmem_to_hbm [thread:$0]  %s3925_s16, 256, %s3927_s22, [#allocation4], %s4644_s19, %s4644_s19, %s4645_s1  }
 0xb96   :  { %4641 = dma.done.wait [#allocation4], 256  }
 0xb97   :  { %4642 = vsyncadd [#allocation4], 4294967040 }
 0xb98   :  { %3937 = vsyncpa [#allocation3], 1 }
 0xb99   :  { %3938 = vsyncpa [#allocation6], 1 }
 0xb9a   :  { %3939 = vsyncpa [#allocation9], 1 }
 0xb9b   :  { %3940 = vsyncpa [#allocation12], 1 }
 0xb9c   :  { %3941 = vsyncpa [#allocation15], 1 }
 0xb9d   :  { %3942 = vsyncpa [#allocation18], 1 }
 0xb9e   :  { %3943 = vsyncpa [#allocation4], 1 }

</bundles_post_ra>
